<compile_context>
chip_gen: v6e
topology: v6e:2x2x1
jax: 0.10.0
libtpu: 0.0.40
codegen_flags: <defaults>
</compile_context>

<pallas_src>
import functools
import math

import numpy as np
import jax
import jax.numpy as jnp
from jax import lax
from jax.experimental import pallas as pl
from jax.experimental.pallas import tpu as pltpu

LOG_LIK_C = float(np.log(np.sqrt(2.0 * np.pi)))
OBS_NOISE_STD = 0.01                                  # compute_KL_loss default
LOG_S2 = math.log(OBS_NOISE_STD)                      # clamp(0.01,1e-6,1e6)
INV_2S2 = 1.0 / (2.0 * OBS_NOISE_STD * OBS_NOISE_STD)

OP_ODE, OP_OBS, OP_NOP = 0, 1, 2

WEIGHT_KEYS = ("ode_wx", "ode_bx", "ode_wh",
               "pm_w1", "pm_b1", "pm_w2", "pm_b2",
               "gru_wi", "gru_wh", "gru_b",
               "wprep", "bprep", "rexp")


def _dot(a, b):
    return jnp.dot(a, b, preferred_element_type=jnp.float32)


def _sigmoid(x):
    # one EUP tanh instead of exp + reciprocal
    return 0.5 * (jnp.tanh(0.5 * x) + 1.0)


# ---------------------------------------------------------------------------
# Fused bidirectional sweep kernel
# ---------------------------------------------------------------------------
def _sweep_kernel(op_ref, ev_ref,                       # scalar prefetch (SMEM)
                  h0_ref, p0_ref, x_ref, m_ref, rowm_ref,
                  ode_wx_ref, ode_bx_ref, ode_wh_ref,
                  pm_w1_ref, pm_b1_ref, pm_w2_ref, pm_b2_ref,
                  gru_wi_ref, gru_wh_ref, gru_b_ref,
                  wprep_ref, bprep_ref, rexp_ref,
                  hout_ref, pout_ref, path_h_ref, path_p_ref, loss_ref,
                  *, D, N_pad, UB, delta_t):
    di = pl.program_id(0)          # direction: 0 = forward time, 1 = reverse
    bi = pl.program_id(1)          # unit block

    def p_model(hh):
        hid = jnp.maximum(_dot(hh, pm_w1_ref[...]) + pm_b1_ref[...], 0.0)
        return jnp.exp(_dot(hid, pm_w2_ref[...]) + pm_b2_ref[...])

    @pl.when(bi == 0)
    def _init():
        hout_ref[...] = h0_ref[...]
        pout_ref[...] = p0_ref[...]
        loss_ref[...] = jnp.zeros_like(loss_ref)

    row_i = lax.broadcasted_iota(jnp.int32, loss_ref.shape, 0)
    lane_i = lax.broadcasted_iota(jnp.int32, loss_ref.shape, 1)

    for s in range(UB):                                  # unrolled sub-steps
        u = bi * UB + s
        op = op_ref[di, u]
        ev = ev_ref[di, u]
        h = hout_ref[...]
        p = pout_ref[...]

        # -------- Euler GRU-ODE step (identical for both time directions) ----
        @pl.when(op == OP_ODE)
        def _ode_step():
            r = _sigmoid(_dot(p, ode_wx_ref[0]) + ode_bx_ref[0]
                         + _dot(h, ode_wh_ref[0]))
            z = _sigmoid(_dot(p, ode_wx_ref[1]) + ode_bx_ref[1]
                         + _dot(h, ode_wh_ref[1]))
            g = jnp.tanh(_dot(p, ode_wx_ref[2]) + ode_bx_ref[2]
                         + _dot(r * h, ode_wh_ref[2]))
            dh = (1.0 - z) * (g - h)
            h_new = h + jnp.clip(delta_t * dh, -1.0, 1.0)   # max_delta_h = 1.0
            hout_ref[...] = h_new
            pout_ref[...] = p_model(h_new)

        # -------- observation update + NLL loss + p refresh + KL loss --------
        @pl.when(op == OP_OBS)
        def _obs_step():
            start = pl.multiple_of(ev * N_pad, N_pad)
            X = x_ref[pl.ds(start, N_pad), :]
            M = m_ref[pl.ds(start, N_pad), :]
            rowm = rowm_ref[pl.ds(start, N_pad), :]        # (N_pad, 1) 0/1 mask

            mean = p[:, :D]
            logvar = jnp.clip(p[:, D:2 * D], -10.0, 10.0)
            sigma = jnp.clip(jnp.exp(0.5 * logvar), 1e-6, 1e6)
            err = jnp.clip((X - mean) / sigma, -1e6, 1e6)
            losses = 0.5 * ((err * err + logvar + 2.0 * LOG_LIK_C) * M)
            l1 = jnp.sum(losses, keepdims=True)            # (1,1)

            # prep network: per-feature block-diagonal weights (no lane concat)
            mrep = _dot(M, rexp_ref[...])                   # (N_pad, D*K)
            gi = (_dot(X, wprep_ref[0]) + _dot(mean, wprep_ref[1])
                  + _dot(logvar, wprep_ref[2]) + _dot(err, wprep_ref[3])
                  + bprep_ref[...])
            gru_in = jnp.maximum(gi, 0.0) * mrep

            # torch.nn.GRUCell gates (r, z, n), un-fused per-gate weights
            gr = _sigmoid(_dot(gru_in, gru_wi_ref[0]) + _dot(h, gru_wh_ref[0])
                          + gru_b_ref[0])
            gz = _sigmoid(_dot(gru_in, gru_wi_ref[1]) + _dot(h, gru_wh_ref[1])
                          + gru_b_ref[1])
            gn = jnp.tanh(_dot(gru_in, gru_wi_ref[2]) + gru_b_ref[2]
                          + gr * (_dot(h, gru_wh_ref[2]) + gru_b_ref[3]))
            h_gru = (1.0 - gz) * gn + gz * h
            h_new = h + rowm * (h_gru - h)                  # only observed rows
            p_new = p_model(h_new)

            # compute_KL_loss(p[i_obs], X_obs, M_obs, logvar=True)
            mean2 = p_new[:, :D]
            var2 = jnp.clip(p_new[:, D:2 * D], -10.0, 10.0)
            std2 = jnp.clip(jnp.exp(0.5 * var2), 1e-6, 1e6)
            kl = ((LOG_S2 - jnp.log(std2))
                  + (std2 * std2 + (mean2 - X) ** 2) * INV_2S2 - 0.5) * M
            l2 = jnp.sum(kl, keepdims=True)

            hout_ref[...] = h_new
            pout_ref[...] = p_new
            # accumulate per-event NLL (row 0, lane=event) and KL (row 1, lane 0)
            m1 = ((row_i == 0) & (lane_i == ev)).astype(jnp.float32)
            m2 = ((row_i == 1) & (lane_i == 0)).astype(jnp.float32)
            loss_ref[...] = loss_ref[...] + m1 * l1 + m2 * l2

        # raw per-unit path entry (merged outside with a host-built weight mat)
        path_h_ref[s] = hout_ref[...]
        path_p_ref[s] = pout_ref[...]


# ---------------------------------------------------------------------------
# Host-side schedule construction (mirrors the reference float accumulation)
# ---------------------------------------------------------------------------
def _build_units_fwd(times, delta_t, T):
    units = []
    ct = 0.0
    for i, ot in enumerate(times):
        ot = float(ot)
        while ct < ot - 0.0001 * delta_t:
            ct = ct + delta_t
            units.append((OP_ODE, 0, ct, 0.0001))
        units.append((OP_OBS, i, ot, 0.01))
    while ct < T:
        ct = ct + delta_t
        units.append((OP_ODE, 0, ct, 0.01))
    return units


def _build_units_bwd(times, delta_t, T, n_ev):
    units = []
    ct = float(T)
    for i, ot in enumerate(list(times)[::-1]):
        ot = float(ot)
        while ct - delta_t > ot - 0.0001 * delta_t:
            ct = ct - delta_t
            units.append((OP_ODE, 0, ct, 0.0001))
        units.append((OP_OBS, n_ev - 1 - i, ot, 0.01))
    while ct - delta_t >= 0.0:
        ct = ct - delta_t
        units.append((OP_ODE, 0, ct, 0.01))
    return units


def _path_merge_weights(units, t0, n_cols):
    """Replays the reference path bookkeeping. Returns (path_t, W) where
    W[slot, 0] weights the initial state and W[slot, u+1] weights the
    post-state of unit u (sequential pairwise averaging of merged entries)."""
    path_t = [float(t0)]
    contribs = [{-1: 1.0}]
    for u, (_, _, t, tol) in enumerate(units):
        if abs(t - float(path_t[-1])) > tol:
            path_t.append(t)
            contribs.append({u: 1.0})
        else:
            last = contribs[-1]
            for k in list(last):
                last[k] *= 0.5
            last[u] = last.get(u, 0.0) + 0.5
    W = np.zeros((len(path_t), n_cols + 1), np.float32)
    for s, dct in enumerate(contribs):
        for k, w in dct.items():
            W[s, k + 1] = w
    return path_t, W


# ---------------------------------------------------------------------------
# Parameter construction (mirrors __init__ shapes + init_weights)
# ---------------------------------------------------------------------------
def init_params(key, D, H, P, K):
    ks = jax.random.split(key, 12)

    def xavier(k, shape):
        fan_in, fan_out = shape
        lim = math.sqrt(6.0 / (fan_in + fan_out))
        return jax.random.uniform(k, shape, jnp.float32, -lim, lim)

    def unif(k, shape, a):
        return jax.random.uniform(k, shape, jnp.float32, -a, a)

    p = {}
    # GRUODECell(2*D, H): Linear weights xavier, biases 0.05
    p["ode_wx"] = jnp.stack([xavier(ks[0], (2 * D, H)),
                             xavier(ks[1], (2 * D, H)),
                             xavier(ks[2], (2 * D, H))])          # (3, 2D, H)
    p["ode_bx"] = jnp.full((3, 1, H), 0.05, jnp.float32)
    p["ode_wh"] = jnp.stack([xavier(ks[3], (H, H)),
                             xavier(ks[4], (H, H)),
                             xavier(ks[5], (H, H))])              # (3, H, H)
    # p_model_pre: Linear(H,P) -> ReLU -> Linear(P,2D)
    p["pm_w1"] = xavier(ks[6], (H, P))
    p["pm_b1"] = jnp.full((1, P), 0.05, jnp.float32)
    p["pm_w2"] = xavier(ks[7], (P, 2 * D))
    p["pm_b2"] = jnp.full((1, 2 * D), 0.05, jnp.float32)
    # torch.nn.GRUCell(K*D, H) default init U(-1/sqrt(H), 1/sqrt(H))
    a = 1.0 / math.sqrt(H)
    p["gru_wi"] = unif(ks[8], (3, K * D, H), a)                   # r, z, n
    p["gru_wh"] = unif(ks[9], (3, H, H), a)
    p["gru_b"] = unif(ks[10], (4, 1, H), a)                       # br, bz, bin, bhn
    # w_prep (D,4,K) -> per-feature block-diagonal (4, D, D*K); bias_prep 0.1
    std = math.sqrt(2.0 / (4 + K))
    w_prep_raw = np.asarray(std * jax.random.normal(ks[11], (D, 4, K), jnp.float32))
    wprep = np.zeros((4, D, D * K), np.float32)
    for f in range(4):
        for d in range(D):
            wprep[f, d, d * K:(d + 1) * K] = w_prep_raw[d, f]
    p["wprep"] = jnp.asarray(wprep)
    p["bprep"] = jnp.full((1, D * K), 0.1, jnp.float32)
    rexp = np.zeros((D, D * K), np.float32)                       # M -> Mrep expander
    for d in range(D):
        rexp[d, d * K:(d + 1) * K] = 1.0
    p["rexp"] = jnp.asarray(rexp)
    return p


# ---------------------------------------------------------------------------
# Full forward pass (return_path=True semantics; solver='euler', impute=True)
# ---------------------------------------------------------------------------
def forward(params, times, time_ptr, X, M, obs_idx, delta_t, T, key,
            mixing=1.0, unroll=4):
    obs_idx = np.asarray(obs_idx)
    time_ptr = np.asarray(time_ptr)
    X_np = np.asarray(X, np.float32)
    M_np = np.asarray(M, np.float32)
    delta_t = float(delta_t)
    T = float(T)

    N = int(obs_idx.max()) + 1
    D = X_np.shape[1]
    H = params["pm_w1"].shape[0]
    n_ev = len(times)
    # TODO(synk): per-event losses are packed into one vreg row -> n_ev <= 128.
    assert 1 <= n_ev <= 128
    N_pad = max(8, -(-N // 8) * 8)                 # fill all 8 vreg sublanes

    # dense per-event observation operands, scattered once on the host
    X_all = np.zeros((n_ev, N_pad, D), np.float32)
    M_all = np.zeros((n_ev, N_pad, D), np.float32)
    R_all = np.zeros((n_ev, N_pad, 1), np.float32)
    for i in range(n_ev):
        s, e = int(time_ptr[i]), int(time_ptr[i + 1])
        idx = obs_idx[s:e]
        X_all[i, idx] = X_np[s:e]
        M_all[i, idx] = M_np[s:e]
        R_all[i, idx, 0] = 1.0

    # host-side unit schedules (float time-stepping control flow of reference)
    units_f = _build_units_fwd(times, delta_t, T)
    units_b = _build_units_bwd(times, delta_t, T, n_ev)
    U = max(len(units_f), len(units_b), 1)
    U_pad = -(-U // unroll) * unroll
    sched_op = np.full((2, U_pad), OP_NOP, np.int32)
    sched_ev = np.zeros((2, U_pad), np.int32)
    for d, units in enumerate((units_f, units_b)):
        for u, (op, ev, _, _) in enumerate(units):
            sched_op[d, u] = op
            sched_ev[d, u] = ev

    path_t_f, W_f = _path_merge_weights(units_f, 0.0, U_pad)
    _, W_b = _path_merge_weights(units_b, T, U_pad)

    # initial states (torch.nn.init.uniform_) and p0 = p_model(h0)
    k_f, k_b = jax.random.split(key)
    h0 = jnp.stack([jax.random.uniform(k_f, (N_pad, H), jnp.float32),
                    jax.random.uniform(k_b, (N_pad, H), jnp.float32)])
    hid0 = jnp.maximum(h0 @ params["pm_w1"] + params["pm_b1"], 0.0)
    p0 = jnp.exp(hid0 @ params["pm_w2"] + params["pm_b2"])

    weights = tuple(params[k] for k in WEIGHT_KEYS)
    kernel = functools.partial(_sweep_kernel, D=D, N_pad=N_pad, UB=unroll,
                               delta_t=delta_t)

    def idx_dir3(d, b, *_):
        return (d, 0, 0)

    def idx_c2(d, b, *_):
        return (0, 0)

    def idx_c3(d, b, *_):
        return (0, 0, 0)

    def idx_path(d, b, *_):
        return (d, b, 0, 0)

    in_specs = ([pl.BlockSpec((None, N_pad, H), idx_dir3),
                 pl.BlockSpec((None, N_pad, 2 * D), idx_dir3),
                 pl.BlockSpec((n_ev * N_pad, D), idx_c2),
                 pl.BlockSpec((n_ev * N_pad, D), idx_c2),
                 pl.BlockSpec((n_ev * N_pad, 1), idx_c2)]
                + [pl.BlockSpec(w.shape, idx_c2 if w.ndim == 2 else idx_c3)
                   for w in weights])

    out_shape = (jax.ShapeDtypeStruct((2, N_pad, H), jnp.float32),
                 jax.ShapeDtypeStruct((2, N_pad, 2 * D), jnp.float32),
                 jax.ShapeDtypeStruct((2, U_pad, N_pad, H), jnp.float32),
                 jax.ShapeDtypeStruct((2, U_pad, N_pad, 2 * D), jnp.float32),
                 jax.ShapeDtypeStruct((2, 8, 128), jnp.float32))
    out_specs = (pl.BlockSpec((None, N_pad, H), idx_dir3),
                 pl.BlockSpec((None, N_pad, 2 * D), idx_dir3),
                 pl.BlockSpec((None, unroll, N_pad, H), idx_path),
                 pl.BlockSpec((None, unroll, N_pad, 2 * D), idx_path),
                 pl.BlockSpec((None, 8, 128), idx_dir3))

    grid_spec = pltpu.PrefetchScalarGridSpec(
        num_scalar_prefetch=2,
        grid=(2, U_pad // unroll),
        in_specs=in_specs,
        out_specs=out_specs)

    h_fin, _, raw_h, raw_p, loss_blk = pl.pallas_call(
        kernel,
        out_shape=out_shape,
        grid_spec=grid_spec,
        compiler_params=pltpu.CompilerParams(
            dimension_semantics=("parallel", "arbitrary")),
    )(jnp.asarray(sched_op), jnp.asarray(sched_ev),
      h0, p0,
      jnp.asarray(X_all.reshape(n_ev * N_pad, D)),
      jnp.asarray(M_all.reshape(n_ev * N_pad, D)),
      jnp.asarray(R_all.reshape(n_ev * N_pad, 1)),
      *weights)

    # ---- path merging: one matmul per path (replaces per-step host averaging)
    Wf = jnp.asarray(W_f)
    Wb = jnp.asarray(W_b)
    raw_h_f = jnp.concatenate([h0[0][None], raw_h[0]], axis=0)
    raw_p_f = jnp.concatenate([p0[0][None], raw_p[0]], axis=0)
    raw_p_b = jnp.concatenate([p0[1][None], raw_p[1]], axis=0)
    path_h_fwd = jnp.tensordot(Wf, raw_h_f, axes=1)[:, :N, :]
    path_p_fwd = jnp.tensordot(Wf, raw_p_f, axes=1)[:, :N, :]
    path_p_bwd = jnp.tensordot(Wb, raw_p_b, axes=1)[:, :N, :]

    # ---- losses + MinMaxScaler weighting (weight_add) ----
    l1_f = loss_blk[0, 0, :n_ev]
    l1_b = loss_blk[1, 0, :n_ev]               # indexed by event id
    loss2 = loss_blk[0, 1, 0] + loss_blk[1, 1, 0]
    if n_ev > 1:
        w_ev = jnp.arange(n_ev, dtype=jnp.float32) / float(n_ev - 1)
    else:
        w_ev = jnp.ones((1,), jnp.float32)
    final_loss = jnp.sum(l1_f * w_ev + l1_b * (1.0 - w_ev)) + loss2 * mixing

    n_p = min(path_p_fwd.shape[0], path_p_bwd.shape[0])
    if n_p > 1:
        w_p = (jnp.arange(n_p, dtype=jnp.float32) / float(n_p - 1))[:, None, None]
    else:
        w_p = jnp.ones((1, 1, 1), jnp.float32)
    final_p = path_p_fwd[:n_p] * w_p + path_p_bwd[::-1][:n_p] * (1.0 - w_p)

    return (h_fin[0, :N, :], final_loss, np.array(path_t_f), final_p,
            path_h_fwd)


# ---------------------------------------------------------------------------
if __name__ == "__main__":
    D, H, P, K = 4, 32, 32, 4       # input_size, hidden_size, p_hidden, prep_hidden
    key = jax.random.PRNGKey(0)
    kp, kx, km, kh = jax.random.split(key, 4)
    params = init_params(kp, D, H, P, K)

    times = [0.1, 0.3, 0.5]
    time_ptr = np.array([0, 3, 5, 8], dtype=np.int32)
    obs_idx = np.array([0, 1, 2, 1, 3, 0, 2, 3], dtype=np.int32)
    Xobs = jax.random.normal(kx, (8, D), jnp.float32)
    Mobs = (jax.random.uniform(km, (8, D)) > 0.3).astype(jnp.float32)
    delta_t = 0.05
    T = 0.6

    h_final, final_loss, path_t, final_p, path_h = forward(
        params, times, time_ptr, Xobs, Mobs, obs_idx, delta_t, T,
        key=kh, mixing=1.0, unroll=4)

    jax.block_until_ready((h_final, final_loss, final_p, path_h))
    assert np.isfinite(float(final_loss))
    assert h_final.shape == (int(obs_idx.max()) + 1, H)
    print("KERNEL_OK")
</pallas_src>

<mosaic_0001>
module attributes {stable_mosaic.version = 11 : i64} {
  func.func @_sweep_kernel(%arg0: i32, %arg1: i32, %arg2: memref<2x16xi32, #tpu.memory_space<smem>>, %arg3: memref<2x16xi32, #tpu.memory_space<smem>>, %arg4: memref<1x8x32xf32, #tpu.memory_space<vmem>>, %arg5: memref<1x8x8xf32, #tpu.memory_space<vmem>>, %arg6: memref<24x4xf32, #tpu.memory_space<vmem>>, %arg7: memref<24x4xf32, #tpu.memory_space<vmem>>, %arg8: memref<24x1xf32, #tpu.memory_space<vmem>>, %arg9: memref<3x8x32xf32, #tpu.memory_space<vmem>>, %arg10: memref<3x1x32xf32, #tpu.memory_space<vmem>>, %arg11: memref<3x32x32xf32, #tpu.memory_space<vmem>>, %arg12: memref<32x32xf32, #tpu.memory_space<vmem>>, %arg13: memref<1x32xf32, #tpu.memory_space<vmem>>, %arg14: memref<32x8xf32, #tpu.memory_space<vmem>>, %arg15: memref<1x8xf32, #tpu.memory_space<vmem>>, %arg16: memref<3x16x32xf32, #tpu.memory_space<vmem>>, %arg17: memref<3x32x32xf32, #tpu.memory_space<vmem>>, %arg18: memref<4x1x32xf32, #tpu.memory_space<vmem>>, %arg19: memref<4x4x16xf32, #tpu.memory_space<vmem>>, %arg20: memref<1x16xf32, #tpu.memory_space<vmem>>, %arg21: memref<4x16xf32, #tpu.memory_space<vmem>>, %arg22: memref<1x8x32xf32, #tpu.memory_space<vmem>>, %arg23: memref<1x8x8xf32, #tpu.memory_space<vmem>>, %arg24: memref<1x4x8x32xf32, #tpu.memory_space<vmem>>, %arg25: memref<1x4x8x8xf32, #tpu.memory_space<vmem>>, %arg26: memref<1x8x128xf32, #tpu.memory_space<vmem>>) attributes {dimension_semantics = [#tpu.dimension_semantics<parallel>, #tpu.dimension_semantics<arbitrary>], iteration_bounds = array<i64: 2, 4>, scalar_prefetch = 2 : i64, scratch_operands = 0 : i64, tpu.core_type = #tpu.core_type<tc>, window_params = [{transform_indices = @transform_0, window_bounds = array<i64: 1, 8, 32>}, {transform_indices = @transform_1, window_bounds = array<i64: 1, 8, 8>}, {pipeline_mode = #tpu.pipeline_mode<synchronous>, transform_indices = @transform_2, window_bounds = array<i64: 24, 4>}, {pipeline_mode = #tpu.pipeline_mode<synchronous>, transform_indices = @transform_3, window_bounds = array<i64: 24, 4>}, {pipeline_mode = #tpu.pipeline_mode<synchronous>, transform_indices = @transform_4, window_bounds = array<i64: 24, 1>}, {pipeline_mode = #tpu.pipeline_mode<synchronous>, transform_indices = @transform_5, window_bounds = array<i64: 3, 8, 32>}, {pipeline_mode = #tpu.pipeline_mode<synchronous>, transform_indices = @transform_6, window_bounds = array<i64: 3, 1, 32>}, {pipeline_mode = #tpu.pipeline_mode<synchronous>, transform_indices = @transform_7, window_bounds = array<i64: 3, 32, 32>}, {pipeline_mode = #tpu.pipeline_mode<synchronous>, transform_indices = @transform_8, window_bounds = array<i64: 32, 32>}, {pipeline_mode = #tpu.pipeline_mode<synchronous>, transform_indices = @transform_9, window_bounds = array<i64: 1, 32>}, {pipeline_mode = #tpu.pipeline_mode<synchronous>, transform_indices = @transform_10, window_bounds = array<i64: 32, 8>}, {pipeline_mode = #tpu.pipeline_mode<synchronous>, transform_indices = @transform_11, window_bounds = array<i64: 1, 8>}, {pipeline_mode = #tpu.pipeline_mode<synchronous>, transform_indices = @transform_12, window_bounds = array<i64: 3, 16, 32>}, {pipeline_mode = #tpu.pipeline_mode<synchronous>, transform_indices = @transform_13, window_bounds = array<i64: 3, 32, 32>}, {pipeline_mode = #tpu.pipeline_mode<synchronous>, transform_indices = @transform_14, window_bounds = array<i64: 4, 1, 32>}, {pipeline_mode = #tpu.pipeline_mode<synchronous>, transform_indices = @transform_15, window_bounds = array<i64: 4, 4, 16>}, {pipeline_mode = #tpu.pipeline_mode<synchronous>, transform_indices = @transform_16, window_bounds = array<i64: 1, 16>}, {pipeline_mode = #tpu.pipeline_mode<synchronous>, transform_indices = @transform_17, window_bounds = array<i64: 4, 16>}, {transform_indices = @transform_18, window_bounds = array<i64: 1, 8, 32>}, {transform_indices = @transform_19, window_bounds = array<i64: 1, 8, 8>}, {transform_indices = @transform_20, window_bounds = array<i64: 1, 4, 8, 32>}, {transform_indices = @transform_21, window_bounds = array<i64: 1, 4, 8, 8>}, {transform_indices = @transform_22, window_bounds = array<i64: 1, 8, 128>}]} {
    %c0_i32 = arith.constant 0 : i32
    %0 = arith.cmpi eq, %arg1, %c0_i32 : i32
    %1 = arith.extui %0 : i1 to i32
    %c0_i32_0 = arith.constant 0 : i32
    %2 = arith.cmpi ne, %1, %c0_i32_0 : i32
    scf.if %2 {
      %c0_97 = arith.constant 0 : index
      %c0_98 = arith.constant 0 : index
      %c0_99 = arith.constant 0 : index
      %117 = vector.load %arg4[%c0_97, %c0_98, %c0_99] : memref<1x8x32xf32, #tpu.memory_space<vmem>>, vector<1x8x32xf32>
      %118 = vector.shape_cast %117 : vector<1x8x32xf32> to vector<8x32xf32>
      %c0_100 = arith.constant 0 : index
      %c0_101 = arith.constant 0 : index
      %c0_102 = arith.constant 0 : index
      %119 = vector.load %arg22[%c0_100, %c0_101, %c0_102] : memref<1x8x32xf32, #tpu.memory_space<vmem>>, vector<1x8x32xf32>
      %120 = vector.shape_cast %119 : vector<1x8x32xf32> to vector<8x32xf32>
      %121 = vector.shape_cast %118 : vector<8x32xf32> to vector<1x8x32xf32>
      tpu.vector_store %arg22[%c0_100, %c0_101, %c0_102], %121 {strides = array<i32>} : memref<1x8x32xf32, #tpu.memory_space<vmem>>, vector<1x8x32xf32>,
      %c0_103 = arith.constant 0 : index
      %c0_104 = arith.constant 0 : index
      %c0_105 = arith.constant 0 : index
      %122 = vector.load %arg5[%c0_103, %c0_104, %c0_105] : memref<1x8x8xf32, #tpu.memory_space<vmem>>, vector<1x8x8xf32>
      %123 = vector.shape_cast %122 : vector<1x8x8xf32> to vector<8x8xf32>
      %c0_106 = arith.constant 0 : index
      %c0_107 = arith.constant 0 : index
      %c0_108 = arith.constant 0 : index
      %124 = vector.load %arg23[%c0_106, %c0_107, %c0_108] : memref<1x8x8xf32, #tpu.memory_space<vmem>>, vector<1x8x8xf32>
      %125 = vector.shape_cast %124 : vector<1x8x8xf32> to vector<8x8xf32>
      %126 = vector.shape_cast %123 : vector<8x8xf32> to vector<1x8x8xf32>
      tpu.vector_store %arg23[%c0_106, %c0_107, %c0_108], %126 {strides = array<i32>} : memref<1x8x8xf32, #tpu.memory_space<vmem>>, vector<1x8x8xf32>,
      %cst = arith.constant 0.000000e+00 : f32
      %127 = vector.broadcast %cst : f32 to vector<8x128xf32>
      %c0_109 = arith.constant 0 : index
      %c0_110 = arith.constant 0 : index
      %c0_111 = arith.constant 0 : index
      %128 = vector.load %arg26[%c0_109, %c0_110, %c0_111] : memref<1x8x128xf32, #tpu.memory_space<vmem>>, vector<1x8x128xf32>
      %129 = vector.shape_cast %128 : vector<1x8x128xf32> to vector<8x128xf32>
      %130 = vector.shape_cast %127 : vector<8x128xf32> to vector<1x8x128xf32>
      tpu.vector_store %arg26[%c0_109, %c0_110, %c0_111], %130 {strides = array<i32>} : memref<1x8x128xf32, #tpu.memory_space<vmem>>, vector<1x8x128xf32>,
    } else {
    }
    %3 = tpu.iota {dimensions = array<i32: 0>} : vector<8x128xi32>
    %4 = tpu.iota {dimensions = array<i32: 1>} : vector<8x128xi32>
    %c4_i32 = arith.constant 4 : i32
    %5 = arith.muli %arg1, %c4_i32 : i32
    %c0_i32_1 = arith.constant 0 : i32
    %6 = arith.addi %5, %c0_i32_1 : i32
    %7 = arith.index_cast %arg0 : i32 to index
    %8 = arith.index_cast %6 : i32 to index
    %9 = memref.load %arg2[%7, %8] : memref<2x16xi32, #tpu.memory_space<smem>>
    %10 = arith.index_cast %arg0 : i32 to index
    %11 = arith.index_cast %6 : i32 to index
    %12 = memref.load %arg3[%10, %11] : memref<2x16xi32, #tpu.memory_space<smem>>
    %c0 = arith.constant 0 : index
    %c0_2 = arith.constant 0 : index
    %c0_3 = arith.constant 0 : index
    %13 = vector.load %arg22[%c0, %c0_2, %c0_3] : memref<1x8x32xf32, #tpu.memory_space<vmem>>, vector<1x8x32xf32>
    %14 = vector.shape_cast %13 : vector<1x8x32xf32> to vector<8x32xf32>
    %c0_4 = arith.constant 0 : index
    %c0_5 = arith.constant 0 : index
    %c0_6 = arith.constant 0 : index
    %15 = vector.load %arg23[%c0_4, %c0_5, %c0_6] : memref<1x8x8xf32, #tpu.memory_space<vmem>>, vector<1x8x8xf32>
    %16 = vector.shape_cast %15 : vector<1x8x8xf32> to vector<8x8xf32>
    %c0_i32_7 = arith.constant 0 : i32
    %17 = arith.cmpi eq, %9, %c0_i32_7 : i32
    %18 = arith.extui %17 : i1 to i32
    %c0_i32_8 = arith.constant 0 : i32
    %19 = arith.cmpi ne, %18, %c0_i32_8 : i32
    scf.if %19 {
      %c0_97 = arith.constant 0 : index
      %c0_98 = arith.constant 0 : index
      %c0_99 = arith.constant 0 : index
      %117 = vector.load %arg9[%c0_97, %c0_98, %c0_99] : memref<3x8x32xf32, #tpu.memory_space<vmem>>, vector<1x8x32xf32>
      %118 = vector.shape_cast %117 : vector<1x8x32xf32> to vector<8x32xf32>
      %cst = arith.constant dense<0.000000e+00> : vector<8x32xf32>
      %119 = tpu.matmul %16, %118, %cst {dimension_numbers = #tpu.dot_dimension_numbers<[1], [0], [0], [1], [0, 0, 1, 1], [], []>} : vector<8x8xf32>, vector<8x32xf32>, vector<8x32xf32> -> vector<8x32xf32>
      %c0_100 = arith.constant 0 : index
      %c0_101 = arith.constant 0 : index
      %c0_102 = arith.constant 0 : index
      %120 = vector.load %arg10[%c0_100, %c0_101, %c0_102] : memref<3x1x32xf32, #tpu.memory_space<vmem>>, vector<1x1x32xf32>
      %121 = vector.shape_cast %120 : vector<1x1x32xf32> to vector<1x32xf32>
      %122 = vector.broadcast %121 : vector<1x32xf32> to vector<8x32xf32>
      %123 = arith.addf %119, %122 : vector<8x32xf32>
      %c0_103 = arith.constant 0 : index
      %c0_104 = arith.constant 0 : index
      %c0_105 = arith.constant 0 : index
      %124 = vector.load %arg11[%c0_103, %c0_104, %c0_105] : memref<3x32x32xf32, #tpu.memory_space<vmem>>, vector<1x32x32xf32>
      %125 = vector.shape_cast %124 : vector<1x32x32xf32> to vector<32x32xf32>
      %cst_106 = arith.constant dense<0.000000e+00> : vector<8x32xf32>
      %126 = tpu.matmul %14, %125, %cst_106 {dimension_numbers = #tpu.dot_dimension_numbers<[1], [0], [0], [1], [0, 0, 1, 1], [], []>} : vector<8x32xf32>, vector<32x32xf32>, vector<8x32xf32> -> vector<8x32xf32>
      %127 = arith.addf %123, %126 : vector<8x32xf32>
      %cst_107 = arith.constant 5.000000e-01 : f32
      %128 = vector.broadcast %cst_107 : f32 to vector<8x32xf32>
      %129 = arith.mulf %128, %127 : vector<8x32xf32>
      %130 = math.tanh %129 : vector<8x32xf32>
      %cst_108 = arith.constant 1.000000e+00 : f32
      %131 = vector.broadcast %cst_108 : f32 to vector<8x32xf32>
      %132 = arith.addf %130, %131 : vector<8x32xf32>
      %cst_109 = arith.constant 5.000000e-01 : f32
      %133 = vector.broadcast %cst_109 : f32 to vector<8x32xf32>
      %134 = arith.mulf %133, %132 : vector<8x32xf32>
      %c1_110 = arith.constant 1 : index
      %c0_111 = arith.constant 0 : index
      %c0_112 = arith.constant 0 : index
      %135 = vector.load %arg9[%c1_110, %c0_111, %c0_112] : memref<3x8x32xf32, #tpu.memory_space<vmem>>, vector<1x8x32xf32>
      %136 = vector.shape_cast %135 : vector<1x8x32xf32> to vector<8x32xf32>
      %cst_113 = arith.constant dense<0.000000e+00> : vector<8x32xf32>
      %137 = tpu.matmul %16, %136, %cst_113 {dimension_numbers = #tpu.dot_dimension_numbers<[1], [0], [0], [1], [0, 0, 1, 1], [], []>} : vector<8x8xf32>, vector<8x32xf32>, vector<8x32xf32> -> vector<8x32xf32>
      %c1_114 = arith.constant 1 : index
      %c0_115 = arith.constant 0 : index
      %c0_116 = arith.constant 0 : index
      %138 = vector.load %arg10[%c1_114, %c0_115, %c0_116] : memref<3x1x32xf32, #tpu.memory_space<vmem>>, vector<1x1x32xf32>
      %139 = vector.shape_cast %138 : vector<1x1x32xf32> to vector<1x32xf32>
      %140 = vector.broadcast %139 : vector<1x32xf32> to vector<8x32xf32>
      %141 = arith.addf %137, %140 : vector<8x32xf32>
      %c1_117 = arith.constant 1 : index
      %c0_118 = arith.constant 0 : index
      %c0_119 = arith.constant 0 : index
      %142 = vector.load %arg11[%c1_117, %c0_118, %c0_119] : memref<3x32x32xf32, #tpu.memory_space<vmem>>, vector<1x32x32xf32>
      %143 = vector.shape_cast %142 : vector<1x32x32xf32> to vector<32x32xf32>
      %cst_120 = arith.constant dense<0.000000e+00> : vector<8x32xf32>
      %144 = tpu.matmul %14, %143, %cst_120 {dimension_numbers = #tpu.dot_dimension_numbers<[1], [0], [0], [1], [0, 0, 1, 1], [], []>} : vector<8x32xf32>, vector<32x32xf32>, vector<8x32xf32> -> vector<8x32xf32>
      %145 = arith.addf %141, %144 : vector<8x32xf32>
      %cst_121 = arith.constant 5.000000e-01 : f32
      %146 = vector.broadcast %cst_121 : f32 to vector<8x32xf32>
      %147 = arith.mulf %146, %145 : vector<8x32xf32>
      %148 = math.tanh %147 : vector<8x32xf32>
      %cst_122 = arith.constant 1.000000e+00 : f32
      %149 = vector.broadcast %cst_122 : f32 to vector<8x32xf32>
      %150 = arith.addf %148, %149 : vector<8x32xf32>
      %cst_123 = arith.constant 5.000000e-01 : f32
      %151 = vector.broadcast %cst_123 : f32 to vector<8x32xf32>
      %152 = arith.mulf %151, %150 : vector<8x32xf32>
      %c2_124 = arith.constant 2 : index
      %c0_125 = arith.constant 0 : index
      %c0_126 = arith.constant 0 : index
      %153 = vector.load %arg9[%c2_124, %c0_125, %c0_126] : memref<3x8x32xf32, #tpu.memory_space<vmem>>, vector<1x8x32xf32>
      %154 = vector.shape_cast %153 : vector<1x8x32xf32> to vector<8x32xf32>
      %cst_127 = arith.constant dense<0.000000e+00> : vector<8x32xf32>
      %155 = tpu.matmul %16, %154, %cst_127 {dimension_numbers = #tpu.dot_dimension_numbers<[1], [0], [0], [1], [0, 0, 1, 1], [], []>} : vector<8x8xf32>, vector<8x32xf32>, vector<8x32xf32> -> vector<8x32xf32>
      %c2_128 = arith.constant 2 : index
      %c0_129 = arith.constant 0 : index
      %c0_130 = arith.constant 0 : index
      %156 = vector.load %arg10[%c2_128, %c0_129, %c0_130] : memref<3x1x32xf32, #tpu.memory_space<vmem>>, vector<1x1x32xf32>
      %157 = vector.shape_cast %156 : vector<1x1x32xf32> to vector<1x32xf32>
      %158 = vector.broadcast %157 : vector<1x32xf32> to vector<8x32xf32>
      %159 = arith.addf %155, %158 : vector<8x32xf32>
      %160 = arith.mulf %134, %14 : vector<8x32xf32>
      %c2_131 = arith.constant 2 : index
      %c0_132 = arith.constant 0 : index
      %c0_133 = arith.constant 0 : index
      %161 = vector.load %arg11[%c2_131, %c0_132, %c0_133] : memref<3x32x32xf32, #tpu.memory_space<vmem>>, vector<1x32x32xf32>
      %162 = vector.shape_cast %161 : vector<1x32x32xf32> to vector<32x32xf32>
      %cst_134 = arith.constant dense<0.000000e+00> : vector<8x32xf32>
      %163 = tpu.matmul %160, %162, %cst_134 {dimension_numbers = #tpu.dot_dimension_numbers<[1], [0], [0], [1], [0, 0, 1, 1], [], []>} : vector<8x32xf32>, vector<32x32xf32>, vector<8x32xf32> -> vector<8x32xf32>
      %164 = arith.addf %159, %163 : vector<8x32xf32>
      %165 = math.tanh %164 : vector<8x32xf32>
      %cst_135 = arith.constant 1.000000e+00 : f32
      %166 = vector.broadcast %cst_135 : f32 to vector<8x32xf32>
      %167 = arith.subf %166, %152 : vector<8x32xf32>
      %168 = arith.subf %165, %14 : vector<8x32xf32>
      %169 = arith.mulf %167, %168 : vector<8x32xf32>
      %cst_136 = arith.constant 5.000000e-02 : f32
      %170 = vector.broadcast %cst_136 : f32 to vector<8x32xf32>
      %171 = arith.mulf %170, %169 : vector<8x32xf32>
      %cst_137 = arith.constant -1.000000e+00 : f32
      %cst_138 = arith.constant 1.000000e+00 : f32
      %172 = vector.broadcast %cst_137 : f32 to vector<8x32xf32>
      %173 = arith.maximumf %172, %171 : vector<8x32xf32>
      %174 = vector.broadcast %cst_138 : f32 to vector<8x32xf32>
      %175 = arith.minimumf %174, %173 : vector<8x32xf32>
      %176 = arith.addf %14, %175 : vector<8x32xf32>
      %c0_139 = arith.constant 0 : index
      %c0_140 = arith.constant 0 : index
      %c0_141 = arith.constant 0 : index
      %177 = vector.load %arg22[%c0_139, %c0_140, %c0_141] : memref<1x8x32xf32, #tpu.memory_space<vmem>>, vector<1x8x32xf32>
      %178 = vector.shape_cast %177 : vector<1x8x32xf32> to vector<8x32xf32>
      %179 = vector.shape_cast %176 : vector<8x32xf32> to vector<1x8x32xf32>
      tpu.vector_store %arg22[%c0_139, %c0_140, %c0_141], %179 {strides = array<i32>} : memref<1x8x32xf32, #tpu.memory_space<vmem>>, vector<1x8x32xf32>,
      %c0_142 = arith.constant 0 : index
      %c0_143 = arith.constant 0 : index
      %180 = vector.load %arg12[%c0_142, %c0_143] : memref<32x32xf32, #tpu.memory_space<vmem>>, vector<32x32xf32>
      %cst_144 = arith.constant dense<0.000000e+00> : vector<8x32xf32>
      %181 = tpu.matmul %176, %180, %cst_144 {dimension_numbers = #tpu.dot_dimension_numbers<[1], [0], [0], [1], [0, 0, 1, 1], [], []>} : vector<8x32xf32>, vector<32x32xf32>, vector<8x32xf32> -> vector<8x32xf32>
      %c0_145 = arith.constant 0 : index
      %c0_146 = arith.constant 0 : index
      %182 = vector.load %arg13[%c0_145, %c0_146] : memref<1x32xf32, #tpu.memory_space<vmem>>, vector<1x32xf32>
      %183 = vector.broadcast %182 : vector<1x32xf32> to vector<8x32xf32>
      %184 = arith.addf %181, %183 : vector<8x32xf32>
      %cst_147 = arith.constant 0.000000e+00 : f32
      %185 = vector.broadcast %cst_147 : f32 to vector<8x32xf32>
      %186 = arith.maximumf %184, %185 : vector<8x32xf32>
      %c0_148 = arith.constant 0 : index
      %c0_149 = arith.constant 0 : index
      %187 = vector.load %arg14[%c0_148, %c0_149] : memref<32x8xf32, #tpu.memory_space<vmem>>, vector<32x8xf32>
      %cst_150 = arith.constant dense<0.000000e+00> : vector<8x8xf32>
      %188 = tpu.matmul %186, %187, %cst_150 {dimension_numbers = #tpu.dot_dimension_numbers<[1], [0], [0], [1], [0, 0, 1, 1], [], []>} : vector<8x32xf32>, vector<32x8xf32>, vector<8x8xf32> -> vector<8x8xf32>
      %c0_151 = arith.constant 0 : index
      %c0_152 = arith.constant 0 : index
      %189 = vector.load %arg15[%c0_151, %c0_152] : memref<1x8xf32, #tpu.memory_space<vmem>>, vector<1x8xf32>
      %190 = vector.broadcast %189 : vector<1x8xf32> to vector<8x8xf32>
      %191 = arith.addf %188, %190 : vector<8x8xf32>
      %192 = math.exp %191 : vector<8x8xf32>
      %c0_153 = arith.constant 0 : index
      %c0_154 = arith.constant 0 : index
      %c0_155 = arith.constant 0 : index
      %193 = vector.load %arg23[%c0_153, %c0_154, %c0_155] : memref<1x8x8xf32, #tpu.memory_space<vmem>>, vector<1x8x8xf32>
      %194 = vector.shape_cast %193 : vector<1x8x8xf32> to vector<8x8xf32>
      %195 = vector.shape_cast %192 : vector<8x8xf32> to vector<1x8x8xf32>
      tpu.vector_store %arg23[%c0_153, %c0_154, %c0_155], %195 {strides = array<i32>} : memref<1x8x8xf32, #tpu.memory_space<vmem>>, vector<1x8x8xf32>,
    } else {
    }
    %c1_i32 = arith.constant 1 : i32
    %20 = arith.cmpi eq, %9, %c1_i32 : i32
    %21 = arith.extui %20 : i1 to i32
    %c0_i32_9 = arith.constant 0 : i32
    %22 = arith.cmpi ne, %21, %c0_i32_9 : i32
    scf.if %22 {
      %c8_i32 = arith.constant 8 : i32
      %117 = arith.muli %12, %c8_i32 : i32
      %118 = tpu.assume_multiple %117, 8 : i32
      %119 = arith.index_cast %118 : i32 to index
      %c0_97 = arith.constant 0 : index
      %120 = vector.load %arg6[%119, %c0_97] : memref<24x4xf32, #tpu.memory_space<vmem>>, vector<8x4xf32>
      %121 = arith.index_cast %118 : i32 to index
      %c0_98 = arith.constant 0 : index
      %122 = vector.load %arg7[%121, %c0_98] : memref<24x4xf32, #tpu.memory_space<vmem>>, vector<8x4xf32>
      %123 = arith.index_cast %118 : i32 to index
      %c0_99 = arith.constant 0 : index
      %124 = vector.load %arg8[%123, %c0_99] : memref<24x1xf32, #tpu.memory_space<vmem>>, vector<8x1xf32>
      %125 = vector.extract_strided_slice %16 {offsets = [0, 0], sizes = [8, 4], strides = [1, 1]} : vector<8x8xf32> to vector<8x4xf32>
      %126 = vector.extract_strided_slice %16 {offsets = [0, 4], sizes = [8, 4], strides = [1, 1]} : vector<8x8xf32> to vector<8x4xf32>
      %cst = arith.constant -1.000000e+01 : f32
      %cst_100 = arith.constant 1.000000e+01 : f32
      %127 = vector.broadcast %cst : f32 to vector<8x4xf32>
      %128 = arith.maximumf %127, %126 : vector<8x4xf32>
      %129 = vector.broadcast %cst_100 : f32 to vector<8x4xf32>
      %130 = arith.minimumf %129, %128 : vector<8x4xf32>
      %cst_101 = arith.constant 5.000000e-01 : f32
      %131 = vector.broadcast %cst_101 : f32 to vector<8x4xf32>
      %132 = arith.mulf %131, %130 : vector<8x4xf32>
      %133 = math.exp %132 : vector<8x4xf32>
      %cst_102 = arith.constant 9.99999997E-7 : f32
      %cst_103 = arith.constant 1.000000e+06 : f32
      %134 = vector.broadcast %cst_102 : f32 to vector<8x4xf32>
      %135 = arith.maximumf %134, %133 : vector<8x4xf32>
      %136 = vector.broadcast %cst_103 : f32 to vector<8x4xf32>
      %137 = arith.minimumf %136, %135 : vector<8x4xf32>
      %138 = arith.subf %120, %125 : vector<8x4xf32>
      %139 = arith.divf %138, %137 : vector<8x4xf32>
      %cst_104 = arith.constant -1.000000e+06 : f32
      %cst_105 = arith.constant 1.000000e+06 : f32
      %140 = vector.broadcast %cst_104 : f32 to vector<8x4xf32>
      %141 = arith.maximumf %140, %139 : vector<8x4xf32>
      %142 = vector.broadcast %cst_105 : f32 to vector<8x4xf32>
      %143 = arith.minimumf %142, %141 : vector<8x4xf32>
      %144 = arith.mulf %143, %143 : vector<8x4xf32>
      %145 = arith.addf %144, %130 : vector<8x4xf32>
      %cst_106 = arith.constant 1.83787704 : f32
      %146 = vector.broadcast %cst_106 : f32 to vector<8x4xf32>
      %147 = arith.addf %145, %146 : vector<8x4xf32>
      %148 = arith.mulf %147, %122 : vector<8x4xf32>
      %cst_107 = arith.constant 5.000000e-01 : f32
      %149 = vector.broadcast %cst_107 : f32 to vector<8x4xf32>
      %150 = arith.mulf %149, %148 : vector<8x4xf32>
      %151 = vector.shape_cast %150 : vector<8x4xf32> to vector<1x8x4xf32>
      %cst_108 = arith.constant dense<0.000000e+00> : vector<1xf32>
      %152 = vector.multi_reduction <add>, %151, %cst_108 [1, 2] : vector<1x8x4xf32> to vector<1xf32>
      %153 = vector.shape_cast %152 : vector<1xf32> to vector<1x1x1xf32>
      %154 = vector.extract %153[0, 0, 0] : f32 from vector<1x1x1xf32>
      %155 = vector.broadcast %154 : f32 to vector<1x1xf32>
      %c0_109 = arith.constant 0 : index
      %c0_110 = arith.constant 0 : index
      %156 = vector.load %arg21[%c0_109, %c0_110] : memref<4x16xf32, #tpu.memory_space<vmem>>, vector<4x16xf32>
      %cst_111 = arith.constant dense<0.000000e+00> : vector<8x16xf32>
      %157 = tpu.matmul %122, %156, %cst_111 {dimension_numbers = #tpu.dot_dimension_numbers<[1], [0], [0], [1], [0, 0, 1, 1], [], []>} : vector<8x4xf32>, vector<4x16xf32>, vector<8x16xf32> -> vector<8x16xf32>
      %c0_112 = arith.constant 0 : index
      %c0_113 = arith.constant 0 : index
      %c0_114 = arith.constant 0 : index
      %158 = vector.load %arg19[%c0_112, %c0_113, %c0_114] : memref<4x4x16xf32, #tpu.memory_space<vmem>>, vector<1x4x16xf32>
      %159 = vector.shape_cast %158 : vector<1x4x16xf32> to vector<4x16xf32>
      %cst_115 = arith.constant dense<0.000000e+00> : vector<8x16xf32>
      %160 = tpu.matmul %120, %159, %cst_115 {dimension_numbers = #tpu.dot_dimension_numbers<[1], [0], [0], [1], [0, 0, 1, 1], [], []>} : vector<8x4xf32>, vector<4x16xf32>, vector<8x16xf32> -> vector<8x16xf32>
      %c1_116 = arith.constant 1 : index
      %c0_117 = arith.constant 0 : index
      %c0_118 = arith.constant 0 : index
      %161 = vector.load %arg19[%c1_116, %c0_117, %c0_118] : memref<4x4x16xf32, #tpu.memory_space<vmem>>, vector<1x4x16xf32>
      %162 = vector.shape_cast %161 : vector<1x4x16xf32> to vector<4x16xf32>
      %cst_119 = arith.constant dense<0.000000e+00> : vector<8x16xf32>
      %163 = tpu.matmul %125, %162, %cst_119 {dimension_numbers = #tpu.dot_dimension_numbers<[1], [0], [0], [1], [0, 0, 1, 1], [], []>} : vector<8x4xf32>, vector<4x16xf32>, vector<8x16xf32> -> vector<8x16xf32>
      %164 = arith.addf %160, %163 : vector<8x16xf32>
      %c2_120 = arith.constant 2 : index
      %c0_121 = arith.constant 0 : index
      %c0_122 = arith.constant 0 : index
      %165 = vector.load %arg19[%c2_120, %c0_121, %c0_122] : memref<4x4x16xf32, #tpu.memory_space<vmem>>, vector<1x4x16xf32>
      %166 = vector.shape_cast %165 : vector<1x4x16xf32> to vector<4x16xf32>
      %cst_123 = arith.constant dense<0.000000e+00> : vector<8x16xf32>
      %167 = tpu.matmul %130, %166, %cst_123 {dimension_numbers = #tpu.dot_dimension_numbers<[1], [0], [0], [1], [0, 0, 1, 1], [], []>} : vector<8x4xf32>, vector<4x16xf32>, vector<8x16xf32> -> vector<8x16xf32>
      %168 = arith.addf %164, %167 : vector<8x16xf32>
      %c3_124 = arith.constant 3 : index
      %c0_125 = arith.constant 0 : index
      %c0_126 = arith.constant 0 : index
      %169 = vector.load %arg19[%c3_124, %c0_125, %c0_126] : memref<4x4x16xf32, #tpu.memory_space<vmem>>, vector<1x4x16xf32>
      %170 = vector.shape_cast %169 : vector<1x4x16xf32> to vector<4x16xf32>
      %cst_127 = arith.constant dense<0.000000e+00> : vector<8x16xf32>
      %171 = tpu.matmul %143, %170, %cst_127 {dimension_numbers = #tpu.dot_dimension_numbers<[1], [0], [0], [1], [0, 0, 1, 1], [], []>} : vector<8x4xf32>, vector<4x16xf32>, vector<8x16xf32> -> vector<8x16xf32>
      %172 = arith.addf %168, %171 : vector<8x16xf32>
      %c0_128 = arith.constant 0 : index
      %c0_129 = arith.constant 0 : index
      %173 = vector.load %arg20[%c0_128, %c0_129] : memref<1x16xf32, #tpu.memory_space<vmem>>, vector<1x16xf32>
      %174 = vector.broadcast %173 : vector<1x16xf32> to vector<8x16xf32>
      %175 = arith.addf %172, %174 : vector<8x16xf32>
      %cst_130 = arith.constant 0.000000e+00 : f32
      %176 = vector.broadcast %cst_130 : f32 to vector<8x16xf32>
      %177 = arith.maximumf %175, %176 : vector<8x16xf32>
      %178 = arith.mulf %177, %157 : vector<8x16xf32>
      %c0_131 = arith.constant 0 : index
      %c0_132 = arith.constant 0 : index
      %c0_133 = arith.constant 0 : index
      %179 = vector.load %arg16[%c0_131, %c0_132, %c0_133] : memref<3x16x32xf32, #tpu.memory_space<vmem>>, vector<1x16x32xf32>
      %180 = vector.shape_cast %179 : vector<1x16x32xf32> to vector<16x32xf32>
      %cst_134 = arith.constant dense<0.000000e+00> : vector<8x32xf32>
      %181 = tpu.matmul %178, %180, %cst_134 {dimension_numbers = #tpu.dot_dimension_numbers<[1], [0], [0], [1], [0, 0, 1, 1], [], []>} : vector<8x16xf32>, vector<16x32xf32>, vector<8x32xf32> -> vector<8x32xf32>
      %c0_135 = arith.constant 0 : index
      %c0_136 = arith.constant 0 : index
      %c0_137 = arith.constant 0 : index
      %182 = vector.load %arg17[%c0_135, %c0_136, %c0_137] : memref<3x32x32xf32, #tpu.memory_space<vmem>>, vector<1x32x32xf32>
      %183 = vector.shape_cast %182 : vector<1x32x32xf32> to vector<32x32xf32>
      %cst_138 = arith.constant dense<0.000000e+00> : vector<8x32xf32>
      %184 = tpu.matmul %14, %183, %cst_138 {dimension_numbers = #tpu.dot_dimension_numbers<[1], [0], [0], [1], [0, 0, 1, 1], [], []>} : vector<8x32xf32>, vector<32x32xf32>, vector<8x32xf32> -> vector<8x32xf32>
      %185 = arith.addf %181, %184 : vector<8x32xf32>
      %c0_139 = arith.constant 0 : index
      %c0_140 = arith.constant 0 : index
      %c0_141 = arith.constant 0 : index
      %186 = vector.load %arg18[%c0_139, %c0_140, %c0_141] : memref<4x1x32xf32, #tpu.memory_space<vmem>>, vector<1x1x32xf32>
      %187 = vector.shape_cast %186 : vector<1x1x32xf32> to vector<1x32xf32>
      %188 = vector.broadcast %187 : vector<1x32xf32> to vector<8x32xf32>
      %189 = arith.addf %185, %188 : vector<8x32xf32>
      %cst_142 = arith.constant 5.000000e-01 : f32
      %190 = vector.broadcast %cst_142 : f32 to vector<8x32xf32>
      %191 = arith.mulf %190, %189 : vector<8x32xf32>
      %192 = math.tanh %191 : vector<8x32xf32>
      %cst_143 = arith.constant 1.000000e+00 : f32
      %193 = vector.broadcast %cst_143 : f32 to vector<8x32xf32>
      %194 = arith.addf %192, %193 : vector<8x32xf32>
      %cst_144 = arith.constant 5.000000e-01 : f32
      %195 = vector.broadcast %cst_144 : f32 to vector<8x32xf32>
      %196 = arith.mulf %195, %194 : vector<8x32xf32>
      %c1_145 = arith.constant 1 : index
      %c0_146 = arith.constant 0 : index
      %c0_147 = arith.constant 0 : index
      %197 = vector.load %arg16[%c1_145, %c0_146, %c0_147] : memref<3x16x32xf32, #tpu.memory_space<vmem>>, vector<1x16x32xf32>
      %198 = vector.shape_cast %197 : vector<1x16x32xf32> to vector<16x32xf32>
      %cst_148 = arith.constant dense<0.000000e+00> : vector<8x32xf32>
      %199 = tpu.matmul %178, %198, %cst_148 {dimension_numbers = #tpu.dot_dimension_numbers<[1], [0], [0], [1], [0, 0, 1, 1], [], []>} : vector<8x16xf32>, vector<16x32xf32>, vector<8x32xf32> -> vector<8x32xf32>
      %c1_149 = arith.constant 1 : index
      %c0_150 = arith.constant 0 : index
      %c0_151 = arith.constant 0 : index
      %200 = vector.load %arg17[%c1_149, %c0_150, %c0_151] : memref<3x32x32xf32, #tpu.memory_space<vmem>>, vector<1x32x32xf32>
      %201 = vector.shape_cast %200 : vector<1x32x32xf32> to vector<32x32xf32>
      %cst_152 = arith.constant dense<0.000000e+00> : vector<8x32xf32>
      %202 = tpu.matmul %14, %201, %cst_152 {dimension_numbers = #tpu.dot_dimension_numbers<[1], [0], [0], [1], [0, 0, 1, 1], [], []>} : vector<8x32xf32>, vector<32x32xf32>, vector<8x32xf32> -> vector<8x32xf32>
      %203 = arith.addf %199, %202 : vector<8x32xf32>
      %c1_153 = arith.constant 1 : index
      %c0_154 = arith.constant 0 : index
      %c0_155 = arith.constant 0 : index
      %204 = vector.load %arg18[%c1_153, %c0_154, %c0_155] : memref<4x1x32xf32, #tpu.memory_space<vmem>>, vector<1x1x32xf32>
      %205 = vector.shape_cast %204 : vector<1x1x32xf32> to vector<1x32xf32>
      %206 = vector.broadcast %205 : vector<1x32xf32> to vector<8x32xf32>
      %207 = arith.addf %203, %206 : vector<8x32xf32>
      %cst_156 = arith.constant 5.000000e-01 : f32
      %208 = vector.broadcast %cst_156 : f32 to vector<8x32xf32>
      %209 = arith.mulf %208, %207 : vector<8x32xf32>
      %210 = math.tanh %209 : vector<8x32xf32>
      %cst_157 = arith.constant 1.000000e+00 : f32
      %211 = vector.broadcast %cst_157 : f32 to vector<8x32xf32>
      %212 = arith.addf %210, %211 : vector<8x32xf32>
      %cst_158 = arith.constant 5.000000e-01 : f32
      %213 = vector.broadcast %cst_158 : f32 to vector<8x32xf32>
      %214 = arith.mulf %213, %212 : vector<8x32xf32>
      %c2_159 = arith.constant 2 : index
      %c0_160 = arith.constant 0 : index
      %c0_161 = arith.constant 0 : index
      %215 = vector.load %arg16[%c2_159, %c0_160, %c0_161] : memref<3x16x32xf32, #tpu.memory_space<vmem>>, vector<1x16x32xf32>
      %216 = vector.shape_cast %215 : vector<1x16x32xf32> to vector<16x32xf32>
      %cst_162 = arith.constant dense<0.000000e+00> : vector<8x32xf32>
      %217 = tpu.matmul %178, %216, %cst_162 {dimension_numbers = #tpu.dot_dimension_numbers<[1], [0], [0], [1], [0, 0, 1, 1], [], []>} : vector<8x16xf32>, vector<16x32xf32>, vector<8x32xf32> -> vector<8x32xf32>
      %c2_163 = arith.constant 2 : index
      %c0_164 = arith.constant 0 : index
      %c0_165 = arith.constant 0 : index
      %218 = vector.load %arg18[%c2_163, %c0_164, %c0_165] : memref<4x1x32xf32, #tpu.memory_space<vmem>>, vector<1x1x32xf32>
      %219 = vector.shape_cast %218 : vector<1x1x32xf32> to vector<1x32xf32>
      %220 = vector.broadcast %219 : vector<1x32xf32> to vector<8x32xf32>
      %221 = arith.addf %217, %220 : vector<8x32xf32>
      %c2_166 = arith.constant 2 : index
      %c0_167 = arith.constant 0 : index
      %c0_168 = arith.constant 0 : index
      %222 = vector.load %arg17[%c2_166, %c0_167, %c0_168] : memref<3x32x32xf32, #tpu.memory_space<vmem>>, vector<1x32x32xf32>
      %223 = vector.shape_cast %222 : vector<1x32x32xf32> to vector<32x32xf32>
      %cst_169 = arith.constant dense<0.000000e+00> : vector<8x32xf32>
      %224 = tpu.matmul %14, %223, %cst_169 {dimension_numbers = #tpu.dot_dimension_numbers<[1], [0], [0], [1], [0, 0, 1, 1], [], []>} : vector<8x32xf32>, vector<32x32xf32>, vector<8x32xf32> -> vector<8x32xf32>
      %c3_170 = arith.constant 3 : index
      %c0_171 = arith.constant 0 : index
      %c0_172 = arith.constant 0 : index
      %225 = vector.load %arg18[%c3_170, %c0_171, %c0_172] : memref<4x1x32xf32, #tpu.memory_space<vmem>>, vector<1x1x32xf32>
      %226 = vector.shape_cast %225 : vector<1x1x32xf32> to vector<1x32xf32>
      %227 = vector.broadcast %226 : vector<1x32xf32> to vector<8x32xf32>
      %228 = arith.addf %224, %227 : vector<8x32xf32>
      %229 = arith.mulf %196, %228 : vector<8x32xf32>
      %230 = arith.addf %221, %229 : vector<8x32xf32>
      %231 = math.tanh %230 : vector<8x32xf32>
      %cst_173 = arith.constant 1.000000e+00 : f32
      %232 = vector.broadcast %cst_173 : f32 to vector<8x32xf32>
      %233 = arith.subf %232, %214 : vector<8x32xf32>
      %234 = arith.mulf %233, %231 : vector<8x32xf32>
      %235 = arith.mulf %214, %14 : vector<8x32xf32>
      %236 = arith.addf %234, %235 : vector<8x32xf32>
      %237 = arith.subf %236, %14 : vector<8x32xf32>
      %238 = vector.broadcast %124 : vector<8x1xf32> to vector<8x32xf32>
      %239 = arith.mulf %238, %237 : vector<8x32xf32>
      %240 = arith.addf %14, %239 : vector<8x32xf32>
      %c0_174 = arith.constant 0 : index
      %c0_175 = arith.constant 0 : index
      %241 = vector.load %arg12[%c0_174, %c0_175] : memref<32x32xf32, #tpu.memory_space<vmem>>, vector<32x32xf32>
      %cst_176 = arith.constant dense<0.000000e+00> : vector<8x32xf32>
      %242 = tpu.matmul %240, %241, %cst_176 {dimension_numbers = #tpu.dot_dimension_numbers<[1], [0], [0], [1], [0, 0, 1, 1], [], []>} : vector<8x32xf32>, vector<32x32xf32>, vector<8x32xf32> -> vector<8x32xf32>
      %c0_177 = arith.constant 0 : index
      %c0_178 = arith.constant 0 : index
      %243 = vector.load %arg13[%c0_177, %c0_178] : memref<1x32xf32, #tpu.memory_space<vmem>>, vector<1x32xf32>
      %244 = vector.broadcast %243 : vector<1x32xf32> to vector<8x32xf32>
      %245 = arith.addf %242, %244 : vector<8x32xf32>
      %cst_179 = arith.constant 0.000000e+00 : f32
      %246 = vector.broadcast %cst_179 : f32 to vector<8x32xf32>
      %247 = arith.maximumf %245, %246 : vector<8x32xf32>
      %c0_180 = arith.constant 0 : index
      %c0_181 = arith.constant 0 : index
      %248 = vector.load %arg14[%c0_180, %c0_181] : memref<32x8xf32, #tpu.memory_space<vmem>>, vector<32x8xf32>
      %cst_182 = arith.constant dense<0.000000e+00> : vector<8x8xf32>
      %249 = tpu.matmul %247, %248, %cst_182 {dimension_numbers = #tpu.dot_dimension_numbers<[1], [0], [0], [1], [0, 0, 1, 1], [], []>} : vector<8x32xf32>, vector<32x8xf32>, vector<8x8xf32> -> vector<8x8xf32>
      %c0_183 = arith.constant 0 : index
      %c0_184 = arith.constant 0 : index
      %250 = vector.load %arg15[%c0_183, %c0_184] : memref<1x8xf32, #tpu.memory_space<vmem>>, vector<1x8xf32>
      %251 = vector.broadcast %250 : vector<1x8xf32> to vector<8x8xf32>
      %252 = arith.addf %249, %251 : vector<8x8xf32>
      %253 = math.exp %252 : vector<8x8xf32>
      %254 = vector.extract_strided_slice %253 {offsets = [0, 0], sizes = [8, 4], strides = [1, 1]} : vector<8x8xf32> to vector<8x4xf32>
      %255 = vector.extract_strided_slice %253 {offsets = [0, 4], sizes = [8, 4], strides = [1, 1]} : vector<8x8xf32> to vector<8x4xf32>
      %cst_185 = arith.constant -1.000000e+01 : f32
      %cst_186 = arith.constant 1.000000e+01 : f32
      %256 = vector.broadcast %cst_185 : f32 to vector<8x4xf32>
      %257 = arith.maximumf %256, %255 : vector<8x4xf32>
      %258 = vector.broadcast %cst_186 : f32 to vector<8x4xf32>
      %259 = arith.minimumf %258, %257 : vector<8x4xf32>
      %cst_187 = arith.constant 5.000000e-01 : f32
      %260 = vector.broadcast %cst_187 : f32 to vector<8x4xf32>
      %261 = arith.mulf %260, %259 : vector<8x4xf32>
      %262 = math.exp %261 : vector<8x4xf32>
      %cst_188 = arith.constant 9.99999997E-7 : f32
      %cst_189 = arith.constant 1.000000e+06 : f32
      %263 = vector.broadcast %cst_188 : f32 to vector<8x4xf32>
      %264 = arith.maximumf %263, %262 : vector<8x4xf32>
      %265 = vector.broadcast %cst_189 : f32 to vector<8x4xf32>
      %266 = arith.minimumf %265, %264 : vector<8x4xf32>
      %267 = math.log %266 : vector<8x4xf32>
      %cst_190 = arith.constant -4.60517025 : f32
      %268 = vector.broadcast %cst_190 : f32 to vector<8x4xf32>
      %269 = arith.subf %268, %267 : vector<8x4xf32>
      %270 = arith.mulf %266, %266 : vector<8x4xf32>
      %271 = arith.subf %254, %120 : vector<8x4xf32>
      %272 = arith.mulf %271, %271 : vector<8x4xf32>
      %273 = arith.addf %270, %272 : vector<8x4xf32>
      %cst_191 = arith.constant 5.000000e+03 : f32
      %274 = vector.broadcast %cst_191 : f32 to vector<8x4xf32>
      %275 = arith.mulf %273, %274 : vector<8x4xf32>
      %276 = arith.addf %269, %275 : vector<8x4xf32>
      %cst_192 = arith.constant 5.000000e-01 : f32
      %277 = vector.broadcast %cst_192 : f32 to vector<8x4xf32>
      %278 = arith.subf %276, %277 : vector<8x4xf32>
      %279 = arith.mulf %278, %122 : vector<8x4xf32>
      %280 = vector.shape_cast %279 : vector<8x4xf32> to vector<1x8x4xf32>
      %cst_193 = arith.constant dense<0.000000e+00> : vector<1xf32>
      %281 = vector.multi_reduction <add>, %280, %cst_193 [1, 2] : vector<1x8x4xf32> to vector<1xf32>
      %282 = vector.shape_cast %281 : vector<1xf32> to vector<1x1x1xf32>
      %283 = vector.extract %282[0, 0, 0] : f32 from vector<1x1x1xf32>
      %284 = vector.broadcast %283 : f32 to vector<1x1xf32>
      %c0_194 = arith.constant 0 : index
      %c0_195 = arith.constant 0 : index
      %c0_196 = arith.constant 0 : index
      %285 = vector.load %arg22[%c0_194, %c0_195, %c0_196] : memref<1x8x32xf32, #tpu.memory_space<vmem>>, vector<1x8x32xf32>
      %286 = vector.shape_cast %285 : vector<1x8x32xf32> to vector<8x32xf32>
      %287 = vector.shape_cast %240 : vector<8x32xf32> to vector<1x8x32xf32>
      tpu.vector_store %arg22[%c0_194, %c0_195, %c0_196], %287 {strides = array<i32>} : memref<1x8x32xf32, #tpu.memory_space<vmem>>, vector<1x8x32xf32>,
      %c0_197 = arith.constant 0 : index
      %c0_198 = arith.constant 0 : index
      %c0_199 = arith.constant 0 : index
      %288 = vector.load %arg23[%c0_197, %c0_198, %c0_199] : memref<1x8x8xf32, #tpu.memory_space<vmem>>, vector<1x8x8xf32>
      %289 = vector.shape_cast %288 : vector<1x8x8xf32> to vector<8x8xf32>
      %290 = vector.shape_cast %253 : vector<8x8xf32> to vector<1x8x8xf32>
      tpu.vector_store %arg23[%c0_197, %c0_198, %c0_199], %290 {strides = array<i32>} : memref<1x8x8xf32, #tpu.memory_space<vmem>>, vector<1x8x8xf32>,
      %c0_i32_200 = arith.constant 0 : i32
      %291 = vector.broadcast %c0_i32_200 : i32 to vector<8x128xi32>
      %292 = arith.cmpi eq, %3, %291 : vector<8x128xi32>
      %293 = vector.broadcast %12 : i32 to vector<8x128xi32>
      %294 = arith.cmpi eq, %4, %293 : vector<8x128xi32>
      %295 = arith.andi %292, %294 : vector<8x128xi1>
      %296 = arith.extui %295 : vector<8x128xi1> to vector<8x128xi32>
      %297 = arith.sitofp %296 : vector<8x128xi32> to vector<8x128xf32>
      %c1_i32_201 = arith.constant 1 : i32
      %298 = vector.broadcast %c1_i32_201 : i32 to vector<8x128xi32>
      %299 = arith.cmpi eq, %3, %298 : vector<8x128xi32>
      %c0_i32_202 = arith.constant 0 : i32
      %300 = vector.broadcast %c0_i32_202 : i32 to vector<8x128xi32>
      %301 = arith.cmpi eq, %4, %300 : vector<8x128xi32>
      %302 = arith.andi %299, %301 : vector<8x128xi1>
      %303 = arith.extui %302 : vector<8x128xi1> to vector<8x128xi32>
      %304 = arith.sitofp %303 : vector<8x128xi32> to vector<8x128xf32>
      %c0_203 = arith.constant 0 : index
      %c0_204 = arith.constant 0 : index
      %c0_205 = arith.constant 0 : index
      %305 = vector.load %arg26[%c0_203, %c0_204, %c0_205] : memref<1x8x128xf32, #tpu.memory_space<vmem>>, vector<1x8x128xf32>
      %306 = vector.shape_cast %305 : vector<1x8x128xf32> to vector<8x128xf32>
      %307 = vector.broadcast %155 : vector<1x1xf32> to vector<8x128xf32>
      %308 = arith.mulf %297, %307 : vector<8x128xf32>
      %309 = arith.addf %306, %308 : vector<8x128xf32>
      %310 = vector.broadcast %284 : vector<1x1xf32> to vector<8x128xf32>
      %311 = arith.mulf %304, %310 : vector<8x128xf32>
      %312 = arith.addf %309, %311 : vector<8x128xf32>
      %c0_206 = arith.constant 0 : index
      %c0_207 = arith.constant 0 : index
      %c0_208 = arith.constant 0 : index
      %313 = vector.load %arg26[%c0_206, %c0_207, %c0_208] : memref<1x8x128xf32, #tpu.memory_space<vmem>>, vector<1x8x128xf32>
      %314 = vector.shape_cast %313 : vector<1x8x128xf32> to vector<8x128xf32>
      %315 = vector.shape_cast %312 : vector<8x128xf32> to vector<1x8x128xf32>
      tpu.vector_store %arg26[%c0_206, %c0_207, %c0_208], %315 {strides = array<i32>} : memref<1x8x128xf32, #tpu.memory_space<vmem>>, vector<1x8x128xf32>,
    } else {
    }
    %c0_10 = arith.constant 0 : index
    %c0_11 = arith.constant 0 : index
    %c0_12 = arith.constant 0 : index
    %23 = vector.load %arg22[%c0_10, %c0_11, %c0_12] : memref<1x8x32xf32, #tpu.memory_space<vmem>>, vector<1x8x32xf32>
    %24 = vector.shape_cast %23 : vector<1x8x32xf32> to vector<8x32xf32>
    %c0_13 = arith.constant 0 : index
    %c0_14 = arith.constant 0 : index
    %c0_15 = arith.constant 0 : index
    %c0_16 = arith.constant 0 : index
    %25 = vector.load %arg24[%c0_13, %c0_14, %c0_15, %c0_16] : memref<1x4x8x32xf32, #tpu.memory_space<vmem>>, vector<1x1x8x32xf32>
    %26 = vector.shape_cast %25 : vector<1x1x8x32xf32> to vector<8x32xf32>
    %27 = vector.shape_cast %24 : vector<8x32xf32> to vector<1x1x8x32xf32>
    tpu.vector_store %arg24[%c0_13, %c0_14, %c0_15, %c0_16], %27 {strides = array<i32>} : memref<1x4x8x32xf32, #tpu.memory_space<vmem>>, vector<1x1x8x32xf32>,
    %c0_17 = arith.constant 0 : index
    %c0_18 = arith.constant 0 : index
    %c0_19 = arith.constant 0 : index
    %28 = vector.load %arg23[%c0_17, %c0_18, %c0_19] : memref<1x8x8xf32, #tpu.memory_space<vmem>>, vector<1x8x8xf32>
    %29 = vector.shape_cast %28 : vector<1x8x8xf32> to vector<8x8xf32>
    %c0_20 = arith.constant 0 : index
    %c0_21 = arith.constant 0 : index
    %c0_22 = arith.constant 0 : index
    %c0_23 = arith.constant 0 : index
    %30 = vector.load %arg25[%c0_20, %c0_21, %c0_22, %c0_23] : memref<1x4x8x8xf32, #tpu.memory_space<vmem>>, vector<1x1x8x8xf32>
    %31 = vector.shape_cast %30 : vector<1x1x8x8xf32> to vector<8x8xf32>
    %32 = vector.shape_cast %29 : vector<8x8xf32> to vector<1x1x8x8xf32>
    tpu.vector_store %arg25[%c0_20, %c0_21, %c0_22, %c0_23], %32 {strides = array<i32>} : memref<1x4x8x8xf32, #tpu.memory_space<vmem>>, vector<1x1x8x8xf32>,
    %c4_i32_24 = arith.constant 4 : i32
    %33 = arith.muli %arg1, %c4_i32_24 : i32
    %c1_i32_25 = arith.constant 1 : i32
    %34 = arith.addi %33, %c1_i32_25 : i32
    %35 = arith.index_cast %arg0 : i32 to index
    %36 = arith.index_cast %34 : i32 to index
    %37 = memref.load %arg2[%35, %36] : memref<2x16xi32, #tpu.memory_space<smem>>
    %38 = arith.index_cast %arg0 : i32 to index
    %39 = arith.index_cast %34 : i32 to index
    %40 = memref.load %arg3[%38, %39] : memref<2x16xi32, #tpu.memory_space<smem>>
    %c0_26 = arith.constant 0 : index
    %c0_27 = arith.constant 0 : index
    %c0_28 = arith.constant 0 : index
    %41 = vector.load %arg22[%c0_26, %c0_27, %c0_28] : memref<1x8x32xf32, #tpu.memory_space<vmem>>, vector<1x8x32xf32>
    %42 = vector.shape_cast %41 : vector<1x8x32xf32> to vector<8x32xf32>
    %c0_29 = arith.constant 0 : index
    %c0_30 = arith.constant 0 : index
    %c0_31 = arith.constant 0 : index
    %43 = vector.load %arg23[%c0_29, %c0_30, %c0_31] : memref<1x8x8xf32, #tpu.memory_space<vmem>>, vector<1x8x8xf32>
    %44 = vector.shape_cast %43 : vector<1x8x8xf32> to vector<8x8xf32>
    %c0_i32_32 = arith.constant 0 : i32
    %45 = arith.cmpi eq, %37, %c0_i32_32 : i32
    %46 = arith.extui %45 : i1 to i32
    %c0_i32_33 = arith.constant 0 : i32
    %47 = arith.cmpi ne, %46, %c0_i32_33 : i32
    scf.if %47 {
      %c0_97 = arith.constant 0 : index
      %c0_98 = arith.constant 0 : index
      %c0_99 = arith.constant 0 : index
      %117 = vector.load %arg9[%c0_97, %c0_98, %c0_99] : memref<3x8x32xf32, #tpu.memory_space<vmem>>, vector<1x8x32xf32>
      %118 = vector.shape_cast %117 : vector<1x8x32xf32> to vector<8x32xf32>
      %cst = arith.constant dense<0.000000e+00> : vector<8x32xf32>
      %119 = tpu.matmul %44, %118, %cst {dimension_numbers = #tpu.dot_dimension_numbers<[1], [0], [0], [1], [0, 0, 1, 1], [], []>} : vector<8x8xf32>, vector<8x32xf32>, vector<8x32xf32> -> vector<8x32xf32>
      %c0_100 = arith.constant 0 : index
      %c0_101 = arith.constant 0 : index
      %c0_102 = arith.constant 0 : index
      %120 = vector.load %arg10[%c0_100, %c0_101, %c0_102] : memref<3x1x32xf32, #tpu.memory_space<vmem>>, vector<1x1x32xf32>
      %121 = vector.shape_cast %120 : vector<1x1x32xf32> to vector<1x32xf32>
      %122 = vector.broadcast %121 : vector<1x32xf32> to vector<8x32xf32>
      %123 = arith.addf %119, %122 : vector<8x32xf32>
      %c0_103 = arith.constant 0 : index
      %c0_104 = arith.constant 0 : index
      %c0_105 = arith.constant 0 : index
      %124 = vector.load %arg11[%c0_103, %c0_104, %c0_105] : memref<3x32x32xf32, #tpu.memory_space<vmem>>, vector<1x32x32xf32>
      %125 = vector.shape_cast %124 : vector<1x32x32xf32> to vector<32x32xf32>
      %cst_106 = arith.constant dense<0.000000e+00> : vector<8x32xf32>
      %126 = tpu.matmul %42, %125, %cst_106 {dimension_numbers = #tpu.dot_dimension_numbers<[1], [0], [0], [1], [0, 0, 1, 1], [], []>} : vector<8x32xf32>, vector<32x32xf32>, vector<8x32xf32> -> vector<8x32xf32>
      %127 = arith.addf %123, %126 : vector<8x32xf32>
      %cst_107 = arith.constant 5.000000e-01 : f32
      %128 = vector.broadcast %cst_107 : f32 to vector<8x32xf32>
      %129 = arith.mulf %128, %127 : vector<8x32xf32>
      %130 = math.tanh %129 : vector<8x32xf32>
      %cst_108 = arith.constant 1.000000e+00 : f32
      %131 = vector.broadcast %cst_108 : f32 to vector<8x32xf32>
      %132 = arith.addf %130, %131 : vector<8x32xf32>
      %cst_109 = arith.constant 5.000000e-01 : f32
      %133 = vector.broadcast %cst_109 : f32 to vector<8x32xf32>
      %134 = arith.mulf %133, %132 : vector<8x32xf32>
      %c1_110 = arith.constant 1 : index
      %c0_111 = arith.constant 0 : index
      %c0_112 = arith.constant 0 : index
      %135 = vector.load %arg9[%c1_110, %c0_111, %c0_112] : memref<3x8x32xf32, #tpu.memory_space<vmem>>, vector<1x8x32xf32>
      %136 = vector.shape_cast %135 : vector<1x8x32xf32> to vector<8x32xf32>
      %cst_113 = arith.constant dense<0.000000e+00> : vector<8x32xf32>
      %137 = tpu.matmul %44, %136, %cst_113 {dimension_numbers = #tpu.dot_dimension_numbers<[1], [0], [0], [1], [0, 0, 1, 1], [], []>} : vector<8x8xf32>, vector<8x32xf32>, vector<8x32xf32> -> vector<8x32xf32>
      %c1_114 = arith.constant 1 : index
      %c0_115 = arith.constant 0 : index
      %c0_116 = arith.constant 0 : index
      %138 = vector.load %arg10[%c1_114, %c0_115, %c0_116] : memref<3x1x32xf32, #tpu.memory_space<vmem>>, vector<1x1x32xf32>
      %139 = vector.shape_cast %138 : vector<1x1x32xf32> to vector<1x32xf32>
      %140 = vector.broadcast %139 : vector<1x32xf32> to vector<8x32xf32>
      %141 = arith.addf %137, %140 : vector<8x32xf32>
      %c1_117 = arith.constant 1 : index
      %c0_118 = arith.constant 0 : index
      %c0_119 = arith.constant 0 : index
      %142 = vector.load %arg11[%c1_117, %c0_118, %c0_119] : memref<3x32x32xf32, #tpu.memory_space<vmem>>, vector<1x32x32xf32>
      %143 = vector.shape_cast %142 : vector<1x32x32xf32> to vector<32x32xf32>
      %cst_120 = arith.constant dense<0.000000e+00> : vector<8x32xf32>
      %144 = tpu.matmul %42, %143, %cst_120 {dimension_numbers = #tpu.dot_dimension_numbers<[1], [0], [0], [1], [0, 0, 1, 1], [], []>} : vector<8x32xf32>, vector<32x32xf32>, vector<8x32xf32> -> vector<8x32xf32>
      %145 = arith.addf %141, %144 : vector<8x32xf32>
      %cst_121 = arith.constant 5.000000e-01 : f32
      %146 = vector.broadcast %cst_121 : f32 to vector<8x32xf32>
      %147 = arith.mulf %146, %145 : vector<8x32xf32>
      %148 = math.tanh %147 : vector<8x32xf32>
      %cst_122 = arith.constant 1.000000e+00 : f32
      %149 = vector.broadcast %cst_122 : f32 to vector<8x32xf32>
      %150 = arith.addf %148, %149 : vector<8x32xf32>
      %cst_123 = arith.constant 5.000000e-01 : f32
      %151 = vector.broadcast %cst_123 : f32 to vector<8x32xf32>
      %152 = arith.mulf %151, %150 : vector<8x32xf32>
      %c2_124 = arith.constant 2 : index
      %c0_125 = arith.constant 0 : index
      %c0_126 = arith.constant 0 : index
      %153 = vector.load %arg9[%c2_124, %c0_125, %c0_126] : memref<3x8x32xf32, #tpu.memory_space<vmem>>, vector<1x8x32xf32>
      %154 = vector.shape_cast %153 : vector<1x8x32xf32> to vector<8x32xf32>
      %cst_127 = arith.constant dense<0.000000e+00> : vector<8x32xf32>
      %155 = tpu.matmul %44, %154, %cst_127 {dimension_numbers = #tpu.dot_dimension_numbers<[1], [0], [0], [1], [0, 0, 1, 1], [], []>} : vector<8x8xf32>, vector<8x32xf32>, vector<8x32xf32> -> vector<8x32xf32>
      %c2_128 = arith.constant 2 : index
      %c0_129 = arith.constant 0 : index
      %c0_130 = arith.constant 0 : index
      %156 = vector.load %arg10[%c2_128, %c0_129, %c0_130] : memref<3x1x32xf32, #tpu.memory_space<vmem>>, vector<1x1x32xf32>
      %157 = vector.shape_cast %156 : vector<1x1x32xf32> to vector<1x32xf32>
      %158 = vector.broadcast %157 : vector<1x32xf32> to vector<8x32xf32>
      %159 = arith.addf %155, %158 : vector<8x32xf32>
      %160 = arith.mulf %134, %42 : vector<8x32xf32>
      %c2_131 = arith.constant 2 : index
      %c0_132 = arith.constant 0 : index
      %c0_133 = arith.constant 0 : index
      %161 = vector.load %arg11[%c2_131, %c0_132, %c0_133] : memref<3x32x32xf32, #tpu.memory_space<vmem>>, vector<1x32x32xf32>
      %162 = vector.shape_cast %161 : vector<1x32x32xf32> to vector<32x32xf32>
      %cst_134 = arith.constant dense<0.000000e+00> : vector<8x32xf32>
      %163 = tpu.matmul %160, %162, %cst_134 {dimension_numbers = #tpu.dot_dimension_numbers<[1], [0], [0], [1], [0, 0, 1, 1], [], []>} : vector<8x32xf32>, vector<32x32xf32>, vector<8x32xf32> -> vector<8x32xf32>
      %164 = arith.addf %159, %163 : vector<8x32xf32>
      %165 = math.tanh %164 : vector<8x32xf32>
      %cst_135 = arith.constant 1.000000e+00 : f32
      %166 = vector.broadcast %cst_135 : f32 to vector<8x32xf32>
      %167 = arith.subf %166, %152 : vector<8x32xf32>
      %168 = arith.subf %165, %42 : vector<8x32xf32>
      %169 = arith.mulf %167, %168 : vector<8x32xf32>
      %cst_136 = arith.constant 5.000000e-02 : f32
      %170 = vector.broadcast %cst_136 : f32 to vector<8x32xf32>
      %171 = arith.mulf %170, %169 : vector<8x32xf32>
      %cst_137 = arith.constant -1.000000e+00 : f32
      %cst_138 = arith.constant 1.000000e+00 : f32
      %172 = vector.broadcast %cst_137 : f32 to vector<8x32xf32>
      %173 = arith.maximumf %172, %171 : vector<8x32xf32>
      %174 = vector.broadcast %cst_138 : f32 to vector<8x32xf32>
      %175 = arith.minimumf %174, %173 : vector<8x32xf32>
      %176 = arith.addf %42, %175 : vector<8x32xf32>
      %c0_139 = arith.constant 0 : index
      %c0_140 = arith.constant 0 : index
      %c0_141 = arith.constant 0 : index
      %177 = vector.load %arg22[%c0_139, %c0_140, %c0_141] : memref<1x8x32xf32, #tpu.memory_space<vmem>>, vector<1x8x32xf32>
      %178 = vector.shape_cast %177 : vector<1x8x32xf32> to vector<8x32xf32>
      %179 = vector.shape_cast %176 : vector<8x32xf32> to vector<1x8x32xf32>
      tpu.vector_store %arg22[%c0_139, %c0_140, %c0_141], %179 {strides = array<i32>} : memref<1x8x32xf32, #tpu.memory_space<vmem>>, vector<1x8x32xf32>,
      %c0_142 = arith.constant 0 : index
      %c0_143 = arith.constant 0 : index
      %180 = vector.load %arg12[%c0_142, %c0_143] : memref<32x32xf32, #tpu.memory_space<vmem>>, vector<32x32xf32>
      %cst_144 = arith.constant dense<0.000000e+00> : vector<8x32xf32>
      %181 = tpu.matmul %176, %180, %cst_144 {dimension_numbers = #tpu.dot_dimension_numbers<[1], [0], [0], [1], [0, 0, 1, 1], [], []>} : vector<8x32xf32>, vector<32x32xf32>, vector<8x32xf32> -> vector<8x32xf32>
      %c0_145 = arith.constant 0 : index
      %c0_146 = arith.constant 0 : index
      %182 = vector.load %arg13[%c0_145, %c0_146] : memref<1x32xf32, #tpu.memory_space<vmem>>, vector<1x32xf32>
      %183 = vector.broadcast %182 : vector<1x32xf32> to vector<8x32xf32>
      %184 = arith.addf %181, %183 : vector<8x32xf32>
      %cst_147 = arith.constant 0.000000e+00 : f32
      %185 = vector.broadcast %cst_147 : f32 to vector<8x32xf32>
      %186 = arith.maximumf %184, %185 : vector<8x32xf32>
      %c0_148 = arith.constant 0 : index
      %c0_149 = arith.constant 0 : index
      %187 = vector.load %arg14[%c0_148, %c0_149] : memref<32x8xf32, #tpu.memory_space<vmem>>, vector<32x8xf32>
      %cst_150 = arith.constant dense<0.000000e+00> : vector<8x8xf32>
      %188 = tpu.matmul %186, %187, %cst_150 {dimension_numbers = #tpu.dot_dimension_numbers<[1], [0], [0], [1], [0, 0, 1, 1], [], []>} : vector<8x32xf32>, vector<32x8xf32>, vector<8x8xf32> -> vector<8x8xf32>
      %c0_151 = arith.constant 0 : index
      %c0_152 = arith.constant 0 : index
      %189 = vector.load %arg15[%c0_151, %c0_152] : memref<1x8xf32, #tpu.memory_space<vmem>>, vector<1x8xf32>
      %190 = vector.broadcast %189 : vector<1x8xf32> to vector<8x8xf32>
      %191 = arith.addf %188, %190 : vector<8x8xf32>
      %192 = math.exp %191 : vector<8x8xf32>
      %c0_153 = arith.constant 0 : index
      %c0_154 = arith.constant 0 : index
      %c0_155 = arith.constant 0 : index
      %193 = vector.load %arg23[%c0_153, %c0_154, %c0_155] : memref<1x8x8xf32, #tpu.memory_space<vmem>>, vector<1x8x8xf32>
      %194 = vector.shape_cast %193 : vector<1x8x8xf32> to vector<8x8xf32>
      %195 = vector.shape_cast %192 : vector<8x8xf32> to vector<1x8x8xf32>
      tpu.vector_store %arg23[%c0_153, %c0_154, %c0_155], %195 {strides = array<i32>} : memref<1x8x8xf32, #tpu.memory_space<vmem>>, vector<1x8x8xf32>,
    } else {
    }
    %c1_i32_34 = arith.constant 1 : i32
    %48 = arith.cmpi eq, %37, %c1_i32_34 : i32
    %49 = arith.extui %48 : i1 to i32
    %c0_i32_35 = arith.constant 0 : i32
    %50 = arith.cmpi ne, %49, %c0_i32_35 : i32
    scf.if %50 {
      %c8_i32 = arith.constant 8 : i32
      %117 = arith.muli %40, %c8_i32 : i32
      %118 = tpu.assume_multiple %117, 8 : i32
      %119 = arith.index_cast %118 : i32 to index
      %c0_97 = arith.constant 0 : index
      %120 = vector.load %arg6[%119, %c0_97] : memref<24x4xf32, #tpu.memory_space<vmem>>, vector<8x4xf32>
      %121 = arith.index_cast %118 : i32 to index
      %c0_98 = arith.constant 0 : index
      %122 = vector.load %arg7[%121, %c0_98] : memref<24x4xf32, #tpu.memory_space<vmem>>, vector<8x4xf32>
      %123 = arith.index_cast %118 : i32 to index
      %c0_99 = arith.constant 0 : index
      %124 = vector.load %arg8[%123, %c0_99] : memref<24x1xf32, #tpu.memory_space<vmem>>, vector<8x1xf32>
      %125 = vector.extract_strided_slice %44 {offsets = [0, 0], sizes = [8, 4], strides = [1, 1]} : vector<8x8xf32> to vector<8x4xf32>
      %126 = vector.extract_strided_slice %44 {offsets = [0, 4], sizes = [8, 4], strides = [1, 1]} : vector<8x8xf32> to vector<8x4xf32>
      %cst = arith.constant -1.000000e+01 : f32
      %cst_100 = arith.constant 1.000000e+01 : f32
      %127 = vector.broadcast %cst : f32 to vector<8x4xf32>
      %128 = arith.maximumf %127, %126 : vector<8x4xf32>
      %129 = vector.broadcast %cst_100 : f32 to vector<8x4xf32>
      %130 = arith.minimumf %129, %128 : vector<8x4xf32>
      %cst_101 = arith.constant 5.000000e-01 : f32
      %131 = vector.broadcast %cst_101 : f32 to vector<8x4xf32>
      %132 = arith.mulf %131, %130 : vector<8x4xf32>
      %133 = math.exp %132 : vector<8x4xf32>
      %cst_102 = arith.constant 9.99999997E-7 : f32
      %cst_103 = arith.constant 1.000000e+06 : f32
      %134 = vector.broadcast %cst_102 : f32 to vector<8x4xf32>
      %135 = arith.maximumf %134, %133 : vector<8x4xf32>
      %136 = vector.broadcast %cst_103 : f32 to vector<8x4xf32>
      %137 = arith.minimumf %136, %135 : vector<8x4xf32>
      %138 = arith.subf %120, %125 : vector<8x4xf32>
      %139 = arith.divf %138, %137 : vector<8x4xf32>
      %cst_104 = arith.constant -1.000000e+06 : f32
      %cst_105 = arith.constant 1.000000e+06 : f32
      %140 = vector.broadcast %cst_104 : f32 to vector<8x4xf32>
      %141 = arith.maximumf %140, %139 : vector<8x4xf32>
      %142 = vector.broadcast %cst_105 : f32 to vector<8x4xf32>
      %143 = arith.minimumf %142, %141 : vector<8x4xf32>
      %144 = arith.mulf %143, %143 : vector<8x4xf32>
      %145 = arith.addf %144, %130 : vector<8x4xf32>
      %cst_106 = arith.constant 1.83787704 : f32
      %146 = vector.broadcast %cst_106 : f32 to vector<8x4xf32>
      %147 = arith.addf %145, %146 : vector<8x4xf32>
      %148 = arith.mulf %147, %122 : vector<8x4xf32>
      %cst_107 = arith.constant 5.000000e-01 : f32
      %149 = vector.broadcast %cst_107 : f32 to vector<8x4xf32>
      %150 = arith.mulf %149, %148 : vector<8x4xf32>
      %151 = vector.shape_cast %150 : vector<8x4xf32> to vector<1x8x4xf32>
      %cst_108 = arith.constant dense<0.000000e+00> : vector<1xf32>
      %152 = vector.multi_reduction <add>, %151, %cst_108 [1, 2] : vector<1x8x4xf32> to vector<1xf32>
      %153 = vector.shape_cast %152 : vector<1xf32> to vector<1x1x1xf32>
      %154 = vector.extract %153[0, 0, 0] : f32 from vector<1x1x1xf32>
      %155 = vector.broadcast %154 : f32 to vector<1x1xf32>
      %c0_109 = arith.constant 0 : index
      %c0_110 = arith.constant 0 : index
      %156 = vector.load %arg21[%c0_109, %c0_110] : memref<4x16xf32, #tpu.memory_space<vmem>>, vector<4x16xf32>
      %cst_111 = arith.constant dense<0.000000e+00> : vector<8x16xf32>
      %157 = tpu.matmul %122, %156, %cst_111 {dimension_numbers = #tpu.dot_dimension_numbers<[1], [0], [0], [1], [0, 0, 1, 1], [], []>} : vector<8x4xf32>, vector<4x16xf32>, vector<8x16xf32> -> vector<8x16xf32>
      %c0_112 = arith.constant 0 : index
      %c0_113 = arith.constant 0 : index
      %c0_114 = arith.constant 0 : index
      %158 = vector.load %arg19[%c0_112, %c0_113, %c0_114] : memref<4x4x16xf32, #tpu.memory_space<vmem>>, vector<1x4x16xf32>
      %159 = vector.shape_cast %158 : vector<1x4x16xf32> to vector<4x16xf32>
      %cst_115 = arith.constant dense<0.000000e+00> : vector<8x16xf32>
      %160 = tpu.matmul %120, %159, %cst_115 {dimension_numbers = #tpu.dot_dimension_numbers<[1], [0], [0], [1], [0, 0, 1, 1], [], []>} : vector<8x4xf32>, vector<4x16xf32>, vector<8x16xf32> -> vector<8x16xf32>
      %c1_116 = arith.constant 1 : index
      %c0_117 = arith.constant 0 : index
      %c0_118 = arith.constant 0 : index
      %161 = vector.load %arg19[%c1_116, %c0_117, %c0_118] : memref<4x4x16xf32, #tpu.memory_space<vmem>>, vector<1x4x16xf32>
      %162 = vector.shape_cast %161 : vector<1x4x16xf32> to vector<4x16xf32>
      %cst_119 = arith.constant dense<0.000000e+00> : vector<8x16xf32>
      %163 = tpu.matmul %125, %162, %cst_119 {dimension_numbers = #tpu.dot_dimension_numbers<[1], [0], [0], [1], [0, 0, 1, 1], [], []>} : vector<8x4xf32>, vector<4x16xf32>, vector<8x16xf32> -> vector<8x16xf32>
      %164 = arith.addf %160, %163 : vector<8x16xf32>
      %c2_120 = arith.constant 2 : index
      %c0_121 = arith.constant 0 : index
      %c0_122 = arith.constant 0 : index
      %165 = vector.load %arg19[%c2_120, %c0_121, %c0_122] : memref<4x4x16xf32, #tpu.memory_space<vmem>>, vector<1x4x16xf32>
      %166 = vector.shape_cast %165 : vector<1x4x16xf32> to vector<4x16xf32>
      %cst_123 = arith.constant dense<0.000000e+00> : vector<8x16xf32>
      %167 = tpu.matmul %130, %166, %cst_123 {dimension_numbers = #tpu.dot_dimension_numbers<[1], [0], [0], [1], [0, 0, 1, 1], [], []>} : vector<8x4xf32>, vector<4x16xf32>, vector<8x16xf32> -> vector<8x16xf32>
      %168 = arith.addf %164, %167 : vector<8x16xf32>
      %c3_124 = arith.constant 3 : index
      %c0_125 = arith.constant 0 : index
      %c0_126 = arith.constant 0 : index
      %169 = vector.load %arg19[%c3_124, %c0_125, %c0_126] : memref<4x4x16xf32, #tpu.memory_space<vmem>>, vector<1x4x16xf32>
      %170 = vector.shape_cast %169 : vector<1x4x16xf32> to vector<4x16xf32>
      %cst_127 = arith.constant dense<0.000000e+00> : vector<8x16xf32>
      %171 = tpu.matmul %143, %170, %cst_127 {dimension_numbers = #tpu.dot_dimension_numbers<[1], [0], [0], [1], [0, 0, 1, 1], [], []>} : vector<8x4xf32>, vector<4x16xf32>, vector<8x16xf32> -> vector<8x16xf32>
      %172 = arith.addf %168, %171 : vector<8x16xf32>
      %c0_128 = arith.constant 0 : index
      %c0_129 = arith.constant 0 : index
      %173 = vector.load %arg20[%c0_128, %c0_129] : memref<1x16xf32, #tpu.memory_space<vmem>>, vector<1x16xf32>
      %174 = vector.broadcast %173 : vector<1x16xf32> to vector<8x16xf32>
      %175 = arith.addf %172, %174 : vector<8x16xf32>
      %cst_130 = arith.constant 0.000000e+00 : f32
      %176 = vector.broadcast %cst_130 : f32 to vector<8x16xf32>
      %177 = arith.maximumf %175, %176 : vector<8x16xf32>
      %178 = arith.mulf %177, %157 : vector<8x16xf32>
      %c0_131 = arith.constant 0 : index
      %c0_132 = arith.constant 0 : index
      %c0_133 = arith.constant 0 : index
      %179 = vector.load %arg16[%c0_131, %c0_132, %c0_133] : memref<3x16x32xf32, #tpu.memory_space<vmem>>, vector<1x16x32xf32>
      %180 = vector.shape_cast %179 : vector<1x16x32xf32> to vector<16x32xf32>
      %cst_134 = arith.constant dense<0.000000e+00> : vector<8x32xf32>
      %181 = tpu.matmul %178, %180, %cst_134 {dimension_numbers = #tpu.dot_dimension_numbers<[1], [0], [0], [1], [0, 0, 1, 1], [], []>} : vector<8x16xf32>, vector<16x32xf32>, vector<8x32xf32> -> vector<8x32xf32>
      %c0_135 = arith.constant 0 : index
      %c0_136 = arith.constant 0 : index
      %c0_137 = arith.constant 0 : index
      %182 = vector.load %arg17[%c0_135, %c0_136, %c0_137] : memref<3x32x32xf32, #tpu.memory_space<vmem>>, vector<1x32x32xf32>
      %183 = vector.shape_cast %182 : vector<1x32x32xf32> to vector<32x32xf32>
      %cst_138 = arith.constant dense<0.000000e+00> : vector<8x32xf32>
      %184 = tpu.matmul %42, %183, %cst_138 {dimension_numbers = #tpu.dot_dimension_numbers<[1], [0], [0], [1], [0, 0, 1, 1], [], []>} : vector<8x32xf32>, vector<32x32xf32>, vector<8x32xf32> -> vector<8x32xf32>
      %185 = arith.addf %181, %184 : vector<8x32xf32>
      %c0_139 = arith.constant 0 : index
      %c0_140 = arith.constant 0 : index
      %c0_141 = arith.constant 0 : index
      %186 = vector.load %arg18[%c0_139, %c0_140, %c0_141] : memref<4x1x32xf32, #tpu.memory_space<vmem>>, vector<1x1x32xf32>
      %187 = vector.shape_cast %186 : vector<1x1x32xf32> to vector<1x32xf32>
      %188 = vector.broadcast %187 : vector<1x32xf32> to vector<8x32xf32>
      %189 = arith.addf %185, %188 : vector<8x32xf32>
      %cst_142 = arith.constant 5.000000e-01 : f32
      %190 = vector.broadcast %cst_142 : f32 to vector<8x32xf32>
      %191 = arith.mulf %190, %189 : vector<8x32xf32>
      %192 = math.tanh %191 : vector<8x32xf32>
      %cst_143 = arith.constant 1.000000e+00 : f32
      %193 = vector.broadcast %cst_143 : f32 to vector<8x32xf32>
      %194 = arith.addf %192, %193 : vector<8x32xf32>
      %cst_144 = arith.constant 5.000000e-01 : f32
      %195 = vector.broadcast %cst_144 : f32 to vector<8x32xf32>
      %196 = arith.mulf %195, %194 : vector<8x32xf32>
      %c1_145 = arith.constant 1 : index
      %c0_146 = arith.constant 0 : index
      %c0_147 = arith.constant 0 : index
      %197 = vector.load %arg16[%c1_145, %c0_146, %c0_147] : memref<3x16x32xf32, #tpu.memory_space<vmem>>, vector<1x16x32xf32>
      %198 = vector.shape_cast %197 : vector<1x16x32xf32> to vector<16x32xf32>
      %cst_148 = arith.constant dense<0.000000e+00> : vector<8x32xf32>
      %199 = tpu.matmul %178, %198, %cst_148 {dimension_numbers = #tpu.dot_dimension_numbers<[1], [0], [0], [1], [0, 0, 1, 1], [], []>} : vector<8x16xf32>, vector<16x32xf32>, vector<8x32xf32> -> vector<8x32xf32>
      %c1_149 = arith.constant 1 : index
      %c0_150 = arith.constant 0 : index
      %c0_151 = arith.constant 0 : index
      %200 = vector.load %arg17[%c1_149, %c0_150, %c0_151] : memref<3x32x32xf32, #tpu.memory_space<vmem>>, vector<1x32x32xf32>
      %201 = vector.shape_cast %200 : vector<1x32x32xf32> to vector<32x32xf32>
      %cst_152 = arith.constant dense<0.000000e+00> : vector<8x32xf32>
      %202 = tpu.matmul %42, %201, %cst_152 {dimension_numbers = #tpu.dot_dimension_numbers<[1], [0], [0], [1], [0, 0, 1, 1], [], []>} : vector<8x32xf32>, vector<32x32xf32>, vector<8x32xf32> -> vector<8x32xf32>
      %203 = arith.addf %199, %202 : vector<8x32xf32>
      %c1_153 = arith.constant 1 : index
      %c0_154 = arith.constant 0 : index
      %c0_155 = arith.constant 0 : index
      %204 = vector.load %arg18[%c1_153, %c0_154, %c0_155] : memref<4x1x32xf32, #tpu.memory_space<vmem>>, vector<1x1x32xf32>
      %205 = vector.shape_cast %204 : vector<1x1x32xf32> to vector<1x32xf32>
      %206 = vector.broadcast %205 : vector<1x32xf32> to vector<8x32xf32>
      %207 = arith.addf %203, %206 : vector<8x32xf32>
      %cst_156 = arith.constant 5.000000e-01 : f32
      %208 = vector.broadcast %cst_156 : f32 to vector<8x32xf32>
      %209 = arith.mulf %208, %207 : vector<8x32xf32>
      %210 = math.tanh %209 : vector<8x32xf32>
      %cst_157 = arith.constant 1.000000e+00 : f32
      %211 = vector.broadcast %cst_157 : f32 to vector<8x32xf32>
      %212 = arith.addf %210, %211 : vector<8x32xf32>
      %cst_158 = arith.constant 5.000000e-01 : f32
      %213 = vector.broadcast %cst_158 : f32 to vector<8x32xf32>
      %214 = arith.mulf %213, %212 : vector<8x32xf32>
      %c2_159 = arith.constant 2 : index
      %c0_160 = arith.constant 0 : index
      %c0_161 = arith.constant 0 : index
      %215 = vector.load %arg16[%c2_159, %c0_160, %c0_161] : memref<3x16x32xf32, #tpu.memory_space<vmem>>, vector<1x16x32xf32>
      %216 = vector.shape_cast %215 : vector<1x16x32xf32> to vector<16x32xf32>
      %cst_162 = arith.constant dense<0.000000e+00> : vector<8x32xf32>
      %217 = tpu.matmul %178, %216, %cst_162 {dimension_numbers = #tpu.dot_dimension_numbers<[1], [0], [0], [1], [0, 0, 1, 1], [], []>} : vector<8x16xf32>, vector<16x32xf32>, vector<8x32xf32> -> vector<8x32xf32>
      %c2_163 = arith.constant 2 : index
      %c0_164 = arith.constant 0 : index
      %c0_165 = arith.constant 0 : index
      %218 = vector.load %arg18[%c2_163, %c0_164, %c0_165] : memref<4x1x32xf32, #tpu.memory_space<vmem>>, vector<1x1x32xf32>
      %219 = vector.shape_cast %218 : vector<1x1x32xf32> to vector<1x32xf32>
      %220 = vector.broadcast %219 : vector<1x32xf32> to vector<8x32xf32>
      %221 = arith.addf %217, %220 : vector<8x32xf32>
      %c2_166 = arith.constant 2 : index
      %c0_167 = arith.constant 0 : index
      %c0_168 = arith.constant 0 : index
      %222 = vector.load %arg17[%c2_166, %c0_167, %c0_168] : memref<3x32x32xf32, #tpu.memory_space<vmem>>, vector<1x32x32xf32>
      %223 = vector.shape_cast %222 : vector<1x32x32xf32> to vector<32x32xf32>
      %cst_169 = arith.constant dense<0.000000e+00> : vector<8x32xf32>
      %224 = tpu.matmul %42, %223, %cst_169 {dimension_numbers = #tpu.dot_dimension_numbers<[1], [0], [0], [1], [0, 0, 1, 1], [], []>} : vector<8x32xf32>, vector<32x32xf32>, vector<8x32xf32> -> vector<8x32xf32>
      %c3_170 = arith.constant 3 : index
      %c0_171 = arith.constant 0 : index
      %c0_172 = arith.constant 0 : index
      %225 = vector.load %arg18[%c3_170, %c0_171, %c0_172] : memref<4x1x32xf32, #tpu.memory_space<vmem>>, vector<1x1x32xf32>
      %226 = vector.shape_cast %225 : vector<1x1x32xf32> to vector<1x32xf32>
      %227 = vector.broadcast %226 : vector<1x32xf32> to vector<8x32xf32>
      %228 = arith.addf %224, %227 : vector<8x32xf32>
      %229 = arith.mulf %196, %228 : vector<8x32xf32>
      %230 = arith.addf %221, %229 : vector<8x32xf32>
      %231 = math.tanh %230 : vector<8x32xf32>
      %cst_173 = arith.constant 1.000000e+00 : f32
      %232 = vector.broadcast %cst_173 : f32 to vector<8x32xf32>
      %233 = arith.subf %232, %214 : vector<8x32xf32>
      %234 = arith.mulf %233, %231 : vector<8x32xf32>
      %235 = arith.mulf %214, %42 : vector<8x32xf32>
      %236 = arith.addf %234, %235 : vector<8x32xf32>
      %237 = arith.subf %236, %42 : vector<8x32xf32>
      %238 = vector.broadcast %124 : vector<8x1xf32> to vector<8x32xf32>
      %239 = arith.mulf %238, %237 : vector<8x32xf32>
      %240 = arith.addf %42, %239 : vector<8x32xf32>
      %c0_174 = arith.constant 0 : index
      %c0_175 = arith.constant 0 : index
      %241 = vector.load %arg12[%c0_174, %c0_175] : memref<32x32xf32, #tpu.memory_space<vmem>>, vector<32x32xf32>
      %cst_176 = arith.constant dense<0.000000e+00> : vector<8x32xf32>
      %242 = tpu.matmul %240, %241, %cst_176 {dimension_numbers = #tpu.dot_dimension_numbers<[1], [0], [0], [1], [0, 0, 1, 1], [], []>} : vector<8x32xf32>, vector<32x32xf32>, vector<8x32xf32> -> vector<8x32xf32>
      %c0_177 = arith.constant 0 : index
      %c0_178 = arith.constant 0 : index
      %243 = vector.load %arg13[%c0_177, %c0_178] : memref<1x32xf32, #tpu.memory_space<vmem>>, vector<1x32xf32>
      %244 = vector.broadcast %243 : vector<1x32xf32> to vector<8x32xf32>
      %245 = arith.addf %242, %244 : vector<8x32xf32>
      %cst_179 = arith.constant 0.000000e+00 : f32
      %246 = vector.broadcast %cst_179 : f32 to vector<8x32xf32>
      %247 = arith.maximumf %245, %246 : vector<8x32xf32>
      %c0_180 = arith.constant 0 : index
      %c0_181 = arith.constant 0 : index
      %248 = vector.load %arg14[%c0_180, %c0_181] : memref<32x8xf32, #tpu.memory_space<vmem>>, vector<32x8xf32>
      %cst_182 = arith.constant dense<0.000000e+00> : vector<8x8xf32>
      %249 = tpu.matmul %247, %248, %cst_182 {dimension_numbers = #tpu.dot_dimension_numbers<[1], [0], [0], [1], [0, 0, 1, 1], [], []>} : vector<8x32xf32>, vector<32x8xf32>, vector<8x8xf32> -> vector<8x8xf32>
      %c0_183 = arith.constant 0 : index
      %c0_184 = arith.constant 0 : index
      %250 = vector.load %arg15[%c0_183, %c0_184] : memref<1x8xf32, #tpu.memory_space<vmem>>, vector<1x8xf32>
      %251 = vector.broadcast %250 : vector<1x8xf32> to vector<8x8xf32>
      %252 = arith.addf %249, %251 : vector<8x8xf32>
      %253 = math.exp %252 : vector<8x8xf32>
      %254 = vector.extract_strided_slice %253 {offsets = [0, 0], sizes = [8, 4], strides = [1, 1]} : vector<8x8xf32> to vector<8x4xf32>
      %255 = vector.extract_strided_slice %253 {offsets = [0, 4], sizes = [8, 4], strides = [1, 1]} : vector<8x8xf32> to vector<8x4xf32>
      %cst_185 = arith.constant -1.000000e+01 : f32
      %cst_186 = arith.constant 1.000000e+01 : f32
      %256 = vector.broadcast %cst_185 : f32 to vector<8x4xf32>
      %257 = arith.maximumf %256, %255 : vector<8x4xf32>
      %258 = vector.broadcast %cst_186 : f32 to vector<8x4xf32>
      %259 = arith.minimumf %258, %257 : vector<8x4xf32>
      %cst_187 = arith.constant 5.000000e-01 : f32
      %260 = vector.broadcast %cst_187 : f32 to vector<8x4xf32>
      %261 = arith.mulf %260, %259 : vector<8x4xf32>
      %262 = math.exp %261 : vector<8x4xf32>
      %cst_188 = arith.constant 9.99999997E-7 : f32
      %cst_189 = arith.constant 1.000000e+06 : f32
      %263 = vector.broadcast %cst_188 : f32 to vector<8x4xf32>
      %264 = arith.maximumf %263, %262 : vector<8x4xf32>
      %265 = vector.broadcast %cst_189 : f32 to vector<8x4xf32>
      %266 = arith.minimumf %265, %264 : vector<8x4xf32>
      %267 = math.log %266 : vector<8x4xf32>
      %cst_190 = arith.constant -4.60517025 : f32
      %268 = vector.broadcast %cst_190 : f32 to vector<8x4xf32>
      %269 = arith.subf %268, %267 : vector<8x4xf32>
      %270 = arith.mulf %266, %266 : vector<8x4xf32>
      %271 = arith.subf %254, %120 : vector<8x4xf32>
      %272 = arith.mulf %271, %271 : vector<8x4xf32>
      %273 = arith.addf %270, %272 : vector<8x4xf32>
      %cst_191 = arith.constant 5.000000e+03 : f32
      %274 = vector.broadcast %cst_191 : f32 to vector<8x4xf32>
      %275 = arith.mulf %273, %274 : vector<8x4xf32>
      %276 = arith.addf %269, %275 : vector<8x4xf32>
      %cst_192 = arith.constant 5.000000e-01 : f32
      %277 = vector.broadcast %cst_192 : f32 to vector<8x4xf32>
      %278 = arith.subf %276, %277 : vector<8x4xf32>
      %279 = arith.mulf %278, %122 : vector<8x4xf32>
      %280 = vector.shape_cast %279 : vector<8x4xf32> to vector<1x8x4xf32>
      %cst_193 = arith.constant dense<0.000000e+00> : vector<1xf32>
      %281 = vector.multi_reduction <add>, %280, %cst_193 [1, 2] : vector<1x8x4xf32> to vector<1xf32>
      %282 = vector.shape_cast %281 : vector<1xf32> to vector<1x1x1xf32>
      %283 = vector.extract %282[0, 0, 0] : f32 from vector<1x1x1xf32>
      %284 = vector.broadcast %283 : f32 to vector<1x1xf32>
      %c0_194 = arith.constant 0 : index
      %c0_195 = arith.constant 0 : index
      %c0_196 = arith.constant 0 : index
      %285 = vector.load %arg22[%c0_194, %c0_195, %c0_196] : memref<1x8x32xf32, #tpu.memory_space<vmem>>, vector<1x8x32xf32>
      %286 = vector.shape_cast %285 : vector<1x8x32xf32> to vector<8x32xf32>
      %287 = vector.shape_cast %240 : vector<8x32xf32> to vector<1x8x32xf32>
      tpu.vector_store %arg22[%c0_194, %c0_195, %c0_196], %287 {strides = array<i32>} : memref<1x8x32xf32, #tpu.memory_space<vmem>>, vector<1x8x32xf32>,
      %c0_197 = arith.constant 0 : index
      %c0_198 = arith.constant 0 : index
      %c0_199 = arith.constant 0 : index
      %288 = vector.load %arg23[%c0_197, %c0_198, %c0_199] : memref<1x8x8xf32, #tpu.memory_space<vmem>>, vector<1x8x8xf32>
      %289 = vector.shape_cast %288 : vector<1x8x8xf32> to vector<8x8xf32>
      %290 = vector.shape_cast %253 : vector<8x8xf32> to vector<1x8x8xf32>
      tpu.vector_store %arg23[%c0_197, %c0_198, %c0_199], %290 {strides = array<i32>} : memref<1x8x8xf32, #tpu.memory_space<vmem>>, vector<1x8x8xf32>,
      %c0_i32_200 = arith.constant 0 : i32
      %291 = vector.broadcast %c0_i32_200 : i32 to vector<8x128xi32>
      %292 = arith.cmpi eq, %3, %291 : vector<8x128xi32>
      %293 = vector.broadcast %40 : i32 to vector<8x128xi32>
      %294 = arith.cmpi eq, %4, %293 : vector<8x128xi32>
      %295 = arith.andi %292, %294 : vector<8x128xi1>
      %296 = arith.extui %295 : vector<8x128xi1> to vector<8x128xi32>
      %297 = arith.sitofp %296 : vector<8x128xi32> to vector<8x128xf32>
      %c1_i32_201 = arith.constant 1 : i32
      %298 = vector.broadcast %c1_i32_201 : i32 to vector<8x128xi32>
      %299 = arith.cmpi eq, %3, %298 : vector<8x128xi32>
      %c0_i32_202 = arith.constant 0 : i32
      %300 = vector.broadcast %c0_i32_202 : i32 to vector<8x128xi32>
      %301 = arith.cmpi eq, %4, %300 : vector<8x128xi32>
      %302 = arith.andi %299, %301 : vector<8x128xi1>
      %303 = arith.extui %302 : vector<8x128xi1> to vector<8x128xi32>
      %304 = arith.sitofp %303 : vector<8x128xi32> to vector<8x128xf32>
      %c0_203 = arith.constant 0 : index
      %c0_204 = arith.constant 0 : index
      %c0_205 = arith.constant 0 : index
      %305 = vector.load %arg26[%c0_203, %c0_204, %c0_205] : memref<1x8x128xf32, #tpu.memory_space<vmem>>, vector<1x8x128xf32>
      %306 = vector.shape_cast %305 : vector<1x8x128xf32> to vector<8x128xf32>
      %307 = vector.broadcast %155 : vector<1x1xf32> to vector<8x128xf32>
      %308 = arith.mulf %297, %307 : vector<8x128xf32>
      %309 = arith.addf %306, %308 : vector<8x128xf32>
      %310 = vector.broadcast %284 : vector<1x1xf32> to vector<8x128xf32>
      %311 = arith.mulf %304, %310 : vector<8x128xf32>
      %312 = arith.addf %309, %311 : vector<8x128xf32>
      %c0_206 = arith.constant 0 : index
      %c0_207 = arith.constant 0 : index
      %c0_208 = arith.constant 0 : index
      %313 = vector.load %arg26[%c0_206, %c0_207, %c0_208] : memref<1x8x128xf32, #tpu.memory_space<vmem>>, vector<1x8x128xf32>
      %314 = vector.shape_cast %313 : vector<1x8x128xf32> to vector<8x128xf32>
      %315 = vector.shape_cast %312 : vector<8x128xf32> to vector<1x8x128xf32>
      tpu.vector_store %arg26[%c0_206, %c0_207, %c0_208], %315 {strides = array<i32>} : memref<1x8x128xf32, #tpu.memory_space<vmem>>, vector<1x8x128xf32>,
    } else {
    }
    %c0_36 = arith.constant 0 : index
    %c0_37 = arith.constant 0 : index
    %c0_38 = arith.constant 0 : index
    %51 = vector.load %arg22[%c0_36, %c0_37, %c0_38] : memref<1x8x32xf32, #tpu.memory_space<vmem>>, vector<1x8x32xf32>
    %52 = vector.shape_cast %51 : vector<1x8x32xf32> to vector<8x32xf32>
    %c0_39 = arith.constant 0 : index
    %c1 = arith.constant 1 : index
    %c0_40 = arith.constant 0 : index
    %c0_41 = arith.constant 0 : index
    %53 = vector.load %arg24[%c0_39, %c1, %c0_40, %c0_41] : memref<1x4x8x32xf32, #tpu.memory_space<vmem>>, vector<1x1x8x32xf32>
    %54 = vector.shape_cast %53 : vector<1x1x8x32xf32> to vector<8x32xf32>
    %55 = vector.shape_cast %52 : vector<8x32xf32> to vector<1x1x8x32xf32>
    tpu.vector_store %arg24[%c0_39, %c1, %c0_40, %c0_41], %55 {strides = array<i32>} : memref<1x4x8x32xf32, #tpu.memory_space<vmem>>, vector<1x1x8x32xf32>,
    %c0_42 = arith.constant 0 : index
    %c0_43 = arith.constant 0 : index
    %c0_44 = arith.constant 0 : index
    %56 = vector.load %arg23[%c0_42, %c0_43, %c0_44] : memref<1x8x8xf32, #tpu.memory_space<vmem>>, vector<1x8x8xf32>
    %57 = vector.shape_cast %56 : vector<1x8x8xf32> to vector<8x8xf32>
    %c0_45 = arith.constant 0 : index
    %c1_46 = arith.constant 1 : index
    %c0_47 = arith.constant 0 : index
    %c0_48 = arith.constant 0 : index
    %58 = vector.load %arg25[%c0_45, %c1_46, %c0_47, %c0_48] : memref<1x4x8x8xf32, #tpu.memory_space<vmem>>, vector<1x1x8x8xf32>
    %59 = vector.shape_cast %58 : vector<1x1x8x8xf32> to vector<8x8xf32>
    %60 = vector.shape_cast %57 : vector<8x8xf32> to vector<1x1x8x8xf32>
    tpu.vector_store %arg25[%c0_45, %c1_46, %c0_47, %c0_48], %60 {strides = array<i32>} : memref<1x4x8x8xf32, #tpu.memory_space<vmem>>, vector<1x1x8x8xf32>,
    %c4_i32_49 = arith.constant 4 : i32
    %61 = arith.muli %arg1, %c4_i32_49 : i32
    %c2_i32 = arith.constant 2 : i32
    %62 = arith.addi %61, %c2_i32 : i32
    %63 = arith.index_cast %arg0 : i32 to index
    %64 = arith.index_cast %62 : i32 to index
    %65 = memref.load %arg2[%63, %64] : memref<2x16xi32, #tpu.memory_space<smem>>
    %66 = arith.index_cast %arg0 : i32 to index
    %67 = arith.index_cast %62 : i32 to index
    %68 = memref.load %arg3[%66, %67] : memref<2x16xi32, #tpu.memory_space<smem>>
    %c0_50 = arith.constant 0 : index
    %c0_51 = arith.constant 0 : index
    %c0_52 = arith.constant 0 : index
    %69 = vector.load %arg22[%c0_50, %c0_51, %c0_52] : memref<1x8x32xf32, #tpu.memory_space<vmem>>, vector<1x8x32xf32>
    %70 = vector.shape_cast %69 : vector<1x8x32xf32> to vector<8x32xf32>
    %c0_53 = arith.constant 0 : index
    %c0_54 = arith.constant 0 : index
    %c0_55 = arith.constant 0 : index
    %71 = vector.load %arg23[%c0_53, %c0_54, %c0_55] : memref<1x8x8xf32, #tpu.memory_space<vmem>>, vector<1x8x8xf32>
    %72 = vector.shape_cast %71 : vector<1x8x8xf32> to vector<8x8xf32>
    %c0_i32_56 = arith.constant 0 : i32
    %73 = arith.cmpi eq, %65, %c0_i32_56 : i32
    %74 = arith.extui %73 : i1 to i32
    %c0_i32_57 = arith.constant 0 : i32
    %75 = arith.cmpi ne, %74, %c0_i32_57 : i32
    scf.if %75 {
      %c0_97 = arith.constant 0 : index
      %c0_98 = arith.constant 0 : index
      %c0_99 = arith.constant 0 : index
      %117 = vector.load %arg9[%c0_97, %c0_98, %c0_99] : memref<3x8x32xf32, #tpu.memory_space<vmem>>, vector<1x8x32xf32>
      %118 = vector.shape_cast %117 : vector<1x8x32xf32> to vector<8x32xf32>
      %cst = arith.constant dense<0.000000e+00> : vector<8x32xf32>
      %119 = tpu.matmul %72, %118, %cst {dimension_numbers = #tpu.dot_dimension_numbers<[1], [0], [0], [1], [0, 0, 1, 1], [], []>} : vector<8x8xf32>, vector<8x32xf32>, vector<8x32xf32> -> vector<8x32xf32>
      %c0_100 = arith.constant 0 : index
      %c0_101 = arith.constant 0 : index
      %c0_102 = arith.constant 0 : index
      %120 = vector.load %arg10[%c0_100, %c0_101, %c0_102] : memref<3x1x32xf32, #tpu.memory_space<vmem>>, vector<1x1x32xf32>
      %121 = vector.shape_cast %120 : vector<1x1x32xf32> to vector<1x32xf32>
      %122 = vector.broadcast %121 : vector<1x32xf32> to vector<8x32xf32>
      %123 = arith.addf %119, %122 : vector<8x32xf32>
      %c0_103 = arith.constant 0 : index
      %c0_104 = arith.constant 0 : index
      %c0_105 = arith.constant 0 : index
      %124 = vector.load %arg11[%c0_103, %c0_104, %c0_105] : memref<3x32x32xf32, #tpu.memory_space<vmem>>, vector<1x32x32xf32>
      %125 = vector.shape_cast %124 : vector<1x32x32xf32> to vector<32x32xf32>
      %cst_106 = arith.constant dense<0.000000e+00> : vector<8x32xf32>
      %126 = tpu.matmul %70, %125, %cst_106 {dimension_numbers = #tpu.dot_dimension_numbers<[1], [0], [0], [1], [0, 0, 1, 1], [], []>} : vector<8x32xf32>, vector<32x32xf32>, vector<8x32xf32> -> vector<8x32xf32>
      %127 = arith.addf %123, %126 : vector<8x32xf32>
      %cst_107 = arith.constant 5.000000e-01 : f32
      %128 = vector.broadcast %cst_107 : f32 to vector<8x32xf32>
      %129 = arith.mulf %128, %127 : vector<8x32xf32>
      %130 = math.tanh %129 : vector<8x32xf32>
      %cst_108 = arith.constant 1.000000e+00 : f32
      %131 = vector.broadcast %cst_108 : f32 to vector<8x32xf32>
      %132 = arith.addf %130, %131 : vector<8x32xf32>
      %cst_109 = arith.constant 5.000000e-01 : f32
      %133 = vector.broadcast %cst_109 : f32 to vector<8x32xf32>
      %134 = arith.mulf %133, %132 : vector<8x32xf32>
      %c1_110 = arith.constant 1 : index
      %c0_111 = arith.constant 0 : index
      %c0_112 = arith.constant 0 : index
      %135 = vector.load %arg9[%c1_110, %c0_111, %c0_112] : memref<3x8x32xf32, #tpu.memory_space<vmem>>, vector<1x8x32xf32>
      %136 = vector.shape_cast %135 : vector<1x8x32xf32> to vector<8x32xf32>
      %cst_113 = arith.constant dense<0.000000e+00> : vector<8x32xf32>
      %137 = tpu.matmul %72, %136, %cst_113 {dimension_numbers = #tpu.dot_dimension_numbers<[1], [0], [0], [1], [0, 0, 1, 1], [], []>} : vector<8x8xf32>, vector<8x32xf32>, vector<8x32xf32> -> vector<8x32xf32>
      %c1_114 = arith.constant 1 : index
      %c0_115 = arith.constant 0 : index
      %c0_116 = arith.constant 0 : index
      %138 = vector.load %arg10[%c1_114, %c0_115, %c0_116] : memref<3x1x32xf32, #tpu.memory_space<vmem>>, vector<1x1x32xf32>
      %139 = vector.shape_cast %138 : vector<1x1x32xf32> to vector<1x32xf32>
      %140 = vector.broadcast %139 : vector<1x32xf32> to vector<8x32xf32>
      %141 = arith.addf %137, %140 : vector<8x32xf32>
      %c1_117 = arith.constant 1 : index
      %c0_118 = arith.constant 0 : index
      %c0_119 = arith.constant 0 : index
      %142 = vector.load %arg11[%c1_117, %c0_118, %c0_119] : memref<3x32x32xf32, #tpu.memory_space<vmem>>, vector<1x32x32xf32>
      %143 = vector.shape_cast %142 : vector<1x32x32xf32> to vector<32x32xf32>
      %cst_120 = arith.constant dense<0.000000e+00> : vector<8x32xf32>
      %144 = tpu.matmul %70, %143, %cst_120 {dimension_numbers = #tpu.dot_dimension_numbers<[1], [0], [0], [1], [0, 0, 1, 1], [], []>} : vector<8x32xf32>, vector<32x32xf32>, vector<8x32xf32> -> vector<8x32xf32>
      %145 = arith.addf %141, %144 : vector<8x32xf32>
      %cst_121 = arith.constant 5.000000e-01 : f32
      %146 = vector.broadcast %cst_121 : f32 to vector<8x32xf32>
      %147 = arith.mulf %146, %145 : vector<8x32xf32>
      %148 = math.tanh %147 : vector<8x32xf32>
      %cst_122 = arith.constant 1.000000e+00 : f32
      %149 = vector.broadcast %cst_122 : f32 to vector<8x32xf32>
      %150 = arith.addf %148, %149 : vector<8x32xf32>
      %cst_123 = arith.constant 5.000000e-01 : f32
      %151 = vector.broadcast %cst_123 : f32 to vector<8x32xf32>
      %152 = arith.mulf %151, %150 : vector<8x32xf32>
      %c2_124 = arith.constant 2 : index
      %c0_125 = arith.constant 0 : index
      %c0_126 = arith.constant 0 : index
      %153 = vector.load %arg9[%c2_124, %c0_125, %c0_126] : memref<3x8x32xf32, #tpu.memory_space<vmem>>, vector<1x8x32xf32>
      %154 = vector.shape_cast %153 : vector<1x8x32xf32> to vector<8x32xf32>
      %cst_127 = arith.constant dense<0.000000e+00> : vector<8x32xf32>
      %155 = tpu.matmul %72, %154, %cst_127 {dimension_numbers = #tpu.dot_dimension_numbers<[1], [0], [0], [1], [0, 0, 1, 1], [], []>} : vector<8x8xf32>, vector<8x32xf32>, vector<8x32xf32> -> vector<8x32xf32>
      %c2_128 = arith.constant 2 : index
      %c0_129 = arith.constant 0 : index
      %c0_130 = arith.constant 0 : index
      %156 = vector.load %arg10[%c2_128, %c0_129, %c0_130] : memref<3x1x32xf32, #tpu.memory_space<vmem>>, vector<1x1x32xf32>
      %157 = vector.shape_cast %156 : vector<1x1x32xf32> to vector<1x32xf32>
      %158 = vector.broadcast %157 : vector<1x32xf32> to vector<8x32xf32>
      %159 = arith.addf %155, %158 : vector<8x32xf32>
      %160 = arith.mulf %134, %70 : vector<8x32xf32>
      %c2_131 = arith.constant 2 : index
      %c0_132 = arith.constant 0 : index
      %c0_133 = arith.constant 0 : index
      %161 = vector.load %arg11[%c2_131, %c0_132, %c0_133] : memref<3x32x32xf32, #tpu.memory_space<vmem>>, vector<1x32x32xf32>
      %162 = vector.shape_cast %161 : vector<1x32x32xf32> to vector<32x32xf32>
      %cst_134 = arith.constant dense<0.000000e+00> : vector<8x32xf32>
      %163 = tpu.matmul %160, %162, %cst_134 {dimension_numbers = #tpu.dot_dimension_numbers<[1], [0], [0], [1], [0, 0, 1, 1], [], []>} : vector<8x32xf32>, vector<32x32xf32>, vector<8x32xf32> -> vector<8x32xf32>
      %164 = arith.addf %159, %163 : vector<8x32xf32>
      %165 = math.tanh %164 : vector<8x32xf32>
      %cst_135 = arith.constant 1.000000e+00 : f32
      %166 = vector.broadcast %cst_135 : f32 to vector<8x32xf32>
      %167 = arith.subf %166, %152 : vector<8x32xf32>
      %168 = arith.subf %165, %70 : vector<8x32xf32>
      %169 = arith.mulf %167, %168 : vector<8x32xf32>
      %cst_136 = arith.constant 5.000000e-02 : f32
      %170 = vector.broadcast %cst_136 : f32 to vector<8x32xf32>
      %171 = arith.mulf %170, %169 : vector<8x32xf32>
      %cst_137 = arith.constant -1.000000e+00 : f32
      %cst_138 = arith.constant 1.000000e+00 : f32
      %172 = vector.broadcast %cst_137 : f32 to vector<8x32xf32>
      %173 = arith.maximumf %172, %171 : vector<8x32xf32>
      %174 = vector.broadcast %cst_138 : f32 to vector<8x32xf32>
      %175 = arith.minimumf %174, %173 : vector<8x32xf32>
      %176 = arith.addf %70, %175 : vector<8x32xf32>
      %c0_139 = arith.constant 0 : index
      %c0_140 = arith.constant 0 : index
      %c0_141 = arith.constant 0 : index
      %177 = vector.load %arg22[%c0_139, %c0_140, %c0_141] : memref<1x8x32xf32, #tpu.memory_space<vmem>>, vector<1x8x32xf32>
      %178 = vector.shape_cast %177 : vector<1x8x32xf32> to vector<8x32xf32>
      %179 = vector.shape_cast %176 : vector<8x32xf32> to vector<1x8x32xf32>
      tpu.vector_store %arg22[%c0_139, %c0_140, %c0_141], %179 {strides = array<i32>} : memref<1x8x32xf32, #tpu.memory_space<vmem>>, vector<1x8x32xf32>,
      %c0_142 = arith.constant 0 : index
      %c0_143 = arith.constant 0 : index
      %180 = vector.load %arg12[%c0_142, %c0_143] : memref<32x32xf32, #tpu.memory_space<vmem>>, vector<32x32xf32>
      %cst_144 = arith.constant dense<0.000000e+00> : vector<8x32xf32>
      %181 = tpu.matmul %176, %180, %cst_144 {dimension_numbers = #tpu.dot_dimension_numbers<[1], [0], [0], [1], [0, 0, 1, 1], [], []>} : vector<8x32xf32>, vector<32x32xf32>, vector<8x32xf32> -> vector<8x32xf32>
      %c0_145 = arith.constant 0 : index
      %c0_146 = arith.constant 0 : index
      %182 = vector.load %arg13[%c0_145, %c0_146] : memref<1x32xf32, #tpu.memory_space<vmem>>, vector<1x32xf32>
      %183 = vector.broadcast %182 : vector<1x32xf32> to vector<8x32xf32>
      %184 = arith.addf %181, %183 : vector<8x32xf32>
      %cst_147 = arith.constant 0.000000e+00 : f32
      %185 = vector.broadcast %cst_147 : f32 to vector<8x32xf32>
      %186 = arith.maximumf %184, %185 : vector<8x32xf32>
      %c0_148 = arith.constant 0 : index
      %c0_149 = arith.constant 0 : index
      %187 = vector.load %arg14[%c0_148, %c0_149] : memref<32x8xf32, #tpu.memory_space<vmem>>, vector<32x8xf32>
      %cst_150 = arith.constant dense<0.000000e+00> : vector<8x8xf32>
      %188 = tpu.matmul %186, %187, %cst_150 {dimension_numbers = #tpu.dot_dimension_numbers<[1], [0], [0], [1], [0, 0, 1, 1], [], []>} : vector<8x32xf32>, vector<32x8xf32>, vector<8x8xf32> -> vector<8x8xf32>
      %c0_151 = arith.constant 0 : index
      %c0_152 = arith.constant 0 : index
      %189 = vector.load %arg15[%c0_151, %c0_152] : memref<1x8xf32, #tpu.memory_space<vmem>>, vector<1x8xf32>
      %190 = vector.broadcast %189 : vector<1x8xf32> to vector<8x8xf32>
      %191 = arith.addf %188, %190 : vector<8x8xf32>
      %192 = math.exp %191 : vector<8x8xf32>
      %c0_153 = arith.constant 0 : index
      %c0_154 = arith.constant 0 : index
      %c0_155 = arith.constant 0 : index
      %193 = vector.load %arg23[%c0_153, %c0_154, %c0_155] : memref<1x8x8xf32, #tpu.memory_space<vmem>>, vector<1x8x8xf32>
      %194 = vector.shape_cast %193 : vector<1x8x8xf32> to vector<8x8xf32>
      %195 = vector.shape_cast %192 : vector<8x8xf32> to vector<1x8x8xf32>
      tpu.vector_store %arg23[%c0_153, %c0_154, %c0_155], %195 {strides = array<i32>} : memref<1x8x8xf32, #tpu.memory_space<vmem>>, vector<1x8x8xf32>,
    } else {
    }
    %c1_i32_58 = arith.constant 1 : i32
    %76 = arith.cmpi eq, %65, %c1_i32_58 : i32
    %77 = arith.extui %76 : i1 to i32
    %c0_i32_59 = arith.constant 0 : i32
    %78 = arith.cmpi ne, %77, %c0_i32_59 : i32
    scf.if %78 {
      %c8_i32 = arith.constant 8 : i32
      %117 = arith.muli %68, %c8_i32 : i32
      %118 = tpu.assume_multiple %117, 8 : i32
      %119 = arith.index_cast %118 : i32 to index
      %c0_97 = arith.constant 0 : index
      %120 = vector.load %arg6[%119, %c0_97] : memref<24x4xf32, #tpu.memory_space<vmem>>, vector<8x4xf32>
      %121 = arith.index_cast %118 : i32 to index
      %c0_98 = arith.constant 0 : index
      %122 = vector.load %arg7[%121, %c0_98] : memref<24x4xf32, #tpu.memory_space<vmem>>, vector<8x4xf32>
      %123 = arith.index_cast %118 : i32 to index
      %c0_99 = arith.constant 0 : index
      %124 = vector.load %arg8[%123, %c0_99] : memref<24x1xf32, #tpu.memory_space<vmem>>, vector<8x1xf32>
      %125 = vector.extract_strided_slice %72 {offsets = [0, 0], sizes = [8, 4], strides = [1, 1]} : vector<8x8xf32> to vector<8x4xf32>
      %126 = vector.extract_strided_slice %72 {offsets = [0, 4], sizes = [8, 4], strides = [1, 1]} : vector<8x8xf32> to vector<8x4xf32>
      %cst = arith.constant -1.000000e+01 : f32
      %cst_100 = arith.constant 1.000000e+01 : f32
      %127 = vector.broadcast %cst : f32 to vector<8x4xf32>
      %128 = arith.maximumf %127, %126 : vector<8x4xf32>
      %129 = vector.broadcast %cst_100 : f32 to vector<8x4xf32>
      %130 = arith.minimumf %129, %128 : vector<8x4xf32>
      %cst_101 = arith.constant 5.000000e-01 : f32
      %131 = vector.broadcast %cst_101 : f32 to vector<8x4xf32>
      %132 = arith.mulf %131, %130 : vector<8x4xf32>
      %133 = math.exp %132 : vector<8x4xf32>
      %cst_102 = arith.constant 9.99999997E-7 : f32
      %cst_103 = arith.constant 1.000000e+06 : f32
      %134 = vector.broadcast %cst_102 : f32 to vector<8x4xf32>
      %135 = arith.maximumf %134, %133 : vector<8x4xf32>
      %136 = vector.broadcast %cst_103 : f32 to vector<8x4xf32>
      %137 = arith.minimumf %136, %135 : vector<8x4xf32>
      %138 = arith.subf %120, %125 : vector<8x4xf32>
      %139 = arith.divf %138, %137 : vector<8x4xf32>
      %cst_104 = arith.constant -1.000000e+06 : f32
      %cst_105 = arith.constant 1.000000e+06 : f32
      %140 = vector.broadcast %cst_104 : f32 to vector<8x4xf32>
      %141 = arith.maximumf %140, %139 : vector<8x4xf32>
      %142 = vector.broadcast %cst_105 : f32 to vector<8x4xf32>
      %143 = arith.minimumf %142, %141 : vector<8x4xf32>
      %144 = arith.mulf %143, %143 : vector<8x4xf32>
      %145 = arith.addf %144, %130 : vector<8x4xf32>
      %cst_106 = arith.constant 1.83787704 : f32
      %146 = vector.broadcast %cst_106 : f32 to vector<8x4xf32>
      %147 = arith.addf %145, %146 : vector<8x4xf32>
      %148 = arith.mulf %147, %122 : vector<8x4xf32>
      %cst_107 = arith.constant 5.000000e-01 : f32
      %149 = vector.broadcast %cst_107 : f32 to vector<8x4xf32>
      %150 = arith.mulf %149, %148 : vector<8x4xf32>
      %151 = vector.shape_cast %150 : vector<8x4xf32> to vector<1x8x4xf32>
      %cst_108 = arith.constant dense<0.000000e+00> : vector<1xf32>
      %152 = vector.multi_reduction <add>, %151, %cst_108 [1, 2] : vector<1x8x4xf32> to vector<1xf32>
      %153 = vector.shape_cast %152 : vector<1xf32> to vector<1x1x1xf32>
      %154 = vector.extract %153[0, 0, 0] : f32 from vector<1x1x1xf32>
      %155 = vector.broadcast %154 : f32 to vector<1x1xf32>
      %c0_109 = arith.constant 0 : index
      %c0_110 = arith.constant 0 : index
      %156 = vector.load %arg21[%c0_109, %c0_110] : memref<4x16xf32, #tpu.memory_space<vmem>>, vector<4x16xf32>
      %cst_111 = arith.constant dense<0.000000e+00> : vector<8x16xf32>
      %157 = tpu.matmul %122, %156, %cst_111 {dimension_numbers = #tpu.dot_dimension_numbers<[1], [0], [0], [1], [0, 0, 1, 1], [], []>} : vector<8x4xf32>, vector<4x16xf32>, vector<8x16xf32> -> vector<8x16xf32>
      %c0_112 = arith.constant 0 : index
      %c0_113 = arith.constant 0 : index
      %c0_114 = arith.constant 0 : index
      %158 = vector.load %arg19[%c0_112, %c0_113, %c0_114] : memref<4x4x16xf32, #tpu.memory_space<vmem>>, vector<1x4x16xf32>
      %159 = vector.shape_cast %158 : vector<1x4x16xf32> to vector<4x16xf32>
      %cst_115 = arith.constant dense<0.000000e+00> : vector<8x16xf32>
      %160 = tpu.matmul %120, %159, %cst_115 {dimension_numbers = #tpu.dot_dimension_numbers<[1], [0], [0], [1], [0, 0, 1, 1], [], []>} : vector<8x4xf32>, vector<4x16xf32>, vector<8x16xf32> -> vector<8x16xf32>
      %c1_116 = arith.constant 1 : index
      %c0_117 = arith.constant 0 : index
      %c0_118 = arith.constant 0 : index
      %161 = vector.load %arg19[%c1_116, %c0_117, %c0_118] : memref<4x4x16xf32, #tpu.memory_space<vmem>>, vector<1x4x16xf32>
      %162 = vector.shape_cast %161 : vector<1x4x16xf32> to vector<4x16xf32>
      %cst_119 = arith.constant dense<0.000000e+00> : vector<8x16xf32>
      %163 = tpu.matmul %125, %162, %cst_119 {dimension_numbers = #tpu.dot_dimension_numbers<[1], [0], [0], [1], [0, 0, 1, 1], [], []>} : vector<8x4xf32>, vector<4x16xf32>, vector<8x16xf32> -> vector<8x16xf32>
      %164 = arith.addf %160, %163 : vector<8x16xf32>
      %c2_120 = arith.constant 2 : index
      %c0_121 = arith.constant 0 : index
      %c0_122 = arith.constant 0 : index
      %165 = vector.load %arg19[%c2_120, %c0_121, %c0_122] : memref<4x4x16xf32, #tpu.memory_space<vmem>>, vector<1x4x16xf32>
      %166 = vector.shape_cast %165 : vector<1x4x16xf32> to vector<4x16xf32>
      %cst_123 = arith.constant dense<0.000000e+00> : vector<8x16xf32>
      %167 = tpu.matmul %130, %166, %cst_123 {dimension_numbers = #tpu.dot_dimension_numbers<[1], [0], [0], [1], [0, 0, 1, 1], [], []>} : vector<8x4xf32>, vector<4x16xf32>, vector<8x16xf32> -> vector<8x16xf32>
      %168 = arith.addf %164, %167 : vector<8x16xf32>
      %c3_124 = arith.constant 3 : index
      %c0_125 = arith.constant 0 : index
      %c0_126 = arith.constant 0 : index
      %169 = vector.load %arg19[%c3_124, %c0_125, %c0_126] : memref<4x4x16xf32, #tpu.memory_space<vmem>>, vector<1x4x16xf32>
      %170 = vector.shape_cast %169 : vector<1x4x16xf32> to vector<4x16xf32>
      %cst_127 = arith.constant dense<0.000000e+00> : vector<8x16xf32>
      %171 = tpu.matmul %143, %170, %cst_127 {dimension_numbers = #tpu.dot_dimension_numbers<[1], [0], [0], [1], [0, 0, 1, 1], [], []>} : vector<8x4xf32>, vector<4x16xf32>, vector<8x16xf32> -> vector<8x16xf32>
      %172 = arith.addf %168, %171 : vector<8x16xf32>
      %c0_128 = arith.constant 0 : index
      %c0_129 = arith.constant 0 : index
      %173 = vector.load %arg20[%c0_128, %c0_129] : memref<1x16xf32, #tpu.memory_space<vmem>>, vector<1x16xf32>
      %174 = vector.broadcast %173 : vector<1x16xf32> to vector<8x16xf32>
      %175 = arith.addf %172, %174 : vector<8x16xf32>
      %cst_130 = arith.constant 0.000000e+00 : f32
      %176 = vector.broadcast %cst_130 : f32 to vector<8x16xf32>
      %177 = arith.maximumf %175, %176 : vector<8x16xf32>
      %178 = arith.mulf %177, %157 : vector<8x16xf32>
      %c0_131 = arith.constant 0 : index
      %c0_132 = arith.constant 0 : index
      %c0_133 = arith.constant 0 : index
      %179 = vector.load %arg16[%c0_131, %c0_132, %c0_133] : memref<3x16x32xf32, #tpu.memory_space<vmem>>, vector<1x16x32xf32>
      %180 = vector.shape_cast %179 : vector<1x16x32xf32> to vector<16x32xf32>
      %cst_134 = arith.constant dense<0.000000e+00> : vector<8x32xf32>
      %181 = tpu.matmul %178, %180, %cst_134 {dimension_numbers = #tpu.dot_dimension_numbers<[1], [0], [0], [1], [0, 0, 1, 1], [], []>} : vector<8x16xf32>, vector<16x32xf32>, vector<8x32xf32> -> vector<8x32xf32>
      %c0_135 = arith.constant 0 : index
      %c0_136 = arith.constant 0 : index
      %c0_137 = arith.constant 0 : index
      %182 = vector.load %arg17[%c0_135, %c0_136, %c0_137] : memref<3x32x32xf32, #tpu.memory_space<vmem>>, vector<1x32x32xf32>
      %183 = vector.shape_cast %182 : vector<1x32x32xf32> to vector<32x32xf32>
      %cst_138 = arith.constant dense<0.000000e+00> : vector<8x32xf32>
      %184 = tpu.matmul %70, %183, %cst_138 {dimension_numbers = #tpu.dot_dimension_numbers<[1], [0], [0], [1], [0, 0, 1, 1], [], []>} : vector<8x32xf32>, vector<32x32xf32>, vector<8x32xf32> -> vector<8x32xf32>
      %185 = arith.addf %181, %184 : vector<8x32xf32>
      %c0_139 = arith.constant 0 : index
      %c0_140 = arith.constant 0 : index
      %c0_141 = arith.constant 0 : index
      %186 = vector.load %arg18[%c0_139, %c0_140, %c0_141] : memref<4x1x32xf32, #tpu.memory_space<vmem>>, vector<1x1x32xf32>
      %187 = vector.shape_cast %186 : vector<1x1x32xf32> to vector<1x32xf32>
      %188 = vector.broadcast %187 : vector<1x32xf32> to vector<8x32xf32>
      %189 = arith.addf %185, %188 : vector<8x32xf32>
      %cst_142 = arith.constant 5.000000e-01 : f32
      %190 = vector.broadcast %cst_142 : f32 to vector<8x32xf32>
      %191 = arith.mulf %190, %189 : vector<8x32xf32>
      %192 = math.tanh %191 : vector<8x32xf32>
      %cst_143 = arith.constant 1.000000e+00 : f32
      %193 = vector.broadcast %cst_143 : f32 to vector<8x32xf32>
      %194 = arith.addf %192, %193 : vector<8x32xf32>
      %cst_144 = arith.constant 5.000000e-01 : f32
      %195 = vector.broadcast %cst_144 : f32 to vector<8x32xf32>
      %196 = arith.mulf %195, %194 : vector<8x32xf32>
      %c1_145 = arith.constant 1 : index
      %c0_146 = arith.constant 0 : index
      %c0_147 = arith.constant 0 : index
      %197 = vector.load %arg16[%c1_145, %c0_146, %c0_147] : memref<3x16x32xf32, #tpu.memory_space<vmem>>, vector<1x16x32xf32>
      %198 = vector.shape_cast %197 : vector<1x16x32xf32> to vector<16x32xf32>
      %cst_148 = arith.constant dense<0.000000e+00> : vector<8x32xf32>
      %199 = tpu.matmul %178, %198, %cst_148 {dimension_numbers = #tpu.dot_dimension_numbers<[1], [0], [0], [1], [0, 0, 1, 1], [], []>} : vector<8x16xf32>, vector<16x32xf32>, vector<8x32xf32> -> vector<8x32xf32>
      %c1_149 = arith.constant 1 : index
      %c0_150 = arith.constant 0 : index
      %c0_151 = arith.constant 0 : index
      %200 = vector.load %arg17[%c1_149, %c0_150, %c0_151] : memref<3x32x32xf32, #tpu.memory_space<vmem>>, vector<1x32x32xf32>
      %201 = vector.shape_cast %200 : vector<1x32x32xf32> to vector<32x32xf32>
      %cst_152 = arith.constant dense<0.000000e+00> : vector<8x32xf32>
      %202 = tpu.matmul %70, %201, %cst_152 {dimension_numbers = #tpu.dot_dimension_numbers<[1], [0], [0], [1], [0, 0, 1, 1], [], []>} : vector<8x32xf32>, vector<32x32xf32>, vector<8x32xf32> -> vector<8x32xf32>
      %203 = arith.addf %199, %202 : vector<8x32xf32>
      %c1_153 = arith.constant 1 : index
      %c0_154 = arith.constant 0 : index
      %c0_155 = arith.constant 0 : index
      %204 = vector.load %arg18[%c1_153, %c0_154, %c0_155] : memref<4x1x32xf32, #tpu.memory_space<vmem>>, vector<1x1x32xf32>
      %205 = vector.shape_cast %204 : vector<1x1x32xf32> to vector<1x32xf32>
      %206 = vector.broadcast %205 : vector<1x32xf32> to vector<8x32xf32>
      %207 = arith.addf %203, %206 : vector<8x32xf32>
      %cst_156 = arith.constant 5.000000e-01 : f32
      %208 = vector.broadcast %cst_156 : f32 to vector<8x32xf32>
      %209 = arith.mulf %208, %207 : vector<8x32xf32>
      %210 = math.tanh %209 : vector<8x32xf32>
      %cst_157 = arith.constant 1.000000e+00 : f32
      %211 = vector.broadcast %cst_157 : f32 to vector<8x32xf32>
      %212 = arith.addf %210, %211 : vector<8x32xf32>
      %cst_158 = arith.constant 5.000000e-01 : f32
      %213 = vector.broadcast %cst_158 : f32 to vector<8x32xf32>
      %214 = arith.mulf %213, %212 : vector<8x32xf32>
      %c2_159 = arith.constant 2 : index
      %c0_160 = arith.constant 0 : index
      %c0_161 = arith.constant 0 : index
      %215 = vector.load %arg16[%c2_159, %c0_160, %c0_161] : memref<3x16x32xf32, #tpu.memory_space<vmem>>, vector<1x16x32xf32>
      %216 = vector.shape_cast %215 : vector<1x16x32xf32> to vector<16x32xf32>
      %cst_162 = arith.constant dense<0.000000e+00> : vector<8x32xf32>
      %217 = tpu.matmul %178, %216, %cst_162 {dimension_numbers = #tpu.dot_dimension_numbers<[1], [0], [0], [1], [0, 0, 1, 1], [], []>} : vector<8x16xf32>, vector<16x32xf32>, vector<8x32xf32> -> vector<8x32xf32>
      %c2_163 = arith.constant 2 : index
      %c0_164 = arith.constant 0 : index
      %c0_165 = arith.constant 0 : index
      %218 = vector.load %arg18[%c2_163, %c0_164, %c0_165] : memref<4x1x32xf32, #tpu.memory_space<vmem>>, vector<1x1x32xf32>
      %219 = vector.shape_cast %218 : vector<1x1x32xf32> to vector<1x32xf32>
      %220 = vector.broadcast %219 : vector<1x32xf32> to vector<8x32xf32>
      %221 = arith.addf %217, %220 : vector<8x32xf32>
      %c2_166 = arith.constant 2 : index
      %c0_167 = arith.constant 0 : index
      %c0_168 = arith.constant 0 : index
      %222 = vector.load %arg17[%c2_166, %c0_167, %c0_168] : memref<3x32x32xf32, #tpu.memory_space<vmem>>, vector<1x32x32xf32>
      %223 = vector.shape_cast %222 : vector<1x32x32xf32> to vector<32x32xf32>
      %cst_169 = arith.constant dense<0.000000e+00> : vector<8x32xf32>
      %224 = tpu.matmul %70, %223, %cst_169 {dimension_numbers = #tpu.dot_dimension_numbers<[1], [0], [0], [1], [0, 0, 1, 1], [], []>} : vector<8x32xf32>, vector<32x32xf32>, vector<8x32xf32> -> vector<8x32xf32>
      %c3_170 = arith.constant 3 : index
      %c0_171 = arith.constant 0 : index
      %c0_172 = arith.constant 0 : index
      %225 = vector.load %arg18[%c3_170, %c0_171, %c0_172] : memref<4x1x32xf32, #tpu.memory_space<vmem>>, vector<1x1x32xf32>
      %226 = vector.shape_cast %225 : vector<1x1x32xf32> to vector<1x32xf32>
      %227 = vector.broadcast %226 : vector<1x32xf32> to vector<8x32xf32>
      %228 = arith.addf %224, %227 : vector<8x32xf32>
      %229 = arith.mulf %196, %228 : vector<8x32xf32>
      %230 = arith.addf %221, %229 : vector<8x32xf32>
      %231 = math.tanh %230 : vector<8x32xf32>
      %cst_173 = arith.constant 1.000000e+00 : f32
      %232 = vector.broadcast %cst_173 : f32 to vector<8x32xf32>
      %233 = arith.subf %232, %214 : vector<8x32xf32>
      %234 = arith.mulf %233, %231 : vector<8x32xf32>
      %235 = arith.mulf %214, %70 : vector<8x32xf32>
      %236 = arith.addf %234, %235 : vector<8x32xf32>
      %237 = arith.subf %236, %70 : vector<8x32xf32>
      %238 = vector.broadcast %124 : vector<8x1xf32> to vector<8x32xf32>
      %239 = arith.mulf %238, %237 : vector<8x32xf32>
      %240 = arith.addf %70, %239 : vector<8x32xf32>
      %c0_174 = arith.constant 0 : index
      %c0_175 = arith.constant 0 : index
      %241 = vector.load %arg12[%c0_174, %c0_175] : memref<32x32xf32, #tpu.memory_space<vmem>>, vector<32x32xf32>
      %cst_176 = arith.constant dense<0.000000e+00> : vector<8x32xf32>
      %242 = tpu.matmul %240, %241, %cst_176 {dimension_numbers = #tpu.dot_dimension_numbers<[1], [0], [0], [1], [0, 0, 1, 1], [], []>} : vector<8x32xf32>, vector<32x32xf32>, vector<8x32xf32> -> vector<8x32xf32>
      %c0_177 = arith.constant 0 : index
      %c0_178 = arith.constant 0 : index
      %243 = vector.load %arg13[%c0_177, %c0_178] : memref<1x32xf32, #tpu.memory_space<vmem>>, vector<1x32xf32>
      %244 = vector.broadcast %243 : vector<1x32xf32> to vector<8x32xf32>
      %245 = arith.addf %242, %244 : vector<8x32xf32>
      %cst_179 = arith.constant 0.000000e+00 : f32
      %246 = vector.broadcast %cst_179 : f32 to vector<8x32xf32>
      %247 = arith.maximumf %245, %246 : vector<8x32xf32>
      %c0_180 = arith.constant 0 : index
      %c0_181 = arith.constant 0 : index
      %248 = vector.load %arg14[%c0_180, %c0_181] : memref<32x8xf32, #tpu.memory_space<vmem>>, vector<32x8xf32>
      %cst_182 = arith.constant dense<0.000000e+00> : vector<8x8xf32>
      %249 = tpu.matmul %247, %248, %cst_182 {dimension_numbers = #tpu.dot_dimension_numbers<[1], [0], [0], [1], [0, 0, 1, 1], [], []>} : vector<8x32xf32>, vector<32x8xf32>, vector<8x8xf32> -> vector<8x8xf32>
      %c0_183 = arith.constant 0 : index
      %c0_184 = arith.constant 0 : index
      %250 = vector.load %arg15[%c0_183, %c0_184] : memref<1x8xf32, #tpu.memory_space<vmem>>, vector<1x8xf32>
      %251 = vector.broadcast %250 : vector<1x8xf32> to vector<8x8xf32>
      %252 = arith.addf %249, %251 : vector<8x8xf32>
      %253 = math.exp %252 : vector<8x8xf32>
      %254 = vector.extract_strided_slice %253 {offsets = [0, 0], sizes = [8, 4], strides = [1, 1]} : vector<8x8xf32> to vector<8x4xf32>
      %255 = vector.extract_strided_slice %253 {offsets = [0, 4], sizes = [8, 4], strides = [1, 1]} : vector<8x8xf32> to vector<8x4xf32>
      %cst_185 = arith.constant -1.000000e+01 : f32
      %cst_186 = arith.constant 1.000000e+01 : f32
      %256 = vector.broadcast %cst_185 : f32 to vector<8x4xf32>
      %257 = arith.maximumf %256, %255 : vector<8x4xf32>
      %258 = vector.broadcast %cst_186 : f32 to vector<8x4xf32>
      %259 = arith.minimumf %258, %257 : vector<8x4xf32>
      %cst_187 = arith.constant 5.000000e-01 : f32
      %260 = vector.broadcast %cst_187 : f32 to vector<8x4xf32>
      %261 = arith.mulf %260, %259 : vector<8x4xf32>
      %262 = math.exp %261 : vector<8x4xf32>
      %cst_188 = arith.constant 9.99999997E-7 : f32
      %cst_189 = arith.constant 1.000000e+06 : f32
      %263 = vector.broadcast %cst_188 : f32 to vector<8x4xf32>
      %264 = arith.maximumf %263, %262 : vector<8x4xf32>
      %265 = vector.broadcast %cst_189 : f32 to vector<8x4xf32>
      %266 = arith.minimumf %265, %264 : vector<8x4xf32>
      %267 = math.log %266 : vector<8x4xf32>
      %cst_190 = arith.constant -4.60517025 : f32
      %268 = vector.broadcast %cst_190 : f32 to vector<8x4xf32>
      %269 = arith.subf %268, %267 : vector<8x4xf32>
      %270 = arith.mulf %266, %266 : vector<8x4xf32>
      %271 = arith.subf %254, %120 : vector<8x4xf32>
      %272 = arith.mulf %271, %271 : vector<8x4xf32>
      %273 = arith.addf %270, %272 : vector<8x4xf32>
      %cst_191 = arith.constant 5.000000e+03 : f32
      %274 = vector.broadcast %cst_191 : f32 to vector<8x4xf32>
      %275 = arith.mulf %273, %274 : vector<8x4xf32>
      %276 = arith.addf %269, %275 : vector<8x4xf32>
      %cst_192 = arith.constant 5.000000e-01 : f32
      %277 = vector.broadcast %cst_192 : f32 to vector<8x4xf32>
      %278 = arith.subf %276, %277 : vector<8x4xf32>
      %279 = arith.mulf %278, %122 : vector<8x4xf32>
      %280 = vector.shape_cast %279 : vector<8x4xf32> to vector<1x8x4xf32>
      %cst_193 = arith.constant dense<0.000000e+00> : vector<1xf32>
      %281 = vector.multi_reduction <add>, %280, %cst_193 [1, 2] : vector<1x8x4xf32> to vector<1xf32>
      %282 = vector.shape_cast %281 : vector<1xf32> to vector<1x1x1xf32>
      %283 = vector.extract %282[0, 0, 0] : f32 from vector<1x1x1xf32>
      %284 = vector.broadcast %283 : f32 to vector<1x1xf32>
      %c0_194 = arith.constant 0 : index
      %c0_195 = arith.constant 0 : index
      %c0_196 = arith.constant 0 : index
      %285 = vector.load %arg22[%c0_194, %c0_195, %c0_196] : memref<1x8x32xf32, #tpu.memory_space<vmem>>, vector<1x8x32xf32>
      %286 = vector.shape_cast %285 : vector<1x8x32xf32> to vector<8x32xf32>
      %287 = vector.shape_cast %240 : vector<8x32xf32> to vector<1x8x32xf32>
      tpu.vector_store %arg22[%c0_194, %c0_195, %c0_196], %287 {strides = array<i32>} : memref<1x8x32xf32, #tpu.memory_space<vmem>>, vector<1x8x32xf32>,
      %c0_197 = arith.constant 0 : index
      %c0_198 = arith.constant 0 : index
      %c0_199 = arith.constant 0 : index
      %288 = vector.load %arg23[%c0_197, %c0_198, %c0_199] : memref<1x8x8xf32, #tpu.memory_space<vmem>>, vector<1x8x8xf32>
      %289 = vector.shape_cast %288 : vector<1x8x8xf32> to vector<8x8xf32>
      %290 = vector.shape_cast %253 : vector<8x8xf32> to vector<1x8x8xf32>
      tpu.vector_store %arg23[%c0_197, %c0_198, %c0_199], %290 {strides = array<i32>} : memref<1x8x8xf32, #tpu.memory_space<vmem>>, vector<1x8x8xf32>,
      %c0_i32_200 = arith.constant 0 : i32
      %291 = vector.broadcast %c0_i32_200 : i32 to vector<8x128xi32>
      %292 = arith.cmpi eq, %3, %291 : vector<8x128xi32>
      %293 = vector.broadcast %68 : i32 to vector<8x128xi32>
      %294 = arith.cmpi eq, %4, %293 : vector<8x128xi32>
      %295 = arith.andi %292, %294 : vector<8x128xi1>
      %296 = arith.extui %295 : vector<8x128xi1> to vector<8x128xi32>
      %297 = arith.sitofp %296 : vector<8x128xi32> to vector<8x128xf32>
      %c1_i32_201 = arith.constant 1 : i32
      %298 = vector.broadcast %c1_i32_201 : i32 to vector<8x128xi32>
      %299 = arith.cmpi eq, %3, %298 : vector<8x128xi32>
      %c0_i32_202 = arith.constant 0 : i32
      %300 = vector.broadcast %c0_i32_202 : i32 to vector<8x128xi32>
      %301 = arith.cmpi eq, %4, %300 : vector<8x128xi32>
      %302 = arith.andi %299, %301 : vector<8x128xi1>
      %303 = arith.extui %302 : vector<8x128xi1> to vector<8x128xi32>
      %304 = arith.sitofp %303 : vector<8x128xi32> to vector<8x128xf32>
      %c0_203 = arith.constant 0 : index
      %c0_204 = arith.constant 0 : index
      %c0_205 = arith.constant 0 : index
      %305 = vector.load %arg26[%c0_203, %c0_204, %c0_205] : memref<1x8x128xf32, #tpu.memory_space<vmem>>, vector<1x8x128xf32>
      %306 = vector.shape_cast %305 : vector<1x8x128xf32> to vector<8x128xf32>
      %307 = vector.broadcast %155 : vector<1x1xf32> to vector<8x128xf32>
      %308 = arith.mulf %297, %307 : vector<8x128xf32>
      %309 = arith.addf %306, %308 : vector<8x128xf32>
      %310 = vector.broadcast %284 : vector<1x1xf32> to vector<8x128xf32>
      %311 = arith.mulf %304, %310 : vector<8x128xf32>
      %312 = arith.addf %309, %311 : vector<8x128xf32>
      %c0_206 = arith.constant 0 : index
      %c0_207 = arith.constant 0 : index
      %c0_208 = arith.constant 0 : index
      %313 = vector.load %arg26[%c0_206, %c0_207, %c0_208] : memref<1x8x128xf32, #tpu.memory_space<vmem>>, vector<1x8x128xf32>
      %314 = vector.shape_cast %313 : vector<1x8x128xf32> to vector<8x128xf32>
      %315 = vector.shape_cast %312 : vector<8x128xf32> to vector<1x8x128xf32>
      tpu.vector_store %arg26[%c0_206, %c0_207, %c0_208], %315 {strides = array<i32>} : memref<1x8x128xf32, #tpu.memory_space<vmem>>, vector<1x8x128xf32>,
    } else {
    }
    %c0_60 = arith.constant 0 : index
    %c0_61 = arith.constant 0 : index
    %c0_62 = arith.constant 0 : index
    %79 = vector.load %arg22[%c0_60, %c0_61, %c0_62] : memref<1x8x32xf32, #tpu.memory_space<vmem>>, vector<1x8x32xf32>
    %80 = vector.shape_cast %79 : vector<1x8x32xf32> to vector<8x32xf32>
    %c0_63 = arith.constant 0 : index
    %c2 = arith.constant 2 : index
    %c0_64 = arith.constant 0 : index
    %c0_65 = arith.constant 0 : index
    %81 = vector.load %arg24[%c0_63, %c2, %c0_64, %c0_65] : memref<1x4x8x32xf32, #tpu.memory_space<vmem>>, vector<1x1x8x32xf32>
    %82 = vector.shape_cast %81 : vector<1x1x8x32xf32> to vector<8x32xf32>
    %83 = vector.shape_cast %80 : vector<8x32xf32> to vector<1x1x8x32xf32>
    tpu.vector_store %arg24[%c0_63, %c2, %c0_64, %c0_65], %83 {strides = array<i32>} : memref<1x4x8x32xf32, #tpu.memory_space<vmem>>, vector<1x1x8x32xf32>,
    %c0_66 = arith.constant 0 : index
    %c0_67 = arith.constant 0 : index
    %c0_68 = arith.constant 0 : index
    %84 = vector.load %arg23[%c0_66, %c0_67, %c0_68] : memref<1x8x8xf32, #tpu.memory_space<vmem>>, vector<1x8x8xf32>
    %85 = vector.shape_cast %84 : vector<1x8x8xf32> to vector<8x8xf32>
    %c0_69 = arith.constant 0 : index
    %c2_70 = arith.constant 2 : index
    %c0_71 = arith.constant 0 : index
    %c0_72 = arith.constant 0 : index
    %86 = vector.load %arg25[%c0_69, %c2_70, %c0_71, %c0_72] : memref<1x4x8x8xf32, #tpu.memory_space<vmem>>, vector<1x1x8x8xf32>
    %87 = vector.shape_cast %86 : vector<1x1x8x8xf32> to vector<8x8xf32>
    %88 = vector.shape_cast %85 : vector<8x8xf32> to vector<1x1x8x8xf32>
    tpu.vector_store %arg25[%c0_69, %c2_70, %c0_71, %c0_72], %88 {strides = array<i32>} : memref<1x4x8x8xf32, #tpu.memory_space<vmem>>, vector<1x1x8x8xf32>,
    %c4_i32_73 = arith.constant 4 : i32
    %89 = arith.muli %arg1, %c4_i32_73 : i32
    %c3_i32 = arith.constant 3 : i32
    %90 = arith.addi %89, %c3_i32 : i32
    %91 = arith.index_cast %arg0 : i32 to index
    %92 = arith.index_cast %90 : i32 to index
    %93 = memref.load %arg2[%91, %92] : memref<2x16xi32, #tpu.memory_space<smem>>
    %94 = arith.index_cast %arg0 : i32 to index
    %95 = arith.index_cast %90 : i32 to index
    %96 = memref.load %arg3[%94, %95] : memref<2x16xi32, #tpu.memory_space<smem>>
    %c0_74 = arith.constant 0 : index
    %c0_75 = arith.constant 0 : index
    %c0_76 = arith.constant 0 : index
    %97 = vector.load %arg22[%c0_74, %c0_75, %c0_76] : memref<1x8x32xf32, #tpu.memory_space<vmem>>, vector<1x8x32xf32>
    %98 = vector.shape_cast %97 : vector<1x8x32xf32> to vector<8x32xf32>
    %c0_77 = arith.constant 0 : index
    %c0_78 = arith.constant 0 : index
    %c0_79 = arith.constant 0 : index
    %99 = vector.load %arg23[%c0_77, %c0_78, %c0_79] : memref<1x8x8xf32, #tpu.memory_space<vmem>>, vector<1x8x8xf32>
    %100 = vector.shape_cast %99 : vector<1x8x8xf32> to vector<8x8xf32>
    %c0_i32_80 = arith.constant 0 : i32
    %101 = arith.cmpi eq, %93, %c0_i32_80 : i32
    %102 = arith.extui %101 : i1 to i32
    %c0_i32_81 = arith.constant 0 : i32
    %103 = arith.cmpi ne, %102, %c0_i32_81 : i32
    scf.if %103 {
      %c0_97 = arith.constant 0 : index
      %c0_98 = arith.constant 0 : index
      %c0_99 = arith.constant 0 : index
      %117 = vector.load %arg9[%c0_97, %c0_98, %c0_99] : memref<3x8x32xf32, #tpu.memory_space<vmem>>, vector<1x8x32xf32>
      %118 = vector.shape_cast %117 : vector<1x8x32xf32> to vector<8x32xf32>
      %cst = arith.constant dense<0.000000e+00> : vector<8x32xf32>
      %119 = tpu.matmul %100, %118, %cst {dimension_numbers = #tpu.dot_dimension_numbers<[1], [0], [0], [1], [0, 0, 1, 1], [], []>} : vector<8x8xf32>, vector<8x32xf32>, vector<8x32xf32> -> vector<8x32xf32>
      %c0_100 = arith.constant 0 : index
      %c0_101 = arith.constant 0 : index
      %c0_102 = arith.constant 0 : index
      %120 = vector.load %arg10[%c0_100, %c0_101, %c0_102] : memref<3x1x32xf32, #tpu.memory_space<vmem>>, vector<1x1x32xf32>
      %121 = vector.shape_cast %120 : vector<1x1x32xf32> to vector<1x32xf32>
      %122 = vector.broadcast %121 : vector<1x32xf32> to vector<8x32xf32>
      %123 = arith.addf %119, %122 : vector<8x32xf32>
      %c0_103 = arith.constant 0 : index
      %c0_104 = arith.constant 0 : index
      %c0_105 = arith.constant 0 : index
      %124 = vector.load %arg11[%c0_103, %c0_104, %c0_105] : memref<3x32x32xf32, #tpu.memory_space<vmem>>, vector<1x32x32xf32>
      %125 = vector.shape_cast %124 : vector<1x32x32xf32> to vector<32x32xf32>
      %cst_106 = arith.constant dense<0.000000e+00> : vector<8x32xf32>
      %126 = tpu.matmul %98, %125, %cst_106 {dimension_numbers = #tpu.dot_dimension_numbers<[1], [0], [0], [1], [0, 0, 1, 1], [], []>} : vector<8x32xf32>, vector<32x32xf32>, vector<8x32xf32> -> vector<8x32xf32>
      %127 = arith.addf %123, %126 : vector<8x32xf32>
      %cst_107 = arith.constant 5.000000e-01 : f32
      %128 = vector.broadcast %cst_107 : f32 to vector<8x32xf32>
      %129 = arith.mulf %128, %127 : vector<8x32xf32>
      %130 = math.tanh %129 : vector<8x32xf32>
      %cst_108 = arith.constant 1.000000e+00 : f32
      %131 = vector.broadcast %cst_108 : f32 to vector<8x32xf32>
      %132 = arith.addf %130, %131 : vector<8x32xf32>
      %cst_109 = arith.constant 5.000000e-01 : f32
      %133 = vector.broadcast %cst_109 : f32 to vector<8x32xf32>
      %134 = arith.mulf %133, %132 : vector<8x32xf32>
      %c1_110 = arith.constant 1 : index
      %c0_111 = arith.constant 0 : index
      %c0_112 = arith.constant 0 : index
      %135 = vector.load %arg9[%c1_110, %c0_111, %c0_112] : memref<3x8x32xf32, #tpu.memory_space<vmem>>, vector<1x8x32xf32>
      %136 = vector.shape_cast %135 : vector<1x8x32xf32> to vector<8x32xf32>
      %cst_113 = arith.constant dense<0.000000e+00> : vector<8x32xf32>
      %137 = tpu.matmul %100, %136, %cst_113 {dimension_numbers = #tpu.dot_dimension_numbers<[1], [0], [0], [1], [0, 0, 1, 1], [], []>} : vector<8x8xf32>, vector<8x32xf32>, vector<8x32xf32> -> vector<8x32xf32>
      %c1_114 = arith.constant 1 : index
      %c0_115 = arith.constant 0 : index
      %c0_116 = arith.constant 0 : index
      %138 = vector.load %arg10[%c1_114, %c0_115, %c0_116] : memref<3x1x32xf32, #tpu.memory_space<vmem>>, vector<1x1x32xf32>
      %139 = vector.shape_cast %138 : vector<1x1x32xf32> to vector<1x32xf32>
      %140 = vector.broadcast %139 : vector<1x32xf32> to vector<8x32xf32>
      %141 = arith.addf %137, %140 : vector<8x32xf32>
      %c1_117 = arith.constant 1 : index
      %c0_118 = arith.constant 0 : index
      %c0_119 = arith.constant 0 : index
      %142 = vector.load %arg11[%c1_117, %c0_118, %c0_119] : memref<3x32x32xf32, #tpu.memory_space<vmem>>, vector<1x32x32xf32>
      %143 = vector.shape_cast %142 : vector<1x32x32xf32> to vector<32x32xf32>
      %cst_120 = arith.constant dense<0.000000e+00> : vector<8x32xf32>
      %144 = tpu.matmul %98, %143, %cst_120 {dimension_numbers = #tpu.dot_dimension_numbers<[1], [0], [0], [1], [0, 0, 1, 1], [], []>} : vector<8x32xf32>, vector<32x32xf32>, vector<8x32xf32> -> vector<8x32xf32>
      %145 = arith.addf %141, %144 : vector<8x32xf32>
      %cst_121 = arith.constant 5.000000e-01 : f32
      %146 = vector.broadcast %cst_121 : f32 to vector<8x32xf32>
      %147 = arith.mulf %146, %145 : vector<8x32xf32>
      %148 = math.tanh %147 : vector<8x32xf32>
      %cst_122 = arith.constant 1.000000e+00 : f32
      %149 = vector.broadcast %cst_122 : f32 to vector<8x32xf32>
      %150 = arith.addf %148, %149 : vector<8x32xf32>
      %cst_123 = arith.constant 5.000000e-01 : f32
      %151 = vector.broadcast %cst_123 : f32 to vector<8x32xf32>
      %152 = arith.mulf %151, %150 : vector<8x32xf32>
      %c2_124 = arith.constant 2 : index
      %c0_125 = arith.constant 0 : index
      %c0_126 = arith.constant 0 : index
      %153 = vector.load %arg9[%c2_124, %c0_125, %c0_126] : memref<3x8x32xf32, #tpu.memory_space<vmem>>, vector<1x8x32xf32>
      %154 = vector.shape_cast %153 : vector<1x8x32xf32> to vector<8x32xf32>
      %cst_127 = arith.constant dense<0.000000e+00> : vector<8x32xf32>
      %155 = tpu.matmul %100, %154, %cst_127 {dimension_numbers = #tpu.dot_dimension_numbers<[1], [0], [0], [1], [0, 0, 1, 1], [], []>} : vector<8x8xf32>, vector<8x32xf32>, vector<8x32xf32> -> vector<8x32xf32>
      %c2_128 = arith.constant 2 : index
      %c0_129 = arith.constant 0 : index
      %c0_130 = arith.constant 0 : index
      %156 = vector.load %arg10[%c2_128, %c0_129, %c0_130] : memref<3x1x32xf32, #tpu.memory_space<vmem>>, vector<1x1x32xf32>
      %157 = vector.shape_cast %156 : vector<1x1x32xf32> to vector<1x32xf32>
      %158 = vector.broadcast %157 : vector<1x32xf32> to vector<8x32xf32>
      %159 = arith.addf %155, %158 : vector<8x32xf32>
      %160 = arith.mulf %134, %98 : vector<8x32xf32>
      %c2_131 = arith.constant 2 : index
      %c0_132 = arith.constant 0 : index
      %c0_133 = arith.constant 0 : index
      %161 = vector.load %arg11[%c2_131, %c0_132, %c0_133] : memref<3x32x32xf32, #tpu.memory_space<vmem>>, vector<1x32x32xf32>
      %162 = vector.shape_cast %161 : vector<1x32x32xf32> to vector<32x32xf32>
      %cst_134 = arith.constant dense<0.000000e+00> : vector<8x32xf32>
      %163 = tpu.matmul %160, %162, %cst_134 {dimension_numbers = #tpu.dot_dimension_numbers<[1], [0], [0], [1], [0, 0, 1, 1], [], []>} : vector<8x32xf32>, vector<32x32xf32>, vector<8x32xf32> -> vector<8x32xf32>
      %164 = arith.addf %159, %163 : vector<8x32xf32>
      %165 = math.tanh %164 : vector<8x32xf32>
      %cst_135 = arith.constant 1.000000e+00 : f32
      %166 = vector.broadcast %cst_135 : f32 to vector<8x32xf32>
      %167 = arith.subf %166, %152 : vector<8x32xf32>
      %168 = arith.subf %165, %98 : vector<8x32xf32>
      %169 = arith.mulf %167, %168 : vector<8x32xf32>
      %cst_136 = arith.constant 5.000000e-02 : f32
      %170 = vector.broadcast %cst_136 : f32 to vector<8x32xf32>
      %171 = arith.mulf %170, %169 : vector<8x32xf32>
      %cst_137 = arith.constant -1.000000e+00 : f32
      %cst_138 = arith.constant 1.000000e+00 : f32
      %172 = vector.broadcast %cst_137 : f32 to vector<8x32xf32>
      %173 = arith.maximumf %172, %171 : vector<8x32xf32>
      %174 = vector.broadcast %cst_138 : f32 to vector<8x32xf32>
      %175 = arith.minimumf %174, %173 : vector<8x32xf32>
      %176 = arith.addf %98, %175 : vector<8x32xf32>
      %c0_139 = arith.constant 0 : index
      %c0_140 = arith.constant 0 : index
      %c0_141 = arith.constant 0 : index
      %177 = vector.load %arg22[%c0_139, %c0_140, %c0_141] : memref<1x8x32xf32, #tpu.memory_space<vmem>>, vector<1x8x32xf32>
      %178 = vector.shape_cast %177 : vector<1x8x32xf32> to vector<8x32xf32>
      %179 = vector.shape_cast %176 : vector<8x32xf32> to vector<1x8x32xf32>
      tpu.vector_store %arg22[%c0_139, %c0_140, %c0_141], %179 {strides = array<i32>} : memref<1x8x32xf32, #tpu.memory_space<vmem>>, vector<1x8x32xf32>,
      %c0_142 = arith.constant 0 : index
      %c0_143 = arith.constant 0 : index
      %180 = vector.load %arg12[%c0_142, %c0_143] : memref<32x32xf32, #tpu.memory_space<vmem>>, vector<32x32xf32>
      %cst_144 = arith.constant dense<0.000000e+00> : vector<8x32xf32>
      %181 = tpu.matmul %176, %180, %cst_144 {dimension_numbers = #tpu.dot_dimension_numbers<[1], [0], [0], [1], [0, 0, 1, 1], [], []>} : vector<8x32xf32>, vector<32x32xf32>, vector<8x32xf32> -> vector<8x32xf32>
      %c0_145 = arith.constant 0 : index
      %c0_146 = arith.constant 0 : index
      %182 = vector.load %arg13[%c0_145, %c0_146] : memref<1x32xf32, #tpu.memory_space<vmem>>, vector<1x32xf32>
      %183 = vector.broadcast %182 : vector<1x32xf32> to vector<8x32xf32>
      %184 = arith.addf %181, %183 : vector<8x32xf32>
      %cst_147 = arith.constant 0.000000e+00 : f32
      %185 = vector.broadcast %cst_147 : f32 to vector<8x32xf32>
      %186 = arith.maximumf %184, %185 : vector<8x32xf32>
      %c0_148 = arith.constant 0 : index
      %c0_149 = arith.constant 0 : index
      %187 = vector.load %arg14[%c0_148, %c0_149] : memref<32x8xf32, #tpu.memory_space<vmem>>, vector<32x8xf32>
      %cst_150 = arith.constant dense<0.000000e+00> : vector<8x8xf32>
      %188 = tpu.matmul %186, %187, %cst_150 {dimension_numbers = #tpu.dot_dimension_numbers<[1], [0], [0], [1], [0, 0, 1, 1], [], []>} : vector<8x32xf32>, vector<32x8xf32>, vector<8x8xf32> -> vector<8x8xf32>
      %c0_151 = arith.constant 0 : index
      %c0_152 = arith.constant 0 : index
      %189 = vector.load %arg15[%c0_151, %c0_152] : memref<1x8xf32, #tpu.memory_space<vmem>>, vector<1x8xf32>
      %190 = vector.broadcast %189 : vector<1x8xf32> to vector<8x8xf32>
      %191 = arith.addf %188, %190 : vector<8x8xf32>
      %192 = math.exp %191 : vector<8x8xf32>
      %c0_153 = arith.constant 0 : index
      %c0_154 = arith.constant 0 : index
      %c0_155 = arith.constant 0 : index
      %193 = vector.load %arg23[%c0_153, %c0_154, %c0_155] : memref<1x8x8xf32, #tpu.memory_space<vmem>>, vector<1x8x8xf32>
      %194 = vector.shape_cast %193 : vector<1x8x8xf32> to vector<8x8xf32>
      %195 = vector.shape_cast %192 : vector<8x8xf32> to vector<1x8x8xf32>
      tpu.vector_store %arg23[%c0_153, %c0_154, %c0_155], %195 {strides = array<i32>} : memref<1x8x8xf32, #tpu.memory_space<vmem>>, vector<1x8x8xf32>,
    } else {
    }
    %c1_i32_82 = arith.constant 1 : i32
    %104 = arith.cmpi eq, %93, %c1_i32_82 : i32
    %105 = arith.extui %104 : i1 to i32
    %c0_i32_83 = arith.constant 0 : i32
    %106 = arith.cmpi ne, %105, %c0_i32_83 : i32
    scf.if %106 {
      %c8_i32 = arith.constant 8 : i32
      %117 = arith.muli %96, %c8_i32 : i32
      %118 = tpu.assume_multiple %117, 8 : i32
      %119 = arith.index_cast %118 : i32 to index
      %c0_97 = arith.constant 0 : index
      %120 = vector.load %arg6[%119, %c0_97] : memref<24x4xf32, #tpu.memory_space<vmem>>, vector<8x4xf32>
      %121 = arith.index_cast %118 : i32 to index
      %c0_98 = arith.constant 0 : index
      %122 = vector.load %arg7[%121, %c0_98] : memref<24x4xf32, #tpu.memory_space<vmem>>, vector<8x4xf32>
      %123 = arith.index_cast %118 : i32 to index
      %c0_99 = arith.constant 0 : index
      %124 = vector.load %arg8[%123, %c0_99] : memref<24x1xf32, #tpu.memory_space<vmem>>, vector<8x1xf32>
      %125 = vector.extract_strided_slice %100 {offsets = [0, 0], sizes = [8, 4], strides = [1, 1]} : vector<8x8xf32> to vector<8x4xf32>
      %126 = vector.extract_strided_slice %100 {offsets = [0, 4], sizes = [8, 4], strides = [1, 1]} : vector<8x8xf32> to vector<8x4xf32>
      %cst = arith.constant -1.000000e+01 : f32
      %cst_100 = arith.constant 1.000000e+01 : f32
      %127 = vector.broadcast %cst : f32 to vector<8x4xf32>
      %128 = arith.maximumf %127, %126 : vector<8x4xf32>
      %129 = vector.broadcast %cst_100 : f32 to vector<8x4xf32>
      %130 = arith.minimumf %129, %128 : vector<8x4xf32>
      %cst_101 = arith.constant 5.000000e-01 : f32
      %131 = vector.broadcast %cst_101 : f32 to vector<8x4xf32>
      %132 = arith.mulf %131, %130 : vector<8x4xf32>
      %133 = math.exp %132 : vector<8x4xf32>
      %cst_102 = arith.constant 9.99999997E-7 : f32
      %cst_103 = arith.constant 1.000000e+06 : f32
      %134 = vector.broadcast %cst_102 : f32 to vector<8x4xf32>
      %135 = arith.maximumf %134, %133 : vector<8x4xf32>
      %136 = vector.broadcast %cst_103 : f32 to vector<8x4xf32>
      %137 = arith.minimumf %136, %135 : vector<8x4xf32>
      %138 = arith.subf %120, %125 : vector<8x4xf32>
      %139 = arith.divf %138, %137 : vector<8x4xf32>
      %cst_104 = arith.constant -1.000000e+06 : f32
      %cst_105 = arith.constant 1.000000e+06 : f32
      %140 = vector.broadcast %cst_104 : f32 to vector<8x4xf32>
      %141 = arith.maximumf %140, %139 : vector<8x4xf32>
      %142 = vector.broadcast %cst_105 : f32 to vector<8x4xf32>
      %143 = arith.minimumf %142, %141 : vector<8x4xf32>
      %144 = arith.mulf %143, %143 : vector<8x4xf32>
      %145 = arith.addf %144, %130 : vector<8x4xf32>
      %cst_106 = arith.constant 1.83787704 : f32
      %146 = vector.broadcast %cst_106 : f32 to vector<8x4xf32>
      %147 = arith.addf %145, %146 : vector<8x4xf32>
      %148 = arith.mulf %147, %122 : vector<8x4xf32>
      %cst_107 = arith.constant 5.000000e-01 : f32
      %149 = vector.broadcast %cst_107 : f32 to vector<8x4xf32>
      %150 = arith.mulf %149, %148 : vector<8x4xf32>
      %151 = vector.shape_cast %150 : vector<8x4xf32> to vector<1x8x4xf32>
      %cst_108 = arith.constant dense<0.000000e+00> : vector<1xf32>
      %152 = vector.multi_reduction <add>, %151, %cst_108 [1, 2] : vector<1x8x4xf32> to vector<1xf32>
      %153 = vector.shape_cast %152 : vector<1xf32> to vector<1x1x1xf32>
      %154 = vector.extract %153[0, 0, 0] : f32 from vector<1x1x1xf32>
      %155 = vector.broadcast %154 : f32 to vector<1x1xf32>
      %c0_109 = arith.constant 0 : index
      %c0_110 = arith.constant 0 : index
      %156 = vector.load %arg21[%c0_109, %c0_110] : memref<4x16xf32, #tpu.memory_space<vmem>>, vector<4x16xf32>
      %cst_111 = arith.constant dense<0.000000e+00> : vector<8x16xf32>
      %157 = tpu.matmul %122, %156, %cst_111 {dimension_numbers = #tpu.dot_dimension_numbers<[1], [0], [0], [1], [0, 0, 1, 1], [], []>} : vector<8x4xf32>, vector<4x16xf32>, vector<8x16xf32> -> vector<8x16xf32>
      %c0_112 = arith.constant 0 : index
      %c0_113 = arith.constant 0 : index
      %c0_114 = arith.constant 0 : index
      %158 = vector.load %arg19[%c0_112, %c0_113, %c0_114] : memref<4x4x16xf32, #tpu.memory_space<vmem>>, vector<1x4x16xf32>
      %159 = vector.shape_cast %158 : vector<1x4x16xf32> to vector<4x16xf32>
      %cst_115 = arith.constant dense<0.000000e+00> : vector<8x16xf32>
      %160 = tpu.matmul %120, %159, %cst_115 {dimension_numbers = #tpu.dot_dimension_numbers<[1], [0], [0], [1], [0, 0, 1, 1], [], []>} : vector<8x4xf32>, vector<4x16xf32>, vector<8x16xf32> -> vector<8x16xf32>
      %c1_116 = arith.constant 1 : index
      %c0_117 = arith.constant 0 : index
      %c0_118 = arith.constant 0 : index
      %161 = vector.load %arg19[%c1_116, %c0_117, %c0_118] : memref<4x4x16xf32, #tpu.memory_space<vmem>>, vector<1x4x16xf32>
      %162 = vector.shape_cast %161 : vector<1x4x16xf32> to vector<4x16xf32>
      %cst_119 = arith.constant dense<0.000000e+00> : vector<8x16xf32>
      %163 = tpu.matmul %125, %162, %cst_119 {dimension_numbers = #tpu.dot_dimension_numbers<[1], [0], [0], [1], [0, 0, 1, 1], [], []>} : vector<8x4xf32>, vector<4x16xf32>, vector<8x16xf32> -> vector<8x16xf32>
      %164 = arith.addf %160, %163 : vector<8x16xf32>
      %c2_120 = arith.constant 2 : index
      %c0_121 = arith.constant 0 : index
      %c0_122 = arith.constant 0 : index
      %165 = vector.load %arg19[%c2_120, %c0_121, %c0_122] : memref<4x4x16xf32, #tpu.memory_space<vmem>>, vector<1x4x16xf32>
      %166 = vector.shape_cast %165 : vector<1x4x16xf32> to vector<4x16xf32>
      %cst_123 = arith.constant dense<0.000000e+00> : vector<8x16xf32>
      %167 = tpu.matmul %130, %166, %cst_123 {dimension_numbers = #tpu.dot_dimension_numbers<[1], [0], [0], [1], [0, 0, 1, 1], [], []>} : vector<8x4xf32>, vector<4x16xf32>, vector<8x16xf32> -> vector<8x16xf32>
      %168 = arith.addf %164, %167 : vector<8x16xf32>
      %c3_124 = arith.constant 3 : index
      %c0_125 = arith.constant 0 : index
      %c0_126 = arith.constant 0 : index
      %169 = vector.load %arg19[%c3_124, %c0_125, %c0_126] : memref<4x4x16xf32, #tpu.memory_space<vmem>>, vector<1x4x16xf32>
      %170 = vector.shape_cast %169 : vector<1x4x16xf32> to vector<4x16xf32>
      %cst_127 = arith.constant dense<0.000000e+00> : vector<8x16xf32>
      %171 = tpu.matmul %143, %170, %cst_127 {dimension_numbers = #tpu.dot_dimension_numbers<[1], [0], [0], [1], [0, 0, 1, 1], [], []>} : vector<8x4xf32>, vector<4x16xf32>, vector<8x16xf32> -> vector<8x16xf32>
      %172 = arith.addf %168, %171 : vector<8x16xf32>
      %c0_128 = arith.constant 0 : index
      %c0_129 = arith.constant 0 : index
      %173 = vector.load %arg20[%c0_128, %c0_129] : memref<1x16xf32, #tpu.memory_space<vmem>>, vector<1x16xf32>
      %174 = vector.broadcast %173 : vector<1x16xf32> to vector<8x16xf32>
      %175 = arith.addf %172, %174 : vector<8x16xf32>
      %cst_130 = arith.constant 0.000000e+00 : f32
      %176 = vector.broadcast %cst_130 : f32 to vector<8x16xf32>
      %177 = arith.maximumf %175, %176 : vector<8x16xf32>
      %178 = arith.mulf %177, %157 : vector<8x16xf32>
      %c0_131 = arith.constant 0 : index
      %c0_132 = arith.constant 0 : index
      %c0_133 = arith.constant 0 : index
      %179 = vector.load %arg16[%c0_131, %c0_132, %c0_133] : memref<3x16x32xf32, #tpu.memory_space<vmem>>, vector<1x16x32xf32>
      %180 = vector.shape_cast %179 : vector<1x16x32xf32> to vector<16x32xf32>
      %cst_134 = arith.constant dense<0.000000e+00> : vector<8x32xf32>
      %181 = tpu.matmul %178, %180, %cst_134 {dimension_numbers = #tpu.dot_dimension_numbers<[1], [0], [0], [1], [0, 0, 1, 1], [], []>} : vector<8x16xf32>, vector<16x32xf32>, vector<8x32xf32> -> vector<8x32xf32>
      %c0_135 = arith.constant 0 : index
      %c0_136 = arith.constant 0 : index
      %c0_137 = arith.constant 0 : index
      %182 = vector.load %arg17[%c0_135, %c0_136, %c0_137] : memref<3x32x32xf32, #tpu.memory_space<vmem>>, vector<1x32x32xf32>
      %183 = vector.shape_cast %182 : vector<1x32x32xf32> to vector<32x32xf32>
      %cst_138 = arith.constant dense<0.000000e+00> : vector<8x32xf32>
      %184 = tpu.matmul %98, %183, %cst_138 {dimension_numbers = #tpu.dot_dimension_numbers<[1], [0], [0], [1], [0, 0, 1, 1], [], []>} : vector<8x32xf32>, vector<32x32xf32>, vector<8x32xf32> -> vector<8x32xf32>
      %185 = arith.addf %181, %184 : vector<8x32xf32>
      %c0_139 = arith.constant 0 : index
      %c0_140 = arith.constant 0 : index
      %c0_141 = arith.constant 0 : index
      %186 = vector.load %arg18[%c0_139, %c0_140, %c0_141] : memref<4x1x32xf32, #tpu.memory_space<vmem>>, vector<1x1x32xf32>
      %187 = vector.shape_cast %186 : vector<1x1x32xf32> to vector<1x32xf32>
      %188 = vector.broadcast %187 : vector<1x32xf32> to vector<8x32xf32>
      %189 = arith.addf %185, %188 : vector<8x32xf32>
      %cst_142 = arith.constant 5.000000e-01 : f32
      %190 = vector.broadcast %cst_142 : f32 to vector<8x32xf32>
      %191 = arith.mulf %190, %189 : vector<8x32xf32>
      %192 = math.tanh %191 : vector<8x32xf32>
      %cst_143 = arith.constant 1.000000e+00 : f32
      %193 = vector.broadcast %cst_143 : f32 to vector<8x32xf32>
      %194 = arith.addf %192, %193 : vector<8x32xf32>
      %cst_144 = arith.constant 5.000000e-01 : f32
      %195 = vector.broadcast %cst_144 : f32 to vector<8x32xf32>
      %196 = arith.mulf %195, %194 : vector<8x32xf32>
      %c1_145 = arith.constant 1 : index
      %c0_146 = arith.constant 0 : index
      %c0_147 = arith.constant 0 : index
      %197 = vector.load %arg16[%c1_145, %c0_146, %c0_147] : memref<3x16x32xf32, #tpu.memory_space<vmem>>, vector<1x16x32xf32>
      %198 = vector.shape_cast %197 : vector<1x16x32xf32> to vector<16x32xf32>
      %cst_148 = arith.constant dense<0.000000e+00> : vector<8x32xf32>
      %199 = tpu.matmul %178, %198, %cst_148 {dimension_numbers = #tpu.dot_dimension_numbers<[1], [0], [0], [1], [0, 0, 1, 1], [], []>} : vector<8x16xf32>, vector<16x32xf32>, vector<8x32xf32> -> vector<8x32xf32>
      %c1_149 = arith.constant 1 : index
      %c0_150 = arith.constant 0 : index
      %c0_151 = arith.constant 0 : index
      %200 = vector.load %arg17[%c1_149, %c0_150, %c0_151] : memref<3x32x32xf32, #tpu.memory_space<vmem>>, vector<1x32x32xf32>
      %201 = vector.shape_cast %200 : vector<1x32x32xf32> to vector<32x32xf32>
      %cst_152 = arith.constant dense<0.000000e+00> : vector<8x32xf32>
      %202 = tpu.matmul %98, %201, %cst_152 {dimension_numbers = #tpu.dot_dimension_numbers<[1], [0], [0], [1], [0, 0, 1, 1], [], []>} : vector<8x32xf32>, vector<32x32xf32>, vector<8x32xf32> -> vector<8x32xf32>
      %203 = arith.addf %199, %202 : vector<8x32xf32>
      %c1_153 = arith.constant 1 : index
      %c0_154 = arith.constant 0 : index
      %c0_155 = arith.constant 0 : index
      %204 = vector.load %arg18[%c1_153, %c0_154, %c0_155] : memref<4x1x32xf32, #tpu.memory_space<vmem>>, vector<1x1x32xf32>
      %205 = vector.shape_cast %204 : vector<1x1x32xf32> to vector<1x32xf32>
      %206 = vector.broadcast %205 : vector<1x32xf32> to vector<8x32xf32>
      %207 = arith.addf %203, %206 : vector<8x32xf32>
      %cst_156 = arith.constant 5.000000e-01 : f32
      %208 = vector.broadcast %cst_156 : f32 to vector<8x32xf32>
      %209 = arith.mulf %208, %207 : vector<8x32xf32>
      %210 = math.tanh %209 : vector<8x32xf32>
      %cst_157 = arith.constant 1.000000e+00 : f32
      %211 = vector.broadcast %cst_157 : f32 to vector<8x32xf32>
      %212 = arith.addf %210, %211 : vector<8x32xf32>
      %cst_158 = arith.constant 5.000000e-01 : f32
      %213 = vector.broadcast %cst_158 : f32 to vector<8x32xf32>
      %214 = arith.mulf %213, %212 : vector<8x32xf32>
      %c2_159 = arith.constant 2 : index
      %c0_160 = arith.constant 0 : index
      %c0_161 = arith.constant 0 : index
      %215 = vector.load %arg16[%c2_159, %c0_160, %c0_161] : memref<3x16x32xf32, #tpu.memory_space<vmem>>, vector<1x16x32xf32>
      %216 = vector.shape_cast %215 : vector<1x16x32xf32> to vector<16x32xf32>
      %cst_162 = arith.constant dense<0.000000e+00> : vector<8x32xf32>
      %217 = tpu.matmul %178, %216, %cst_162 {dimension_numbers = #tpu.dot_dimension_numbers<[1], [0], [0], [1], [0, 0, 1, 1], [], []>} : vector<8x16xf32>, vector<16x32xf32>, vector<8x32xf32> -> vector<8x32xf32>
      %c2_163 = arith.constant 2 : index
      %c0_164 = arith.constant 0 : index
      %c0_165 = arith.constant 0 : index
      %218 = vector.load %arg18[%c2_163, %c0_164, %c0_165] : memref<4x1x32xf32, #tpu.memory_space<vmem>>, vector<1x1x32xf32>
      %219 = vector.shape_cast %218 : vector<1x1x32xf32> to vector<1x32xf32>
      %220 = vector.broadcast %219 : vector<1x32xf32> to vector<8x32xf32>
      %221 = arith.addf %217, %220 : vector<8x32xf32>
      %c2_166 = arith.constant 2 : index
      %c0_167 = arith.constant 0 : index
      %c0_168 = arith.constant 0 : index
      %222 = vector.load %arg17[%c2_166, %c0_167, %c0_168] : memref<3x32x32xf32, #tpu.memory_space<vmem>>, vector<1x32x32xf32>
      %223 = vector.shape_cast %222 : vector<1x32x32xf32> to vector<32x32xf32>
      %cst_169 = arith.constant dense<0.000000e+00> : vector<8x32xf32>
      %224 = tpu.matmul %98, %223, %cst_169 {dimension_numbers = #tpu.dot_dimension_numbers<[1], [0], [0], [1], [0, 0, 1, 1], [], []>} : vector<8x32xf32>, vector<32x32xf32>, vector<8x32xf32> -> vector<8x32xf32>
      %c3_170 = arith.constant 3 : index
      %c0_171 = arith.constant 0 : index
      %c0_172 = arith.constant 0 : index
      %225 = vector.load %arg18[%c3_170, %c0_171, %c0_172] : memref<4x1x32xf32, #tpu.memory_space<vmem>>, vector<1x1x32xf32>
      %226 = vector.shape_cast %225 : vector<1x1x32xf32> to vector<1x32xf32>
      %227 = vector.broadcast %226 : vector<1x32xf32> to vector<8x32xf32>
      %228 = arith.addf %224, %227 : vector<8x32xf32>
      %229 = arith.mulf %196, %228 : vector<8x32xf32>
      %230 = arith.addf %221, %229 : vector<8x32xf32>
      %231 = math.tanh %230 : vector<8x32xf32>
      %cst_173 = arith.constant 1.000000e+00 : f32
      %232 = vector.broadcast %cst_173 : f32 to vector<8x32xf32>
      %233 = arith.subf %232, %214 : vector<8x32xf32>
      %234 = arith.mulf %233, %231 : vector<8x32xf32>
      %235 = arith.mulf %214, %98 : vector<8x32xf32>
      %236 = arith.addf %234, %235 : vector<8x32xf32>
      %237 = arith.subf %236, %98 : vector<8x32xf32>
      %238 = vector.broadcast %124 : vector<8x1xf32> to vector<8x32xf32>
      %239 = arith.mulf %238, %237 : vector<8x32xf32>
      %240 = arith.addf %98, %239 : vector<8x32xf32>
      %c0_174 = arith.constant 0 : index
      %c0_175 = arith.constant 0 : index
      %241 = vector.load %arg12[%c0_174, %c0_175] : memref<32x32xf32, #tpu.memory_space<vmem>>, vector<32x32xf32>
      %cst_176 = arith.constant dense<0.000000e+00> : vector<8x32xf32>
      %242 = tpu.matmul %240, %241, %cst_176 {dimension_numbers = #tpu.dot_dimension_numbers<[1], [0], [0], [1], [0, 0, 1, 1], [], []>} : vector<8x32xf32>, vector<32x32xf32>, vector<8x32xf32> -> vector<8x32xf32>
      %c0_177 = arith.constant 0 : index
      %c0_178 = arith.constant 0 : index
      %243 = vector.load %arg13[%c0_177, %c0_178] : memref<1x32xf32, #tpu.memory_space<vmem>>, vector<1x32xf32>
      %244 = vector.broadcast %243 : vector<1x32xf32> to vector<8x32xf32>
      %245 = arith.addf %242, %244 : vector<8x32xf32>
      %cst_179 = arith.constant 0.000000e+00 : f32
      %246 = vector.broadcast %cst_179 : f32 to vector<8x32xf32>
      %247 = arith.maximumf %245, %246 : vector<8x32xf32>
      %c0_180 = arith.constant 0 : index
      %c0_181 = arith.constant 0 : index
      %248 = vector.load %arg14[%c0_180, %c0_181] : memref<32x8xf32, #tpu.memory_space<vmem>>, vector<32x8xf32>
      %cst_182 = arith.constant dense<0.000000e+00> : vector<8x8xf32>
      %249 = tpu.matmul %247, %248, %cst_182 {dimension_numbers = #tpu.dot_dimension_numbers<[1], [0], [0], [1], [0, 0, 1, 1], [], []>} : vector<8x32xf32>, vector<32x8xf32>, vector<8x8xf32> -> vector<8x8xf32>
      %c0_183 = arith.constant 0 : index
      %c0_184 = arith.constant 0 : index
      %250 = vector.load %arg15[%c0_183, %c0_184] : memref<1x8xf32, #tpu.memory_space<vmem>>, vector<1x8xf32>
      %251 = vector.broadcast %250 : vector<1x8xf32> to vector<8x8xf32>
      %252 = arith.addf %249, %251 : vector<8x8xf32>
      %253 = math.exp %252 : vector<8x8xf32>
      %254 = vector.extract_strided_slice %253 {offsets = [0, 0], sizes = [8, 4], strides = [1, 1]} : vector<8x8xf32> to vector<8x4xf32>
      %255 = vector.extract_strided_slice %253 {offsets = [0, 4], sizes = [8, 4], strides = [1, 1]} : vector<8x8xf32> to vector<8x4xf32>
      %cst_185 = arith.constant -1.000000e+01 : f32
      %cst_186 = arith.constant 1.000000e+01 : f32
      %256 = vector.broadcast %cst_185 : f32 to vector<8x4xf32>
      %257 = arith.maximumf %256, %255 : vector<8x4xf32>
      %258 = vector.broadcast %cst_186 : f32 to vector<8x4xf32>
      %259 = arith.minimumf %258, %257 : vector<8x4xf32>
      %cst_187 = arith.constant 5.000000e-01 : f32
      %260 = vector.broadcast %cst_187 : f32 to vector<8x4xf32>
      %261 = arith.mulf %260, %259 : vector<8x4xf32>
      %262 = math.exp %261 : vector<8x4xf32>
      %cst_188 = arith.constant 9.99999997E-7 : f32
      %cst_189 = arith.constant 1.000000e+06 : f32
      %263 = vector.broadcast %cst_188 : f32 to vector<8x4xf32>
      %264 = arith.maximumf %263, %262 : vector<8x4xf32>
      %265 = vector.broadcast %cst_189 : f32 to vector<8x4xf32>
      %266 = arith.minimumf %265, %264 : vector<8x4xf32>
      %267 = math.log %266 : vector<8x4xf32>
      %cst_190 = arith.constant -4.60517025 : f32
      %268 = vector.broadcast %cst_190 : f32 to vector<8x4xf32>
      %269 = arith.subf %268, %267 : vector<8x4xf32>
      %270 = arith.mulf %266, %266 : vector<8x4xf32>
      %271 = arith.subf %254, %120 : vector<8x4xf32>
      %272 = arith.mulf %271, %271 : vector<8x4xf32>
      %273 = arith.addf %270, %272 : vector<8x4xf32>
      %cst_191 = arith.constant 5.000000e+03 : f32
      %274 = vector.broadcast %cst_191 : f32 to vector<8x4xf32>
      %275 = arith.mulf %273, %274 : vector<8x4xf32>
      %276 = arith.addf %269, %275 : vector<8x4xf32>
      %cst_192 = arith.constant 5.000000e-01 : f32
      %277 = vector.broadcast %cst_192 : f32 to vector<8x4xf32>
      %278 = arith.subf %276, %277 : vector<8x4xf32>
      %279 = arith.mulf %278, %122 : vector<8x4xf32>
      %280 = vector.shape_cast %279 : vector<8x4xf32> to vector<1x8x4xf32>
      %cst_193 = arith.constant dense<0.000000e+00> : vector<1xf32>
      %281 = vector.multi_reduction <add>, %280, %cst_193 [1, 2] : vector<1x8x4xf32> to vector<1xf32>
      %282 = vector.shape_cast %281 : vector<1xf32> to vector<1x1x1xf32>
      %283 = vector.extract %282[0, 0, 0] : f32 from vector<1x1x1xf32>
      %284 = vector.broadcast %283 : f32 to vector<1x1xf32>
      %c0_194 = arith.constant 0 : index
      %c0_195 = arith.constant 0 : index
      %c0_196 = arith.constant 0 : index
      %285 = vector.load %arg22[%c0_194, %c0_195, %c0_196] : memref<1x8x32xf32, #tpu.memory_space<vmem>>, vector<1x8x32xf32>
      %286 = vector.shape_cast %285 : vector<1x8x32xf32> to vector<8x32xf32>
      %287 = vector.shape_cast %240 : vector<8x32xf32> to vector<1x8x32xf32>
      tpu.vector_store %arg22[%c0_194, %c0_195, %c0_196], %287 {strides = array<i32>} : memref<1x8x32xf32, #tpu.memory_space<vmem>>, vector<1x8x32xf32>,
      %c0_197 = arith.constant 0 : index
      %c0_198 = arith.constant 0 : index
      %c0_199 = arith.constant 0 : index
      %288 = vector.load %arg23[%c0_197, %c0_198, %c0_199] : memref<1x8x8xf32, #tpu.memory_space<vmem>>, vector<1x8x8xf32>
      %289 = vector.shape_cast %288 : vector<1x8x8xf32> to vector<8x8xf32>
      %290 = vector.shape_cast %253 : vector<8x8xf32> to vector<1x8x8xf32>
      tpu.vector_store %arg23[%c0_197, %c0_198, %c0_199], %290 {strides = array<i32>} : memref<1x8x8xf32, #tpu.memory_space<vmem>>, vector<1x8x8xf32>,
      %c0_i32_200 = arith.constant 0 : i32
      %291 = vector.broadcast %c0_i32_200 : i32 to vector<8x128xi32>
      %292 = arith.cmpi eq, %3, %291 : vector<8x128xi32>
      %293 = vector.broadcast %96 : i32 to vector<8x128xi32>
      %294 = arith.cmpi eq, %4, %293 : vector<8x128xi32>
      %295 = arith.andi %292, %294 : vector<8x128xi1>
      %296 = arith.extui %295 : vector<8x128xi1> to vector<8x128xi32>
      %297 = arith.sitofp %296 : vector<8x128xi32> to vector<8x128xf32>
      %c1_i32_201 = arith.constant 1 : i32
      %298 = vector.broadcast %c1_i32_201 : i32 to vector<8x128xi32>
      %299 = arith.cmpi eq, %3, %298 : vector<8x128xi32>
      %c0_i32_202 = arith.constant 0 : i32
      %300 = vector.broadcast %c0_i32_202 : i32 to vector<8x128xi32>
      %301 = arith.cmpi eq, %4, %300 : vector<8x128xi32>
      %302 = arith.andi %299, %301 : vector<8x128xi1>
      %303 = arith.extui %302 : vector<8x128xi1> to vector<8x128xi32>
      %304 = arith.sitofp %303 : vector<8x128xi32> to vector<8x128xf32>
      %c0_203 = arith.constant 0 : index
      %c0_204 = arith.constant 0 : index
      %c0_205 = arith.constant 0 : index
      %305 = vector.load %arg26[%c0_203, %c0_204, %c0_205] : memref<1x8x128xf32, #tpu.memory_space<vmem>>, vector<1x8x128xf32>
      %306 = vector.shape_cast %305 : vector<1x8x128xf32> to vector<8x128xf32>
      %307 = vector.broadcast %155 : vector<1x1xf32> to vector<8x128xf32>
      %308 = arith.mulf %297, %307 : vector<8x128xf32>
      %309 = arith.addf %306, %308 : vector<8x128xf32>
      %310 = vector.broadcast %284 : vector<1x1xf32> to vector<8x128xf32>
      %311 = arith.mulf %304, %310 : vector<8x128xf32>
      %312 = arith.addf %309, %311 : vector<8x128xf32>
      %c0_206 = arith.constant 0 : index
      %c0_207 = arith.constant 0 : index
      %c0_208 = arith.constant 0 : index
      %313 = vector.load %arg26[%c0_206, %c0_207, %c0_208] : memref<1x8x128xf32, #tpu.memory_space<vmem>>, vector<1x8x128xf32>
      %314 = vector.shape_cast %313 : vector<1x8x128xf32> to vector<8x128xf32>
      %315 = vector.shape_cast %312 : vector<8x128xf32> to vector<1x8x128xf32>
      tpu.vector_store %arg26[%c0_206, %c0_207, %c0_208], %315 {strides = array<i32>} : memref<1x8x128xf32, #tpu.memory_space<vmem>>, vector<1x8x128xf32>,
    } else {
    }
    %c0_84 = arith.constant 0 : index
    %c0_85 = arith.constant 0 : index
    %c0_86 = arith.constant 0 : index
    %107 = vector.load %arg22[%c0_84, %c0_85, %c0_86] : memref<1x8x32xf32, #tpu.memory_space<vmem>>, vector<1x8x32xf32>
    %108 = vector.shape_cast %107 : vector<1x8x32xf32> to vector<8x32xf32>
    %c0_87 = arith.constant 0 : index
    %c3 = arith.constant 3 : index
    %c0_88 = arith.constant 0 : index
    %c0_89 = arith.constant 0 : index
    %109 = vector.load %arg24[%c0_87, %c3, %c0_88, %c0_89] : memref<1x4x8x32xf32, #tpu.memory_space<vmem>>, vector<1x1x8x32xf32>
    %110 = vector.shape_cast %109 : vector<1x1x8x32xf32> to vector<8x32xf32>
    %111 = vector.shape_cast %108 : vector<8x32xf32> to vector<1x1x8x32xf32>
    tpu.vector_store %arg24[%c0_87, %c3, %c0_88, %c0_89], %111 {strides = array<i32>} : memref<1x4x8x32xf32, #tpu.memory_space<vmem>>, vector<1x1x8x32xf32>,
    %c0_90 = arith.constant 0 : index
    %c0_91 = arith.constant 0 : index
    %c0_92 = arith.constant 0 : index
    %112 = vector.load %arg23[%c0_90, %c0_91, %c0_92] : memref<1x8x8xf32, #tpu.memory_space<vmem>>, vector<1x8x8xf32>
    %113 = vector.shape_cast %112 : vector<1x8x8xf32> to vector<8x8xf32>
    %c0_93 = arith.constant 0 : index
    %c3_94 = arith.constant 3 : index
    %c0_95 = arith.constant 0 : index
    %c0_96 = arith.constant 0 : index
    %114 = vector.load %arg25[%c0_93, %c3_94, %c0_95, %c0_96] : memref<1x4x8x8xf32, #tpu.memory_space<vmem>>, vector<1x1x8x8xf32>
    %115 = vector.shape_cast %114 : vector<1x1x8x8xf32> to vector<8x8xf32>
    %116 = vector.shape_cast %113 : vector<8x8xf32> to vector<1x1x8x8xf32>
    tpu.vector_store %arg25[%c0_93, %c3_94, %c0_95, %c0_96], %116 {strides = array<i32>} : memref<1x4x8x8xf32, #tpu.memory_space<vmem>>, vector<1x1x8x8xf32>,
    return
  }
  func.func @transform_0(%arg0: i32, %arg1: i32, %arg2: memref<2x16xi32, #tpu.memory_space<smem>>, %arg3: memref<2x16xi32, #tpu.memory_space<smem>>) -> (i32, i32, i32) {
    %c0_i32 = arith.constant 0 : i32
    %c0_i32_0 = arith.constant 0 : i32
    %c0_i32_1 = arith.constant 0 : i32
    return %arg0, %c0_i32, %c0_i32_0 : i32, i32, i32
  }
  func.func @transform_1(%arg0: i32, %arg1: i32, %arg2: memref<2x16xi32, #tpu.memory_space<smem>>, %arg3: memref<2x16xi32, #tpu.memory_space<smem>>) -> (i32, i32, i32) {
    %c0_i32 = arith.constant 0 : i32
    %c0_i32_0 = arith.constant 0 : i32
    %c0_i32_1 = arith.constant 0 : i32
    return %arg0, %c0_i32, %c0_i32_0 : i32, i32, i32
  }
  func.func @transform_2(%arg0: i32, %arg1: i32, %arg2: memref<2x16xi32, #tpu.memory_space<smem>>, %arg3: memref<2x16xi32, #tpu.memory_space<smem>>) -> (i32, i32) {
    %c0_i32 = arith.constant 0 : i32
    %c0_i32_0 = arith.constant 0 : i32
    %c0_i32_1 = arith.constant 0 : i32
    return %c0_i32, %c0_i32_0 : i32, i32
  }
  func.func @transform_3(%arg0: i32, %arg1: i32, %arg2: memref<2x16xi32, #tpu.memory_space<smem>>, %arg3: memref<2x16xi32, #tpu.memory_space<smem>>) -> (i32, i32) {
    %c0_i32 = arith.constant 0 : i32
    %c0_i32_0 = arith.constant 0 : i32
    %c0_i32_1 = arith.constant 0 : i32
    return %c0_i32, %c0_i32_0 : i32, i32
  }
  func.func @transform_4(%arg0: i32, %arg1: i32, %arg2: memref<2x16xi32, #tpu.memory_space<smem>>, %arg3: memref<2x16xi32, #tpu.memory_space<smem>>) -> (i32, i32) {
    %c0_i32 = arith.constant 0 : i32
    %c0_i32_0 = arith.constant 0 : i32
    %c0_i32_1 = arith.constant 0 : i32
    return %c0_i32, %c0_i32_0 : i32, i32
  }
  func.func @transform_5(%arg0: i32, %arg1: i32, %arg2: memref<2x16xi32, #tpu.memory_space<smem>>, %arg3: memref<2x16xi32, #tpu.memory_space<smem>>) -> (i32, i32, i32) {
    %c0_i32 = arith.constant 0 : i32
    %c0_i32_0 = arith.constant 0 : i32
    %c0_i32_1 = arith.constant 0 : i32
    %c0_i32_2 = arith.constant 0 : i32
    return %c0_i32, %c0_i32_0, %c0_i32_1 : i32, i32, i32
  }
  func.func @transform_6(%arg0: i32, %arg1: i32, %arg2: memref<2x16xi32, #tpu.memory_space<smem>>, %arg3: memref<2x16xi32, #tpu.memory_space<smem>>) -> (i32, i32, i32) {
    %c0_i32 = arith.constant 0 : i32
    %c0_i32_0 = arith.constant 0 : i32
    %c0_i32_1 = arith.constant 0 : i32
    %c0_i32_2 = arith.constant 0 : i32
    return %c0_i32, %c0_i32_0, %c0_i32_1 : i32, i32, i32
  }
  func.func @transform_7(%arg0: i32, %arg1: i32, %arg2: memref<2x16xi32, #tpu.memory_space<smem>>, %arg3: memref<2x16xi32, #tpu.memory_space<smem>>) -> (i32, i32, i32) {
    %c0_i32 = arith.constant 0 : i32
    %c0_i32_0 = arith.constant 0 : i32
    %c0_i32_1 = arith.constant 0 : i32
    %c0_i32_2 = arith.constant 0 : i32
    return %c0_i32, %c0_i32_0, %c0_i32_1 : i32, i32, i32
  }
  func.func @transform_8(%arg0: i32, %arg1: i32, %arg2: memref<2x16xi32, #tpu.memory_space<smem>>, %arg3: memref<2x16xi32, #tpu.memory_space<smem>>) -> (i32, i32) {
    %c0_i32 = arith.constant 0 : i32
    %c0_i32_0 = arith.constant 0 : i32
    %c0_i32_1 = arith.constant 0 : i32
    return %c0_i32, %c0_i32_0 : i32, i32
  }
  func.func @transform_9(%arg0: i32, %arg1: i32, %arg2: memref<2x16xi32, #tpu.memory_space<smem>>, %arg3: memref<2x16xi32, #tpu.memory_space<smem>>) -> (i32, i32) {
    %c0_i32 = arith.constant 0 : i32
    %c0_i32_0 = arith.constant 0 : i32
    %c0_i32_1 = arith.constant 0 : i32
    return %c0_i32, %c0_i32_0 : i32, i32
  }
  func.func @transform_10(%arg0: i32, %arg1: i32, %arg2: memref<2x16xi32, #tpu.memory_space<smem>>, %arg3: memref<2x16xi32, #tpu.memory_space<smem>>) -> (i32, i32) {
    %c0_i32 = arith.constant 0 : i32
    %c0_i32_0 = arith.constant 0 : i32
    %c0_i32_1 = arith.constant 0 : i32
    return %c0_i32, %c0_i32_0 : i32, i32
  }
  func.func @transform_11(%arg0: i32, %arg1: i32, %arg2: memref<2x16xi32, #tpu.memory_space<smem>>, %arg3: memref<2x16xi32, #tpu.memory_space<smem>>) -> (i32, i32) {
    %c0_i32 = arith.constant 0 : i32
    %c0_i32_0 = arith.constant 0 : i32
    %c0_i32_1 = arith.constant 0 : i32
    return %c0_i32, %c0_i32_0 : i32, i32
  }
  func.func @transform_12(%arg0: i32, %arg1: i32, %arg2: memref<2x16xi32, #tpu.memory_space<smem>>, %arg3: memref<2x16xi32, #tpu.memory_space<smem>>) -> (i32, i32, i32) {
    %c0_i32 = arith.constant 0 : i32
    %c0_i32_0 = arith.constant 0 : i32
    %c0_i32_1 = arith.constant 0 : i32
    %c0_i32_2 = arith.constant 0 : i32
    return %c0_i32, %c0_i32_0, %c0_i32_1 : i32, i32, i32
  }
  func.func @transform_13(%arg0: i32, %arg1: i32, %arg2: memref<2x16xi32, #tpu.memory_space<smem>>, %arg3: memref<2x16xi32, #tpu.memory_space<smem>>) -> (i32, i32, i32) {
    %c0_i32 = arith.constant 0 : i32
    %c0_i32_0 = arith.constant 0 : i32
    %c0_i32_1 = arith.constant 0 : i32
    %c0_i32_2 = arith.constant 0 : i32
    return %c0_i32, %c0_i32_0, %c0_i32_1 : i32, i32, i32
  }
  func.func @transform_14(%arg0: i32, %arg1: i32, %arg2: memref<2x16xi32, #tpu.memory_space<smem>>, %arg3: memref<2x16xi32, #tpu.memory_space<smem>>) -> (i32, i32, i32) {
    %c0_i32 = arith.constant 0 : i32
    %c0_i32_0 = arith.constant 0 : i32
    %c0_i32_1 = arith.constant 0 : i32
    %c0_i32_2 = arith.constant 0 : i32
    return %c0_i32, %c0_i32_0, %c0_i32_1 : i32, i32, i32
  }
  func.func @transform_15(%arg0: i32, %arg1: i32, %arg2: memref<2x16xi32, #tpu.memory_space<smem>>, %arg3: memref<2x16xi32, #tpu.memory_space<smem>>) -> (i32, i32, i32) {
    %c0_i32 = arith.constant 0 : i32
    %c0_i32_0 = arith.constant 0 : i32
    %c0_i32_1 = arith.constant 0 : i32
    %c0_i32_2 = arith.constant 0 : i32
    return %c0_i32, %c0_i32_0, %c0_i32_1 : i32, i32, i32
  }
  func.func @transform_16(%arg0: i32, %arg1: i32, %arg2: memref<2x16xi32, #tpu.memory_space<smem>>, %arg3: memref<2x16xi32, #tpu.memory_space<smem>>) -> (i32, i32) {
    %c0_i32 = arith.constant 0 : i32
    %c0_i32_0 = arith.constant 0 : i32
    %c0_i32_1 = arith.constant 0 : i32
    return %c0_i32, %c0_i32_0 : i32, i32
  }
  func.func @transform_17(%arg0: i32, %arg1: i32, %arg2: memref<2x16xi32, #tpu.memory_space<smem>>, %arg3: memref<2x16xi32, #tpu.memory_space<smem>>) -> (i32, i32) {
    %c0_i32 = arith.constant 0 : i32
    %c0_i32_0 = arith.constant 0 : i32
    %c0_i32_1 = arith.constant 0 : i32
    return %c0_i32, %c0_i32_0 : i32, i32
  }
  func.func @transform_18(%arg0: i32, %arg1: i32, %arg2: memref<2x16xi32, #tpu.memory_space<smem>>, %arg3: memref<2x16xi32, #tpu.memory_space<smem>>) -> (i32, i32, i32) {
    %c0_i32 = arith.constant 0 : i32
    %c0_i32_0 = arith.constant 0 : i32
    %c0_i32_1 = arith.constant 0 : i32
    return %arg0, %c0_i32, %c0_i32_0 : i32, i32, i32
  }
  func.func @transform_19(%arg0: i32, %arg1: i32, %arg2: memref<2x16xi32, #tpu.memory_space<smem>>, %arg3: memref<2x16xi32, #tpu.memory_space<smem>>) -> (i32, i32, i32) {
    %c0_i32 = arith.constant 0 : i32
    %c0_i32_0 = arith.constant 0 : i32
    %c0_i32_1 = arith.constant 0 : i32
    return %arg0, %c0_i32, %c0_i32_0 : i32, i32, i32
  }
  func.func @transform_20(%arg0: i32, %arg1: i32, %arg2: memref<2x16xi32, #tpu.memory_space<smem>>, %arg3: memref<2x16xi32, #tpu.memory_space<smem>>) -> (i32, i32, i32, i32) {
    %c0_i32 = arith.constant 0 : i32
    %c0_i32_0 = arith.constant 0 : i32
    %c0_i32_1 = arith.constant 0 : i32
    return %arg0, %arg1, %c0_i32, %c0_i32_0 : i32, i32, i32, i32
  }
  func.func @transform_21(%arg0: i32, %arg1: i32, %arg2: memref<2x16xi32, #tpu.memory_space<smem>>, %arg3: memref<2x16xi32, #tpu.memory_space<smem>>) -> (i32, i32, i32, i32) {
    %c0_i32 = arith.constant 0 : i32
    %c0_i32_0 = arith.constant 0 : i32
    %c0_i32_1 = arith.constant 0 : i32
    return %arg0, %arg1, %c0_i32, %c0_i32_0 : i32, i32, i32, i32
  }
  func.func @transform_22(%arg0: i32, %arg1: i32, %arg2: memref<2x16xi32, #tpu.memory_space<smem>>, %arg3: memref<2x16xi32, #tpu.memory_space<smem>>) -> (i32, i32, i32) {
    %c0_i32 = arith.constant 0 : i32
    %c0_i32_0 = arith.constant 0 : i32
    %c0_i32_1 = arith.constant 0 : i32
    return %arg0, %c0_i32, %c0_i32_0 : i32, i32, i32
  }
}

</mosaic_0001>

<bundles_post_ra>
// kernel: tpu_custom_call.1
= control target key start
LH: loop header
LB: loop body
LE: loop exit
PB: predicated region body
PF: predicated region fallthrough
CT: control target
= control target key end

     0   :  { %s10948_s28 = smov [#allocation4]   ;;  %s12817_s0 = inlined_call_operand.hbm [shape: s32[2,16], index: 0, kind: input, shape index: {}]   ;;  %s12818_s2 = inlined_call_operand.hbm [shape: f32[2,8,32], index: 2, kind: input, shape index: {}]   ;;  %s12819_s3 = inlined_call_operand.hbm [shape: f32[2,8,8], index: 3, kind: input, shape index: {}]   ;;  %s12820_s4 = inlined_call_operand.vmem [shape: f32[24,4], index: 4, kind: input, shape index: {}]   ;;  %s12821_s5 = inlined_call_operand.vmem [shape: f32[24,4], index: 5, kind: input, shape index: {}]   ;;  %s12822_s6 = inlined_call_operand.vmem [shape: f32[24,1], index: 6, kind: input, shape index: {}]   ;;  %s12823_s7 = inlined_call_operand.hbm [shape: f32[3,8,32], index: 7, kind: input, shape index: {}]   ;;  %s12824_s8 = inlined_call_operand.hbm [shape: f32[3,1,32], index: 8, kind: input, shape index: {}]   ;;  %s12825_s9 = inlined_call_operand.vmem [shape: f32[3,32,32], index: 9, kind: input, shape index: {}]   ;;  %s12826_s10 = inlined_call_operand.hbm [shape: f32[32,32], index: 10, kind: input, shape index: {}]   ;;  %s12827_s11 = inlined_call_operand.hbm [shape: f32[1,32], index: 11, kind: input, shape index: {}]   ;;  %s12828_s12 = inlined_call_operand.vmem [shape: f32[32,8], index: 12, kind: input, shape index: {}]   ;;  %s12829_s13 = inlined_call_operand.hbm [shape: f32[1,8], index: 13, kind: input, shape index: {}]   ;;  %s12830_s14 = inlined_call_operand.vmem [shape: f32[3,16,32], index: 14, kind: input, shape index: {}]   ;;  %s12831_s15 = inlined_call_operand.hbm [shape: f32[3,32,32], index: 15, kind: input, shape index: {}]   ;;  %s12832_s16 = inlined_call_operand.vmem [shape: f32[4,1,32], index: 16, kind: input, shape index: {}]   ;;  %s12833_s17 = inlined_call_operand.hbm [shape: f32[4,4,16], index: 17, kind: input, shape index: {}]   ;;  %s12834_s18 = inlined_call_operand.vmem [shape: f32[1,16], index: 18, kind: input, shape index: {}]   ;;  %s12835_s19 = inlined_call_operand.vmem [shape: f32[4,16], index: 19, kind: input, shape index: {}]   ;;  %s12836_s20 = inlined_call_operand.hbm [shape: f32[2,8,32], index: 20, kind: output, shape index: {0}]   ;;  %s12837_s21 = inlined_call_operand.hbm [shape: f32[2,8,8], index: 21, kind: output, shape index: {1}]   ;;  %s12838_s22 = inlined_call_operand.hbm [shape: f32[2,16,8,32], index: 22, kind: output, shape index: {2}]   ;;  %s12839_s23 = inlined_call_operand.vmem [shape: f32[2,16,8,8], index: 23, kind: output, shape index: {3}]   ;;  %s12840_s24 = inlined_call_operand.hbm [shape: f32[2,8,128], index: 24, kind: output, shape index: {4}]   ;;  %s12841_s1 = inlined_call_operand.hbm [shape: s32[2,16], index: 1, kind: input, shape index: {}]  }
   0x1   :  { %12882 = sst [smem:[#allocation44_spill]] %s12817_s0 }
   0x2   :  { %12883 = sst [smem:[#allocation45_spill]] %s12818_s2 }
   0x3   :  { %12884 = sst [smem:[#allocation46_spill]] %s12819_s3 }
   0x4   :  { %12885 = sst [smem:[#allocation47_spill]] %s12820_s4 }
   0x5   :  { %12886 = sst [smem:[#allocation48_spill]] %s12821_s5 }
   0x6   :  { %12887 = sst [smem:[#allocation49_spill]] %s12822_s6  ;;  %s10947_s6 = smov [#allocation3]  }
   0x7   :  { %12888 = sst [smem:[#allocation50_spill]] %s12823_s7 }
   0x8   :  { %12889 = sst [smem:[#allocation51_spill]] %s12824_s8 }
   0x9   :  { %12890 = sst [smem:[#allocation52_spill]] %s12825_s9 }
   0xa   :  { %12891 = sst [smem:[#allocation53_spill]] %s12826_s10 }
   0xb   :  { %12892 = sst [smem:[#allocation54_spill]] %s12827_s11 }
   0xc   :  { %12893 = sst [smem:[#allocation55_spill]] %s12828_s12 }
   0xd   :  { %12894 = sst [smem:[#allocation56_spill]] %s12829_s13 }
   0xe   :  { %12895 = sst [smem:[#allocation57_spill]] %s12830_s14 }
   0xf   :  { %12896 = sst [smem:[#allocation58_spill]] %s12831_s15 }
  0x10   :  { %12897 = sst [smem:[#allocation59_spill]] %s12832_s16 }
  0x11   :  { %12898 = sst [smem:[#allocation60_spill]] %s12833_s17 }
  0x12   :  { %12899 = sst [smem:[#allocation61_spill]] %s12834_s18 }
  0x13   :  { %12900 = sst [smem:[#allocation62_spill]] %s12835_s19 }
  0x14   :  { %12901 = sst [smem:[#allocation63_spill]] %s12836_s20 }
  0x15   :  { %12902 = sst [smem:[#allocation64_spill]] %s12837_s21 }
  0x16   :  { %12903 = sst [smem:[#allocation65_spill]] %s12838_s22 }
  0x17   :  { %12904 = sst [smem:[#allocation66_spill]] %s12839_s23 }
  0x18   :  { %12905 = sst [smem:[#allocation67_spill]] %s12840_s24 }
  0x19   :  { %s12906_s16 = sld [smem:[#allocation44_spill]] }
  0x1f   :  { %31 = dma.hbm_to_smem %s12906_s16, 32, %s10947_s6, [#allocation2] }
  0x20   :  { %33 = dma.hbm_to_smem %s12841_s1, 32, %s10948_s28, [#allocation2] }
  0x21   :  { %10861 = dma.done.wait [#allocation2], 64 }
  0x22   :  { %10862 = vsyncadd [#allocation2], 4294967232 }
  0x23   :  { %35 = sfence }
  0x24   :  { %36 = vsyncpa [#allocation6], 0 }
  0x25   :  { %38 = vsyncpa [#allocation6 + $0x1], 0 }
  0x26   :  { %39 = vsyncpa [#allocation9], 0 }
  0x27   :  { %41 = vsyncpa [#allocation9 + $0x1], 0 }
  0x28   :  { %42 = vsyncpa [#allocation12], 0 }
  0x29   :  { %43 = vsyncpa [#allocation15], 0 }
  0x2a   :  { %44 = vsyncpa [#allocation18], 0 }
  0x2b   :  { %45 = vsyncpa [#allocation7], 0 }
  0x2c   :  { %47 = vsyncpa [#allocation7 + $0x1], 0 }
  0x2d   :  { %48 = vsyncpa [#allocation22], 0 }
  0x2e   :  { %50 = vsyncpa [#allocation22 + $0x1], 0 }
  0x2f   :  { %51 = vsyncpa [#allocation25], 0 }
  0x30   :  { %53 = vsyncpa [#allocation25 + $0x1], 0  ;;  %s11130_s16 = smov 0   ;;  %s11132_s29 = smov 0  }
  0x31   :  { %s11134_s1 = smov 0   ;;  %s11136_s0 = smov 0  }
  0x32   :  { %s11138_s8 = smov 0   ;;  %s11140_s30 = smov 0  }
  0x33   :  { %s11142_s4 = smov 0   ;;  %s11144_s25 = smov 0  }
  0x34   :  { %s11146_s9 = smov 0   ;;  %s11148_s5 = smov 0  }
  0x35   :  { %s11150_s2 = smov 0  }
  0x36 LB: > { %12907 = sst [smem:[#allocation37_spill]] %s10925_s30  ;;  %s11186_s6 = sadd.s32 4294967295, %s10945_s2   ;;  %s10945_s2 = sphi %s11150_s2, %s59_s2   ;;  %s10941_s5 = sphi %s11148_s5, %s13006_s5   ;;  %s10937_s9 = sphi %s11146_s9, %s13005_s9   ;;  %s10933_s25 = sphi %s11144_s25, %s13012_s25   ;;  %s10929_s4 = sphi %s11142_s4, %s13003_s4   ;;  %s10925_s30 = sphi %s11140_s30, %s13002_s30   ;;  %s10921_s8 = sphi %s11138_s8, %s13011_s8   ;;  %s10917_s0 = sphi %s11136_s0, %s13010_s0   ;;  %s10913_s1 = sphi %s11134_s1, %s13009_s1   ;;  %s10909_s29 = sphi %s11132_s29, %s13008_s29   ;;  %s10905_s16 = sphi %s11130_s16, %s13007_s16  }
  0x37   : > { %12908 = sst [smem:[#allocation38_spill]] %s10933_s25  ;;  %p8817_p0 = scmp.ge.s32.totalorder %s10945_s2, 1 }
  0x38   : > { %12909 = sst [smem:[#allocation39_spill]] %s10937_s9  ;;  %p12872_p1 = scmp.eq.s32.totalorder %s11186_s6, 0 }
  0x39   : > { %12910 = sst [smem:[#allocation40_spill]] %s10941_s5  ;;  %p598_p2 = scmp.lt.s32.totalorder %s10945_s2, 9 }
  0x3a   : > { %s10949_s27 = smov [#allocation10]   ;;  %s10950_s3 = smov [#allocation11]  }
  0x3b   : > { %p11191_p3 = pnand %p8817_p0, %p598_p2  ;;  %s619_s28 = sshll.u32 %s10949_s27, 4  ;;  %s620_s28 = int_to_ptr.vmem [resolvable:$true] %s619_s28 }
  0x3c   : > { %s632_s24 = sshll.u32 %s10950_s3, 4  ;;  %s10486_s27 = scalar_lea.vmem %s620_s28, 384  ;;  %s11203_s24 = int_to_ptr.vmem [resolvable:$true] %s632_s24 }
  0x3d   : > { %s12911_s26 = scalar_select %p11191_p3, 1, 0 }
  0x3e   : > { %p10163_p4 = pneg %p11191_p3  ;;  %p10487_p7 = scmp.ne.s32.totalorder %s620_s28, %s10486_s27 }
  0x3f   : > { %p10494_p10 = scmp.lt.s32.totalorder %s620_s28, %s620_s28  ;;  %p10495_p11 = scmp.lt.s32.totalorder %s10486_s27, %s10486_s27 }
  0x40   : > { %p11199_p5 = pnand %p10163_p4, %p12872_p1 }
  0x41   : > { %p10496_p12 = por %p10495_p11, %p10494_p10 }
  0x42   : > { %p11207_p6 = pneg %p11199_p5 }
  0x44   : > { %p10489_p8 = pnand %p10487_p7, %p11207_p6 }
  0x46   : > { %p10490_p9 = pneg %p10489_p8 }
  0x48   : > { %p10497_p13 = pnand %p10496_p12, %p10490_p9 }
  0x4a   : > { %10500 = shalt.err (!%p10497_p13)
}
  0x4b   : > { %s12866_s20 = smov 128   ;;  %s12868_s3 = smov 8  }
  0x4c   : > { %s12914_s14 = sld [smem:[#allocation50_spill]]  ;;  %s10512_s27 = scalar_lea.vmem %s11203_s24, 48 }
  0x4d   : > { %p10513_p0 = scmp.ne.s32.totalorder %s11203_s24, %s10512_s27  ;;  %s10519_s19 = scalar_lea.vmem %s11203_s24, 64 }
  0x4e   : > { %p10520_p7 = scmp.lt.s32.totalorder %s11203_s24, %s11203_s24  ;;  %p10521_p8 = scmp.lt.s32.totalorder %s10519_s19, %s10512_s27 }
  0x4f   : > { %p10515_p2 = pnand %p10513_p0, %p11207_p6 }
  0x50   : > { %p10522_p9 = por %p10521_p8, %p10520_p7 }
  0x51   : > { %p10516_p4 = pneg %p10515_p2 }
  0x52   : > { %10166 = dma.hbm_to_vmem [thread:$0]  (!%p11199_p5), %s12914_s14, 384, %s620_s28, [#allocation9], %s12866_s20, %s12866_s20, %s12868_s3  }
  0x53   : > { %p10523_p10 = pnand %p10522_p9, %p10516_p4 }
  0x55   : > { %10526 = shalt.err (!%p10523_p10)
}
  0x56   : > { %s10953_s12 = smov 16   ;;  %s10954_s23 = smov 1  }
  0x57   : > { %s12915_s21 = sld [smem:[#allocation51_spill]]  ;;  %s10955_s28 = smov [#allocation14]  }
  0x58   : > { %s662_s20 = sshll.u32 %s10955_s28, 4  ;;  %s10956_s3 = smov [#allocation17]   ;;  %s663_s20 = int_to_ptr.vmem [resolvable:$true] %s662_s20 }
  0x59   : > { %s689_s25 = sshll.u32 %s10956_s3, 4  ;;  %s10538_s19 = scalar_lea.vmem %s663_s20, 16  ;;  %s690_s25 = int_to_ptr.vmem [resolvable:$true] %s689_s25 }
  0x5a   : > { %p10539_p11 = scmp.ne.s32.totalorder %s663_s20, %s10538_s19  ;;  %s10545_s27 = scalar_lea.vmem %s663_s20, 32 }
  0x5b   : > { %p10546_p0 = scmp.lt.s32.totalorder %s663_s20, %s663_s20  ;;  %p10547_p2 = scmp.lt.s32.totalorder %s10545_s27, %s10538_s19 }
  0x5c   : > { %p10541_p12 = pnand %p10539_p11, %p11207_p6 }
  0x5d   : > { %10169 = dma.hbm_to_vmem [thread:$0]  (!%p11199_p5), %s12915_s21, 48, %s11203_s24, [#allocation12], %s10953_s12, %s10953_s12, %s10954_s23  }
  0x5e   : > { %p10542_p13 = pneg %p10541_p12  ;;  %p10548_p4 = por %p10547_p2, %p10546_p0 }
  0x60   : > { %p10549_p7 = pnand %p10548_p4, %p10542_p13 }
  0x62   : > { %10552 = shalt.err (!%p10549_p7)
}
  0x63   : > { %s12916_s11 = sld [smem:[#allocation54_spill]]  ;;  %s10564_s24 = scalar_lea.vmem %s690_s25, 1536 }
  0x64   : > { %p10565_p8 = scmp.ne.s32.totalorder %s690_s25, %s10564_s24  ;;  %p10572_p11 = scmp.lt.s32.totalorder %s690_s25, %s690_s25 }
  0x65   : > { %p10573_p12 = scmp.lt.s32.totalorder %s10564_s24, %s10564_s24 }
  0x66   : > { %p10567_p9 = pnand %p10565_p8, %p11207_p6 }
  0x67   : > { %p10574_p1 = por %p10573_p12, %p10572_p11 }
  0x68   : > { %p10568_p10 = pneg %p10567_p9 }
  0x69   : > { %10175 = dma.hbm_to_vmem [thread:$0]  (!%p11199_p5), %s12916_s11, 16, %s663_s20, [#allocation15]  }
  0x6a   : > { %p10575_p3 = pnand %p10574_p1, %p10568_p10 }
  0x6c   : > { %10578 = shalt.err (!%p10575_p3)
}
  0x6d   : > { %s12917_s3 = smov 8   ;;  %s12918_s18 = smov 128  }
  0x6e   : > { %s12919_s15 = sld [smem:[#allocation58_spill]]  ;;  %s10957_s20 = smov [#allocation13]  }
  0x6f   : > { %s648_s28 = sshll.u32 %s10957_s20, 4  ;;  %s10958_s19 = smov [#allocation16]   ;;  %s649_s28 = int_to_ptr.vmem [resolvable:$true] %s648_s28 }
  0x70   : > { %s676_s27 = sshll.u32 %s10958_s19, 4  ;;  %s10590_s12 = scalar_lea.vmem %s649_s28, 512  ;;  %s677_s27 = int_to_ptr.vmem [resolvable:$true] %s676_s27 }
  0x71   : > { %p10591_p13 = scmp.ne.s32.totalorder %s649_s28, %s10590_s12  ;;  %p10598_p0 = scmp.lt.s32.totalorder %s649_s28, %s649_s28 }
  0x72   : > { %p10599_p2 = scmp.lt.s32.totalorder %s10590_s12, %s10590_s12 }
  0x73   : > { %p10593_p1 = pnand %p10591_p13, %p11207_p6 }
  0x74   : > { %10181 = dma.hbm_to_vmem [thread:$0]  (!%p11199_p5), %s12919_s15, 1536, %s690_s25, [#allocation18], %s12918_s18, %s12918_s18, %s12917_s3  }
  0x75   : > { %p10594_p3 = pneg %p10593_p1  ;;  %p10600_p4 = por %p10599_p2, %p10598_p0 }
  0x77   : > { %p10601_p7 = pnand %p10600_p4, %p10594_p3 }
  0x79   : > { %10604 = shalt.err (!%p10601_p7)
}
  0x7a   : > { %s12920_s10 = sld [smem:[#allocation53_spill]]  ;;  %s10616_s24 = scalar_lea.vmem %s677_s27, 16 }
  0x7b   : > { %p10617_p8 = scmp.ne.s32.totalorder %s677_s27, %s10616_s24  ;;  %s10623_s14 = scalar_lea.vmem %s677_s27, 32 }
  0x7c   : > { %p10624_p11 = scmp.lt.s32.totalorder %s677_s27, %s677_s27  ;;  %p10625_p12 = scmp.lt.s32.totalorder %s10623_s14, %s10616_s24 }
  0x7d   : > { %p10619_p9 = pnand %p10617_p8, %p11207_p6 }
  0x7e   : > { %p10626_p13 = por %p10625_p12, %p10624_p11 }
  0x7f   : > { %p10620_p10 = pneg %p10619_p9 }
  0x80   : > { %10172 = dma.hbm_to_vmem [thread:$0]  (!%p11199_p5), %s12920_s10, 512, %s649_s28, [#allocation12], %s12918_s18, %s12918_s18, %s12917_s3  }
  0x81   : > { %p10627_p1 = pnand %p10626_p13, %p10620_p10 }
  0x83   : > { %10630 = shalt.err (!%p10627_p1)
}
  0x84   : > { %s12921_s13 = sld [smem:[#allocation56_spill]]  ;;  %s10959_s19 = smov [#allocation19]  }
  0x85   : > { %s705_s3 = sshll.u32 %s10959_s19, 4  ;;  %s706_s3 = int_to_ptr.vmem [resolvable:$true] %s705_s3 }
  0x86   : > { %s10642_s18 = scalar_lea.vmem %s706_s3, 256  ;;  %p10650_p4 = scmp.lt.s32.totalorder %s706_s3, %s706_s3 }
  0x87   : > { %p10643_p3 = scmp.ne.s32.totalorder %s706_s3, %s10642_s18  ;;  %p10651_p7 = scmp.lt.s32.totalorder %s10642_s18, %s10642_s18 }
  0x89   : > { %p10645_p0 = pnand %p10643_p3, %p11207_p6  ;;  %p10652_p8 = por %p10651_p7, %p10650_p4 }
  0x8a   : > { %10178 = dma.hbm_to_vmem [thread:$0]  (!%p11199_p5), %s12921_s13, 16, %s677_s27, [#allocation15]  }
  0x8b   : > { %p10646_p2 = pneg %p10645_p0 }
  0x8d   : > { %p10653_p9 = pnand %p10652_p8, %p10646_p2 }
  0x8f   : > { %10656 = shalt.err (!%p10653_p9)
}
  0x90   : > { %s10960_s28 = smov 64   ;;  %s10961_s22 = smov 4  }
  0x91   : > { %s12922_s17 = sld [smem:[#allocation60_spill]]  ;;  %s12874_s25 = sadd.s32 4294967294, %s10945_s2  }
  0x92   : > { %s68_s23 = sadd.s32 1, %s10937_s9  ;;  %s71_s24 = sadd.s32 1, %s10941_s5 }
  0x93   : > { %p69_p6 = scmp.ge.s32.totalorder %s68_s23, 4  ;;  %s78_s14 = sadd.s32 1, %s10925_s30 }
  0x94   : > { %p85_p10 = scmp.ne.s32.totalorder %s10925_s30, %s10921_s8  ;;  %p86_p11 = scmp.eq.s32.totalorder %s10945_s2, 0 }
  0x95   : > { %s13014_s23 = smov (%p69_p6, %s68_s23), 0  ;;  %s13016_s24 = smov (!%p69_p6, %s71_s24), %s10941_s5 }
  0x96   : > { %12923 = sst [smem:[#allocation41_spill]] %s13014_s23  ;;  %p11285_p12 = por %p86_p11, %p85_p10 }
  0x97   : > { %10184 = dma.hbm_to_vmem [thread:$0]  (!%p11199_p5), %s12922_s17, 256, %s706_s3, [#allocation18], %s10960_s28, %s10960_s28, %s10961_s22  }
  0x98   : > { %p91_p5 = scmp.ne.s32.totalorder %s10921_s8, %s10917_s0  ;;  %p73_p13 = scmp.ge.s32.totalorder %s13016_s24, 2 }
  0x99   : > { %p477_p1 = scmp.eq.s32.totalorder %s11186_s6, 7  ;;  %p12925_p3 = scmp.eq.s32.totalorder %s11186_s6, 0 }
  0x9a   : > { %p11300_p2 = scmp.eq.s32.totalorder %s12874_s25, 7  ;;  %s13018_s24 = smov (%p73_p13, %s13016_s24), 0 }
  0x9b   : > { %p11294_p0 = por %p12925_p3, %p91_p5  ;;  %12928 = sst [smem:[#allocation42_spill]] %s13018_s24 }
  0x9c   : > { %p11308_p4 = por %p477_p1, %p85_p10  ;;  %p11314_p7 = por %p11300_p2, %p91_p5 }
  0x9d   : > { %s75_s18 = ssub.s32 %s10941_s5, %s13018_s24  ;;  %s516_s28 = ssub.s32 %s10937_s9, %s13014_s23 }
  0x9e   : > { %p76_p8 = scmp.eq.s32.totalorder %s75_s18, 0  ;;  %s517_s22 = sor.u32 %s516_s28, %s75_s18 }
  0x9f   : > { %p518_p9 = scmp.eq.s32.totalorder %s517_s22, 0  ;;  %s520_s27 = sadd.s32 1, %s10913_s1 }
  0xa0   : > { %s11324_s12 = scalar_select %p76_p8, %s10925_s30, %s78_s14  }
  0xa1   : > { %s11327_s25 = scalar_select %p518_p9, %s10913_s1, %s520_s27  }
  0xa2   : > { %12931 = sst [smem:[#allocation43_spill]] %s11324_s12  ;;  %p530_p6 = scmp.ne.s32.totalorder %s10913_s1, %s10909_s29 }
  0xa3   : > { %p536_p10 = scmp.ne.s32.totalorder %s10909_s29, %s10905_s16  ;;  %p10212_p11 = scmp.lt.s32.totalorder %s10945_s2, 8 }
  0xa4   : > { %s725_s10 = sand.u32 1, %s10925_s30   ;;  %p11337_p5 = por %p530_p6, %p477_p1 }
  0xa5   : > { %p11343_p13 = por %p536_p10, %p11300_p2  ;;  %s8826_s28 = sshll.u32 %s725_s10, 3 }
  0xa6   : > { %s8827_s14 = sshll.u32 %s10941_s5, 7  ;;  %s12934_s27 = sld [smem:[#allocation45_spill]] }
  0xa7   : > { %s12933_s18 = scalar_select %p11343_p13, 1, 0 }
  0xa8   : > { %s729_s17 = scalar_lea.vmem [#allocation5], %s8826_s28  ;;  %p11353_p3 = pnand %p10212_p11, %p11285_p12 }
  0xa9   : > { %s736_s16 = sshll.u32 %s729_s17, 4  ;;  %s12936_s9 = sld [smem:[#allocation46_spill]]  ;;  %s737_s16 = int_to_ptr.vmem [resolvable:$true] %s736_s16 }
  0xaa   : > { %s743_s5 = sand.u32 1, %s10945_s2   ;;  %s726_s30 = scalar_lea.sflag [#allocation6], %s725_s10 }
  0xab   : > { %p10659_p1 = pneg %p11353_p3  ;;  %s10670_s13 = scalar_lea.vmem %s737_s16, 128 }
  0xac   : > { %s734_s15 = scalar_lea.hbm %s12934_s27, %s8827_s14  ;;  %p10671_p2 = scmp.ne.s32.totalorder %s737_s16, %s10670_s13 }
  0xad   : > { %s10962_s17 = smov [#allocation5]  }
  0xae   : > { %p10673_p8 = pnand %p10671_p2, %p10659_p1  ;;  %s10675_s7 = sshll.u32 %s10962_s17, 4  ;;  %s10676_s7 = int_to_ptr.vmem [resolvable:$false] %s10675_s7 }
  0xaf   : > { %s11360_s12 = scalar_lea.hbm %s12936_s9, %s8827_s14  ;;  %s10677_s22 = scalar_lea.vmem %s10676_s7, 256 }
  0xb0   : > { %p10674_p12 = pneg %p10673_p8  ;;  %p10678_p9 = scmp.lt.s32.totalorder %s737_s16, %s10676_s7 }
  0xb1   : > { %p10679_p6 = scmp.lt.s32.totalorder %s10677_s22, %s10670_s13 }
  0xb3   : > { %p10680_p10 = por %p10679_p6, %p10678_p9 }
  0xb5   : > { %p10681_p11 = pnand %p10680_p10, %p10674_p12 }
  0xb7   : > { %10684 = shalt.err (!%p10681_p11)
}
  0xb8   : > { %10188 = dma.hbm_to_vmem [thread:$0]  (!%p11353_p3), %s734_s15, 128, %s737_s16, %s726_s30  }
  0xb9   : > { %s747_s10 = scalar_lea.vmem [#allocation8], %s8826_s28  ;;  %s744_s23 = scalar_lea.sflag [#allocation9], %s743_s5 }
  0xba   : > { %s754_s9 = sshll.u32 %s747_s10, 4  ;;  %s10963_s27 = smov [#allocation8]   ;;  %s755_s9 = int_to_ptr.vmem [resolvable:$true] %s754_s9 }
  0xbb   : > { %s10698_s14 = scalar_lea.vmem %s755_s9, 128  ;;  %s10703_s20 = sshll.u32 %s10963_s27, 4  ;;  %s10704_s20 = int_to_ptr.vmem [resolvable:$false] %s10703_s20 }
  0xbc   : > { %p10699_p2 = scmp.ne.s32.totalorder %s755_s9, %s10698_s14  ;;  %s10705_s13 = scalar_lea.vmem %s10704_s20, 256 }
  0xbd   : > { %p10706_p12 = scmp.lt.s32.totalorder %s755_s9, %s10704_s20  ;;  %p10707_p9 = scmp.lt.s32.totalorder %s10705_s13, %s10698_s14 }
  0xbe   : > { %p10701_p8 = pnand %p10699_p2, %p10659_p1 }
  0xbf   : > { %p10708_p6 = por %p10707_p9, %p10706_p12 }
  0xc0   : > { %p10702_p13 = pneg %p10701_p8 }
  0xc2   : > { %p10709_p10 = pnand %p10708_p6, %p10702_p13 }
  0xc4   : > { %10712 = shalt.err (!%p10709_p10)
}
  0xc5   : > { %10191 = dma.hbm_to_vmem [thread:$0]  (!%p11353_p3), %s11360_s12, 128, %s755_s9, %s744_s23  }
  0xc6   : > { %p12937_p11 = scmp.ne.s32.totalorder %s12911_s26, 0 }
  0xc7   : > { %s11379_s15 = sand.u32 (!%p12937_p11), 1, %s10921_s8  }
  0xc8   : > { %763 = sbr.rel (%p12937_p11) target bundleno = 9715 (0x25f3), region = 92  ;;  %s11382_s30 = sshll.u32 (!%p12937_p11), %s11379_s15, 3 }
  0xc9   : > { %s766_s5 = scalar_lea.sflag (!%p12937_p11), [#allocation6], %s11379_s15  ;;  %s769_s28 = scalar_lea.vmem (!%p12937_p11), [#allocation5], %s11382_s30 }
  0xcd   : > { %10864 = dma.done.wait (%p11294_p0), %s766_s5, 128  }
  0xce   : > { %10866 = vsyncadd (%p11294_p0), %s766_s5, 4294967168  ;;  %s12880_s26 = sand.u32 1, %s11186_s6   ;;  %s778_s12 = scalar_lea.vmem [#allocation8], %s11382_s30 }
  0xcf   : > { %s775_s24 = scalar_lea.sflag [#allocation9], %s12880_s26 }
  0xd0   : > { %10868 = dma.done.wait (%p11294_p0), %s775_s24, 128  }
  0xd1   : > { %10870 = vsyncadd (%p11294_p0), %s775_s24, 4294967168  ;;  %p12938_p13 = scmp.eq.s32.totalorder %s11186_s6, 0 }
  0xd3   : > { %10872 = dma.done.wait (%p12938_p13), [#allocation9], 384   ;;  %p12939_p3 = pmov %p12938_p13 }
  0xd5   : > { %10874 = vsyncadd (%p12939_p3), [#allocation9], 4294966912  ;;  %p12940_p1 = pmov %p12939_p3 }
  0xd7   : > { %10876 = dma.done.wait (%p12940_p1), [#allocation12], 560   ;;  %p12941_p2 = pmov %p12940_p1 }
  0xd8   : > { %p12942_p8 = pmov %p12940_p1 }
  0xd9   : > { %10878 = vsyncadd (%p12941_p2), [#allocation12], 4294966736 }
  0xda   : > { %10880 = dma.done.wait (%p12942_p8), [#allocation15], 32   ;;  %p12943_p12 = pmov %p12940_p1 }
  0xdb   : > { %p12944_p0 = pmov %p12940_p1 }
  0xdc   : > { %10882 = vsyncadd (%p12943_p12), [#allocation15], 4294967264 }
  0xdd   : > { %10884 = dma.done.wait (%p12944_p0), [#allocation18], 1792   ;;  %p12945_p9 = pmov %p12944_p0 }
  0xde   : > { %s12946_s21 = sld [smem:[#allocation38_spill]]  ;;  %s875_s16 = sand.u32 1, %s10909_s29  }
  0xdf   : > { %10886 = vsyncadd (%p12945_p9), [#allocation18], 4294965504  ;;  %s8842_s17 = sshll.u32 %s875_s16, 5  ;;  %s11416_s7 = sshll.u32 %s10929_s4, 2 }
  0xe0   : > { %p900_p10 = scmp.lt.s32.totalorder %s11416_s7, 15  ;;  %s12947_s20 = sld [smem:[#allocation66_spill]] }
  0xe1   : > { %s11428_s5 = scalar_lea.vmem [#allocation20], %s11382_s30  ;;  %s11431_s24 = scalar_lea.vmem [#allocation21], %s11382_s30 }
  0xe2   : > { %s901_s22 = scalar_select %p900_p10, %s11416_s7, 15 }
  0xe3   : > { %s11433_s16 = scalar_lea.vmem [#allocation23], %s8842_s17  ;;  %s11436_s26 = scalar_lea.vmem [#allocation24], %s11382_s30 }
  0xe4   : > { %p898_p6 = scmp.lt.s32.totalorder %s12946_s21, 1  ;;  %p8847_p11 = scmp.ne.s32.totalorder %s10929_s4, 0 }
  0xe6   : > { %s13020_s21 = smov (!%p898_p6, %s12946_s21), 1  ;;  %910 = sbr.rel (%p8847_p11) target bundleno = 238 (0xee), region = 132 }
  0xe7   : > { %s8845_s10 = sshll.u32 %s13020_s21, 4 }
  0xe8   : > { %s903_s9 = sadd.s32 %s8845_s10, %s901_s22 }
  0xe9   : > { %s8846_s23 = sshll.u32 %s903_s9, 3 }
  0xea   : > { %s11425_s13 = scalar_lea.vmem %s12947_s20, %s8846_s23 }
  0xeb   : > { %v911_v0 = vld [vmem:[%s769_s28] sm:$0xff]  ;;  %vm912_vm0 = vcmask 261120   ;;  %v914_v1 = vld [vmem:[%s778_s12] sm:$0xff]  ;;  %vm915_vm1 = vcmask 64512   ;;  %v10964_v2 = vmov 0.0  }
  0xec   : > { %913 = vst.msk [vmem:[%s11428_s5] sm:$0xff] %vm912_vm0, %v911_v0  ;;  %917 = vst [vmem:[%s11436_s26] sm:$0xff] %v10964_v2 }
  0xed   : > { %916 = vst.msk [vmem:[%s11431_s24] sm:$0xff] %vm915_vm1, %v914_v1 }
  0xee PF: > { %v918_v3 = vlaneseq  ;;  %s12948_s4 = sld [smem:[#allocation38_spill]]  ;;  %s923_s21 = sshra.s32 %s11416_s7, 7 }
  0xef   : > { %s928_s30 = sand.u32 127, %s11416_s7 }
  0xf0   : > { %v11453_v6 = vshrl.u32 %v918_v3, 7  ;;  %v11455_v7 = vand.u32 127, %v918_v3 }
  0xf3   : > { %v11447_v4 = vld [vmem:[%s11428_s5] sm:$0xff] }
  0xf4   : > { %v11450_v5 = vld [vmem:[%s11431_s24] sm:$0xff]  ;;  %s925_s28 = sadd.s32 %s12948_s4, %s923_s21 }
  0xf5   : > { %s8849_s12 = sshll.u32 %s925_s28, 7 }
  0xf6   : > { %s929_s17 = sadd.s32 %s8849_s12, %s928_s30 }
  0xf7   : > { %s11457_s22 = sld [smem:[#allocation3 + %s929_s17]] }
  0xf8   : > { %s11459_s10 = sld [smem:[#allocation4 + %s929_s17]] }
  0xfd   : > { %p8850_p13 = scmp.ne.s32.totalorder %s11457_s22, 0 }
  0xfe   : > { %s12949_s14 = sld [smem:[#allocation52_spill]] (!%p8850_p13) }
  0xff   : > { %937 = sbr.rel (%p8850_p13) target bundleno = 1114 (0x45a), region = 136  ;;  %s12950_s21 = sld [smem:[#allocation55_spill]] (!%p8850_p13) }
 0x104   : > { %v1023_v8 = vld [vmem:[%s12949_s14 + $0x18] sm:$0xff]  ;;  %v938_v9 = vld [vmem:[#allocation10] sm:$0xff]  ;;  %v10965_v10 = vmov 0.0   ;;  %v1022_v11 = vld [vmem:[%s12949_s14 + $0x10] sm:$0xff]  ;;  %vm946_vm2 = vcmask 64512   ;;  %vm10966_vm3 = vmmov 0  }
 0x105   : > { %9428 = vmatprep.subr.mxu1 %v10965_v10  ;;  %9423 = vmatprep.subr.mxu0 %v10965_v10  ;;  %v1021_v12 = vld [vmem:[%s12949_s14 + $0x8] sm:$0xff]  ;;  %v1020_v13 = vld [vmem:[%s12949_s14] sm:$0xff]  ;;  %vm1024_vm4 = vcmask 261120   ;;  %v8859_v15 = vld [vmem:[%s12949_s14 + $0x38] sm:$0xff] }
 0x106   : > { %9429 = vmatpush3.msra.mxu1 %v1023_v8  ;;  %9424 = vmatpush3.msra.mxu0 %v938_v9  ;;  %v1104_v14 = vld [vmem:[#allocation10 + $0x8] sm:$0xff]  ;;  %v8858_v16 = vld [vmem:[%s12949_s14 + $0x30] sm:$0xff]  ;;  %v8856_v18 = vld [vmem:[%s12949_s14 + $0x20] sm:$0xff] }
 0x107   : > { %9430 = vmatprep.subr.mxu1 %v10965_v10  ;;  %9425 = vmatprep.mubr.msk.f32.mxu0 %vm10966_vm3, %v10965_v10  ;;  %v8857_v17 = vld [vmem:[%s12949_s14 + $0x28] sm:$0xff]  ;;  %v8866_v19 = vld [vmem:[%s12949_s14 + $0x58] sm:$0xff]  ;;  %v1264_v20 = vld [vmem:[#allocation10 + $0x10] sm:$0xff] }
 0x108   : > { %9431 = vmatpush3.msra.mxu1 %v1022_v11  ;;  %9426 = vmatmul.mubr.msk.f32.vlgmr.msra.gmra.mxu0 %vm946_vm2, %v11450_v5  ;;  %v8865_v21 = vld [vmem:[%s12949_s14 + $0x50] sm:$0xff]  ;;  %v8864_v22 = vld [vmem:[%s12949_s14 + $0x48] sm:$0xff]  ;;  %v8863_v23 = vld [vmem:[%s12949_s14 + $0x40] sm:$0xff] }
 0x109   : > { %9432 = vmatprep.subr.mxu1 %v10965_v10  ;;  %9436 = vmatprep.mubr.msk.f32.mxu1 %vm10966_vm3, %v10965_v10  ;;  %v8851_v24 = vld [vmem:[#allocation11] ss:$0 sm:$0xff]  ;;  %v8854_v37 = vld [vmem:[#allocation11 + $0x1] ss:$0 sm:$0xff]  ;;  %v1434_v46 = vld [vmem:[#allocation13 + $0x10] sm:$0xff] }
 0x10a   : > { %9433 = vmatpush3.msra.mxu1 %v1021_v12  ;;  %9439 = vmatprep.subr.mxu0 %v10965_v10  ;;  %v1435_v45 = vld [vmem:[#allocation13 + $0x18] sm:$0xff]  ;;  %v1433_v47 = vld [vmem:[#allocation13 + $0x8] sm:$0xff]  ;;  %v1432_v48 = vld [vmem:[#allocation13] sm:$0xff] }
 0x10b   : > { %9434 = vmatprep.subr.mxu1 %v10965_v10  ;;  %9441 = vmatprep.mubr.msk.f32.mxu0 %vm10966_vm3, %v10965_v10  ;;  %v1520_v49 = vld [vmem:[%s12950_s21 + $0x18] sm:$0xff]  ;;  %v1519_v2 = vld [vmem:[%s12950_s21 + $0x10] sm:$0xff]  ;;  %v1518_v3 = vld [vmem:[%s12950_s21 + $0x8] sm:$0xff] }
 0x10c   : > { %9435 = vmatpush3.msra.mxu1 %v1020_v13  ;;  %9440 = vmatpush3.msra.mxu0 %v1104_v14  ;;  %v8861_v51 = vld [vmem:[#allocation11 + $0x2] ss:$0 sm:$0xff]  ;;  %v1517_v8 = vld [vmem:[%s12950_s21] sm:$0xff]  ;;  %v8869_v9 = vld [vmem:[#allocation14] ss:$0 sm:$0xff] }
 0x10d   : > { %9437 = vmatmul.mubr.msk.f32.vlgmr.msra.gmra.mxu1 %vm1024_vm4, %v11447_v4  ;;  %9460 = vmatprep.subr.mxu1 %v10965_v10 }
 0x10e   : > { %9468 = vmatprep.mubr.msk.f32.mxu1 %vm10966_vm3, %v10965_v10  ;;  %9444 = vmatprep.subr.mxu0 %v10965_v10 }
 0x10f   : > { %9442 = vmatmul.mubr.msk.f32.vlgmr.msra.gmra.mxu0 %vm946_vm2, %v11450_v5  ;;  %9461 = vmatpush3.msra.mxu1 %v8866_v19 }
 0x110   : > { %9445 = vmatpush3.msra.mxu0 %v8859_v15  ;;  %9452 = vmatprep.mubr.msk.f32.mxu0 %vm10966_vm3, %v10965_v10  ;;  %v8871_v15 = vld [vmem:[#allocation16] ss:$0 sm:$0xff] }
 0x111   : > { %9446 = vmatprep.subr.mxu0 %v10965_v10  ;;  %9462 = vmatprep.subr.mxu1 %v10965_v10 }
 0x112   : > { %9447 = vmatpush3.msra.mxu0 %v8858_v16  ;;  %9463 = vmatpush3.msra.mxu1 %v8865_v21 }
 0x113   : > { %9448 = vmatprep.subr.mxu0 %v10965_v10  ;;  %9464 = vmatprep.subr.mxu1 %v10965_v10 }
 0x114   : > { %9449 = vmatpush3.msra.mxu0 %v8857_v17  ;;  %9465 = vmatpush3.msra.mxu1 %v8864_v22 }
 0x115   : > { %9450 = vmatprep.subr.mxu0 %v10965_v10  ;;  %9466 = vmatprep.subr.mxu1 %v10965_v10 }
 0x116   : > { %9451 = vmatpush3.msra.mxu0 %v8856_v18  ;;  %9467 = vmatpush3.msra.mxu1 %v8863_v23 }
 0x117   : > { %9453 = vmatmul.mubr.msk.f32.vlgmr.msra.gmra.mxu0 %vm1024_vm4, %v11447_v4  ;;  %9455 = vmatprep.subr.mxu0 %v10965_v10 }
 0x118   : > { %9457 = vmatprep.mubr.msk.f32.mxu0 %vm10966_vm3, %v10965_v10  ;;  %9456 = vmatpush3.msra.mxu0 %v1264_v20 }
 0x119   : > { %9471 = vmatprep.subr.mxu0 %v10965_v10  ;;  %9482 = vmatprep.subr.mxu1 %v10965_v10 }
 0x11b   : > { %9458 = vmatmul.mubr.msk.f32.vlgmr.msra.gmra.mxu0 %vm946_vm2, %v11450_v5 }
 0x11c   : > { %9479 = vmatprep.mubr.msk.f32.mxu0 %vm10966_vm3, %v10965_v10  ;;  %9472 = vmatpush3.msra.mxu0 %v1435_v45 }
 0x11d   : > { %9473 = vmatprep.subr.mxu0 %v10965_v10 }
 0x11e   : > { %9474 = vmatpush3.msra.mxu0 %v1434_v46 }
 0x11f   : > { %9475 = vmatprep.subr.mxu0 %v10965_v10 }
 0x120   : > { %9476 = vmatpush3.msra.mxu0 %v1433_v47 }
 0x121   : > { %9477 = vmatprep.subr.mxu0 %v10965_v10 }
 0x122   : > { %9478 = vmatpush3.msra.mxu0 %v1432_v48 }
 0x1c8   : > { %v1016_v25 = vpop.f32.mrf.mxu0 }
 0x1c9   : > { %v1017_v26 = vadd.f32 %v8851_v24, %v1016_v25 }
 0x1ca   : > { %v9427_v27 = vpop.f32.mrf.mxu0 }
 0x1cd   : > { %v1094_v28 = vpop.f32.mrf.mxu1 }
 0x1ce   : > { %v1098_v29 = vadd.f32 %v1094_v28, %v1017_v26 }
 0x1cf   : > { %v9438_v30 = vpop.f32.mrf.mxu1  ;;  %v1179_v36 = vpop.f32.mrf.mxu0 }
 0x1d0   : > { %v1099_v31 = vmul.f32 0.5, %v1098_v29  ;;  %v1180_v39 = vadd.f32 %v8854_v37, %v1179_v36 }
 0x1d1   : > { %v9443_v38 = vpop.f32.mrf.mxu0 }
 0x1d2   : > { %10355 = vtanh.f32 %v1099_v31 }
 0x1d7   : > { %v1254_v40 = vpop.f32.mrf.mxu0 }
 0x1d8   : > { %v1258_v41 = vadd.f32 %v1254_v40, %v1180_v39 }
 0x1d9   : > { %v9454_v42 = vpop.f32.mrf.mxu0 }
 0x1da   : > { %v1259_v50 = vmul.f32 0.5, %v1258_v41 }
 0x1db   : > { %v1339_v43 = vpop.f32.mrf.mxu0 }
 0x1dc   : > { %10357 = vtanh.f32 %v1259_v50  ;;  %v1340_v52 = vadd.f32 %v8861_v51, %v1339_v43 }
 0x1dd   : > { %v9459_v44 = vpop.f32.mrf.mxu0 }
 0x1df   : > { %v10356_v32 = vpop.eup %10355 }
 0x1e0   : > { %v1101_v33 = vadd.f32 1.0, %v10356_v32 }
 0x1e2   : > { %v1102_v34 = vmul.f32 0.5, %v1101_v33 }
 0x1e4   : > { %v1343_v35 = vmul.f32 %v1102_v34, %v11447_v4 }
 0x1e6   : > { %9469 = vmatmul.mubr.msk.f32.vlgmr.msra.gmra.mxu1 %vm1024_vm4, %v1343_v35 }
 0x1e7   : > { %9490 = vmatprep.mubr.msk.f32.mxu1 %vm10966_vm3, %v10965_v10  ;;  %9483 = vmatpush3.msra.mxu1 %v1520_v49 }
 0x1e8   : > { %9484 = vmatprep.subr.mxu1 %v10965_v10 }
 0x1e9   : > { %v10358_v56 = vpop.eup %10357  ;;  %9485 = vmatpush3.msra.mxu1 %v1519_v2 }
 0x1ea   : > { %v1261_v57 = vadd.f32 1.0, %v10358_v56  ;;  %9486 = vmatprep.subr.mxu1 %v10965_v10 }
 0x1eb   : > { %9487 = vmatpush3.msra.mxu1 %v1518_v3 }
 0x1ec   : > { %v1262_v58 = vmul.f32 0.5, %v1261_v57  ;;  %9488 = vmatprep.subr.mxu1 %v10965_v10 }
 0x1ed   : > { %9489 = vmatpush3.msra.mxu1 %v1517_v8 }
 0x1ee   : > { %v1424_v60 = vsub.f32 1.0, %v1262_v58 }
 0x2a6   : > { %v1418_v53 = vpop.f32.mrf.mxu1 }
 0x2a7   : > { %v1422_v54 = vadd.f32 %v1418_v53, %v1340_v52 }
 0x2a8   : > { %v9470_v55 = vpop.f32.mrf.mxu1 }
 0x2a9   : > { %10359 = vtanh.f32 %v1422_v54 }
 0x2b6   : > { %v10360_v59 = vpop.eup %10359 }
 0x2b7   : > { %v1425_v61 = vsub.f32 %v10360_v59, %v11447_v4 }
 0x2b9   : > { %v1426_v62 = vmul.f32 %v1425_v61, %v1424_v60 }
 0x2bb   : > { %v1427_v63 = vmul.f32 0.05, %v1426_v62 }
 0x2bd   : > { %v8868_v0 = vclamps-f32 %v1427_v63, 1.0 }
 0x2bf   : > { %v1430_v1 = vadd.f32 %v8868_v0, %v11447_v4 }
 0x2c1   : > { %1431 = vst.msk [vmem:[%s11428_s5] sm:$0xff] %vm1024_vm4, %v1430_v1  ;;  %9480 = vmatmul.mubr.msk.f32.vlgmr.msra.gmra.mxu0 %vm1024_vm4, %v1430_v1 }
 0x381   : > { %v1512_v11 = vpop.f32.mrf.mxu0 }
 0x382   : > { %v1513_v12 = vadd.f32 %v8869_v9, %v1512_v11 }
 0x383   : > { %v9481_v13 = vpop.f32.mrf.mxu0 }
 0x384   : > { %v1516_v14 = vmax.f32 %v1513_v12, 0.0 }
 0x386   : > { %9491 = vmatmul.mubr.msk.f32.vlgmr.msra.gmra.mxu1 %vm1024_vm4, %v1516_v14 }
 0x446   : > { %v1597_v16 = vpop.f32.mrf.mxu1 }
 0x447   : > { %v1598_v17 = vadd.f32 %v8871_v15, %v1597_v16 }
 0x448   : > { %v9492_v18 = vpop.f32.mrf.mxu1 }
 0x449   : > { %v1601_v19 = vmul.f32 1.442695, %v1598_v17 }
 0x44b   : > { %10361 = vpow2.f32 %v1601_v19 }
 0x458   : > { %v10362_v10 = vpop.eup %10361 }
 0x459   : > { %1603 = vst.msk [vmem:[%s11431_s24] sm:$0xff] %vm946_vm2, %v10362_v10 }
 0x45a PF: > { %p8873_p3 = scmp.ne.s32.totalorder %s11457_s22, 1 }
 0x45b   : > { %s11572_s27 = sshll.u32 (!%p8873_p3), %s11459_s10, 3  ;;  %s12951_s4 = sld [smem:[#allocation48_spill]] (!%p8873_p3) }
 0x45c   : > { %1607 = sbr.rel (%p8873_p3) target bundleno = 2583 (0xa17), region = 140  ;;  %s12952_s12 = sld [smem:[#allocation62_spill]] (!%p8873_p3) }
 0x45d   : > { %s12953_s9 = sld [smem:[#allocation47_spill]] (!%p8873_p3)  ;;  %s10969_s20 = smov (!%p8873_p3), 124  }
 0x45e   : > { %s10970_s14 = smov (!%p8873_p3), 4   ;;  %s12954_s30 = sld [smem:[#allocation57_spill]] (!%p8873_p3) }
 0x45f   : > { %s12955_s28 = sld [smem:[#allocation49_spill]] (!%p8873_p3) }
 0x460   : > { %s12956_s17 = sld [smem:[#allocation61_spill]] (!%p8873_p3) }
 0x461   : > { %v8875_v20 = vclamps-f32 %v11450_v5, 10.0  ;;  %s1611_s21 = scalar_lea.vmem %s12951_s4, %s11572_s27  ;;  %vm1655_vm5 = vcmask 1043456   ;;  %vm1640_vm6 = vcmask 31744   ;;  %v10967_v24 = vmov 0.0   ;;  %v1731_v25 = vld [vmem:[#allocation19 + $0x4] sm:$0xf] }
 0x462   : > { %v1651_v23 = vld [vmem:[%s12952_s12] sm:$0xf]  ;;  %9493 = vmatprep.subr.mxu1 %v10967_v24  ;;  %vm10968_vm7 = vmmov 0   ;;  %9503 = vmatprep.subr.mxu0 %v10967_v24  ;;  %v1885_v29 = vld [vmem:[#allocation19 + $0x8] sm:$0xf]  ;;  %v2055_v53 = vld [vmem:[#allocation17 + $0x10] sm:$0xff] }
 0x463   : > { %v1617_v21 = vmul.f32 0.5, %v8875_v20  ;;  %s1609_s23 = scalar_lea.vmem %s12953_s9, %s11572_s27  ;;  %9495 = vmatprep.mubr.msk.f32.mxu1 %vm10968_vm7, %v10967_v24  ;;  %v1612_v26 = vld [vmem:[%s1611_s21] sm:$0xff]  ;;  %9494 = vmatpush3.msk.msra.mxu1 %vm1655_vm5, %v1651_v23  ;;  %v1963_v33 = vld [vmem:[#allocation19 + $0xc] sm:$0xf]  ;;  %vm2057_vm8 = vcmask 261120   ;;  %v10971_v60 = vmov 0  }
 0x464   : > { %v1729_v27 = vld [vmem:[#allocation19] sm:$0xf]  ;;  %9496 = vmatmul.mubr.msk.f32.vlgmr.msra.gmra.mxu1 %vm1640_vm6, %v1612_v26  ;;  %9498 = vmatprep.subr.mxu1 %v10967_v24  ;;  %v2054_v54 = vld [vmem:[#allocation17 + $0x8] sm:$0xff]  ;;  %v8892_v57 = vld [vmem:[%s12954_s30 + $0x18] sm:$0xff]  ;;  %vm2131_vm9 = vcmask 130048   ;;  %vm2768_vm10 = vcmask 64512  }
 0x465   : > { %v1618_v22 = vmul.f32 1.442695, %v1617_v21  ;;  %v11592_v28 = vld [vmem:[%s1609_s23] sm:$0xff]  ;;  %9499 = vmatpush3.msk.msra.mxu1 %vm1655_vm5, %v1731_v25  ;;  %9500 = vmatprep.mubr.msk.f32.mxu1 %vm10968_vm7, %v10967_v24  ;;  %v2052_v56 = vld [vmem:[%s12954_s30 + $0x8] sm:$0xff]  ;;  %v8891_v59 = vld [vmem:[%s12954_s30 + $0x10] sm:$0xff]  ;;  %s1613_s12 = scalar_lea.vmem %s12955_s28, %s11572_s27  ;;  %vm2770_vm11 = vcmp.eq.s32.totalorder %v11453_v6, 0 }
 0x466   : > { %9504 = vmatpush3.msk.msra.mxu0 %vm1655_vm5, %v1729_v27  ;;  %9505 = vmatprep.mubr.msk.f32.mxu0 %vm10968_vm7, %v10967_v24  ;;  %v1622_v36 = vsub.f32 %v11592_v28, %v11450_v5  ;;  %v2053_v55 = vld [vmem:[#allocation17] sm:$0xff]  ;;  %v8898_v21 = vld [vmem:[%s12954_s30 + $0x28] sm:$0xff]  ;;  %v2463_v27 = vld [vmem:[#allocation17 + $0x58] sm:$0xff]  ;;  %vm2776_vm14 = vcmp.eq.s32.totalorder %v11453_v6, 1  ;;  %vm2777_vm15 = vcmp.eq.s32.totalorder %v11455_v7, 0 }
 0x467   : > { %10365 = vpow2.f32 %v1618_v22  ;;  %9508 = vmatprep.subr.mxu1 %v10967_v24  ;;  %9506 = vmatmul.mubr.msk.f32.vlgmr.msra.gmra.mxu0 %vm1640_vm6, %v11592_v28  ;;  %v2051_v58 = vld [vmem:[%s12954_s30] sm:$0xff]  ;;  %v2223_v22 = vld [vmem:[#allocation17 + $0x30] sm:$0xff]  ;;  %v2222_v25 = vld [vmem:[#allocation17 + $0x28] sm:$0xff] }
 0x468   : > { %9501 = vmatmul.mubr.msk.f32.vlgmr.msra.gmra.mxu1 %vm1640_vm6, %v11450_v5  ;;  %9513 = vmatprep.subr.mxu0 %v10967_v24  ;;  %v2056_v5 = vld [vmem:[#allocation17 + $0x18] sm:$0xff]  ;;  %v1614_v61 = vld [vmem:[%s1613_s12] sm:$0xff]  ;;  %s12957_s12 = sld [smem:[#allocation55_spill]]  ;;  %vm2778_vm0 = vmand %vm2776_vm14, %vm2777_vm15 }
 0x469   : > { %9509 = vmatpush3.msk.msra.mxu1 %vm1655_vm5, %v1885_v29  ;;  %9510 = vmatprep.mubr.msk.f32.mxu1 %vm10968_vm7, %v10967_v24  ;;  %v8887_v15 = vld [vmem:[%s12956_s17] ss:$0 sm:$0xff]  ;;  %v2462_v29 = vld [vmem:[#allocation17 + $0x50] sm:$0xff]  ;;  %s12958_s17 = sld [smem:[#allocation59_spill]] }
 0x46a   : > { %9515 = vmatprep.mubr.msk.f32.mxu0 %vm10968_vm7, %v10967_v24  ;;  %9518 = vmatprep.subr.mxu1 %v10967_v24  ;;  %v8897_v23 = vld [vmem:[%s12954_s30 + $0x20] sm:$0xff] }
 0x46b   : > { %9514 = vmatpush3.msk.msra.mxu0 %vm1655_vm5, %v1963_v33  ;;  %10363 = vset.pattern.permute.xlu1 %v10971_v60 }
 0x46c   : > { %9529 = vmatprep.subr.mxu0 %v10967_v24  ;;  %10364 = vset.pattern.permute.xlu0 %v10971_v60 }
 0x46d   : > { %2552 = vperm.xlu1 %10363, %v1614_v61  }
 0x46f   : > { %v8900_v60 = vld [vmem:[%s12958_s17 + $0x2] ss:$0 sm:$0xff] }
 0x474   : > { %v10366_v30 = vpop.eup %10365 }
 0x475   : > { %v1620_v31 = vmax.f32 %v10366_v30, 1e-06  ;;  %v2461_v30 = vld [vmem:[#allocation17 + $0x48] sm:$0xff] }
 0x477   : > { %v1621_v32 = vmin.f32 %v1620_v31, 1000000.0  ;;  %v2460_v31 = vld [vmem:[#allocation17 + $0x40] sm:$0xff] }
 0x479   : > { %1624 = vrot.lane.b32.xlu0 %v1621_v32, %s10969_s20 }
 0x47d   : > { %1633 = vrot.lane.b32.xlu0 %v8875_v20, %s10969_s20  ;;  %v2224_v20 = vld [vmem:[#allocation17 + $0x38] sm:$0xff] }
 0x481   : > { %2749 = vrot.lane.b32.xlu0 %v1612_v26, %s10970_s14 }
 0x4eb   : > { %v1625_v34 = vpop.permute.xlu0 %1624 }
 0x4ec   : > { %10367 = vrcp.f32 %v1625_v34  ;;  %v2560_v34 = vld [vmem:[#allocation13 + $0x18] sm:$0xff] }
 0x4ef   : > { %v1634_v35 = vpop.permute.xlu0 %1633 }
 0x4f0   : > { %9511 = vmatmul.mubr.msk.f32.vlgmr.msra.gmra.mxu1 %vm1640_vm6, %v1634_v35 }
 0x4f1   : > { %9526 = vmatprep.mubr.msk.f32.mxu1 %vm10968_vm7, %v10967_v24  ;;  %9519 = vmatpush3.msra.mxu1 %v2056_v5 }
 0x4f2   : > { %9520 = vmatprep.subr.mxu1 %v10967_v24 }
 0x4f3   : > { %9521 = vmatpush3.msra.mxu1 %v2055_v53  ;;  %v11654_v62 = vpop.permute.xlu0 %2749 }
 0x4f4   : > { %9522 = vmatprep.subr.mxu1 %v10967_v24 }
 0x4f5   : > { %9523 = vmatpush3.msra.mxu1 %v2054_v54 }
 0x4f6   : > { %9524 = vmatprep.subr.mxu1 %v10967_v24 }
 0x4f7   : > { %9525 = vmatpush3.msra.mxu1 %v2053_v55  ;;  %v8903_v55 = vld [vmem:[%s12958_s17 + $0x3] ss:$0 sm:$0xff] }
 0x4f8   : > { %9527 = vmatmul.mubr.msk.f32.vlgmr.msra.gmra.mxu1 %vm2057_vm8, %v11447_v4  ;;  %9547 = vmatprep.subr.mxu1 %v10967_v24 }
 0x4f9   : > { %v10368_v37 = vpop.eup %10367  ;;  %9548 = vmatpush3.msra.mxu1 %v8892_v57  ;;  %9551 = vmatprep.mubr.msk.f32.mxu1 %vm10968_vm7, %v10967_v24 }
 0x4fa   : > { %v1628_v38 = vmul.f32 %v10368_v37, %v1622_v36  ;;  %9549 = vmatprep.subr.mxu1 %v10967_v24  ;;  %v2558_v36 = vld [vmem:[#allocation13 + $0x8] sm:$0xff]  ;;  %v2557_v37 = vld [vmem:[#allocation13] sm:$0xff] }
 0x4fb   : > { %9550 = vmatpush3.msra.mxu1 %v8891_v59 }
 0x4fc   : > { %v8876_v39 = vclamps-f32 %v1628_v38, 1000000.0  ;;  %9554 = vmatprep.subr.mxu1 %v10967_v24  ;;  %v2645_v38 = vld [vmem:[%s12957_s12 + $0x18] sm:$0xff] }
 0x4fe   : > { %v1631_v40 = vmul.f32 %v8876_v39, %v8876_v39  ;;  %9516 = vmatmul.mubr.msk.f32.vlgmr.msra.gmra.mxu0 %vm1640_vm6, %v8876_v39 }
 0x4ff   : > { %9533 = vmatprep.mubr.msk.f32.mxu0 %vm10968_vm7, %v10967_v24  ;;  %9530 = vmatpush3.msra.mxu0 %v2052_v56 }
 0x500   : > { %v1636_v41 = vadd.f32 %v1634_v35, %v1631_v40  ;;  %9531 = vmatprep.subr.mxu0 %v10967_v24  ;;  %v2559_v35 = vld [vmem:[#allocation13 + $0x10] sm:$0xff]  ;;  %v8890_v40 = vld [vmem:[%s12958_s17] ss:$0 sm:$0xff] }
 0x501   : > { %9532 = vmatpush3.msra.mxu0 %v2051_v58 }
 0x502   : > { %v1637_v42 = vadd.f32 1.837877, %v1636_v41  ;;  %9536 = vmatprep.subr.mxu0 %v10967_v24 }
 0x504   : > { %v1638_v43 = vmul.f32 %v1637_v42, %v1612_v26  ;;  %v2221_v26 = vld [vmem:[#allocation17 + $0x20] sm:$0xff] }
 0x506   : > { %v1639_v44 = vmul.f32 0.5, %v1638_v43 }
 0x508   : > { %v1641_v45 = vsel %vm1640_vm6, %v1639_v44, 0.0 }
 0x509   : > { %1642 = vadd.xlane.f32.xlu0 %v1641_v45 }
 0x524   : > { %v1725_v46 = vpop.f32.mrf.mxu1 }
 0x526   : > { %v9497_v47 = vpop.f32.mrf.mxu1 }
 0x527   : > { %v1880_v48 = vpop.f32.mrf.mxu0 }
 0x528   : > { %v1804_v49 = vpop.f32.mrf.mxu1 }
 0x529   : > { %v1881_v50 = vadd.f32 %v1880_v48, %v1804_v49  ;;  %v9507_v51 = vpop.f32.mrf.mxu0  ;;  %v8896_v49 = vld [vmem:[%s12958_s17 + $0x1] ss:$0 sm:$0xff] }
 0x52a   : > { %v9502_v52 = vpop.f32.mrf.mxu1 }
 0x592   : > { %v1643_v63 = vpop.xlane.xlu0 %1642 }
 0x593   : > { %v1644_v0 = vrot.slane %v1643_v63, 4 }
 0x595   : > { %v1645_v1 = vadd.f32 %v1644_v0, %v1643_v63 }
 0x597   : > { %v1646_v2 = vrot.slane %v1645_v1, 2 }
 0x599   : > { %v1647_v3 = vadd.f32 %v1646_v2, %v1645_v1 }
 0x59b   : > { %v1648_v8 = vrot.slane %v1647_v3, 1 }
 0x59d   : > { %v1649_v9 = vadd.f32 %v1648_v8, %v1647_v3 }
 0x59f   : > { %10107 = vpush %v1649_v9 }
 0x5b0   : > { %v1957_v11 = vpop.f32.mrf.mxu1 }
 0x5b1   : > { %v1961_v13 = vadd.f32 %v1957_v11, %v1881_v50 }
 0x5b2   : > { %v9512_v12 = vpop.f32.mrf.mxu1 }
 0x5b8   : > { %v2127_v32 = vpop.f32.mrf.mxu1 }
 0x5ba   : > { %v9528_v33 = vpop.f32.mrf.mxu1 }
 0x5be   : > { %v2036_v14 = vpop.f32.mrf.mxu0 }
 0x5bf   : > { %v2040_v16 = vadd.f32 %v2036_v14, %v1961_v13 }
 0x5c0   : > { %v9517_v17 = vpop.f32.mrf.mxu0 }
 0x5c1   : > { %v2048_v18 = vadd.f32 %v8887_v15, %v2040_v16  ;;  %v2553_v15 = vpop.permute.xlu1 %2552 }
 0x5c3   : > { %v2049_v19 = vmax.f32 %v2048_v18, 0.0 }
 0x5c5   : > { %v2050_v10 = vmul.f32 %v2049_v19, %v1725_v46  ;;  %v2644_v19 = vld [vmem:[%s12957_s12 + $0x10] sm:$0xff] }
 0x5c7   : > { %9534 = vmatmul.mubr.msk.f32.vlgmr.msra.gmra.mxu0 %vm2131_vm9, %v2050_v10  ;;  %9552 = vmatmul.mubr.msk.f32.vlgmr.msra.gmra.mxu1 %vm2131_vm9, %v2050_v10 }
 0x5c8   : > { %9537 = vmatpush3.msra.mxu0 %v2224_v20  ;;  %9555 = vmatpush3.msra.mxu1 %v8898_v21  ;;  %v8905_v20 = vld [vmem:[#allocation14] ss:$0 sm:$0xff] }
 0x5c9   : > { %9538 = vmatprep.subr.mxu0 %v10967_v24  ;;  %9556 = vmatprep.subr.mxu1 %v10967_v24 }
 0x5ca   : > { %9539 = vmatpush3.msra.mxu0 %v2223_v22  ;;  %9557 = vmatpush3.msra.mxu1 %v8897_v23 }
 0x5cb   : > { %9540 = vmatprep.subr.mxu0 %v10967_v24  ;;  %9558 = vmatprep.mubr.msk.f32.mxu1 %vm10968_vm7, %v10967_v24 }
 0x5cc   : > { %9541 = vmatpush3.msra.mxu0 %v2222_v25  ;;  %9559 = vmatmul.mubr.msk.f32.vlgmr.msra.gmra.mxu1 %vm2131_vm9, %v2050_v10  ;;  %v2643_v10 = vld [vmem:[%s12957_s12 + $0x8] sm:$0xff] }
 0x5cd   : > { %9542 = vmatprep.subr.mxu0 %v10967_v24  ;;  %9544 = vmatprep.mubr.msk.f32.mxu0 %vm10968_vm7, %v10967_v24 }
 0x5ce   : > { %9543 = vmatpush3.msra.mxu0 %v2221_v26  ;;  %9572 = vmatprep.subr.mxu1 %v10967_v24  ;;  %v8907_v26 = vld [vmem:[#allocation16] ss:$0 sm:$0xff] }
 0x5cf   : > { %9545 = vmatmul.mubr.msk.f32.vlgmr.msra.gmra.mxu0 %vm2057_vm8, %v11447_v4  ;;  %9561 = vmatprep.subr.mxu0 %v10967_v24 }
 0x5d0   : > { %9562 = vmatpush3.msra.mxu0 %v2463_v27  ;;  %9569 = vmatprep.mubr.msk.f32.mxu0 %vm10968_vm7, %v10967_v24 }
 0x5d1   : > { %9563 = vmatprep.subr.mxu0 %v10967_v24  ;;  %9580 = vmatprep.mubr.msk.f32.mxu1 %vm10968_vm7, %v10967_v24 }
 0x5d2   : > { %9564 = vmatpush3.msra.mxu0 %v2462_v29  ;;  %9573 = vmatpush3.msra.mxu1 %v2560_v34 }
 0x5d3   : > { %9565 = vmatprep.subr.mxu0 %v10967_v24  ;;  %9574 = vmatprep.subr.mxu1 %v10967_v24 }
 0x5d4   : > { %9566 = vmatpush3.msra.mxu0 %v2461_v30  ;;  %9575 = vmatpush3.msra.mxu1 %v2559_v35 }
 0x5d5   : > { %9567 = vmatprep.subr.mxu0 %v10967_v24  ;;  %9576 = vmatprep.subr.mxu1 %v10967_v24 }
 0x5d6   : > { %9568 = vmatpush3.msra.mxu0 %v2460_v31  ;;  %9577 = vmatpush3.msra.mxu1 %v2558_v36 }
 0x5d7   : > { %9570 = vmatmul.mubr.msk.f32.vlgmr.msra.gmra.mxu0 %vm2057_vm8, %v11447_v4  ;;  %9583 = vmatprep.subr.mxu0 %v10967_v24 }
 0x5d8   : > { %9591 = vmatprep.mubr.msk.f32.mxu0 %vm10968_vm7, %v10967_v24  ;;  %9578 = vmatprep.subr.mxu1 %v10967_v24 }
 0x5d9   : > { %9579 = vmatpush3.msra.mxu1 %v2557_v37  ;;  %9584 = vmatpush3.msra.mxu0 %v2645_v38 }
 0x5da   : > { %9585 = vmatprep.subr.mxu0 %v10967_v24 }
 0x5db   : > { %9586 = vmatpush3.msra.mxu0 %v2644_v19 }
 0x5dc   : > { %9587 = vmatprep.subr.mxu0 %v10967_v24 }
 0x5dd   : > { %9588 = vmatpush3.msra.mxu0 %v2643_v10 }
 0x5de   : > { %9589 = vmatprep.subr.mxu0 %v10967_v24 }
 0x687   : > { %v2201_v39 = vpop.f32.mrf.mxu0  ;;  %v2361_v41 = vpop.f32.mrf.mxu1 }
 0x688   : > { %v2202_v42 = vadd.f32 %v2201_v39, %v2127_v32 }
 0x689   : > { %v9535_v43 = vpop.f32.mrf.mxu0  ;;  %v9553_v44 = vpop.f32.mrf.mxu1 }
 0x68a   : > { %v2212_v45 = vadd.f32 %v8890_v40, %v2202_v42 }
 0x68c   : > { %v2213_v46 = vmul.f32 0.5, %v2212_v45  ;;  %v2455_v47 = vpop.f32.mrf.mxu1 }
 0x68d   : > { %v2456_v63 = vadd.f32 %v8900_v60, %v2455_v47 }
 0x68e   : > { %10369 = vtanh.f32 %v2213_v46  ;;  %v9560_v48 = vpop.f32.mrf.mxu1 }
 0x68f   : > { %v2291_v5 = vpop.f32.mrf.mxu0 }
 0x690   : > { %v2362_v50 = vadd.f32 %v2361_v41, %v2291_v5 }
 0x691   : > { %v9546_v51 = vpop.f32.mrf.mxu0 }
 0x692   : > { %v2373_v52 = vadd.f32 %v8896_v49, %v2362_v50 }
 0x694   : > { %v2374_v53 = vmul.f32 0.5, %v2373_v52 }
 0x696   : > { %10371 = vtanh.f32 %v2374_v53 }
 0x697   : > { %v2538_v54 = vpop.f32.mrf.mxu0 }
 0x698   : > { %v2539_v59 = vadd.f32 %v8903_v55, %v2538_v54 }
 0x699   : > { %v9571_v56 = vpop.f32.mrf.mxu0 }
 0x69b   : > { %v10370_v57 = vpop.eup %10369 }
 0x69c   : > { %v2215_v58 = vadd.f32 1.0, %v10370_v57 }
 0x69e   : > { %v2216_v61 = vmul.f32 0.5, %v2215_v58  ;;  %v2771_v58 = vstv %s11459_s10 }
 0x69f   : > { %vm2772_vm12 = vcmp.eq.s32.totalorder %v11455_v7, %v2771_v58 }
 0x6a0   : > { %v2542_v0 = vmul.f32 %v2539_v59, %v2216_v61  ;;  %vm2773_vm13 = vmand %vm2770_vm11, %vm2772_vm12  ;;  %v2781_v61 = vld [vmem:[%s11436_s26] sm:$0xff] }
 0x6a2   : > { %v2543_v1 = vadd.f32 %v2542_v0, %v2456_v63  ;;  %v8912_v63 = vsel %vm2778_vm0, 1.0, %v10967_v24 }
 0x6a3   : > { %v10372_v2 = vpop.eup %10371 }
 0x6a4   : > { %10373 = vtanh.f32 %v2543_v1  ;;  %v2376_v3 = vadd.f32 1.0, %v10372_v2 }
 0x6a6   : > { %v2377_v8 = vmul.f32 0.5, %v2376_v3 }
 0x6a8   : > { %v2545_v9 = vsub.f32 1.0, %v2377_v8  ;;  %v2547_v13 = vmul.f32 %v2377_v8, %v11447_v4 }
 0x6b1   : > { %v10374_v11 = vpop.eup %10373 }
 0x6b2   : > { %v2546_v12 = vmul.f32 %v10374_v11, %v2545_v9 }
 0x6b4   : > { %v2548_v14 = vadd.f32 %v2547_v13, %v2546_v12 }
 0x6b6   : > { %v2549_v16 = vsub.f32 %v2548_v14, %v11447_v4 }
 0x6b8   : > { %v2555_v17 = vmul.f32 %v2553_v15, %v2549_v16 }
 0x6ba   : > { %v2556_v18 = vadd.f32 %v2555_v17, %v11447_v4  ;;  %v2642_v4 = vld [vmem:[%s12957_s12] sm:$0xff] }
 0x6bb   : > { %9590 = vmatpush3.msra.mxu0 %v2642_v4 }
 0x6bc   : > { %2767 = vst.msk [vmem:[%s11428_s5] sm:$0xff] %vm2057_vm8, %v2556_v18  ;;  %9581 = vmatmul.mubr.msk.f32.vlgmr.msra.gmra.mxu1 %vm2057_vm8, %v2556_v18 }
 0x77c   : > { %v2637_v21 = vpop.f32.mrf.mxu1 }
 0x77d   : > { %v2638_v22 = vadd.f32 %v8905_v20, %v2637_v21 }
 0x77e   : > { %v9582_v23 = vpop.f32.mrf.mxu1 }
 0x77f   : > { %v2641_v25 = vmax.f32 %v2638_v22, 0.0 }
 0x781   : > { %9592 = vmatmul.mubr.msk.f32.vlgmr.msra.gmra.mxu0 %vm2057_vm8, %v2641_v25 }
 0x841   : > { %v2722_v27 = vpop.f32.mrf.mxu0 }
 0x842   : > { %v2723_v29 = vadd.f32 %v8907_v26, %v2722_v27 }
 0x843   : > { %v9593_v30 = vpop.f32.mrf.mxu0 }
 0x844   : > { %v2726_v31 = vmul.f32 1.442695, %v2723_v29 }
 0x846   : > { %10375 = vpow2.f32 %v2726_v31 }
 0x853   : > { %v10376_v32 = vpop.eup %10375 }
 0x854   : > { %2769 = vst.msk [vmem:[%s11431_s24] sm:$0xff] %vm2768_vm10, %v10376_v32  ;;  %v2739_v33 = vsub.f32 %v10376_v32, %v11592_v28  ;;  %v8909_v35 = vclamps-f32 %v10376_v32, 10.0 }
 0x856   : > { %v2740_v34 = vmul.f32 %v2739_v33, %v2739_v33  ;;  %v2730_v36 = vmul.f32 0.5, %v8909_v35 }
 0x858   : > { %2742 = vrot.lane.b32.xlu1 %v2740_v34, %s10970_s14  ;;  %v2731_v37 = vmul.f32 1.442695, %v2730_v36 }
 0x85a   : > { %10377 = vpow2.f32 %v2731_v37 }
 0x867   : > { %v10378_v38 = vpop.eup %10377 }
 0x868   : > { %v2733_v39 = vmax.f32 %v10378_v38, 1e-06 }
 0x86a   : > { %v2734_v40 = vmin.f32 %v2733_v39, 1000000.0 }
 0x86c   : > { %10379 = vlog2.f32 %v2734_v40  ;;  %v2738_v43 = vmul.f32 %v2734_v40, %v2734_v40 }
 0x879   : > { %v10380_v41 = vpop.eup %10379 }
 0x87a   : > { %v2736_v42 = vmul.f32 0.6931472, %v10380_v41 }
 0x87c   : > { %v2737_v46 = vsub.f32 -4.6051702, %v2736_v42 }
 0x8ca   : > { %v2743_v44 = vpop.permute.xlu1 %2742 }
 0x8cb   : > { %v2745_v45 = vadd.f32 %v2743_v44, %v2738_v43 }
 0x8cd   : > { %v2746_v47 = vmul.f32 5000.0, %v2745_v45 }
 0x8cf   : > { %v2747_v28 = vadd.f32 %v2746_v47, %v2737_v46 }
 0x8d1   : > { %v8910_v48 = vadd.f32 -0.5, %v2747_v28 }
 0x8d3   : > { %v2752_v5 = vmul.f32 %v8910_v48, %v11654_v62  ;;  %v8911_v62 = vsel %vm2773_vm13, 1.0, %v10967_v24 }
 0x8d5   : > { %2754 = vrot.lane.b32.xlu1 %v2752_v5, %s10969_s20  ;;  %s10108_s20 = spop %10107 }
 0x8d6   : > { %v2782_v59 = vstv %s10108_s20 }
 0x8d7   : > { %v2783_v60 = vmul.f32 %v8911_v62, %v2782_v59 }
 0x8d9   : > { %v2784_v1 = vadd.f32 %v2783_v60, %v2781_v61 }
 0x947   : > { %v2755_v49 = vpop.permute.xlu1 %2754 }
 0x948   : > { %v2757_v50 = vsel %vm1640_vm6, %v2755_v49, 0.0 }
 0x949   : > { %2758 = vadd.xlane.f32.xlu1 %v2757_v50 }
 0x9d2   : > { %v2759_v51 = vpop.xlane.xlu1 %2758 }
 0x9d3   : > { %v2760_v52 = vrot.slane %v2759_v51, 4 }
 0x9d5   : > { %v2761_v53 = vadd.f32 %v2760_v52, %v2759_v51 }
 0x9d7   : > { %v2762_v54 = vrot.slane %v2761_v53, 2 }
 0x9d9   : > { %v2763_v55 = vadd.f32 %v2762_v54, %v2761_v53 }
 0x9db   : > { %v2764_v56 = vrot.slane %v2763_v55, 1 }
 0x9dd   : > { %v2765_v57 = vadd.f32 %v2764_v56, %v2763_v55 }
 0x9df   : > { %10109 = vpush %v2765_v57 }
 0xa10   : > { %s10110_s10 = spop %10109 }
 0xa11   : > { %v2785_v0 = vstv %s10110_s10 }
 0xa12   : > { %v2786_v2 = vmul.f32 %v8912_v63, %v2785_v0 }
 0xa14   : > { %v2787_v3 = vadd.f32 %v2786_v2, %v2784_v1 }
 0xa16   : > { %2788 = vst [vmem:[%s11436_s26] sm:$0xff] %v2787_v3 }
 0xa17 PF: > { %s12959_s14 = sld [smem:[#allocation38_spill]]  ;;  %v11745_v8 = vld [vmem:[%s11428_s5] sm:$0xff]  ;;  %vm2790_vm1 = vcmask 261120   ;;  %v11748_v9 = vld [vmem:[%s11431_s24] sm:$0xff]  ;;  %vm2793_vm2 = vcmask 64512   ;;  %s2795_s12 = sadd.s32 1, %s11416_s7 }
 0xa18   : > { %2791 = vst.msk [vmem:[%s11433_s16] sm:$0xff] %vm2790_vm1, %v11745_v8  ;;  %s2796_s21 = sshra.s32 %s2795_s12, 7  ;;  %s2801_s30 = sand.u32 127, %s2795_s12 }
 0xa19   : > { %2794 = vst.msk [vmem:[%s11425_s13] sm:$0xff] %vm2793_vm2, %v11748_v9 }
 0xa1d   : > { %s2798_s28 = sadd.s32 %s12959_s14, %s2796_s21 }
 0xa1e   : > { %s8913_s27 = sshll.u32 %s2798_s28, 7 }
 0xa1f   : > { %s2802_s22 = sadd.s32 %s8913_s27, %s2801_s30 }
 0xa20   : > { %s11758_s17 = sld [smem:[#allocation3 + %s2802_s22]] }
 0xa21   : > { %s11760_s9 = sld [smem:[#allocation4 + %s2802_s22]] }
 0xa26   : > { %p8914_p1 = scmp.ne.s32.totalorder %s11758_s17, 0 }
 0xa27   : > { %s12960_s20 = sld [smem:[#allocation52_spill]] (!%p8914_p1) }
 0xa28   : > { %2810 = sbr.rel (%p8914_p1) target bundleno = 3459 (0xd83), region = 144  ;;  %s12961_s21 = sld [smem:[#allocation55_spill]] (!%p8914_p1) }
 0xa2d   : > { %v2895_v24 = vld [vmem:[%s12960_s20 + $0x18] sm:$0xff]  ;;  %v2811_v11 = vld [vmem:[#allocation10] sm:$0xff]  ;;  %v10972_v12 = vmov 0.0   ;;  %v2894_v13 = vld [vmem:[%s12960_s20 + $0x10] sm:$0xff]  ;;  %vm10973_vm3 = vmmov 0  }
 0xa2e   : > { %9599 = vmatprep.subr.mxu1 %v10972_v12  ;;  %9594 = vmatprep.subr.mxu0 %v10972_v12  ;;  %v2893_v14 = vld [vmem:[%s12960_s20 + $0x8] sm:$0xff]  ;;  %v2892_v15 = vld [vmem:[%s12960_s20] sm:$0xff]  ;;  %v8923_v17 = vld [vmem:[%s12960_s20 + $0x38] sm:$0xff] }
 0xa2f   : > { %9600 = vmatpush3.msra.mxu1 %v2895_v24  ;;  %9595 = vmatpush3.msra.mxu0 %v2811_v11  ;;  %v2975_v16 = vld [vmem:[#allocation10 + $0x8] sm:$0xff]  ;;  %v8922_v18 = vld [vmem:[%s12960_s20 + $0x30] sm:$0xff]  ;;  %v8920_v10 = vld [vmem:[%s12960_s20 + $0x20] sm:$0xff] }
 0xa30   : > { %9601 = vmatprep.subr.mxu1 %v10972_v12  ;;  %9596 = vmatprep.mubr.msk.f32.mxu0 %vm10973_vm3, %v10972_v12  ;;  %v8921_v19 = vld [vmem:[%s12960_s20 + $0x28] sm:$0xff]  ;;  %v8930_v4 = vld [vmem:[%s12960_s20 + $0x58] sm:$0xff]  ;;  %v3135_v20 = vld [vmem:[#allocation10 + $0x10] sm:$0xff] }
 0xa31   : > { %9602 = vmatpush3.msra.mxu1 %v2894_v13  ;;  %9597 = vmatmul.mubr.msk.f32.vlgmr.msra.gmra.mxu0 %vm2793_vm2, %v11748_v9  ;;  %v8929_v21 = vld [vmem:[%s12960_s20 + $0x50] sm:$0xff]  ;;  %v8928_v22 = vld [vmem:[%s12960_s20 + $0x48] sm:$0xff]  ;;  %v8927_v23 = vld [vmem:[%s12960_s20 + $0x40] sm:$0xff] }
 0xa32   : > { %9603 = vmatprep.subr.mxu1 %v10972_v12  ;;  %9607 = vmatprep.mubr.msk.f32.mxu1 %vm10973_vm3, %v10972_v12  ;;  %v8915_v25 = vld [vmem:[#allocation11] ss:$0 sm:$0xff]  ;;  %v8918_v39 = vld [vmem:[#allocation11 + $0x1] ss:$0 sm:$0xff]  ;;  %v3305_v28 = vld [vmem:[#allocation13 + $0x10] sm:$0xff] }
 0xa33   : > { %9604 = vmatpush3.msra.mxu1 %v2893_v14  ;;  %9610 = vmatprep.subr.mxu0 %v10972_v12  ;;  %v3306_v47 = vld [vmem:[#allocation13 + $0x18] sm:$0xff]  ;;  %v3304_v48 = vld [vmem:[#allocation13 + $0x8] sm:$0xff]  ;;  %v3303_v5 = vld [vmem:[#allocation13] sm:$0xff] }
 0xa34   : > { %9605 = vmatprep.subr.mxu1 %v10972_v12  ;;  %9612 = vmatprep.mubr.msk.f32.mxu0 %vm10973_vm3, %v10972_v12  ;;  %v3391_v49 = vld [vmem:[%s12961_s21 + $0x18] sm:$0xff]  ;;  %v3390_v2 = vld [vmem:[%s12961_s21 + $0x10] sm:$0xff]  ;;  %v3389_v3 = vld [vmem:[%s12961_s21 + $0x8] sm:$0xff] }
 0xa35   : > { %9606 = vmatpush3.msra.mxu1 %v2892_v15  ;;  %9611 = vmatpush3.msra.mxu0 %v2975_v16  ;;  %v8925_v51 = vld [vmem:[#allocation11 + $0x2] ss:$0 sm:$0xff]  ;;  %v3388_v24 = vld [vmem:[%s12961_s21] sm:$0xff]  ;;  %v8933_v11 = vld [vmem:[#allocation14] ss:$0 sm:$0xff] }
 0xa36   : > { %9608 = vmatmul.mubr.msk.f32.vlgmr.msra.gmra.mxu1 %vm2790_vm1, %v11745_v8  ;;  %9631 = vmatprep.subr.mxu1 %v10972_v12 }
 0xa37   : > { %9639 = vmatprep.mubr.msk.f32.mxu1 %vm10973_vm3, %v10972_v12  ;;  %9615 = vmatprep.subr.mxu0 %v10972_v12 }
 0xa38   : > { %9613 = vmatmul.mubr.msk.f32.vlgmr.msra.gmra.mxu0 %vm2793_vm2, %v11748_v9  ;;  %9632 = vmatpush3.msra.mxu1 %v8930_v4 }
 0xa39   : > { %9616 = vmatpush3.msra.mxu0 %v8923_v17  ;;  %9623 = vmatprep.mubr.msk.f32.mxu0 %vm10973_vm3, %v10972_v12  ;;  %v8935_v17 = vld [vmem:[#allocation16] ss:$0 sm:$0xff] }
 0xa3a   : > { %9617 = vmatprep.subr.mxu0 %v10972_v12  ;;  %9633 = vmatprep.subr.mxu1 %v10972_v12 }
 0xa3b   : > { %9618 = vmatpush3.msra.mxu0 %v8922_v18  ;;  %9634 = vmatpush3.msra.mxu1 %v8929_v21 }
 0xa3c   : > { %9619 = vmatprep.subr.mxu0 %v10972_v12  ;;  %9635 = vmatprep.subr.mxu1 %v10972_v12 }
 0xa3d   : > { %9620 = vmatpush3.msra.mxu0 %v8921_v19  ;;  %9636 = vmatpush3.msra.mxu1 %v8928_v22 }
 0xa3e   : > { %9621 = vmatprep.subr.mxu0 %v10972_v12  ;;  %9637 = vmatprep.subr.mxu1 %v10972_v12 }
 0xa3f   : > { %9622 = vmatpush3.msra.mxu0 %v8920_v10  ;;  %9638 = vmatpush3.msra.mxu1 %v8927_v23 }
 0xa40   : > { %9624 = vmatmul.mubr.msk.f32.vlgmr.msra.gmra.mxu0 %vm2790_vm1, %v11745_v8  ;;  %9626 = vmatprep.subr.mxu0 %v10972_v12 }
 0xa41   : > { %9628 = vmatprep.mubr.msk.f32.mxu0 %vm10973_vm3, %v10972_v12  ;;  %9627 = vmatpush3.msra.mxu0 %v3135_v20 }
 0xa42   : > { %9642 = vmatprep.subr.mxu0 %v10972_v12  ;;  %9653 = vmatprep.subr.mxu1 %v10972_v12 }
 0xa44   : > { %9629 = vmatmul.mubr.msk.f32.vlgmr.msra.gmra.mxu0 %vm2793_vm2, %v11748_v9 }
 0xa45   : > { %9650 = vmatprep.mubr.msk.f32.mxu0 %vm10973_vm3, %v10972_v12  ;;  %9643 = vmatpush3.msra.mxu0 %v3306_v47 }
 0xa46   : > { %9644 = vmatprep.subr.mxu0 %v10972_v12 }
 0xa47   : > { %9645 = vmatpush3.msra.mxu0 %v3305_v28 }
 0xa48   : > { %9646 = vmatprep.subr.mxu0 %v10972_v12 }
 0xa49   : > { %9647 = vmatpush3.msra.mxu0 %v3304_v48 }
 0xa4a   : > { %9648 = vmatprep.subr.mxu0 %v10972_v12 }
 0xa4b   : > { %9649 = vmatpush3.msra.mxu0 %v3303_v5 }
 0xaf1   : > { %v2888_v26 = vpop.f32.mrf.mxu0 }
 0xaf2   : > { %v2889_v27 = vadd.f32 %v8915_v25, %v2888_v26 }
 0xaf3   : > { %v9598_v29 = vpop.f32.mrf.mxu0 }
 0xaf6   : > { %v2965_v30 = vpop.f32.mrf.mxu1 }
 0xaf7   : > { %v2969_v31 = vadd.f32 %v2965_v30, %v2889_v27 }
 0xaf8   : > { %v9609_v32 = vpop.f32.mrf.mxu1  ;;  %v3050_v38 = vpop.f32.mrf.mxu0 }
 0xaf9   : > { %v2970_v33 = vmul.f32 0.5, %v2969_v31  ;;  %v3051_v41 = vadd.f32 %v8918_v39, %v3050_v38 }
 0xafa   : > { %v9614_v40 = vpop.f32.mrf.mxu0 }
 0xafb   : > { %10381 = vtanh.f32 %v2970_v33 }
 0xb00   : > { %v3125_v42 = vpop.f32.mrf.mxu0 }
 0xb01   : > { %v3129_v43 = vadd.f32 %v3125_v42, %v3051_v41 }
 0xb02   : > { %v9625_v44 = vpop.f32.mrf.mxu0 }
 0xb03   : > { %v3130_v50 = vmul.f32 0.5, %v3129_v43 }
 0xb04   : > { %v3210_v45 = vpop.f32.mrf.mxu0 }
 0xb05   : > { %10383 = vtanh.f32 %v3130_v50  ;;  %v3211_v52 = vadd.f32 %v8925_v51, %v3210_v45 }
 0xb06   : > { %v9630_v46 = vpop.f32.mrf.mxu0 }
 0xb08   : > { %v10382_v34 = vpop.eup %10381 }
 0xb09   : > { %v2972_v35 = vadd.f32 1.0, %v10382_v34 }
 0xb0b   : > { %v2973_v36 = vmul.f32 0.5, %v2972_v35 }
 0xb0d   : > { %v3214_v37 = vmul.f32 %v2973_v36, %v11745_v8 }
 0xb0f   : > { %9640 = vmatmul.mubr.msk.f32.vlgmr.msra.gmra.mxu1 %vm2790_vm1, %v3214_v37 }
 0xb10   : > { %9661 = vmatprep.mubr.msk.f32.mxu1 %vm10973_vm3, %v10972_v12  ;;  %9654 = vmatpush3.msra.mxu1 %v3391_v49 }
 0xb11   : > { %9655 = vmatprep.subr.mxu1 %v10972_v12 }
 0xb12   : > { %v10384_v56 = vpop.eup %10383  ;;  %9656 = vmatpush3.msra.mxu1 %v3390_v2 }
 0xb13   : > { %v3132_v57 = vadd.f32 1.0, %v10384_v56  ;;  %9657 = vmatprep.subr.mxu1 %v10972_v12 }
 0xb14   : > { %9658 = vmatpush3.msra.mxu1 %v3389_v3 }
 0xb15   : > { %v3133_v58 = vmul.f32 0.5, %v3132_v57  ;;  %9659 = vmatprep.subr.mxu1 %v10972_v12 }
 0xb16   : > { %9660 = vmatpush3.msra.mxu1 %v3388_v24 }
 0xb17   : > { %v3295_v59 = vsub.f32 1.0, %v3133_v58 }
 0xbcf   : > { %v3289_v53 = vpop.f32.mrf.mxu1 }
 0xbd0   : > { %v3293_v54 = vadd.f32 %v3289_v53, %v3211_v52 }
 0xbd1   : > { %v9641_v55 = vpop.f32.mrf.mxu1 }
 0xbd2   : > { %10385 = vtanh.f32 %v3293_v54 }
 0xbdf   : > { %v10386_v62 = vpop.eup %10385 }
 0xbe0   : > { %v3296_v60 = vsub.f32 %v10386_v62, %v11745_v8 }
 0xbe2   : > { %v3297_v61 = vmul.f32 %v3296_v60, %v3295_v59 }
 0xbe4   : > { %v3298_v63 = vmul.f32 0.05, %v3297_v61 }
 0xbe6   : > { %v8932_v0 = vclamps-f32 %v3298_v63, 1.0 }
 0xbe8   : > { %v3301_v1 = vadd.f32 %v8932_v0, %v11745_v8 }
 0xbea   : > { %3302 = vst.msk [vmem:[%s11428_s5] sm:$0xff] %vm2790_vm1, %v3301_v1  ;;  %9651 = vmatmul.mubr.msk.f32.vlgmr.msra.gmra.mxu0 %vm2790_vm1, %v3301_v1 }
 0xcaa   : > { %v3383_v13 = vpop.f32.mrf.mxu0 }
 0xcab   : > { %v3384_v14 = vadd.f32 %v8933_v11, %v3383_v13 }
 0xcac   : > { %v9652_v15 = vpop.f32.mrf.mxu0 }
 0xcad   : > { %v3387_v16 = vmax.f32 %v3384_v14, 0.0 }
 0xcaf   : > { %9662 = vmatmul.mubr.msk.f32.vlgmr.msra.gmra.mxu1 %vm2790_vm1, %v3387_v16 }
 0xd6f   : > { %v3468_v18 = vpop.f32.mrf.mxu1 }
 0xd70   : > { %v3469_v19 = vadd.f32 %v8935_v17, %v3468_v18 }
 0xd71   : > { %v9663_v10 = vpop.f32.mrf.mxu1 }
 0xd72   : > { %v3472_v4 = vmul.f32 1.442695, %v3469_v19 }
 0xd74   : > { %10387 = vpow2.f32 %v3472_v4 }
 0xd81   : > { %v10388_v12 = vpop.eup %10387 }
 0xd82   : > { %3474 = vst.msk [vmem:[%s11431_s24] sm:$0xff] %vm2793_vm2, %v10388_v12 }
 0xd83 PF: > { %p8937_p2 = scmp.ne.s32.totalorder %s11758_s17, 1 }
 0xd84   : > { %s11873_s10 = sshll.u32 (!%p8937_p2), %s11760_s9, 3  ;;  %s12962_s12 = sld [smem:[#allocation48_spill]] (!%p8937_p2) }
 0xd85   : > { %3478 = sbr.rel (%p8937_p2) target bundleno = 4928 (0x1340), region = 148  ;;  %s12963_s27 = sld [smem:[#allocation62_spill]] (!%p8937_p2) }
 0xd86   : > { %s12964_s23 = sld [smem:[#allocation47_spill]] (!%p8937_p2)  ;;  %s10976_s14 = smov (!%p8937_p2), 124  }
 0xd87   : > { %s10977_s20 = smov (!%p8937_p2), 4   ;;  %s12965_s30 = sld [smem:[#allocation57_spill]] (!%p8937_p2) }
 0xd88   : > { %s12966_s28 = sld [smem:[#allocation49_spill]] (!%p8937_p2) }
 0xd89   : > { %s12967_s22 = sld [smem:[#allocation61_spill]] (!%p8937_p2) }
 0xd8a   : > { %v8939_v20 = vclamps-f32 %v11748_v9, 10.0  ;;  %s3482_s21 = scalar_lea.vmem %s12962_s12, %s11873_s10  ;;  %vm3526_vm4 = vcmask 1043456   ;;  %vm3511_vm5 = vcmask 31744   ;;  %v10974_v25 = vmov 0.0   ;;  %v3602_v26 = vld [vmem:[#allocation19 + $0x4] sm:$0xf] }
 0xd8b   : > { %v3522_v23 = vld [vmem:[%s12963_s27] sm:$0xf]  ;;  %9664 = vmatprep.subr.mxu1 %v10974_v25  ;;  %vm10975_vm6 = vmmov 0   ;;  %9674 = vmatprep.subr.mxu0 %v10974_v25  ;;  %v3756_v31 = vld [vmem:[#allocation19 + $0x8] sm:$0xf]  ;;  %v3926_v53 = vld [vmem:[#allocation17 + $0x10] sm:$0xff] }
 0xd8c   : > { %v3488_v21 = vmul.f32 0.5, %v8939_v20  ;;  %s3480_s4 = scalar_lea.vmem %s12964_s23, %s11873_s10  ;;  %9666 = vmatprep.mubr.msk.f32.mxu1 %vm10975_vm6, %v10974_v25  ;;  %v3483_v27 = vld [vmem:[%s3482_s21] sm:$0xff]  ;;  %9665 = vmatpush3.msk.msra.mxu1 %vm3526_vm4, %v3522_v23  ;;  %v3834_v35 = vld [vmem:[#allocation19 + $0xc] sm:$0xf]  ;;  %v10978_v59 = vmov 0   ;;  %vm4001_vm7 = vcmask 130048  }
 0xd8d   : > { %v3600_v29 = vld [vmem:[#allocation19] sm:$0xf]  ;;  %9667 = vmatmul.mubr.msk.f32.vlgmr.msra.gmra.mxu1 %vm3511_vm5, %v3483_v27  ;;  %9669 = vmatprep.subr.mxu1 %v10974_v25  ;;  %v3925_v54 = vld [vmem:[#allocation17 + $0x8] sm:$0xff]  ;;  %v8956_v57 = vld [vmem:[%s12965_s30 + $0x18] sm:$0xff]  ;;  %vm4639_vm8 = vcmp.eq.s32.totalorder %v11453_v6, 0  ;;  %vm4645_vm11 = vcmp.eq.s32.totalorder %v11453_v6, 1 }
 0xd8e   : > { %v3489_v22 = vmul.f32 1.442695, %v3488_v21  ;;  %v11893_v30 = vld [vmem:[%s3480_s4] sm:$0xff]  ;;  %9670 = vmatpush3.msk.msra.mxu1 %vm3526_vm4, %v3602_v26  ;;  %9671 = vmatprep.mubr.msk.f32.mxu1 %vm10975_vm6, %v10974_v25  ;;  %v3923_v56 = vld [vmem:[%s12965_s30 + $0x8] sm:$0xff]  ;;  %v8955_v62 = vld [vmem:[%s12965_s30 + $0x10] sm:$0xff]  ;;  %s3484_s27 = scalar_lea.vmem %s12966_s28, %s11873_s10  ;;  %vm4646_vm12 = vcmp.eq.s32.totalorder %v11455_v7, 0 }
 0xd8f   : > { %9675 = vmatpush3.msk.msra.mxu0 %vm3526_vm4, %v3600_v29  ;;  %9676 = vmatprep.mubr.msk.f32.mxu0 %vm10975_vm6, %v10974_v25  ;;  %v3493_v38 = vsub.f32 %v11893_v30, %v11748_v9  ;;  %v3924_v55 = vld [vmem:[#allocation17] sm:$0xff]  ;;  %v8962_v21 = vld [vmem:[%s12965_s30 + $0x28] sm:$0xff]  ;;  %v4333_v29 = vld [vmem:[#allocation17 + $0x58] sm:$0xff] }
 0xd90   : > { %10391 = vpow2.f32 %v3489_v22  ;;  %9679 = vmatprep.subr.mxu1 %v10974_v25  ;;  %9677 = vmatmul.mubr.msk.f32.vlgmr.msra.gmra.mxu0 %vm3511_vm5, %v11893_v30  ;;  %v3922_v58 = vld [vmem:[%s12965_s30] sm:$0xff]  ;;  %v4093_v22 = vld [vmem:[#allocation17 + $0x30] sm:$0xff]  ;;  %v4092_v26 = vld [vmem:[#allocation17 + $0x28] sm:$0xff] }
 0xd91   : > { %9672 = vmatmul.mubr.msk.f32.vlgmr.msra.gmra.mxu1 %vm3511_vm5, %v11748_v9  ;;  %9684 = vmatprep.subr.mxu0 %v10974_v25  ;;  %v3927_v9 = vld [vmem:[#allocation17 + $0x18] sm:$0xff]  ;;  %v3485_v60 = vld [vmem:[%s3484_s27] sm:$0xff]  ;;  %s12968_s27 = sld [smem:[#allocation55_spill]]  ;;  %vm4647_vm13 = vmand %vm4645_vm11, %vm4646_vm12 }
 0xd92   : > { %9680 = vmatpush3.msk.msra.mxu1 %vm3526_vm4, %v3756_v31  ;;  %9681 = vmatprep.mubr.msk.f32.mxu1 %vm10975_vm6, %v10974_v25  ;;  %v8951_v17 = vld [vmem:[%s12967_s22] ss:$0 sm:$0xff]  ;;  %v4332_v31 = vld [vmem:[#allocation17 + $0x50] sm:$0xff]  ;;  %s12969_s22 = sld [smem:[#allocation59_spill]] }
 0xd93   : > { %9686 = vmatprep.mubr.msk.f32.mxu0 %vm10975_vm6, %v10974_v25  ;;  %9689 = vmatprep.subr.mxu1 %v10974_v25  ;;  %v8961_v23 = vld [vmem:[%s12965_s30 + $0x20] sm:$0xff] }
 0xd94   : > { %9685 = vmatpush3.msk.msra.mxu0 %vm3526_vm4, %v3834_v35  ;;  %10389 = vset.pattern.permute.xlu1 %v10978_v59 }
 0xd95   : > { %9700 = vmatprep.subr.mxu0 %v10974_v25  ;;  %10390 = vset.pattern.permute.xlu0 %v10978_v59 }
 0xd96   : > { %4422 = vperm.xlu1 %10389, %v3485_v60  }
 0xd98   : > { %v8964_v59 = vld [vmem:[%s12969_s22 + $0x2] ss:$0 sm:$0xff] }
 0xd9d   : > { %v10392_v32 = vpop.eup %10391 }
 0xd9e   : > { %v3491_v33 = vmax.f32 %v10392_v32, 1e-06  ;;  %v4331_v32 = vld [vmem:[#allocation17 + $0x48] sm:$0xff] }
 0xda0   : > { %v3492_v34 = vmin.f32 %v3491_v33, 1000000.0  ;;  %v4330_v33 = vld [vmem:[#allocation17 + $0x40] sm:$0xff] }
 0xda2   : > { %3495 = vrot.lane.b32.xlu0 %v3492_v34, %s10976_s14 }
 0xda6   : > { %3504 = vrot.lane.b32.xlu0 %v8939_v20, %s10976_s14  ;;  %v4094_v20 = vld [vmem:[#allocation17 + $0x38] sm:$0xff] }
 0xdaa   : > { %4619 = vrot.lane.b32.xlu0 %v3483_v27, %s10977_s20 }
 0xe14   : > { %v3496_v36 = vpop.permute.xlu0 %3495 }
 0xe15   : > { %10393 = vrcp.f32 %v3496_v36  ;;  %v4430_v36 = vld [vmem:[#allocation13 + $0x18] sm:$0xff] }
 0xe18   : > { %v3505_v37 = vpop.permute.xlu0 %3504 }
 0xe19   : > { %9682 = vmatmul.mubr.msk.f32.vlgmr.msra.gmra.mxu1 %vm3511_vm5, %v3505_v37 }
 0xe1a   : > { %9697 = vmatprep.mubr.msk.f32.mxu1 %vm10975_vm6, %v10974_v25  ;;  %9690 = vmatpush3.msra.mxu1 %v3927_v9 }
 0xe1b   : > { %9691 = vmatprep.subr.mxu1 %v10974_v25 }
 0xe1c   : > { %9692 = vmatpush3.msra.mxu1 %v3926_v53  ;;  %v11955_v61 = vpop.permute.xlu0 %4619 }
 0xe1d   : > { %9693 = vmatprep.subr.mxu1 %v10974_v25 }
 0xe1e   : > { %9694 = vmatpush3.msra.mxu1 %v3925_v54 }
 0xe1f   : > { %9695 = vmatprep.subr.mxu1 %v10974_v25 }
 0xe20   : > { %9696 = vmatpush3.msra.mxu1 %v3924_v55  ;;  %v8967_v55 = vld [vmem:[%s12969_s22 + $0x3] ss:$0 sm:$0xff] }
 0xe21   : > { %9698 = vmatmul.mubr.msk.f32.vlgmr.msra.gmra.mxu1 %vm2790_vm1, %v11745_v8  ;;  %9718 = vmatprep.subr.mxu1 %v10974_v25 }
 0xe22   : > { %v10394_v39 = vpop.eup %10393  ;;  %9719 = vmatpush3.msra.mxu1 %v8956_v57  ;;  %9722 = vmatprep.mubr.msk.f32.mxu1 %vm10975_vm6, %v10974_v25 }
 0xe23   : > { %v3499_v40 = vmul.f32 %v10394_v39, %v3493_v38  ;;  %9720 = vmatprep.subr.mxu1 %v10974_v25  ;;  %v4428_v38 = vld [vmem:[#allocation13 + $0x8] sm:$0xff]  ;;  %v4427_v39 = vld [vmem:[#allocation13] sm:$0xff] }
 0xe24   : > { %9721 = vmatpush3.msra.mxu1 %v8955_v62 }
 0xe25   : > { %v8940_v41 = vclamps-f32 %v3499_v40, 1000000.0  ;;  %9725 = vmatprep.subr.mxu1 %v10974_v25  ;;  %v4515_v40 = vld [vmem:[%s12968_s27 + $0x18] sm:$0xff] }
 0xe27   : > { %v3502_v42 = vmul.f32 %v8940_v41, %v8940_v41  ;;  %9687 = vmatmul.mubr.msk.f32.vlgmr.msra.gmra.mxu0 %vm3511_vm5, %v8940_v41 }
 0xe28   : > { %9704 = vmatprep.mubr.msk.f32.mxu0 %vm10975_vm6, %v10974_v25  ;;  %9701 = vmatpush3.msra.mxu0 %v3923_v56 }
 0xe29   : > { %v3507_v43 = vadd.f32 %v3505_v37, %v3502_v42  ;;  %9702 = vmatprep.subr.mxu0 %v10974_v25  ;;  %v4429_v37 = vld [vmem:[#allocation13 + $0x10] sm:$0xff]  ;;  %v8954_v42 = vld [vmem:[%s12969_s22] ss:$0 sm:$0xff] }
 0xe2a   : > { %9703 = vmatpush3.msra.mxu0 %v3922_v58 }
 0xe2b   : > { %v3508_v44 = vadd.f32 1.837877, %v3507_v43  ;;  %9707 = vmatprep.subr.mxu0 %v10974_v25 }
 0xe2d   : > { %v3509_v45 = vmul.f32 %v3508_v44, %v3483_v27  ;;  %v4091_v27 = vld [vmem:[#allocation17 + $0x20] sm:$0xff] }
 0xe2f   : > { %v3510_v46 = vmul.f32 0.5, %v3509_v45 }
 0xe31   : > { %v3512_v47 = vsel %vm3511_vm5, %v3510_v46, 0.0 }
 0xe32   : > { %3513 = vadd.xlane.f32.xlu0 %v3512_v47 }
 0xe4d   : > { %v3596_v28 = vpop.f32.mrf.mxu1 }
 0xe4f   : > { %v9668_v48 = vpop.f32.mrf.mxu1 }
 0xe50   : > { %v3751_v5 = vpop.f32.mrf.mxu0 }
 0xe51   : > { %v3675_v49 = vpop.f32.mrf.mxu1 }
 0xe52   : > { %v3752_v50 = vadd.f32 %v3751_v5, %v3675_v49  ;;  %v9678_v51 = vpop.f32.mrf.mxu0  ;;  %v8960_v49 = vld [vmem:[%s12969_s22 + $0x1] ss:$0 sm:$0xff] }
 0xe53   : > { %v9673_v52 = vpop.f32.mrf.mxu1 }
 0xebb   : > { %v3514_v63 = vpop.xlane.xlu0 %3513 }
 0xebc   : > { %v3515_v0 = vrot.slane %v3514_v63, 4 }
 0xebe   : > { %v3516_v1 = vadd.f32 %v3515_v0, %v3514_v63 }
 0xec0   : > { %v3517_v2 = vrot.slane %v3516_v1, 2 }
 0xec2   : > { %v3518_v3 = vadd.f32 %v3517_v2, %v3516_v1 }
 0xec4   : > { %v3519_v24 = vrot.slane %v3518_v3, 1 }
 0xec6   : > { %v3520_v11 = vadd.f32 %v3519_v24, %v3518_v3 }
 0xec8   : > { %10111 = vpush %v3520_v11 }
 0xed9   : > { %v3828_v13 = vpop.f32.mrf.mxu1 }
 0xeda   : > { %v3832_v15 = vadd.f32 %v3828_v13, %v3752_v50 }
 0xedb   : > { %v9683_v14 = vpop.f32.mrf.mxu1 }
 0xee1   : > { %v3997_v34 = vpop.f32.mrf.mxu1 }
 0xee3   : > { %v9699_v35 = vpop.f32.mrf.mxu1 }
 0xee7   : > { %v3907_v16 = vpop.f32.mrf.mxu0 }
 0xee8   : > { %v3911_v18 = vadd.f32 %v3907_v16, %v3832_v15 }
 0xee9   : > { %v9688_v19 = vpop.f32.mrf.mxu0 }
 0xeea   : > { %v3919_v10 = vadd.f32 %v8951_v17, %v3911_v18  ;;  %v4423_v17 = vpop.permute.xlu1 %4422 }
 0xeec   : > { %v3920_v4 = vmax.f32 %v3919_v10, 0.0 }
 0xeee   : > { %v3921_v12 = vmul.f32 %v3920_v4, %v3596_v28  ;;  %v4514_v4 = vld [vmem:[%s12968_s27 + $0x10] sm:$0xff] }
 0xef0   : > { %9705 = vmatmul.mubr.msk.f32.vlgmr.msra.gmra.mxu0 %vm4001_vm7, %v3921_v12  ;;  %9723 = vmatmul.mubr.msk.f32.vlgmr.msra.gmra.mxu1 %vm4001_vm7, %v3921_v12 }
 0xef1   : > { %9708 = vmatpush3.msra.mxu0 %v4094_v20  ;;  %9726 = vmatpush3.msra.mxu1 %v8962_v21  ;;  %v8969_v20 = vld [vmem:[#allocation14] ss:$0 sm:$0xff] }
 0xef2   : > { %9709 = vmatprep.subr.mxu0 %v10974_v25  ;;  %9727 = vmatprep.subr.mxu1 %v10974_v25 }
 0xef3   : > { %9710 = vmatpush3.msra.mxu0 %v4093_v22  ;;  %9728 = vmatpush3.msra.mxu1 %v8961_v23 }
 0xef4   : > { %9711 = vmatprep.subr.mxu0 %v10974_v25  ;;  %9729 = vmatprep.mubr.msk.f32.mxu1 %vm10975_vm6, %v10974_v25 }
 0xef5   : > { %9712 = vmatpush3.msra.mxu0 %v4092_v26  ;;  %9730 = vmatmul.mubr.msk.f32.vlgmr.msra.gmra.mxu1 %vm4001_vm7, %v3921_v12  ;;  %v4513_v12 = vld [vmem:[%s12968_s27 + $0x8] sm:$0xff] }
 0xef6   : > { %9713 = vmatprep.subr.mxu0 %v10974_v25  ;;  %9715 = vmatprep.mubr.msk.f32.mxu0 %vm10975_vm6, %v10974_v25 }
 0xef7   : > { %9714 = vmatpush3.msra.mxu0 %v4091_v27  ;;  %9743 = vmatprep.subr.mxu1 %v10974_v25  ;;  %v8971_v27 = vld [vmem:[#allocation16] ss:$0 sm:$0xff] }
 0xef8   : > { %9716 = vmatmul.mubr.msk.f32.vlgmr.msra.gmra.mxu0 %vm2790_vm1, %v11745_v8  ;;  %9732 = vmatprep.subr.mxu0 %v10974_v25 }
 0xef9   : > { %9733 = vmatpush3.msra.mxu0 %v4333_v29  ;;  %9740 = vmatprep.mubr.msk.f32.mxu0 %vm10975_vm6, %v10974_v25 }
 0xefa   : > { %9734 = vmatprep.subr.mxu0 %v10974_v25  ;;  %9751 = vmatprep.mubr.msk.f32.mxu1 %vm10975_vm6, %v10974_v25 }
 0xefb   : > { %9735 = vmatpush3.msra.mxu0 %v4332_v31  ;;  %9744 = vmatpush3.msra.mxu1 %v4430_v36 }
 0xefc   : > { %9736 = vmatprep.subr.mxu0 %v10974_v25  ;;  %9745 = vmatprep.subr.mxu1 %v10974_v25 }
 0xefd   : > { %9737 = vmatpush3.msra.mxu0 %v4331_v32  ;;  %9746 = vmatpush3.msra.mxu1 %v4429_v37 }
 0xefe   : > { %9738 = vmatprep.subr.mxu0 %v10974_v25  ;;  %9747 = vmatprep.subr.mxu1 %v10974_v25 }
 0xeff   : > { %9739 = vmatpush3.msra.mxu0 %v4330_v33  ;;  %9748 = vmatpush3.msra.mxu1 %v4428_v38 }
 0xf00   : > { %9741 = vmatmul.mubr.msk.f32.vlgmr.msra.gmra.mxu0 %vm2790_vm1, %v11745_v8  ;;  %9754 = vmatprep.subr.mxu0 %v10974_v25 }
 0xf01   : > { %9762 = vmatprep.mubr.msk.f32.mxu0 %vm10975_vm6, %v10974_v25  ;;  %9749 = vmatprep.subr.mxu1 %v10974_v25 }
 0xf02   : > { %9750 = vmatpush3.msra.mxu1 %v4427_v39  ;;  %9755 = vmatpush3.msra.mxu0 %v4515_v40 }
 0xf03   : > { %9756 = vmatprep.subr.mxu0 %v10974_v25 }
 0xf04   : > { %9757 = vmatpush3.msra.mxu0 %v4514_v4 }
 0xf05   : > { %9758 = vmatprep.subr.mxu0 %v10974_v25 }
 0xf06   : > { %9759 = vmatpush3.msra.mxu0 %v4513_v12 }
 0xf07   : > { %9760 = vmatprep.subr.mxu0 %v10974_v25 }
 0xfb0   : > { %v4071_v41 = vpop.f32.mrf.mxu0  ;;  %v4231_v43 = vpop.f32.mrf.mxu1 }
 0xfb1   : > { %v4072_v44 = vadd.f32 %v4071_v41, %v3997_v34 }
 0xfb2   : > { %v9706_v45 = vpop.f32.mrf.mxu0  ;;  %v9724_v46 = vpop.f32.mrf.mxu1 }
 0xfb3   : > { %v4082_v47 = vadd.f32 %v8954_v42, %v4072_v44 }
 0xfb5   : > { %v4083_v28 = vmul.f32 0.5, %v4082_v47  ;;  %v4325_v48 = vpop.f32.mrf.mxu1 }
 0xfb6   : > { %v4326_v63 = vadd.f32 %v8964_v59, %v4325_v48 }
 0xfb7   : > { %10395 = vtanh.f32 %v4083_v28  ;;  %v9731_v5 = vpop.f32.mrf.mxu1 }
 0xfb8   : > { %v4161_v9 = vpop.f32.mrf.mxu0 }
 0xfb9   : > { %v4232_v50 = vadd.f32 %v4231_v43, %v4161_v9 }
 0xfba   : > { %v9717_v51 = vpop.f32.mrf.mxu0 }
 0xfbb   : > { %v4243_v52 = vadd.f32 %v8960_v49, %v4232_v50 }
 0xfbd   : > { %v4244_v53 = vmul.f32 0.5, %v4243_v52 }
 0xfbf   : > { %10397 = vtanh.f32 %v4244_v53 }
 0xfc0   : > { %v4408_v54 = vpop.f32.mrf.mxu0 }
 0xfc1   : > { %v4409_v62 = vadd.f32 %v8967_v55, %v4408_v54 }
 0xfc2   : > { %v9742_v56 = vpop.f32.mrf.mxu0 }
 0xfc4   : > { %v10396_v57 = vpop.eup %10395 }
 0xfc5   : > { %v4085_v58 = vadd.f32 1.0, %v10396_v57 }
 0xfc7   : > { %v4086_v60 = vmul.f32 0.5, %v4085_v58  ;;  %v4640_v58 = vstv %s11760_s9 }
 0xfc8   : > { %vm4641_vm9 = vcmp.eq.s32.totalorder %v11455_v7, %v4640_v58 }
 0xfc9   : > { %v4412_v0 = vmul.f32 %v4409_v62, %v4086_v60  ;;  %vm4642_vm10 = vmand %vm4639_vm8, %vm4641_vm9  ;;  %v4650_v60 = vld [vmem:[%s11436_s26] sm:$0xff] }
 0xfcb   : > { %v4413_v1 = vadd.f32 %v4412_v0, %v4326_v63  ;;  %v8976_v63 = vsel %vm4647_vm13, 1.0, %v10974_v25 }
 0xfcc   : > { %v10398_v2 = vpop.eup %10397 }
 0xfcd   : > { %10399 = vtanh.f32 %v4413_v1  ;;  %v4246_v3 = vadd.f32 1.0, %v10398_v2 }
 0xfcf   : > { %v4247_v24 = vmul.f32 0.5, %v4246_v3 }
 0xfd1   : > { %v4415_v11 = vsub.f32 1.0, %v4247_v24  ;;  %v4417_v15 = vmul.f32 %v4247_v24, %v11745_v8 }
 0xfda   : > { %v10400_v13 = vpop.eup %10399 }
 0xfdb   : > { %v4416_v14 = vmul.f32 %v10400_v13, %v4415_v11 }
 0xfdd   : > { %v4418_v16 = vadd.f32 %v4417_v15, %v4416_v14 }
 0xfdf   : > { %v4419_v18 = vsub.f32 %v4418_v16, %v11745_v8 }
 0xfe1   : > { %v4425_v19 = vmul.f32 %v4423_v17, %v4419_v18 }
 0xfe3   : > { %v4426_v10 = vadd.f32 %v4425_v19, %v11745_v8  ;;  %v4512_v8 = vld [vmem:[%s12968_s27] sm:$0xff] }
 0xfe4   : > { %9761 = vmatpush3.msra.mxu0 %v4512_v8 }
 0xfe5   : > { %4637 = vst.msk [vmem:[%s11428_s5] sm:$0xff] %vm2790_vm1, %v4426_v10  ;;  %9752 = vmatmul.mubr.msk.f32.vlgmr.msra.gmra.mxu1 %vm2790_vm1, %v4426_v10 }
0x10a5   : > { %v4507_v21 = vpop.f32.mrf.mxu1 }
0x10a6   : > { %v4508_v22 = vadd.f32 %v8969_v20, %v4507_v21 }
0x10a7   : > { %v9753_v23 = vpop.f32.mrf.mxu1 }
0x10a8   : > { %v4511_v26 = vmax.f32 %v4508_v22, 0.0 }
0x10aa   : > { %9763 = vmatmul.mubr.msk.f32.vlgmr.msra.gmra.mxu0 %vm2790_vm1, %v4511_v26 }
0x116a   : > { %v4592_v29 = vpop.f32.mrf.mxu0 }
0x116b   : > { %v4593_v31 = vadd.f32 %v8971_v27, %v4592_v29 }
0x116c   : > { %v9764_v32 = vpop.f32.mrf.mxu0 }
0x116d   : > { %v4596_v33 = vmul.f32 1.442695, %v4593_v31 }
0x116f   : > { %10401 = vpow2.f32 %v4596_v33 }
0x117c   : > { %v10402_v34 = vpop.eup %10401 }
0x117d   : > { %4638 = vst.msk [vmem:[%s11431_s24] sm:$0xff] %vm2793_vm2, %v10402_v34  ;;  %v4609_v35 = vsub.f32 %v10402_v34, %v11893_v30  ;;  %v8973_v37 = vclamps-f32 %v10402_v34, 10.0 }
0x117f   : > { %v4610_v36 = vmul.f32 %v4609_v35, %v4609_v35  ;;  %v4600_v38 = vmul.f32 0.5, %v8973_v37 }
0x1181   : > { %4612 = vrot.lane.b32.xlu1 %v4610_v36, %s10977_s20  ;;  %v4601_v39 = vmul.f32 1.442695, %v4600_v38 }
0x1183   : > { %10403 = vpow2.f32 %v4601_v39 }
0x1190   : > { %v10404_v40 = vpop.eup %10403 }
0x1191   : > { %v4603_v41 = vmax.f32 %v10404_v40, 1e-06 }
0x1193   : > { %v4604_v42 = vmin.f32 %v4603_v41, 1000000.0 }
0x1195   : > { %10405 = vlog2.f32 %v4604_v42  ;;  %v4608_v45 = vmul.f32 %v4604_v42, %v4604_v42 }
0x11a2   : > { %v10406_v43 = vpop.eup %10405 }
0x11a3   : > { %v4606_v44 = vmul.f32 0.6931472, %v10406_v43 }
0x11a5   : > { %v4607_v28 = vsub.f32 -4.6051702, %v4606_v44 }
0x11f3   : > { %v4613_v46 = vpop.permute.xlu1 %4612 }
0x11f4   : > { %v4615_v47 = vadd.f32 %v4613_v46, %v4608_v45 }
0x11f6   : > { %v4616_v48 = vmul.f32 5000.0, %v4615_v47 }
0x11f8   : > { %v4617_v30 = vadd.f32 %v4616_v48, %v4607_v28 }
0x11fa   : > { %v8974_v5 = vadd.f32 -0.5, %v4617_v30 }
0x11fc   : > { %v4622_v9 = vmul.f32 %v8974_v5, %v11955_v61  ;;  %v8975_v61 = vsel %vm4642_vm10, 1.0, %v10974_v25 }
0x11fe   : > { %4624 = vrot.lane.b32.xlu1 %v4622_v9, %s10976_s14  ;;  %s10112_s14 = spop %10111 }
0x11ff   : > { %v4651_v62 = vstv %s10112_s14 }
0x1200   : > { %v4652_v59 = vmul.f32 %v8975_v61, %v4651_v62 }
0x1202   : > { %v4653_v1 = vadd.f32 %v4652_v59, %v4650_v60 }
0x1270   : > { %v4625_v49 = vpop.permute.xlu1 %4624 }
0x1271   : > { %v4627_v50 = vsel %vm3511_vm5, %v4625_v49, 0.0 }
0x1272   : > { %4628 = vadd.xlane.f32.xlu1 %v4627_v50 }
0x12fb   : > { %v4629_v51 = vpop.xlane.xlu1 %4628 }
0x12fc   : > { %v4630_v52 = vrot.slane %v4629_v51, 4 }
0x12fe   : > { %v4631_v53 = vadd.f32 %v4630_v52, %v4629_v51 }
0x1300   : > { %v4632_v54 = vrot.slane %v4631_v53, 2 }
0x1302   : > { %v4633_v55 = vadd.f32 %v4632_v54, %v4631_v53 }
0x1304   : > { %v4634_v56 = vrot.slane %v4633_v55, 1 }
0x1306   : > { %v4635_v57 = vadd.f32 %v4634_v56, %v4633_v55 }
0x1308   : > { %10113 = vpush %v4635_v57 }
0x1339   : > { %s10114_s9 = spop %10113 }
0x133a   : > { %v4654_v0 = vstv %s10114_s9 }
0x133b   : > { %v4655_v2 = vmul.f32 %v8976_v63, %v4654_v0 }
0x133d   : > { %v4656_v3 = vadd.f32 %v4655_v2, %v4653_v1 }
0x133f   : > { %4657 = vst [vmem:[%s11436_s26] sm:$0xff] %v4656_v3 }
0x1340 PF: > { %s12970_s20 = sld [smem:[#allocation38_spill]]  ;;  %v12047_v24 = vld [vmem:[%s11428_s5] sm:$0xff]  ;;  %v12050_v11 = vld [vmem:[%s11431_s24] sm:$0xff]  ;;  %s4664_s27 = sadd.s32 2, %s11416_s7 }
0x1341   : > { %8977 = vst.msk [vmem:[%s11433_s16 + $0x8] sm:$0xff] %vm2790_vm1, %v12047_v24  ;;  %s4665_s21 = sshra.s32 %s4664_s27, 7  ;;  %s4670_s30 = sand.u32 127, %s4664_s27 }
0x1342   : > { %8978 = vst.msk [vmem:[%s11425_s13 + $0x8] sm:$0xff] %vm2793_vm2, %v12050_v11 }
0x1346   : > { %s4667_s28 = sadd.s32 %s12970_s20, %s4665_s21 }
0x1347   : > { %s8979_s10 = sshll.u32 %s4667_s28, 7 }
0x1348   : > { %s4671_s17 = sadd.s32 %s8979_s10, %s4670_s30 }
0x1349   : > { %s12060_s22 = sld [smem:[#allocation3 + %s4671_s17]] }
0x134a   : > { %s12062_s23 = sld [smem:[#allocation4 + %s4671_s17]] }
0x134f   : > { %p8980_p8 = scmp.ne.s32.totalorder %s12060_s22, 0 }
0x1350   : > { %s12971_s14 = sld [smem:[#allocation52_spill]] (!%p8980_p8) }
0x1351   : > { %4679 = sbr.rel (%p8980_p8) target bundleno = 5804 (0x16ac), region = 152  ;;  %s12972_s21 = sld [smem:[#allocation55_spill]] (!%p8980_p8) }
0x1356   : > { %v4764_v25 = vld [vmem:[%s12971_s14 + $0x18] sm:$0xff]  ;;  %v4680_v13 = vld [vmem:[#allocation10] sm:$0xff]  ;;  %v10979_v14 = vmov 0.0   ;;  %v4763_v15 = vld [vmem:[%s12971_s14 + $0x10] sm:$0xff]  ;;  %vm10980_vm14 = vmmov 0  }
0x1357   : > { %9770 = vmatprep.subr.mxu1 %v10979_v14  ;;  %9765 = vmatprep.subr.mxu0 %v10979_v14  ;;  %v4762_v16 = vld [vmem:[%s12971_s14 + $0x8] sm:$0xff]  ;;  %v4761_v17 = vld [vmem:[%s12971_s14] sm:$0xff]  ;;  %v8989_v19 = vld [vmem:[%s12971_s14 + $0x38] sm:$0xff] }
0x1358   : > { %9771 = vmatpush3.msra.mxu1 %v4764_v25  ;;  %9766 = vmatpush3.msra.mxu0 %v4680_v13  ;;  %v4844_v18 = vld [vmem:[#allocation10 + $0x8] sm:$0xff]  ;;  %v8988_v10 = vld [vmem:[%s12971_s14 + $0x30] sm:$0xff]  ;;  %v8986_v12 = vld [vmem:[%s12971_s14 + $0x20] sm:$0xff] }
0x1359   : > { %9772 = vmatprep.subr.mxu1 %v10979_v14  ;;  %9767 = vmatprep.mubr.msk.f32.mxu0 %vm10980_vm14, %v10979_v14  ;;  %v8987_v4 = vld [vmem:[%s12971_s14 + $0x28] sm:$0xff]  ;;  %v8996_v8 = vld [vmem:[%s12971_s14 + $0x58] sm:$0xff]  ;;  %v5004_v20 = vld [vmem:[#allocation10 + $0x10] sm:$0xff] }
0x135a   : > { %9773 = vmatpush3.msra.mxu1 %v4763_v15  ;;  %9768 = vmatmul.mubr.msk.f32.vlgmr.msra.gmra.mxu0 %vm2793_vm2, %v12050_v11  ;;  %v8995_v21 = vld [vmem:[%s12971_s14 + $0x50] sm:$0xff]  ;;  %v8994_v22 = vld [vmem:[%s12971_s14 + $0x48] sm:$0xff]  ;;  %v8993_v23 = vld [vmem:[%s12971_s14 + $0x40] sm:$0xff] }
0x135b   : > { %9774 = vmatprep.subr.mxu1 %v10979_v14  ;;  %9778 = vmatprep.mubr.msk.f32.mxu1 %vm10980_vm14, %v10979_v14  ;;  %v8981_v26 = vld [vmem:[#allocation11] ss:$0 sm:$0xff]  ;;  %v8984_v41 = vld [vmem:[#allocation11 + $0x1] ss:$0 sm:$0xff]  ;;  %v5174_v30 = vld [vmem:[#allocation13 + $0x10] sm:$0xff] }
0x135c   : > { %9775 = vmatpush3.msra.mxu1 %v4762_v16  ;;  %9781 = vmatprep.subr.mxu0 %v10979_v14  ;;  %v5175_v48 = vld [vmem:[#allocation13 + $0x18] sm:$0xff]  ;;  %v5173_v5 = vld [vmem:[#allocation13 + $0x8] sm:$0xff]  ;;  %v5172_v9 = vld [vmem:[#allocation13] sm:$0xff] }
0x135d   : > { %9776 = vmatprep.subr.mxu1 %v10979_v14  ;;  %9783 = vmatprep.mubr.msk.f32.mxu0 %vm10980_vm14, %v10979_v14  ;;  %v5260_v49 = vld [vmem:[%s12972_s21 + $0x18] sm:$0xff]  ;;  %v5259_v2 = vld [vmem:[%s12972_s21 + $0x10] sm:$0xff]  ;;  %v5258_v3 = vld [vmem:[%s12972_s21 + $0x8] sm:$0xff] }
0x135e   : > { %9777 = vmatpush3.msra.mxu1 %v4761_v17  ;;  %9782 = vmatpush3.msra.mxu0 %v4844_v18  ;;  %v8991_v51 = vld [vmem:[#allocation11 + $0x2] ss:$0 sm:$0xff]  ;;  %v5257_v25 = vld [vmem:[%s12972_s21] sm:$0xff]  ;;  %v8999_v13 = vld [vmem:[#allocation14] ss:$0 sm:$0xff] }
0x135f   : > { %9779 = vmatmul.mubr.msk.f32.vlgmr.msra.gmra.mxu1 %vm2790_vm1, %v12047_v24  ;;  %9802 = vmatprep.subr.mxu1 %v10979_v14 }
0x1360   : > { %9810 = vmatprep.mubr.msk.f32.mxu1 %vm10980_vm14, %v10979_v14  ;;  %9786 = vmatprep.subr.mxu0 %v10979_v14 }
0x1361   : > { %9784 = vmatmul.mubr.msk.f32.vlgmr.msra.gmra.mxu0 %vm2793_vm2, %v12050_v11  ;;  %9803 = vmatpush3.msra.mxu1 %v8996_v8 }
0x1362   : > { %9787 = vmatpush3.msra.mxu0 %v8989_v19  ;;  %9794 = vmatprep.mubr.msk.f32.mxu0 %vm10980_vm14, %v10979_v14  ;;  %v9001_v19 = vld [vmem:[#allocation16] ss:$0 sm:$0xff] }
0x1363   : > { %9788 = vmatprep.subr.mxu0 %v10979_v14  ;;  %9804 = vmatprep.subr.mxu1 %v10979_v14 }
0x1364   : > { %9789 = vmatpush3.msra.mxu0 %v8988_v10  ;;  %9805 = vmatpush3.msra.mxu1 %v8995_v21 }
0x1365   : > { %9790 = vmatprep.subr.mxu0 %v10979_v14  ;;  %9806 = vmatprep.subr.mxu1 %v10979_v14 }
0x1366   : > { %9791 = vmatpush3.msra.mxu0 %v8987_v4  ;;  %9807 = vmatpush3.msra.mxu1 %v8994_v22 }
0x1367   : > { %9792 = vmatprep.subr.mxu0 %v10979_v14  ;;  %9808 = vmatprep.subr.mxu1 %v10979_v14 }
0x1368   : > { %9793 = vmatpush3.msra.mxu0 %v8986_v12  ;;  %9809 = vmatpush3.msra.mxu1 %v8993_v23 }
0x1369   : > { %9795 = vmatmul.mubr.msk.f32.vlgmr.msra.gmra.mxu0 %vm2790_vm1, %v12047_v24  ;;  %9797 = vmatprep.subr.mxu0 %v10979_v14 }
0x136a   : > { %9799 = vmatprep.mubr.msk.f32.mxu0 %vm10980_vm14, %v10979_v14  ;;  %9798 = vmatpush3.msra.mxu0 %v5004_v20 }
0x136b   : > { %9813 = vmatprep.subr.mxu0 %v10979_v14  ;;  %9824 = vmatprep.subr.mxu1 %v10979_v14 }
0x136d   : > { %9800 = vmatmul.mubr.msk.f32.vlgmr.msra.gmra.mxu0 %vm2793_vm2, %v12050_v11 }
0x136e   : > { %9821 = vmatprep.mubr.msk.f32.mxu0 %vm10980_vm14, %v10979_v14  ;;  %9814 = vmatpush3.msra.mxu0 %v5175_v48 }
0x136f   : > { %9815 = vmatprep.subr.mxu0 %v10979_v14 }
0x1370   : > { %9816 = vmatpush3.msra.mxu0 %v5174_v30 }
0x1371   : > { %9817 = vmatprep.subr.mxu0 %v10979_v14 }
0x1372   : > { %9818 = vmatpush3.msra.mxu0 %v5173_v5 }
0x1373   : > { %9819 = vmatprep.subr.mxu0 %v10979_v14 }
0x1374   : > { %9820 = vmatpush3.msra.mxu0 %v5172_v9 }
0x141a   : > { %v4757_v27 = vpop.f32.mrf.mxu0 }
0x141b   : > { %v4758_v29 = vadd.f32 %v8981_v26, %v4757_v27 }
0x141c   : > { %v9769_v31 = vpop.f32.mrf.mxu0 }
0x141f   : > { %v4834_v32 = vpop.f32.mrf.mxu1 }
0x1420   : > { %v4838_v33 = vadd.f32 %v4834_v32, %v4758_v29 }
0x1421   : > { %v9780_v34 = vpop.f32.mrf.mxu1  ;;  %v4919_v40 = vpop.f32.mrf.mxu0 }
0x1422   : > { %v4839_v35 = vmul.f32 0.5, %v4838_v33  ;;  %v4920_v43 = vadd.f32 %v8984_v41, %v4919_v40 }
0x1423   : > { %v9785_v42 = vpop.f32.mrf.mxu0 }
0x1424   : > { %10407 = vtanh.f32 %v4839_v35 }
0x1429   : > { %v4994_v44 = vpop.f32.mrf.mxu0 }
0x142a   : > { %v4998_v45 = vadd.f32 %v4994_v44, %v4920_v43 }
0x142b   : > { %v9796_v46 = vpop.f32.mrf.mxu0 }
0x142c   : > { %v4999_v50 = vmul.f32 0.5, %v4998_v45 }
0x142d   : > { %v5079_v47 = vpop.f32.mrf.mxu0 }
0x142e   : > { %10409 = vtanh.f32 %v4999_v50  ;;  %v5080_v52 = vadd.f32 %v8991_v51, %v5079_v47 }
0x142f   : > { %v9801_v28 = vpop.f32.mrf.mxu0 }
0x1431   : > { %v10408_v36 = vpop.eup %10407 }
0x1432   : > { %v4841_v37 = vadd.f32 1.0, %v10408_v36 }
0x1434   : > { %v4842_v38 = vmul.f32 0.5, %v4841_v37 }
0x1436   : > { %v5083_v39 = vmul.f32 %v4842_v38, %v12047_v24 }
0x1438   : > { %9811 = vmatmul.mubr.msk.f32.vlgmr.msra.gmra.mxu1 %vm2790_vm1, %v5083_v39 }
0x1439   : > { %9832 = vmatprep.mubr.msk.f32.mxu1 %vm10980_vm14, %v10979_v14  ;;  %9825 = vmatpush3.msra.mxu1 %v5260_v49 }
0x143a   : > { %9826 = vmatprep.subr.mxu1 %v10979_v14 }
0x143b   : > { %v10410_v56 = vpop.eup %10409  ;;  %9827 = vmatpush3.msra.mxu1 %v5259_v2 }
0x143c   : > { %v5001_v57 = vadd.f32 1.0, %v10410_v56  ;;  %9828 = vmatprep.subr.mxu1 %v10979_v14 }
0x143d   : > { %9829 = vmatpush3.msra.mxu1 %v5258_v3 }
0x143e   : > { %v5002_v58 = vmul.f32 0.5, %v5001_v57  ;;  %9830 = vmatprep.subr.mxu1 %v10979_v14 }
0x143f   : > { %9831 = vmatpush3.msra.mxu1 %v5257_v25 }
0x1440   : > { %v5164_v62 = vsub.f32 1.0, %v5002_v58 }
0x14f8   : > { %v5158_v53 = vpop.f32.mrf.mxu1 }
0x14f9   : > { %v5162_v54 = vadd.f32 %v5158_v53, %v5080_v52 }
0x14fa   : > { %v9812_v55 = vpop.f32.mrf.mxu1 }
0x14fb   : > { %10411 = vtanh.f32 %v5162_v54 }
0x1508   : > { %v10412_v61 = vpop.eup %10411 }
0x1509   : > { %v5165_v59 = vsub.f32 %v10412_v61, %v12047_v24 }
0x150b   : > { %v5166_v60 = vmul.f32 %v5165_v59, %v5164_v62 }
0x150d   : > { %v5167_v63 = vmul.f32 0.05, %v5166_v60 }
0x150f   : > { %v8998_v0 = vclamps-f32 %v5167_v63, 1.0 }
0x1511   : > { %v5170_v1 = vadd.f32 %v8998_v0, %v12047_v24 }
0x1513   : > { %5171 = vst.msk [vmem:[%s11428_s5] sm:$0xff] %vm2790_vm1, %v5170_v1  ;;  %9822 = vmatmul.mubr.msk.f32.vlgmr.msra.gmra.mxu0 %vm2790_vm1, %v5170_v1 }
0x15d3   : > { %v5252_v15 = vpop.f32.mrf.mxu0 }
0x15d4   : > { %v5253_v16 = vadd.f32 %v8999_v13, %v5252_v15 }
0x15d5   : > { %v9823_v17 = vpop.f32.mrf.mxu0 }
0x15d6   : > { %v5256_v18 = vmax.f32 %v5253_v16, 0.0 }
0x15d8   : > { %9833 = vmatmul.mubr.msk.f32.vlgmr.msra.gmra.mxu1 %vm2790_vm1, %v5256_v18 }
0x1698   : > { %v5337_v10 = vpop.f32.mrf.mxu1 }
0x1699   : > { %v5338_v4 = vadd.f32 %v9001_v19, %v5337_v10 }
0x169a   : > { %v9834_v12 = vpop.f32.mrf.mxu1 }
0x169b   : > { %v5341_v8 = vmul.f32 1.442695, %v5338_v4 }
0x169d   : > { %10413 = vpow2.f32 %v5341_v8 }
0x16aa   : > { %v10414_v14 = vpop.eup %10413 }
0x16ab   : > { %5343 = vst.msk [vmem:[%s11431_s24] sm:$0xff] %vm2793_vm2, %v10414_v14 }
0x16ac PF: > { %p9003_p12 = scmp.ne.s32.totalorder %s12060_s22, 1 }
0x16ad   : > { %s12175_s9 = sshll.u32 (!%p9003_p12), %s12062_s23, 3  ;;  %s12973_s27 = sld [smem:[#allocation48_spill]] (!%p9003_p12) }
0x16ae   : > { %5347 = sbr.rel (%p9003_p12) target bundleno = 7273 (0x1c69), region = 156  ;;  %s12974_s10 = sld [smem:[#allocation62_spill]] (!%p9003_p12) }
0x16af   : > { %s12975_s4 = sld [smem:[#allocation47_spill]] (!%p9003_p12)  ;;  %s10983_s20 = smov (!%p9003_p12), 124  }
0x16b0   : > { %s10984_s14 = smov (!%p9003_p12), 4   ;;  %s12976_s30 = sld [smem:[#allocation57_spill]] (!%p9003_p12) }
0x16b1   : > { %s12977_s28 = sld [smem:[#allocation49_spill]] (!%p9003_p12) }
0x16b2   : > { %s12978_s17 = sld [smem:[#allocation61_spill]] (!%p9003_p12) }
0x16b3   : > { %v9005_v20 = vclamps-f32 %v12050_v11, 10.0  ;;  %s5351_s21 = scalar_lea.vmem %s12973_s27, %s12175_s9  ;;  %vm5395_vm15 = vcmask 1043456   ;;  %vm5380_vm0 = vcmask 31744   ;;  %v10981_v26 = vmov 0.0   ;;  %v5471_v27 = vld [vmem:[#allocation19 + $0x4] sm:$0xf] }
0x16b4   : > { %v5391_v23 = vld [vmem:[%s12974_s10] sm:$0xf]  ;;  %9835 = vmatprep.subr.mxu1 %v10981_v26  ;;  %vm10982_vm3 = vmmov 0   ;;  %9845 = vmatprep.subr.mxu0 %v10981_v26  ;;  %v5625_v33 = vld [vmem:[#allocation19 + $0x8] sm:$0xf]  ;;  %v5795_v53 = vld [vmem:[#allocation17 + $0x10] sm:$0xff] }
0x16b5   : > { %v5357_v21 = vmul.f32 0.5, %v9005_v20  ;;  %s5349_s12 = scalar_lea.vmem %s12975_s4, %s12175_s9  ;;  %9837 = vmatprep.mubr.msk.f32.mxu1 %vm10982_vm3, %v10981_v26  ;;  %v5352_v29 = vld [vmem:[%s5351_s21] sm:$0xff]  ;;  %9836 = vmatpush3.msk.msra.mxu1 %vm5395_vm15, %v5391_v23  ;;  %v5703_v37 = vld [vmem:[#allocation19 + $0xc] sm:$0xf]  ;;  %v10985_v62 = vmov 0   ;;  %vm5870_vm4 = vcmask 130048  }
0x16b6   : > { %v5469_v31 = vld [vmem:[#allocation19] sm:$0xf]  ;;  %9838 = vmatmul.mubr.msk.f32.vlgmr.msra.gmra.mxu1 %vm5380_vm0, %v5352_v29  ;;  %9840 = vmatprep.subr.mxu1 %v10981_v26  ;;  %v5794_v54 = vld [vmem:[#allocation17 + $0x8] sm:$0xff]  ;;  %v9022_v57 = vld [vmem:[%s12976_s30 + $0x18] sm:$0xff]  ;;  %vm6508_vm5 = vcmp.eq.s32.totalorder %v11453_v6, 0  ;;  %vm6514_vm8 = vcmp.eq.s32.totalorder %v11453_v6, 1 }
0x16b7   : > { %v5358_v22 = vmul.f32 1.442695, %v5357_v21  ;;  %v12195_v32 = vld [vmem:[%s5349_s12] sm:$0xff]  ;;  %9841 = vmatpush3.msk.msra.mxu1 %vm5395_vm15, %v5471_v27  ;;  %9842 = vmatprep.mubr.msk.f32.mxu1 %vm10982_vm3, %v10981_v26  ;;  %v5792_v56 = vld [vmem:[%s12976_s30 + $0x8] sm:$0xff]  ;;  %v9021_v61 = vld [vmem:[%s12976_s30 + $0x10] sm:$0xff]  ;;  %s5353_s10 = scalar_lea.vmem %s12977_s28, %s12175_s9  ;;  %vm6515_vm9 = vcmp.eq.s32.totalorder %v11455_v7, 0 }
0x16b8   : > { %9846 = vmatpush3.msk.msra.mxu0 %vm5395_vm15, %v5469_v31  ;;  %9847 = vmatprep.mubr.msk.f32.mxu0 %vm10982_vm3, %v10981_v26  ;;  %v5362_v40 = vsub.f32 %v12195_v32, %v12050_v11  ;;  %v5793_v55 = vld [vmem:[#allocation17] sm:$0xff]  ;;  %v9028_v21 = vld [vmem:[%s12976_s30 + $0x28] sm:$0xff]  ;;  %v6202_v31 = vld [vmem:[#allocation17 + $0x58] sm:$0xff] }
0x16b9   : > { %10417 = vpow2.f32 %v5358_v22  ;;  %9850 = vmatprep.subr.mxu1 %v10981_v26  ;;  %9848 = vmatmul.mubr.msk.f32.vlgmr.msra.gmra.mxu0 %vm5380_vm0, %v12195_v32  ;;  %v5791_v58 = vld [vmem:[%s12976_s30] sm:$0xff]  ;;  %v5962_v22 = vld [vmem:[#allocation17 + $0x30] sm:$0xff]  ;;  %v5961_v27 = vld [vmem:[#allocation17 + $0x28] sm:$0xff] }
0x16ba   : > { %9843 = vmatmul.mubr.msk.f32.vlgmr.msra.gmra.mxu1 %vm5380_vm0, %v12050_v11  ;;  %9855 = vmatprep.subr.mxu0 %v10981_v26  ;;  %v5796_v11 = vld [vmem:[#allocation17 + $0x18] sm:$0xff]  ;;  %v5354_v59 = vld [vmem:[%s5353_s10] sm:$0xff]  ;;  %s12979_s10 = sld [smem:[#allocation55_spill]]  ;;  %vm6516_vm10 = vmand %vm6514_vm8, %vm6515_vm9 }
0x16bb   : > { %9851 = vmatpush3.msk.msra.mxu1 %vm5395_vm15, %v5625_v33  ;;  %9852 = vmatprep.mubr.msk.f32.mxu1 %vm10982_vm3, %v10981_v26  ;;  %v9017_v19 = vld [vmem:[%s12978_s17] ss:$0 sm:$0xff]  ;;  %v6201_v33 = vld [vmem:[#allocation17 + $0x50] sm:$0xff]  ;;  %s12980_s17 = sld [smem:[#allocation59_spill]] }
0x16bc   : > { %9857 = vmatprep.mubr.msk.f32.mxu0 %vm10982_vm3, %v10981_v26  ;;  %9860 = vmatprep.subr.mxu1 %v10981_v26  ;;  %v9027_v23 = vld [vmem:[%s12976_s30 + $0x20] sm:$0xff] }
0x16bd   : > { %9856 = vmatpush3.msk.msra.mxu0 %vm5395_vm15, %v5703_v37  ;;  %10415 = vset.pattern.permute.xlu1 %v10985_v62 }
0x16be   : > { %9871 = vmatprep.subr.mxu0 %v10981_v26  ;;  %10416 = vset.pattern.permute.xlu0 %v10985_v62 }
0x16bf   : > { %6291 = vperm.xlu1 %10415, %v5354_v59  }
0x16c1   : > { %v9030_v62 = vld [vmem:[%s12980_s17 + $0x2] ss:$0 sm:$0xff] }
0x16c6   : > { %v10418_v34 = vpop.eup %10417 }
0x16c7   : > { %v5360_v35 = vmax.f32 %v10418_v34, 1e-06  ;;  %v6200_v34 = vld [vmem:[#allocation17 + $0x48] sm:$0xff] }
0x16c9   : > { %v5361_v36 = vmin.f32 %v5360_v35, 1000000.0  ;;  %v6199_v35 = vld [vmem:[#allocation17 + $0x40] sm:$0xff] }
0x16cb   : > { %5364 = vrot.lane.b32.xlu0 %v5361_v36, %s10983_s20 }
0x16cf   : > { %5373 = vrot.lane.b32.xlu0 %v9005_v20, %s10983_s20  ;;  %v5963_v20 = vld [vmem:[#allocation17 + $0x38] sm:$0xff] }
0x16d3   : > { %6488 = vrot.lane.b32.xlu0 %v5352_v29, %s10984_s14 }
0x173d   : > { %v5365_v38 = vpop.permute.xlu0 %5364 }
0x173e   : > { %10419 = vrcp.f32 %v5365_v38  ;;  %v6299_v38 = vld [vmem:[#allocation13 + $0x18] sm:$0xff] }
0x1741   : > { %v5374_v39 = vpop.permute.xlu0 %5373 }
0x1742   : > { %9853 = vmatmul.mubr.msk.f32.vlgmr.msra.gmra.mxu1 %vm5380_vm0, %v5374_v39 }
0x1743   : > { %9868 = vmatprep.mubr.msk.f32.mxu1 %vm10982_vm3, %v10981_v26  ;;  %9861 = vmatpush3.msra.mxu1 %v5796_v11 }
0x1744   : > { %9862 = vmatprep.subr.mxu1 %v10981_v26 }
0x1745   : > { %9863 = vmatpush3.msra.mxu1 %v5795_v53  ;;  %v12257_v60 = vpop.permute.xlu0 %6488 }
0x1746   : > { %9864 = vmatprep.subr.mxu1 %v10981_v26 }
0x1747   : > { %9865 = vmatpush3.msra.mxu1 %v5794_v54 }
0x1748   : > { %9866 = vmatprep.subr.mxu1 %v10981_v26 }
0x1749   : > { %9867 = vmatpush3.msra.mxu1 %v5793_v55  ;;  %v9033_v55 = vld [vmem:[%s12980_s17 + $0x3] ss:$0 sm:$0xff] }
0x174a   : > { %9869 = vmatmul.mubr.msk.f32.vlgmr.msra.gmra.mxu1 %vm2790_vm1, %v12047_v24  ;;  %9889 = vmatprep.subr.mxu1 %v10981_v26 }
0x174b   : > { %v10420_v41 = vpop.eup %10419  ;;  %9890 = vmatpush3.msra.mxu1 %v9022_v57  ;;  %9893 = vmatprep.mubr.msk.f32.mxu1 %vm10982_vm3, %v10981_v26 }
0x174c   : > { %v5368_v42 = vmul.f32 %v10420_v41, %v5362_v40  ;;  %9891 = vmatprep.subr.mxu1 %v10981_v26  ;;  %v6297_v40 = vld [vmem:[#allocation13 + $0x8] sm:$0xff]  ;;  %v6296_v41 = vld [vmem:[#allocation13] sm:$0xff] }
0x174d   : > { %9892 = vmatpush3.msra.mxu1 %v9021_v61 }
0x174e   : > { %v9006_v43 = vclamps-f32 %v5368_v42, 1000000.0  ;;  %9896 = vmatprep.subr.mxu1 %v10981_v26  ;;  %v6384_v42 = vld [vmem:[%s12979_s10 + $0x18] sm:$0xff] }
0x1750   : > { %v5371_v44 = vmul.f32 %v9006_v43, %v9006_v43  ;;  %9858 = vmatmul.mubr.msk.f32.vlgmr.msra.gmra.mxu0 %vm5380_vm0, %v9006_v43 }
0x1751   : > { %9875 = vmatprep.mubr.msk.f32.mxu0 %vm10982_vm3, %v10981_v26  ;;  %9872 = vmatpush3.msra.mxu0 %v5792_v56 }
0x1752   : > { %v5376_v45 = vadd.f32 %v5374_v39, %v5371_v44  ;;  %9873 = vmatprep.subr.mxu0 %v10981_v26  ;;  %v6298_v39 = vld [vmem:[#allocation13 + $0x10] sm:$0xff]  ;;  %v9020_v44 = vld [vmem:[%s12980_s17] ss:$0 sm:$0xff] }
0x1753   : > { %9874 = vmatpush3.msra.mxu0 %v5791_v58 }
0x1754   : > { %v5377_v46 = vadd.f32 1.837877, %v5376_v45  ;;  %9878 = vmatprep.subr.mxu0 %v10981_v26 }
0x1756   : > { %v5378_v47 = vmul.f32 %v5377_v46, %v5352_v29  ;;  %v5960_v29 = vld [vmem:[#allocation17 + $0x20] sm:$0xff] }
0x1758   : > { %v5379_v28 = vmul.f32 0.5, %v5378_v47 }
0x175a   : > { %v5381_v48 = vsel %vm5380_vm0, %v5379_v28, 0.0 }
0x175b   : > { %5382 = vadd.xlane.f32.xlu0 %v5381_v48 }
0x1776   : > { %v5465_v30 = vpop.f32.mrf.mxu1 }
0x1778   : > { %v9839_v5 = vpop.f32.mrf.mxu1 }
0x1779   : > { %v5620_v9 = vpop.f32.mrf.mxu0 }
0x177a   : > { %v5544_v49 = vpop.f32.mrf.mxu1 }
0x177b   : > { %v5621_v50 = vadd.f32 %v5620_v9, %v5544_v49  ;;  %v9849_v51 = vpop.f32.mrf.mxu0  ;;  %v9026_v49 = vld [vmem:[%s12980_s17 + $0x1] ss:$0 sm:$0xff] }
0x177c   : > { %v9844_v52 = vpop.f32.mrf.mxu1 }
0x17e4   : > { %v5383_v63 = vpop.xlane.xlu0 %5382 }
0x17e5   : > { %v5384_v0 = vrot.slane %v5383_v63, 4 }
0x17e7   : > { %v5385_v1 = vadd.f32 %v5384_v0, %v5383_v63 }
0x17e9   : > { %v5386_v2 = vrot.slane %v5385_v1, 2 }
0x17eb   : > { %v5387_v3 = vadd.f32 %v5386_v2, %v5385_v1 }
0x17ed   : > { %v5388_v25 = vrot.slane %v5387_v3, 1 }
0x17ef   : > { %v5389_v13 = vadd.f32 %v5388_v25, %v5387_v3 }
0x17f1   : > { %10115 = vpush %v5389_v13 }
0x1802   : > { %v5697_v15 = vpop.f32.mrf.mxu1 }
0x1803   : > { %v5701_v17 = vadd.f32 %v5697_v15, %v5621_v50 }
0x1804   : > { %v9854_v16 = vpop.f32.mrf.mxu1 }
0x180a   : > { %v5866_v36 = vpop.f32.mrf.mxu1 }
0x180c   : > { %v9870_v37 = vpop.f32.mrf.mxu1 }
0x1810   : > { %v5776_v18 = vpop.f32.mrf.mxu0 }
0x1811   : > { %v5780_v10 = vadd.f32 %v5776_v18, %v5701_v17 }
0x1812   : > { %v9859_v4 = vpop.f32.mrf.mxu0 }
0x1813   : > { %v5788_v12 = vadd.f32 %v9017_v19, %v5780_v10  ;;  %v6292_v19 = vpop.permute.xlu1 %6291 }
0x1815   : > { %v5789_v8 = vmax.f32 %v5788_v12, 0.0 }
0x1817   : > { %v5790_v14 = vmul.f32 %v5789_v8, %v5465_v30  ;;  %v6383_v8 = vld [vmem:[%s12979_s10 + $0x10] sm:$0xff] }
0x1819   : > { %9876 = vmatmul.mubr.msk.f32.vlgmr.msra.gmra.mxu0 %vm5870_vm4, %v5790_v14  ;;  %9894 = vmatmul.mubr.msk.f32.vlgmr.msra.gmra.mxu1 %vm5870_vm4, %v5790_v14 }
0x181a   : > { %9879 = vmatpush3.msra.mxu0 %v5963_v20  ;;  %9897 = vmatpush3.msra.mxu1 %v9028_v21  ;;  %v9035_v20 = vld [vmem:[#allocation14] ss:$0 sm:$0xff] }
0x181b   : > { %9880 = vmatprep.subr.mxu0 %v10981_v26  ;;  %9898 = vmatprep.subr.mxu1 %v10981_v26 }
0x181c   : > { %9881 = vmatpush3.msra.mxu0 %v5962_v22  ;;  %9899 = vmatpush3.msra.mxu1 %v9027_v23 }
0x181d   : > { %9882 = vmatprep.subr.mxu0 %v10981_v26  ;;  %9900 = vmatprep.mubr.msk.f32.mxu1 %vm10982_vm3, %v10981_v26 }
0x181e   : > { %9883 = vmatpush3.msra.mxu0 %v5961_v27  ;;  %9901 = vmatmul.mubr.msk.f32.vlgmr.msra.gmra.mxu1 %vm5870_vm4, %v5790_v14  ;;  %v6382_v14 = vld [vmem:[%s12979_s10 + $0x8] sm:$0xff] }
0x181f   : > { %9884 = vmatprep.subr.mxu0 %v10981_v26  ;;  %9886 = vmatprep.mubr.msk.f32.mxu0 %vm10982_vm3, %v10981_v26 }
0x1820   : > { %9885 = vmatpush3.msra.mxu0 %v5960_v29  ;;  %9914 = vmatprep.subr.mxu1 %v10981_v26  ;;  %v9037_v29 = vld [vmem:[#allocation16] ss:$0 sm:$0xff] }
0x1821   : > { %9887 = vmatmul.mubr.msk.f32.vlgmr.msra.gmra.mxu0 %vm2790_vm1, %v12047_v24  ;;  %9903 = vmatprep.subr.mxu0 %v10981_v26 }
0x1822   : > { %9904 = vmatpush3.msra.mxu0 %v6202_v31  ;;  %9911 = vmatprep.mubr.msk.f32.mxu0 %vm10982_vm3, %v10981_v26 }
0x1823   : > { %9905 = vmatprep.subr.mxu0 %v10981_v26  ;;  %9922 = vmatprep.mubr.msk.f32.mxu1 %vm10982_vm3, %v10981_v26 }
0x1824   : > { %9906 = vmatpush3.msra.mxu0 %v6201_v33  ;;  %9915 = vmatpush3.msra.mxu1 %v6299_v38 }
0x1825   : > { %9907 = vmatprep.subr.mxu0 %v10981_v26  ;;  %9916 = vmatprep.subr.mxu1 %v10981_v26 }
0x1826   : > { %9908 = vmatpush3.msra.mxu0 %v6200_v34  ;;  %9917 = vmatpush3.msra.mxu1 %v6298_v39 }
0x1827   : > { %9909 = vmatprep.subr.mxu0 %v10981_v26  ;;  %9918 = vmatprep.subr.mxu1 %v10981_v26 }
0x1828   : > { %9910 = vmatpush3.msra.mxu0 %v6199_v35  ;;  %9919 = vmatpush3.msra.mxu1 %v6297_v40 }
0x1829   : > { %9912 = vmatmul.mubr.msk.f32.vlgmr.msra.gmra.mxu0 %vm2790_vm1, %v12047_v24  ;;  %9925 = vmatprep.subr.mxu0 %v10981_v26 }
0x182a   : > { %9933 = vmatprep.mubr.msk.f32.mxu0 %vm10982_vm3, %v10981_v26  ;;  %9920 = vmatprep.subr.mxu1 %v10981_v26 }
0x182b   : > { %9921 = vmatpush3.msra.mxu1 %v6296_v41  ;;  %9926 = vmatpush3.msra.mxu0 %v6384_v42 }
0x182c   : > { %9927 = vmatprep.subr.mxu0 %v10981_v26 }
0x182d   : > { %9928 = vmatpush3.msra.mxu0 %v6383_v8 }
0x182e   : > { %9929 = vmatprep.subr.mxu0 %v10981_v26 }
0x182f   : > { %9930 = vmatpush3.msra.mxu0 %v6382_v14 }
0x1830   : > { %9931 = vmatprep.subr.mxu0 %v10981_v26 }
0x18d9   : > { %v5940_v43 = vpop.f32.mrf.mxu0  ;;  %v6100_v45 = vpop.f32.mrf.mxu1 }
0x18da   : > { %v5941_v46 = vadd.f32 %v5940_v43, %v5866_v36 }
0x18db   : > { %v9877_v47 = vpop.f32.mrf.mxu0  ;;  %v9895_v28 = vpop.f32.mrf.mxu1 }
0x18dc   : > { %v5951_v48 = vadd.f32 %v9020_v44, %v5941_v46 }
0x18de   : > { %v5952_v30 = vmul.f32 0.5, %v5951_v48  ;;  %v6194_v5 = vpop.f32.mrf.mxu1 }
0x18df   : > { %v6195_v63 = vadd.f32 %v9030_v62, %v6194_v5 }
0x18e0   : > { %10421 = vtanh.f32 %v5952_v30  ;;  %v9902_v9 = vpop.f32.mrf.mxu1 }
0x18e1   : > { %v6030_v11 = vpop.f32.mrf.mxu0 }
0x18e2   : > { %v6101_v50 = vadd.f32 %v6100_v45, %v6030_v11 }
0x18e3   : > { %v9888_v51 = vpop.f32.mrf.mxu0 }
0x18e4   : > { %v6112_v52 = vadd.f32 %v9026_v49, %v6101_v50 }
0x18e6   : > { %v6113_v53 = vmul.f32 0.5, %v6112_v52 }
0x18e8   : > { %10423 = vtanh.f32 %v6113_v53 }
0x18e9   : > { %v6277_v54 = vpop.f32.mrf.mxu0 }
0x18ea   : > { %v6278_v61 = vadd.f32 %v9033_v55, %v6277_v54 }
0x18eb   : > { %v9913_v56 = vpop.f32.mrf.mxu0 }
0x18ed   : > { %v10422_v57 = vpop.eup %10421 }
0x18ee   : > { %v5954_v58 = vadd.f32 1.0, %v10422_v57 }
0x18f0   : > { %v5955_v59 = vmul.f32 0.5, %v5954_v58  ;;  %v6509_v58 = vstv %s12062_s23 }
0x18f1   : > { %vm6510_vm6 = vcmp.eq.s32.totalorder %v11455_v7, %v6509_v58 }
0x18f2   : > { %v6281_v0 = vmul.f32 %v6278_v61, %v5955_v59  ;;  %vm6511_vm7 = vmand %vm6508_vm5, %vm6510_vm6  ;;  %v6519_v59 = vld [vmem:[%s11436_s26] sm:$0xff] }
0x18f4   : > { %v6282_v1 = vadd.f32 %v6281_v0, %v6195_v63  ;;  %v9042_v63 = vsel %vm6516_vm10, 1.0, %v10981_v26 }
0x18f5   : > { %v10424_v2 = vpop.eup %10423 }
0x18f6   : > { %10425 = vtanh.f32 %v6282_v1  ;;  %v6115_v3 = vadd.f32 1.0, %v10424_v2 }
0x18f8   : > { %v6116_v25 = vmul.f32 0.5, %v6115_v3 }
0x18fa   : > { %v6284_v13 = vsub.f32 1.0, %v6116_v25  ;;  %v6286_v17 = vmul.f32 %v6116_v25, %v12047_v24 }
0x1903   : > { %v10426_v15 = vpop.eup %10425 }
0x1904   : > { %v6285_v16 = vmul.f32 %v10426_v15, %v6284_v13 }
0x1906   : > { %v6287_v18 = vadd.f32 %v6286_v17, %v6285_v16 }
0x1908   : > { %v6288_v10 = vsub.f32 %v6287_v18, %v12047_v24 }
0x190a   : > { %v6294_v4 = vmul.f32 %v6292_v19, %v6288_v10 }
0x190c   : > { %v6295_v12 = vadd.f32 %v6294_v4, %v12047_v24  ;;  %v6381_v24 = vld [vmem:[%s12979_s10] sm:$0xff] }
0x190d   : > { %9932 = vmatpush3.msra.mxu0 %v6381_v24 }
0x190e   : > { %6506 = vst.msk [vmem:[%s11428_s5] sm:$0xff] %vm2790_vm1, %v6295_v12  ;;  %9923 = vmatmul.mubr.msk.f32.vlgmr.msra.gmra.mxu1 %vm2790_vm1, %v6295_v12 }
0x19ce   : > { %v6376_v21 = vpop.f32.mrf.mxu1 }
0x19cf   : > { %v6377_v22 = vadd.f32 %v9035_v20, %v6376_v21 }
0x19d0   : > { %v9924_v23 = vpop.f32.mrf.mxu1 }
0x19d1   : > { %v6380_v27 = vmax.f32 %v6377_v22, 0.0 }
0x19d3   : > { %9934 = vmatmul.mubr.msk.f32.vlgmr.msra.gmra.mxu0 %vm2790_vm1, %v6380_v27 }
0x1a93   : > { %v6461_v31 = vpop.f32.mrf.mxu0 }
0x1a94   : > { %v6462_v33 = vadd.f32 %v9037_v29, %v6461_v31 }
0x1a95   : > { %v9935_v34 = vpop.f32.mrf.mxu0 }
0x1a96   : > { %v6465_v35 = vmul.f32 1.442695, %v6462_v33 }
0x1a98   : > { %10427 = vpow2.f32 %v6465_v35 }
0x1aa5   : > { %v10428_v36 = vpop.eup %10427 }
0x1aa6   : > { %6507 = vst.msk [vmem:[%s11431_s24] sm:$0xff] %vm2793_vm2, %v10428_v36  ;;  %v6478_v37 = vsub.f32 %v10428_v36, %v12195_v32  ;;  %v9039_v39 = vclamps-f32 %v10428_v36, 10.0 }
0x1aa8   : > { %v6479_v38 = vmul.f32 %v6478_v37, %v6478_v37  ;;  %v6469_v40 = vmul.f32 0.5, %v9039_v39 }
0x1aaa   : > { %6481 = vrot.lane.b32.xlu1 %v6479_v38, %s10984_s14  ;;  %v6470_v41 = vmul.f32 1.442695, %v6469_v40 }
0x1aac   : > { %10429 = vpow2.f32 %v6470_v41 }
0x1ab9   : > { %v10430_v42 = vpop.eup %10429 }
0x1aba   : > { %v6472_v43 = vmax.f32 %v10430_v42, 1e-06 }
0x1abc   : > { %v6473_v44 = vmin.f32 %v6472_v43, 1000000.0 }
0x1abe   : > { %10431 = vlog2.f32 %v6473_v44  ;;  %v6477_v47 = vmul.f32 %v6473_v44, %v6473_v44 }
0x1acb   : > { %v10432_v45 = vpop.eup %10431 }
0x1acc   : > { %v6475_v46 = vmul.f32 0.6931472, %v10432_v45 }
0x1ace   : > { %v6476_v30 = vsub.f32 -4.6051702, %v6475_v46 }
0x1b1c   : > { %v6482_v28 = vpop.permute.xlu1 %6481 }
0x1b1d   : > { %v6484_v48 = vadd.f32 %v6482_v28, %v6477_v47 }
0x1b1f   : > { %v6485_v5 = vmul.f32 5000.0, %v6484_v48 }
0x1b21   : > { %v6486_v32 = vadd.f32 %v6485_v5, %v6476_v30 }
0x1b23   : > { %v9040_v9 = vadd.f32 -0.5, %v6486_v32 }
0x1b25   : > { %v6491_v11 = vmul.f32 %v9040_v9, %v12257_v60  ;;  %v9041_v60 = vsel %vm6511_vm7, 1.0, %v10981_v26 }
0x1b27   : > { %6493 = vrot.lane.b32.xlu1 %v6491_v11, %s10983_s20  ;;  %s10116_s20 = spop %10115 }
0x1b28   : > { %v6520_v61 = vstv %s10116_s20 }
0x1b29   : > { %v6521_v62 = vmul.f32 %v9041_v60, %v6520_v61 }
0x1b2b   : > { %v6522_v1 = vadd.f32 %v6521_v62, %v6519_v59 }
0x1b99   : > { %v6494_v49 = vpop.permute.xlu1 %6493 }
0x1b9a   : > { %v6496_v50 = vsel %vm5380_vm0, %v6494_v49, 0.0 }
0x1b9b   : > { %6497 = vadd.xlane.f32.xlu1 %v6496_v50 }
0x1c24   : > { %v6498_v51 = vpop.xlane.xlu1 %6497 }
0x1c25   : > { %v6499_v52 = vrot.slane %v6498_v51, 4 }
0x1c27   : > { %v6500_v53 = vadd.f32 %v6499_v52, %v6498_v51 }
0x1c29   : > { %v6501_v54 = vrot.slane %v6500_v53, 2 }
0x1c2b   : > { %v6502_v55 = vadd.f32 %v6501_v54, %v6500_v53 }
0x1c2d   : > { %v6503_v56 = vrot.slane %v6502_v55, 1 }
0x1c2f   : > { %v6504_v57 = vadd.f32 %v6503_v56, %v6502_v55 }
0x1c31   : > { %10117 = vpush %v6504_v57 }
0x1c62   : > { %s10118_s23 = spop %10117 }
0x1c63   : > { %v6523_v0 = vstv %s10118_s23 }
0x1c64   : > { %v6524_v2 = vmul.f32 %v9042_v63, %v6523_v0 }
0x1c66   : > { %v6525_v3 = vadd.f32 %v6524_v2, %v6522_v1 }
0x1c68   : > { %6526 = vst [vmem:[%s11436_s26] sm:$0xff] %v6525_v3 }
0x1c69 PF: > { %s12981_s14 = sld [smem:[#allocation38_spill]]  ;;  %v12349_v25 = vld [vmem:[%s11428_s5] sm:$0xff]  ;;  %v12352_v13 = vld [vmem:[%s11431_s24] sm:$0xff]  ;;  %s6533_s10 = sadd.s32 3, %s11416_s7 }
0x1c6a   : > { %9043 = vst.msk [vmem:[%s11433_s16 + $0x10] sm:$0xff] %vm2790_vm1, %v12349_v25  ;;  %s6534_s21 = sshra.s32 %s6533_s10, 7  ;;  %s6539_s30 = sand.u32 127, %s6533_s10 }
0x1c6b   : > { %9044 = vst.msk [vmem:[%s11425_s13 + $0x10] sm:$0xff] %vm2793_vm2, %v12352_v13 }
0x1c6f   : > { %s6536_s28 = sadd.s32 %s12981_s14, %s6534_s21 }
0x1c70   : > { %s9045_s9 = sshll.u32 %s6536_s28, 7 }
0x1c71   : > { %s6540_s22 = sadd.s32 %s9045_s9, %s6539_s30 }
0x1c72   : > { %s12362_s17 = sld [smem:[#allocation3 + %s6540_s22]] }
0x1c73   : > { %s12364_s4 = sld [smem:[#allocation4 + %s6540_s22]] }
0x1c78   : > { %p9046_p0 = scmp.ne.s32.totalorder %s12362_s17, 0 }
0x1c79   : > { %s12982_s20 = sld [smem:[#allocation52_spill]] (!%p9046_p0) }
0x1c7a   : > { %6548 = sbr.rel (%p9046_p0) target bundleno = 8149 (0x1fd5), region = 160  ;;  %s12983_s21 = sld [smem:[#allocation55_spill]] (!%p9046_p0) }
0x1c7f   : > { %v6633_v26 = vld [vmem:[%s12982_s20 + $0x18] sm:$0xff]  ;;  %v6549_v15 = vld [vmem:[#allocation10] sm:$0xff]  ;;  %v10986_v16 = vmov 0.0   ;;  %v6632_v17 = vld [vmem:[%s12982_s20 + $0x10] sm:$0xff]  ;;  %vm10987_vm11 = vmmov 0  }
0x1c80   : > { %9941 = vmatprep.subr.mxu1 %v10986_v16  ;;  %9936 = vmatprep.subr.mxu0 %v10986_v16  ;;  %v6631_v18 = vld [vmem:[%s12982_s20 + $0x8] sm:$0xff]  ;;  %v6630_v19 = vld [vmem:[%s12982_s20] sm:$0xff]  ;;  %v9055_v4 = vld [vmem:[%s12982_s20 + $0x38] sm:$0xff] }
0x1c81   : > { %9942 = vmatpush3.msra.mxu1 %v6633_v26  ;;  %9937 = vmatpush3.msra.mxu0 %v6549_v15  ;;  %v6713_v10 = vld [vmem:[#allocation10 + $0x8] sm:$0xff]  ;;  %v9054_v12 = vld [vmem:[%s12982_s20 + $0x30] sm:$0xff]  ;;  %v9052_v14 = vld [vmem:[%s12982_s20 + $0x20] sm:$0xff] }
0x1c82   : > { %9943 = vmatprep.subr.mxu1 %v10986_v16  ;;  %9938 = vmatprep.mubr.msk.f32.mxu0 %vm10987_vm11, %v10986_v16  ;;  %v9053_v8 = vld [vmem:[%s12982_s20 + $0x28] sm:$0xff]  ;;  %v9062_v24 = vld [vmem:[%s12982_s20 + $0x58] sm:$0xff]  ;;  %v6873_v20 = vld [vmem:[#allocation10 + $0x10] sm:$0xff] }
0x1c83   : > { %9944 = vmatpush3.msra.mxu1 %v6632_v17  ;;  %9939 = vmatmul.mubr.msk.f32.vlgmr.msra.gmra.mxu0 %vm2793_vm2, %v12352_v13  ;;  %v9061_v21 = vld [vmem:[%s12982_s20 + $0x50] sm:$0xff]  ;;  %v9060_v22 = vld [vmem:[%s12982_s20 + $0x48] sm:$0xff]  ;;  %v9059_v23 = vld [vmem:[%s12982_s20 + $0x40] sm:$0xff] }
0x1c84   : > { %9945 = vmatprep.subr.mxu1 %v10986_v16  ;;  %9949 = vmatprep.mubr.msk.f32.mxu1 %vm10987_vm11, %v10986_v16  ;;  %v9047_v27 = vld [vmem:[#allocation11] ss:$0 sm:$0xff]  ;;  %v9050_v43 = vld [vmem:[#allocation11 + $0x1] ss:$0 sm:$0xff]  ;;  %v7043_v32 = vld [vmem:[#allocation13 + $0x10] sm:$0xff] }
0x1c85   : > { %9946 = vmatpush3.msra.mxu1 %v6631_v18  ;;  %9952 = vmatprep.subr.mxu0 %v10986_v16  ;;  %v7044_v5 = vld [vmem:[#allocation13 + $0x18] sm:$0xff]  ;;  %v7042_v9 = vld [vmem:[#allocation13 + $0x8] sm:$0xff]  ;;  %v7041_v11 = vld [vmem:[#allocation13] sm:$0xff] }
0x1c86   : > { %9947 = vmatprep.subr.mxu1 %v10986_v16  ;;  %9954 = vmatprep.mubr.msk.f32.mxu0 %vm10987_vm11, %v10986_v16  ;;  %v7129_v49 = vld [vmem:[%s12983_s21 + $0x18] sm:$0xff]  ;;  %v7128_v2 = vld [vmem:[%s12983_s21 + $0x10] sm:$0xff]  ;;  %v7127_v3 = vld [vmem:[%s12983_s21 + $0x8] sm:$0xff] }
0x1c87   : > { %9948 = vmatpush3.msra.mxu1 %v6630_v19  ;;  %9953 = vmatpush3.msra.mxu0 %v6713_v10  ;;  %v9057_v51 = vld [vmem:[#allocation11 + $0x2] ss:$0 sm:$0xff]  ;;  %v7126_v26 = vld [vmem:[%s12983_s21] sm:$0xff]  ;;  %v9065_v15 = vld [vmem:[#allocation14] ss:$0 sm:$0xff] }
0x1c88   : > { %9950 = vmatmul.mubr.msk.f32.vlgmr.msra.gmra.mxu1 %vm2790_vm1, %v12349_v25  ;;  %9973 = vmatprep.subr.mxu1 %v10986_v16 }
0x1c89   : > { %9981 = vmatprep.mubr.msk.f32.mxu1 %vm10987_vm11, %v10986_v16  ;;  %9957 = vmatprep.subr.mxu0 %v10986_v16 }
0x1c8a   : > { %9955 = vmatmul.mubr.msk.f32.vlgmr.msra.gmra.mxu0 %vm2793_vm2, %v12352_v13  ;;  %9974 = vmatpush3.msra.mxu1 %v9062_v24 }
0x1c8b   : > { %9958 = vmatpush3.msra.mxu0 %v9055_v4  ;;  %9965 = vmatprep.mubr.msk.f32.mxu0 %vm10987_vm11, %v10986_v16  ;;  %v9067_v4 = vld [vmem:[#allocation16] ss:$0 sm:$0xff] }
0x1c8c   : > { %9959 = vmatprep.subr.mxu0 %v10986_v16  ;;  %9975 = vmatprep.subr.mxu1 %v10986_v16 }
0x1c8d   : > { %9960 = vmatpush3.msra.mxu0 %v9054_v12  ;;  %9976 = vmatpush3.msra.mxu1 %v9061_v21 }
0x1c8e   : > { %9961 = vmatprep.subr.mxu0 %v10986_v16  ;;  %9977 = vmatprep.subr.mxu1 %v10986_v16 }
0x1c8f   : > { %9962 = vmatpush3.msra.mxu0 %v9053_v8  ;;  %9978 = vmatpush3.msra.mxu1 %v9060_v22 }
0x1c90   : > { %9963 = vmatprep.subr.mxu0 %v10986_v16  ;;  %9979 = vmatprep.subr.mxu1 %v10986_v16 }
0x1c91   : > { %9964 = vmatpush3.msra.mxu0 %v9052_v14  ;;  %9980 = vmatpush3.msra.mxu1 %v9059_v23 }
0x1c92   : > { %9966 = vmatmul.mubr.msk.f32.vlgmr.msra.gmra.mxu0 %vm2790_vm1, %v12349_v25  ;;  %9968 = vmatprep.subr.mxu0 %v10986_v16 }
0x1c93   : > { %9970 = vmatprep.mubr.msk.f32.mxu0 %vm10987_vm11, %v10986_v16  ;;  %9969 = vmatpush3.msra.mxu0 %v6873_v20 }
0x1c94   : > { %9984 = vmatprep.subr.mxu0 %v10986_v16  ;;  %9995 = vmatprep.subr.mxu1 %v10986_v16 }
0x1c96   : > { %9971 = vmatmul.mubr.msk.f32.vlgmr.msra.gmra.mxu0 %vm2793_vm2, %v12352_v13 }
0x1c97   : > { %9992 = vmatprep.mubr.msk.f32.mxu0 %vm10987_vm11, %v10986_v16  ;;  %9985 = vmatpush3.msra.mxu0 %v7044_v5 }
0x1c98   : > { %9986 = vmatprep.subr.mxu0 %v10986_v16 }
0x1c99   : > { %9987 = vmatpush3.msra.mxu0 %v7043_v32 }
0x1c9a   : > { %9988 = vmatprep.subr.mxu0 %v10986_v16 }
0x1c9b   : > { %9989 = vmatpush3.msra.mxu0 %v7042_v9 }
0x1c9c   : > { %9990 = vmatprep.subr.mxu0 %v10986_v16 }
0x1c9d   : > { %9991 = vmatpush3.msra.mxu0 %v7041_v11 }
0x1d43   : > { %v6626_v29 = vpop.f32.mrf.mxu0 }
0x1d44   : > { %v6627_v31 = vadd.f32 %v9047_v27, %v6626_v29 }
0x1d45   : > { %v9940_v33 = vpop.f32.mrf.mxu0 }
0x1d48   : > { %v6703_v34 = vpop.f32.mrf.mxu1 }
0x1d49   : > { %v6707_v35 = vadd.f32 %v6703_v34, %v6627_v31 }
0x1d4a   : > { %v9951_v36 = vpop.f32.mrf.mxu1  ;;  %v6788_v42 = vpop.f32.mrf.mxu0 }
0x1d4b   : > { %v6708_v37 = vmul.f32 0.5, %v6707_v35  ;;  %v6789_v45 = vadd.f32 %v9050_v43, %v6788_v42 }
0x1d4c   : > { %v9956_v44 = vpop.f32.mrf.mxu0 }
0x1d4d   : > { %10433 = vtanh.f32 %v6708_v37 }
0x1d52   : > { %v6863_v46 = vpop.f32.mrf.mxu0 }
0x1d53   : > { %v6867_v47 = vadd.f32 %v6863_v46, %v6789_v45 }
0x1d54   : > { %v9967_v28 = vpop.f32.mrf.mxu0 }
0x1d55   : > { %v6868_v50 = vmul.f32 0.5, %v6867_v47 }
0x1d56   : > { %v6948_v48 = vpop.f32.mrf.mxu0 }
0x1d57   : > { %10435 = vtanh.f32 %v6868_v50  ;;  %v6949_v52 = vadd.f32 %v9057_v51, %v6948_v48 }
0x1d58   : > { %v9972_v30 = vpop.f32.mrf.mxu0 }
0x1d5a   : > { %v10434_v38 = vpop.eup %10433 }
0x1d5b   : > { %v6710_v39 = vadd.f32 1.0, %v10434_v38 }
0x1d5d   : > { %v6711_v40 = vmul.f32 0.5, %v6710_v39 }
0x1d5f   : > { %v6952_v41 = vmul.f32 %v6711_v40, %v12349_v25 }
0x1d61   : > { %9982 = vmatmul.mubr.msk.f32.vlgmr.msra.gmra.mxu1 %vm2790_vm1, %v6952_v41 }
0x1d62   : > { %10003 = vmatprep.mubr.msk.f32.mxu1 %vm10987_vm11, %v10986_v16  ;;  %9996 = vmatpush3.msra.mxu1 %v7129_v49 }
0x1d63   : > { %9997 = vmatprep.subr.mxu1 %v10986_v16 }
0x1d64   : > { %v10436_v56 = vpop.eup %10435  ;;  %9998 = vmatpush3.msra.mxu1 %v7128_v2 }
0x1d65   : > { %v6870_v57 = vadd.f32 1.0, %v10436_v56  ;;  %9999 = vmatprep.subr.mxu1 %v10986_v16 }
0x1d66   : > { %10000 = vmatpush3.msra.mxu1 %v7127_v3 }
0x1d67   : > { %v6871_v58 = vmul.f32 0.5, %v6870_v57  ;;  %10001 = vmatprep.subr.mxu1 %v10986_v16 }
0x1d68   : > { %10002 = vmatpush3.msra.mxu1 %v7126_v26 }
0x1d69   : > { %v7033_v61 = vsub.f32 1.0, %v6871_v58 }
0x1e21   : > { %v7027_v53 = vpop.f32.mrf.mxu1 }
0x1e22   : > { %v7031_v54 = vadd.f32 %v7027_v53, %v6949_v52 }
0x1e23   : > { %v9983_v55 = vpop.f32.mrf.mxu1 }
0x1e24   : > { %10437 = vtanh.f32 %v7031_v54 }
0x1e31   : > { %v10438_v60 = vpop.eup %10437 }
0x1e32   : > { %v7034_v62 = vsub.f32 %v10438_v60, %v12349_v25 }
0x1e34   : > { %v7035_v59 = vmul.f32 %v7034_v62, %v7033_v61 }
0x1e36   : > { %v7036_v63 = vmul.f32 0.05, %v7035_v59 }
0x1e38   : > { %v9064_v0 = vclamps-f32 %v7036_v63, 1.0 }
0x1e3a   : > { %v7039_v1 = vadd.f32 %v9064_v0, %v12349_v25 }
0x1e3c   : > { %7040 = vst.msk [vmem:[%s11428_s5] sm:$0xff] %vm2790_vm1, %v7039_v1  ;;  %9993 = vmatmul.mubr.msk.f32.vlgmr.msra.gmra.mxu0 %vm2790_vm1, %v7039_v1 }
0x1efc   : > { %v7121_v17 = vpop.f32.mrf.mxu0 }
0x1efd   : > { %v7122_v18 = vadd.f32 %v9065_v15, %v7121_v17 }
0x1efe   : > { %v9994_v19 = vpop.f32.mrf.mxu0 }
0x1eff   : > { %v7125_v10 = vmax.f32 %v7122_v18, 0.0 }
0x1f01   : > { %10004 = vmatmul.mubr.msk.f32.vlgmr.msra.gmra.mxu1 %vm2790_vm1, %v7125_v10 }
0x1fc1   : > { %v7206_v12 = vpop.f32.mrf.mxu1 }
0x1fc2   : > { %v7207_v8 = vadd.f32 %v9067_v4, %v7206_v12 }
0x1fc3   : > { %v10005_v14 = vpop.f32.mrf.mxu1 }
0x1fc4   : > { %v7210_v24 = vmul.f32 1.442695, %v7207_v8 }
0x1fc6   : > { %10439 = vpow2.f32 %v7210_v24 }
0x1fd3   : > { %v10440_v16 = vpop.eup %10439 }
0x1fd4   : > { %7212 = vst.msk [vmem:[%s11431_s24] sm:$0xff] %vm2793_vm2, %v10440_v16 }
0x1fd5 PF: > { %p9069_p9 = scmp.ne.s32.totalorder %s12362_s17, 1 }
0x1fd6   : > { %s12477_s23 = sshll.u32 (!%p9069_p9), %s12364_s4, 3  ;;  %s12984_s10 = sld [smem:[#allocation48_spill]] (!%p9069_p9) }
0x1fd7   : > { %7216 = sbr.rel (%p9069_p9) target bundleno = 9618 (0x2592), region = 164  ;;  %s12985_s9 = sld [smem:[#allocation62_spill]] (!%p9069_p9) }
0x1fd8   : > { %s12986_s12 = sld [smem:[#allocation47_spill]] (!%p9069_p9)  ;;  %s10990_s14 = smov (!%p9069_p9), 124  }
0x1fd9   : > { %s10991_s20 = smov (!%p9069_p9), 4   ;;  %s12987_s30 = sld [smem:[#allocation57_spill]] (!%p9069_p9) }
0x1fda   : > { %s12988_s28 = sld [smem:[#allocation49_spill]] (!%p9069_p9) }
0x1fdb   : > { %s12989_s22 = sld [smem:[#allocation61_spill]] (!%p9069_p9) }
0x1fdc   : > { %v9071_v20 = vclamps-f32 %v12352_v13, 10.0  ;;  %s7220_s21 = scalar_lea.vmem %s12984_s10, %s12477_s23  ;;  %vm7264_vm12 = vcmask 1043456   ;;  %vm7249_vm13 = vcmask 31744   ;;  %v10988_v27 = vmov 0.0   ;;  %v7340_v29 = vld [vmem:[#allocation19 + $0x4] sm:$0xf] }
0x1fdd   : > { %v7260_v23 = vld [vmem:[%s12985_s9] sm:$0xf]  ;;  %10006 = vmatprep.subr.mxu1 %v10988_v27  ;;  %vm10989_vm14 = vmmov 0   ;;  %10016 = vmatprep.subr.mxu0 %v10988_v27  ;;  %v7494_v35 = vld [vmem:[#allocation19 + $0x8] sm:$0xf]  ;;  %v7664_v53 = vld [vmem:[#allocation17 + $0x10] sm:$0xff] }
0x1fde   : > { %v7226_v21 = vmul.f32 0.5, %v9071_v20  ;;  %s7218_s27 = scalar_lea.vmem %s12986_s12, %s12477_s23  ;;  %10008 = vmatprep.mubr.msk.f32.mxu1 %vm10989_vm14, %v10988_v27  ;;  %v7221_v31 = vld [vmem:[%s7220_s21] sm:$0xff]  ;;  %10007 = vmatpush3.msk.msra.mxu1 %vm7264_vm12, %v7260_v23  ;;  %v7572_v39 = vld [vmem:[#allocation19 + $0xc] sm:$0xf]  ;;  %v10992_v61 = vmov 0   ;;  %vm7739_vm15 = vcmask 130048  }
0x1fdf   : > { %v7338_v33 = vld [vmem:[#allocation19] sm:$0xf]  ;;  %10009 = vmatmul.mubr.msk.f32.vlgmr.msra.gmra.mxu1 %vm7249_vm13, %v7221_v31  ;;  %10011 = vmatprep.subr.mxu1 %v10988_v27  ;;  %v7663_v54 = vld [vmem:[#allocation17 + $0x8] sm:$0xff]  ;;  %v9088_v57 = vld [vmem:[%s12987_s30 + $0x18] sm:$0xff]  ;;  %vm8377_vm0 = vcmp.eq.s32.totalorder %v11453_v6, 0  ;;  %vm8383_vm5 = vcmp.eq.s32.totalorder %v11453_v6, 1 }
0x1fe0   : > { %v7227_v22 = vmul.f32 1.442695, %v7226_v21  ;;  %v12497_v34 = vld [vmem:[%s7218_s27] sm:$0xff]  ;;  %10012 = vmatpush3.msk.msra.mxu1 %vm7264_vm12, %v7340_v29  ;;  %10013 = vmatprep.mubr.msk.f32.mxu1 %vm10989_vm14, %v10988_v27  ;;  %v7661_v56 = vld [vmem:[%s12987_s30 + $0x8] sm:$0xff]  ;;  %v9087_v60 = vld [vmem:[%s12987_s30 + $0x10] sm:$0xff]  ;;  %s7222_s9 = scalar_lea.vmem %s12988_s28, %s12477_s23  ;;  %vm8384_vm6 = vcmp.eq.s32.totalorder %v11455_v7, 0 }
0x1fe1   : > { %10017 = vmatpush3.msk.msra.mxu0 %vm7264_vm12, %v7338_v33  ;;  %10018 = vmatprep.mubr.msk.f32.mxu0 %vm10989_vm14, %v10988_v27  ;;  %v7231_v42 = vsub.f32 %v12497_v34, %v12352_v13  ;;  %v7662_v55 = vld [vmem:[#allocation17] sm:$0xff]  ;;  %v9094_v21 = vld [vmem:[%s12987_s30 + $0x28] sm:$0xff]  ;;  %v8071_v33 = vld [vmem:[#allocation17 + $0x58] sm:$0xff] }
0x1fe2   : > { %10443 = vpow2.f32 %v7227_v22  ;;  %10021 = vmatprep.subr.mxu1 %v10988_v27  ;;  %10019 = vmatmul.mubr.msk.f32.vlgmr.msra.gmra.mxu0 %vm7249_vm13, %v12497_v34  ;;  %v7660_v58 = vld [vmem:[%s12987_s30] sm:$0xff]  ;;  %v7831_v22 = vld [vmem:[#allocation17 + $0x30] sm:$0xff]  ;;  %v7830_v29 = vld [vmem:[#allocation17 + $0x28] sm:$0xff] }
0x1fe3   : > { %10014 = vmatmul.mubr.msk.f32.vlgmr.msra.gmra.mxu1 %vm7249_vm13, %v12352_v13  ;;  %10026 = vmatprep.subr.mxu0 %v10988_v27  ;;  %v7665_v13 = vld [vmem:[#allocation17 + $0x18] sm:$0xff]  ;;  %v7223_v62 = vld [vmem:[%s7222_s9] sm:$0xff]  ;;  %s12990_s9 = sld [smem:[#allocation55_spill]]  ;;  %vm8385_vm7 = vmand %vm8383_vm5, %vm8384_vm6 }
0x1fe4   : > { %10022 = vmatpush3.msk.msra.mxu1 %vm7264_vm12, %v7494_v35  ;;  %10023 = vmatprep.mubr.msk.f32.mxu1 %vm10989_vm14, %v10988_v27  ;;  %v9083_v4 = vld [vmem:[%s12989_s22] ss:$0 sm:$0xff]  ;;  %v8070_v35 = vld [vmem:[#allocation17 + $0x50] sm:$0xff]  ;;  %s12991_s22 = sld [smem:[#allocation59_spill]] }
0x1fe5   : > { %10028 = vmatprep.mubr.msk.f32.mxu0 %vm10989_vm14, %v10988_v27  ;;  %10031 = vmatprep.subr.mxu1 %v10988_v27  ;;  %v9093_v23 = vld [vmem:[%s12987_s30 + $0x20] sm:$0xff] }
0x1fe6   : > { %10027 = vmatpush3.msk.msra.mxu0 %vm7264_vm12, %v7572_v39  ;;  %10441 = vset.pattern.permute.xlu1 %v10992_v61 }
0x1fe7   : > { %10042 = vmatprep.subr.mxu0 %v10988_v27  ;;  %10442 = vset.pattern.permute.xlu0 %v10992_v61 }
0x1fe8   : > { %8160 = vperm.xlu1 %10441, %v7223_v62  }
0x1fea   : > { %v9096_v61 = vld [vmem:[%s12991_s22 + $0x2] ss:$0 sm:$0xff] }
0x1fef   : > { %v10444_v36 = vpop.eup %10443 }
0x1ff0   : > { %v7229_v37 = vmax.f32 %v10444_v36, 1e-06  ;;  %v8069_v36 = vld [vmem:[#allocation17 + $0x48] sm:$0xff] }
0x1ff2   : > { %v7230_v38 = vmin.f32 %v7229_v37, 1000000.0  ;;  %v8068_v37 = vld [vmem:[#allocation17 + $0x40] sm:$0xff] }
0x1ff4   : > { %7233 = vrot.lane.b32.xlu0 %v7230_v38, %s10990_s14 }
0x1ff8   : > { %7242 = vrot.lane.b32.xlu0 %v9071_v20, %s10990_s14  ;;  %v7832_v20 = vld [vmem:[#allocation17 + $0x38] sm:$0xff] }
0x1ffc   : > { %8357 = vrot.lane.b32.xlu0 %v7221_v31, %s10991_s20 }
0x2066   : > { %v7234_v40 = vpop.permute.xlu0 %7233 }
0x2067   : > { %10445 = vrcp.f32 %v7234_v40  ;;  %v8168_v40 = vld [vmem:[#allocation13 + $0x18] sm:$0xff] }
0x206a   : > { %v7243_v41 = vpop.permute.xlu0 %7242 }
0x206b   : > { %10024 = vmatmul.mubr.msk.f32.vlgmr.msra.gmra.mxu1 %vm7249_vm13, %v7243_v41 }
0x206c   : > { %10039 = vmatprep.mubr.msk.f32.mxu1 %vm10989_vm14, %v10988_v27  ;;  %10032 = vmatpush3.msra.mxu1 %v7665_v13 }
0x206d   : > { %10033 = vmatprep.subr.mxu1 %v10988_v27 }
0x206e   : > { %10034 = vmatpush3.msra.mxu1 %v7664_v53  ;;  %v12559_v59 = vpop.permute.xlu0 %8357 }
0x206f   : > { %10035 = vmatprep.subr.mxu1 %v10988_v27 }
0x2070   : > { %10036 = vmatpush3.msra.mxu1 %v7663_v54 }
0x2071   : > { %10037 = vmatprep.subr.mxu1 %v10988_v27 }
0x2072   : > { %10038 = vmatpush3.msra.mxu1 %v7662_v55  ;;  %v9099_v55 = vld [vmem:[%s12991_s22 + $0x3] ss:$0 sm:$0xff] }
0x2073   : > { %10040 = vmatmul.mubr.msk.f32.vlgmr.msra.gmra.mxu1 %vm2790_vm1, %v12349_v25  ;;  %10060 = vmatprep.subr.mxu1 %v10988_v27 }
0x2074   : > { %v10446_v43 = vpop.eup %10445  ;;  %10061 = vmatpush3.msra.mxu1 %v9088_v57  ;;  %10064 = vmatprep.mubr.msk.f32.mxu1 %vm10989_vm14, %v10988_v27 }
0x2075   : > { %v7237_v44 = vmul.f32 %v10446_v43, %v7231_v42  ;;  %10062 = vmatprep.subr.mxu1 %v10988_v27  ;;  %v8166_v42 = vld [vmem:[#allocation13 + $0x8] sm:$0xff]  ;;  %v8165_v43 = vld [vmem:[#allocation13] sm:$0xff] }
0x2076   : > { %10063 = vmatpush3.msra.mxu1 %v9087_v60 }
0x2077   : > { %v9072_v45 = vclamps-f32 %v7237_v44, 1000000.0  ;;  %10067 = vmatprep.subr.mxu1 %v10988_v27  ;;  %v8253_v44 = vld [vmem:[%s12990_s9 + $0x18] sm:$0xff] }
0x2079   : > { %v7240_v46 = vmul.f32 %v9072_v45, %v9072_v45  ;;  %10029 = vmatmul.mubr.msk.f32.vlgmr.msra.gmra.mxu0 %vm7249_vm13, %v9072_v45 }
0x207a   : > { %10046 = vmatprep.mubr.msk.f32.mxu0 %vm10989_vm14, %v10988_v27  ;;  %10043 = vmatpush3.msra.mxu0 %v7661_v56 }
0x207b   : > { %v7245_v47 = vadd.f32 %v7243_v41, %v7240_v46  ;;  %10044 = vmatprep.subr.mxu0 %v10988_v27  ;;  %v8167_v41 = vld [vmem:[#allocation13 + $0x10] sm:$0xff]  ;;  %v9086_v46 = vld [vmem:[%s12991_s22] ss:$0 sm:$0xff] }
0x207c   : > { %10045 = vmatpush3.msra.mxu0 %v7660_v58 }
0x207d   : > { %v7246_v28 = vadd.f32 1.837877, %v7245_v47  ;;  %10049 = vmatprep.subr.mxu0 %v10988_v27 }
0x207f   : > { %v7247_v48 = vmul.f32 %v7246_v28, %v7221_v31  ;;  %v7829_v31 = vld [vmem:[#allocation17 + $0x20] sm:$0xff] }
0x2081   : > { %v7248_v30 = vmul.f32 0.5, %v7247_v48 }
0x2083   : > { %v7250_v5 = vsel %vm7249_vm13, %v7248_v30, 0.0 }
0x2084   : > { %7251 = vadd.xlane.f32.xlu0 %v7250_v5 }
0x209f   : > { %v7334_v32 = vpop.f32.mrf.mxu1 }
0x20a1   : > { %v10010_v9 = vpop.f32.mrf.mxu1 }
0x20a2   : > { %v7489_v11 = vpop.f32.mrf.mxu0 }
0x20a3   : > { %v7413_v49 = vpop.f32.mrf.mxu1 }
0x20a4   : > { %v7490_v50 = vadd.f32 %v7489_v11, %v7413_v49  ;;  %v10020_v51 = vpop.f32.mrf.mxu0  ;;  %v9092_v49 = vld [vmem:[%s12991_s22 + $0x1] ss:$0 sm:$0xff] }
0x20a5   : > { %v10015_v52 = vpop.f32.mrf.mxu1 }
0x210d   : > { %v7252_v63 = vpop.xlane.xlu0 %7251 }
0x210e   : > { %v7253_v0 = vrot.slane %v7252_v63, 4 }
0x2110   : > { %v7254_v1 = vadd.f32 %v7253_v0, %v7252_v63 }
0x2112   : > { %v7255_v2 = vrot.slane %v7254_v1, 2 }
0x2114   : > { %v7256_v3 = vadd.f32 %v7255_v2, %v7254_v1 }
0x2116   : > { %v7257_v26 = vrot.slane %v7256_v3, 1 }
0x2118   : > { %v7258_v15 = vadd.f32 %v7257_v26, %v7256_v3 }
0x211a   : > { %10119 = vpush %v7258_v15 }
0x212b   : > { %v7566_v17 = vpop.f32.mrf.mxu1 }
0x212c   : > { %v7570_v19 = vadd.f32 %v7566_v17, %v7490_v50 }
0x212d   : > { %v10025_v18 = vpop.f32.mrf.mxu1 }
0x2133   : > { %v7735_v38 = vpop.f32.mrf.mxu1 }
0x2135   : > { %v10041_v39 = vpop.f32.mrf.mxu1 }
0x2139   : > { %v7645_v10 = vpop.f32.mrf.mxu0 }
0x213a   : > { %v7649_v12 = vadd.f32 %v7645_v10, %v7570_v19 }
0x213b   : > { %v10030_v8 = vpop.f32.mrf.mxu0 }
0x213c   : > { %v7657_v14 = vadd.f32 %v9083_v4, %v7649_v12  ;;  %v8161_v4 = vpop.permute.xlu1 %8160 }
0x213e   : > { %v7658_v24 = vmax.f32 %v7657_v14, 0.0 }
0x2140   : > { %v7659_v16 = vmul.f32 %v7658_v24, %v7334_v32  ;;  %v8252_v24 = vld [vmem:[%s12990_s9 + $0x10] sm:$0xff] }
0x2142   : > { %10047 = vmatmul.mubr.msk.f32.vlgmr.msra.gmra.mxu0 %vm7739_vm15, %v7659_v16  ;;  %10065 = vmatmul.mubr.msk.f32.vlgmr.msra.gmra.mxu1 %vm7739_vm15, %v7659_v16 }
0x2143   : > { %10050 = vmatpush3.msra.mxu0 %v7832_v20  ;;  %10068 = vmatpush3.msra.mxu1 %v9094_v21  ;;  %v9101_v20 = vld [vmem:[#allocation14] ss:$0 sm:$0xff] }
0x2144   : > { %10051 = vmatprep.subr.mxu0 %v10988_v27  ;;  %10069 = vmatprep.subr.mxu1 %v10988_v27 }
0x2145   : > { %10052 = vmatpush3.msra.mxu0 %v7831_v22  ;;  %10070 = vmatpush3.msra.mxu1 %v9093_v23 }
0x2146   : > { %10053 = vmatprep.subr.mxu0 %v10988_v27  ;;  %10071 = vmatprep.mubr.msk.f32.mxu1 %vm10989_vm14, %v10988_v27 }
0x2147   : > { %10054 = vmatpush3.msra.mxu0 %v7830_v29  ;;  %10072 = vmatmul.mubr.msk.f32.vlgmr.msra.gmra.mxu1 %vm7739_vm15, %v7659_v16  ;;  %v8251_v16 = vld [vmem:[%s12990_s9 + $0x8] sm:$0xff] }
0x2148   : > { %10055 = vmatprep.subr.mxu0 %v10988_v27  ;;  %10057 = vmatprep.mubr.msk.f32.mxu0 %vm10989_vm14, %v10988_v27 }
0x2149   : > { %10056 = vmatpush3.msra.mxu0 %v7829_v31  ;;  %10085 = vmatprep.subr.mxu1 %v10988_v27  ;;  %v9103_v31 = vld [vmem:[#allocation16] ss:$0 sm:$0xff] }
0x214a   : > { %10058 = vmatmul.mubr.msk.f32.vlgmr.msra.gmra.mxu0 %vm2790_vm1, %v12349_v25  ;;  %10074 = vmatprep.subr.mxu0 %v10988_v27 }
0x214b   : > { %10075 = vmatpush3.msra.mxu0 %v8071_v33  ;;  %10082 = vmatprep.mubr.msk.f32.mxu0 %vm10989_vm14, %v10988_v27 }
0x214c   : > { %10076 = vmatprep.subr.mxu0 %v10988_v27  ;;  %10093 = vmatprep.mubr.msk.f32.mxu1 %vm10989_vm14, %v10988_v27 }
0x214d   : > { %10077 = vmatpush3.msra.mxu0 %v8070_v35  ;;  %10086 = vmatpush3.msra.mxu1 %v8168_v40 }
0x214e   : > { %10078 = vmatprep.subr.mxu0 %v10988_v27  ;;  %10087 = vmatprep.subr.mxu1 %v10988_v27 }
0x214f   : > { %10079 = vmatpush3.msra.mxu0 %v8069_v36  ;;  %10088 = vmatpush3.msra.mxu1 %v8167_v41 }
0x2150   : > { %10080 = vmatprep.subr.mxu0 %v10988_v27  ;;  %10089 = vmatprep.subr.mxu1 %v10988_v27 }
0x2151   : > { %10081 = vmatpush3.msra.mxu0 %v8068_v37  ;;  %10090 = vmatpush3.msra.mxu1 %v8166_v42 }
0x2152   : > { %10083 = vmatmul.mubr.msk.f32.vlgmr.msra.gmra.mxu0 %vm2790_vm1, %v12349_v25  ;;  %10096 = vmatprep.subr.mxu0 %v10988_v27 }
0x2153   : > { %10104 = vmatprep.mubr.msk.f32.mxu0 %vm10989_vm14, %v10988_v27  ;;  %10091 = vmatprep.subr.mxu1 %v10988_v27 }
0x2154   : > { %10092 = vmatpush3.msra.mxu1 %v8165_v43  ;;  %10097 = vmatpush3.msra.mxu0 %v8253_v44 }
0x2155   : > { %10098 = vmatprep.subr.mxu0 %v10988_v27 }
0x2156   : > { %10099 = vmatpush3.msra.mxu0 %v8252_v24 }
0x2157   : > { %10100 = vmatprep.subr.mxu0 %v10988_v27 }
0x2158   : > { %10101 = vmatpush3.msra.mxu0 %v8251_v16 }
0x2159   : > { %10102 = vmatprep.subr.mxu0 %v10988_v27 }
0x2202   : > { %v7809_v45 = vpop.f32.mrf.mxu0  ;;  %v7969_v47 = vpop.f32.mrf.mxu1 }
0x2203   : > { %v7810_v28 = vadd.f32 %v7809_v45, %v7735_v38 }
0x2204   : > { %v10048_v48 = vpop.f32.mrf.mxu0  ;;  %v10066_v30 = vpop.f32.mrf.mxu1 }
0x2205   : > { %v7820_v5 = vadd.f32 %v9086_v46, %v7810_v28 }
0x2207   : > { %v7821_v32 = vmul.f32 0.5, %v7820_v5  ;;  %v8063_v9 = vpop.f32.mrf.mxu1 }
0x2208   : > { %v8064_v63 = vadd.f32 %v9096_v61, %v8063_v9 }
0x2209   : > { %10447 = vtanh.f32 %v7821_v32  ;;  %v10073_v11 = vpop.f32.mrf.mxu1 }
0x220a   : > { %v7899_v13 = vpop.f32.mrf.mxu0 }
0x220b   : > { %v7970_v50 = vadd.f32 %v7969_v47, %v7899_v13 }
0x220c   : > { %v10059_v51 = vpop.f32.mrf.mxu0 }
0x220d   : > { %v7981_v52 = vadd.f32 %v9092_v49, %v7970_v50 }
0x220f   : > { %v7982_v53 = vmul.f32 0.5, %v7981_v52 }
0x2211   : > { %10449 = vtanh.f32 %v7982_v53 }
0x2212   : > { %v8146_v54 = vpop.f32.mrf.mxu0 }
0x2213   : > { %v8147_v60 = vadd.f32 %v9099_v55, %v8146_v54 }
0x2214   : > { %v10084_v56 = vpop.f32.mrf.mxu0 }
0x2216   : > { %v10448_v57 = vpop.eup %10447 }
0x2217   : > { %v7823_v58 = vadd.f32 1.0, %v10448_v57 }
0x2219   : > { %v7824_v62 = vmul.f32 0.5, %v7823_v58  ;;  %v8378_v58 = vstv %s12364_s4 }
0x221a   : > { %vm8379_vm3 = vcmp.eq.s32.totalorder %v11455_v7, %v8378_v58 }
0x221b   : > { %v8150_v0 = vmul.f32 %v8147_v60, %v7824_v62  ;;  %vm8380_vm4 = vmand %vm8377_vm0, %vm8379_vm3  ;;  %v8388_v62 = vld [vmem:[%s11436_s26] sm:$0xff] }
0x221d   : > { %v8151_v1 = vadd.f32 %v8150_v0, %v8064_v63  ;;  %v9108_v63 = vsel %vm8385_vm7, 1.0, %v10988_v27 }
0x221e   : > { %v10450_v2 = vpop.eup %10449 }
0x221f   : > { %10451 = vtanh.f32 %v8151_v1  ;;  %v7984_v3 = vadd.f32 1.0, %v10450_v2 }
0x2221   : > { %v7985_v26 = vmul.f32 0.5, %v7984_v3 }
0x2223   : > { %v8153_v15 = vsub.f32 1.0, %v7985_v26  ;;  %v8155_v19 = vmul.f32 %v7985_v26, %v12349_v25 }
0x222c   : > { %v10452_v17 = vpop.eup %10451 }
0x222d   : > { %v8154_v18 = vmul.f32 %v10452_v17, %v8153_v15 }
0x222f   : > { %v8156_v10 = vadd.f32 %v8155_v19, %v8154_v18 }
0x2231   : > { %v8157_v12 = vsub.f32 %v8156_v10, %v12349_v25 }
0x2233   : > { %v8163_v8 = vmul.f32 %v8161_v4, %v8157_v12 }
0x2235   : > { %v8164_v14 = vadd.f32 %v8163_v8, %v12349_v25  ;;  %v8250_v25 = vld [vmem:[%s12990_s9] sm:$0xff] }
0x2236   : > { %10103 = vmatpush3.msra.mxu0 %v8250_v25 }
0x2237   : > { %8375 = vst.msk [vmem:[%s11428_s5] sm:$0xff] %vm2790_vm1, %v8164_v14  ;;  %10094 = vmatmul.mubr.msk.f32.vlgmr.msra.gmra.mxu1 %vm2790_vm1, %v8164_v14 }
0x22f7   : > { %v8245_v21 = vpop.f32.mrf.mxu1 }
0x22f8   : > { %v8246_v22 = vadd.f32 %v9101_v20, %v8245_v21 }
0x22f9   : > { %v10095_v23 = vpop.f32.mrf.mxu1 }
0x22fa   : > { %v8249_v29 = vmax.f32 %v8246_v22, 0.0 }
0x22fc   : > { %10105 = vmatmul.mubr.msk.f32.vlgmr.msra.gmra.mxu0 %vm2790_vm1, %v8249_v29 }
0x23bc   : > { %v8330_v33 = vpop.f32.mrf.mxu0 }
0x23bd   : > { %v8331_v35 = vadd.f32 %v9103_v31, %v8330_v33 }
0x23be   : > { %v10106_v36 = vpop.f32.mrf.mxu0 }
0x23bf   : > { %v8334_v37 = vmul.f32 1.442695, %v8331_v35 }
0x23c1   : > { %10453 = vpow2.f32 %v8334_v37 }
0x23ce   : > { %v10454_v38 = vpop.eup %10453 }
0x23cf   : > { %8376 = vst.msk [vmem:[%s11431_s24] sm:$0xff] %vm2793_vm2, %v10454_v38  ;;  %v8347_v39 = vsub.f32 %v10454_v38, %v12497_v34  ;;  %v9105_v41 = vclamps-f32 %v10454_v38, 10.0 }
0x23d1   : > { %v8348_v40 = vmul.f32 %v8347_v39, %v8347_v39  ;;  %v8338_v42 = vmul.f32 0.5, %v9105_v41 }
0x23d3   : > { %8350 = vrot.lane.b32.xlu1 %v8348_v40, %s10991_s20  ;;  %v8339_v43 = vmul.f32 1.442695, %v8338_v42 }
0x23d5   : > { %10455 = vpow2.f32 %v8339_v43 }
0x23e2   : > { %v10456_v44 = vpop.eup %10455 }
0x23e3   : > { %v8341_v45 = vmax.f32 %v10456_v44, 1e-06 }
0x23e5   : > { %v8342_v46 = vmin.f32 %v8341_v45, 1000000.0 }
0x23e7   : > { %10457 = vlog2.f32 %v8342_v46  ;;  %v8346_v48 = vmul.f32 %v8342_v46, %v8342_v46 }
0x23f4   : > { %v10458_v47 = vpop.eup %10457 }
0x23f5   : > { %v8344_v28 = vmul.f32 0.6931472, %v10458_v47 }
0x23f7   : > { %v8345_v32 = vsub.f32 -4.6051702, %v8344_v28 }
0x2445   : > { %v8351_v30 = vpop.permute.xlu1 %8350 }
0x2446   : > { %v8353_v5 = vadd.f32 %v8351_v30, %v8346_v48 }
0x2448   : > { %v8354_v9 = vmul.f32 5000.0, %v8353_v5 }
0x244a   : > { %v8355_v34 = vadd.f32 %v8354_v9, %v8345_v32 }
0x244c   : > { %v9106_v11 = vadd.f32 -0.5, %v8355_v34 }
0x244e   : > { %v8360_v13 = vmul.f32 %v9106_v11, %v12559_v59  ;;  %v9107_v59 = vsel %vm8380_vm4, 1.0, %v10988_v27 }
0x2450   : > { %8362 = vrot.lane.b32.xlu1 %v8360_v13, %s10990_s14  ;;  %s10120_s14 = spop %10119 }
0x2451   : > { %v8389_v60 = vstv %s10120_s14 }
0x2452   : > { %v8390_v61 = vmul.f32 %v9107_v59, %v8389_v60 }
0x2454   : > { %v8391_v1 = vadd.f32 %v8390_v61, %v8388_v62 }
0x24c2   : > { %v8363_v49 = vpop.permute.xlu1 %8362 }
0x24c3   : > { %v8365_v50 = vsel %vm7249_vm13, %v8363_v49, 0.0 }
0x24c4   : > { %8366 = vadd.xlane.f32.xlu1 %v8365_v50 }
0x254d   : > { %v8367_v51 = vpop.xlane.xlu1 %8366 }
0x254e   : > { %v8368_v52 = vrot.slane %v8367_v51, 4 }
0x2550   : > { %v8369_v53 = vadd.f32 %v8368_v52, %v8367_v51 }
0x2552   : > { %v8370_v54 = vrot.slane %v8369_v53, 2 }
0x2554   : > { %v8371_v55 = vadd.f32 %v8370_v54, %v8369_v53 }
0x2556   : > { %v8372_v56 = vrot.slane %v8371_v55, 1 }
0x2558   : > { %v8373_v57 = vadd.f32 %v8372_v56, %v8371_v55 }
0x255a   : > { %10121 = vpush %v8373_v57 }
0x258b   : > { %s10122_s4 = spop %10121 }
0x258c   : > { %v8392_v0 = vstv %s10122_s4 }
0x258d   : > { %v8393_v2 = vmul.f32 %v9108_v63, %v8392_v0 }
0x258f   : > { %v8394_v3 = vadd.f32 %v8393_v2, %v8391_v1 }
0x2591   : > { %8395 = vst [vmem:[%s11436_s26] sm:$0xff] %v8394_v3 }
0x2592 PF: > { %s12992_s20 = sld [smem:[#allocation38_spill]]  ;;  %v8396_v6 = vld [vmem:[%s11428_s5] sm:$0xff]  ;;  %v8399_v7 = vld [vmem:[%s11431_s24] sm:$0xff]  ;;  %s8453_s17 = sshll.u32 %s11431_s24, 4  ;;  %s8454_s17 = int_to_ptr.vmem [resolvable:$true] %s8453_s17 }
0x2593   : > { %9109 = vst.msk [vmem:[%s11433_s16 + $0x18] sm:$0xff] %vm2790_vm1, %v8396_v6  ;;  %s12993_s28 = sld [smem:[#allocation64_spill]]  ;;  %s12994_s22 = sand.u32 1, %s11186_s6  }
0x2594   : > { %9110 = vst.msk [vmem:[%s11425_s13 + $0x18] sm:$0xff] %vm2793_vm2, %v8399_v7  ;;  %s12668_s12 = scalar_lea.sflag [#allocation22], %s12994_s22  ;;  %s10713_s27 = scalar_lea.vmem %s8454_s17, 128 }
0x2595   : > { %p10714_p6 = scmp.ne.s32.totalorder %s8454_s17, %s10713_s27  ;;  %s10993_s10 = smov [#allocation21]  }
0x2596   : > { %s10717_s14 = sshll.u32 %s10993_s10, 4  ;;  %s10718_s14 = int_to_ptr.vmem [resolvable:$false] %s10717_s14 }
0x2597   : > { %p10715_p10 = pnand %p10714_p6, %p11308_p4  ;;  %s10719_s4 = scalar_lea.vmem %s10718_s14, 256 }
0x2598   : > { %s12652_s9 = sshll.u32 %s12992_s20, 7  ;;  %p10720_p13 = scmp.lt.s32.totalorder %s8454_s17, %s10718_s14 }
0x2599   : > { %s12661_s23 = scalar_lea.hbm %s12993_s28, %s12652_s9  ;;  %p10716_p11 = pneg %p10715_p10 }
0x259a   : > { %p10721_p3 = scmp.lt.s32.totalorder %s10719_s4, %s10713_s27 }
0x259c   : > { %p10722_p1 = por %p10721_p3, %p10720_p13 }
0x259e   : > { %p10723_p2 = pnand %p10722_p1, %p10716_p11 }
0x25a0   : > { %10726 = shalt.err (!%p10723_p2)
}
0x25a1   : > { %s10727_s6 = scalar_lea.hbm %s12661_s23, 128  ;;  %s10731_s21 = scalar_lea.hbm %s12993_s28, 256 }
0x25a2   : > { %p10728_p8 = scmp.ne.s32.totalorder %s12661_s23, %s10727_s6  ;;  %p10732_p9 = scmp.lt.s32.totalorder %s12661_s23, %s12993_s28 }
0x25a3   : > { %p10733_p6 = scmp.lt.s32.totalorder %s10731_s21, %s10727_s6 }
0x25a4   : > { %p10729_p12 = pnand %p10728_p8, %p11308_p4 }
0x25a5   : > { %p10734_p10 = por %p10733_p6, %p10732_p9 }
0x25a6   : > { %p10730_p0 = pneg %p10729_p12 }
0x25a8   : > { %p10735_p11 = pnand %p10734_p10, %p10730_p0 }
0x25aa   : > { %10738 = shalt.err (!%p10735_p11)
}
0x25ab   : > { %10156 = dma.vmem_to_hbm [thread:$0]  (%p11308_p4), %s8454_s17, 128, %s12661_s23, %s12668_s12  }
0x25ac   : > { %s12995_s14 = sld [smem:[#allocation63_spill]]  ;;  %s8440_s13 = sshll.u32 %s11428_s5, 4  ;;  %s8441_s13 = int_to_ptr.vmem [resolvable:$true] %s8440_s13 }
0x25ad   : > { %s9118_s6 = sshll.u32 %s12992_s20, 4  ;;  %s8403_s24 = scalar_lea.sflag [#allocation7], %s11379_s15 }
0x25ae   : > { %s10739_s21 = scalar_lea.vmem %s8441_s13, 128  ;;  %s10994_s30 = smov [#allocation20]  }
0x25af   : > { %p10740_p13 = scmp.ne.s32.totalorder %s8441_s13, %s10739_s21  ;;  %s10743_s22 = sshll.u32 %s10994_s30, 4  ;;  %s10744_s22 = int_to_ptr.vmem [resolvable:$false] %s10743_s22 }
0x25b0   : > { %s10745_s28 = scalar_lea.vmem %s10744_s22, 256  ;;  %p10746_p2 = scmp.lt.s32.totalorder %s8441_s13, %s10744_s22 }
0x25b1   : > { %p10741_p3 = pnand %p10740_p13, %p11308_p4  ;;  %p10747_p8 = scmp.lt.s32.totalorder %s10745_s28, %s10739_s21 }
0x25b2   : > { %s12691_s4 = scalar_lea.hbm %s12995_s14, %s12652_s9 }
0x25b3   : > { %p10742_p1 = pneg %p10741_p3  ;;  %p10748_p12 = por %p10747_p8, %p10746_p2 }
0x25b5   : > { %p10749_p0 = pnand %p10748_p12, %p10742_p1 }
0x25b7   : > { %10752 = shalt.err (!%p10749_p0)
}
0x25b8   : > { %s10753_s5 = scalar_lea.hbm %s12691_s4, 128  ;;  %s10757_s17 = scalar_lea.hbm %s12995_s14, 256 }
0x25b9   : > { %p10754_p9 = scmp.ne.s32.totalorder %s12691_s4, %s10753_s5  ;;  %p10758_p11 = scmp.lt.s32.totalorder %s12691_s4, %s12995_s14 }
0x25ba   : > { %p10759_p13 = scmp.lt.s32.totalorder %s10757_s17, %s10753_s5 }
0x25bb   : > { %p10755_p6 = pnand %p10754_p9, %p11308_p4 }
0x25bc   : > { %p10760_p3 = por %p10759_p13, %p10758_p11 }
0x25bd   : > { %p10756_p10 = pneg %p10755_p6 }
0x25bf   : > { %p10761_p1 = pnand %p10760_p3, %p10756_p10 }
0x25c1   : > { %10764 = shalt.err (!%p10761_p1)
}
0x25c2   : > { %10155 = dma.vmem_to_hbm [thread:$0]  (%p11308_p4), %s8441_s13, 128, %s12691_s4, %s8403_s24  }
0x25c3   : > { %s8465_s28 = sadd.s32 %s9118_s6, %s11416_s7  ;;  %s8468_s21 = sshll.u32 %s11433_s16, 4  ;;  %s12714_s21 = int_to_ptr.vmem [resolvable:$true] %s8468_s21 }
0x25c4   : > { %s9119_s30 = sshll.u32 %s8465_s28, 7  ;;  %s12996_s23 = sld [smem:[#allocation65_spill]] }
0x25c5   : > { %s10765_s17 = scalar_lea.vmem %s12714_s21, 512  ;;  %s10995_s27 = smov [#allocation23]  }
0x25c6   : > { %p10766_p2 = scmp.ne.s32.totalorder %s12714_s21, %s10765_s17  ;;  %s10769_s4 = sshll.u32 %s10995_s27, 4  ;;  %s10770_s4 = int_to_ptr.vmem [resolvable:$false] %s10769_s4 }
0x25c7   : > { %s10771_s7 = scalar_lea.vmem %s10770_s4, 1024  ;;  %p10772_p0 = scmp.lt.s32.totalorder %s12714_s21, %s10770_s4 }
0x25c8   : > { %p10767_p8 = pnand %p10766_p2, %p11337_p5  ;;  %p10773_p9 = scmp.lt.s32.totalorder %s10771_s7, %s10765_s17 }
0x25ca   : > { %s12719_s5 = scalar_lea.hbm %s12996_s23, %s9119_s30  ;;  %p10768_p12 = pneg %p10767_p8 }
0x25cb   : > { %p10774_p6 = por %p10773_p9, %p10772_p0 }
0x25cd   : > { %p10775_p10 = pnand %p10774_p6, %p10768_p12 }
0x25cf   : > { %10778 = shalt.err (!%p10775_p10)
}
0x25d0   : > { %s10779_s16 = scalar_lea.hbm %s12719_s5, 512  ;;  %s10783_s24 = scalar_lea.hbm %s12996_s23, 4096 }
0x25d1   : > { %p10780_p11 = scmp.ne.s32.totalorder %s12719_s5, %s10779_s16  ;;  %p10784_p1 = scmp.lt.s32.totalorder %s12719_s5, %s12996_s23 }
0x25d2   : > { %p10785_p2 = scmp.lt.s32.totalorder %s10783_s24, %s10779_s16 }
0x25d3   : > { %p10781_p13 = pnand %p10780_p11, %p11337_p5 }
0x25d4   : > { %p10786_p8 = por %p10785_p2, %p10784_p1 }
0x25d5   : > { %p10782_p3 = pneg %p10781_p13 }
0x25d7   : > { %p10787_p12 = pnand %p10786_p8, %p10782_p3 }
0x25d9   : > { %10790 = shalt.err (!%p10787_p12)
}
0x25da   : > { %s10996_s30 = smov 128   ;;  %s10997_s22 = smov 8  }
0x25db   : > { %10157 = dma.vmem_to_hbm [thread:$0]  (%p11337_p5), %s12714_s21, 512, %s12719_s5, %s12668_s12, %s10996_s30, %s10996_s30, %s10997_s22  }
0x25dc   : > { %s12997_s27 = sld [smem:[#allocation67_spill]]  ;;  %s8488_s7 = sshll.u32 %s11436_s26, 4  ;;  %s8489_s7 = int_to_ptr.vmem [resolvable:$true] %s8488_s7 }
0x25dd   : > { %s8427_s16 = scalar_lea.sflag [#allocation25], %s11379_s15  ;;  %s10791_s13 = scalar_lea.vmem %s8489_s7, 128 }
0x25de   : > { %p10792_p0 = scmp.ne.s32.totalorder %s8489_s7, %s10791_s13  ;;  %s10998_s6 = smov [#allocation24]  }
0x25df   : > { %s10795_s24 = sshll.u32 %s10998_s6, 4  ;;  %s10796_s24 = int_to_ptr.vmem [resolvable:$false] %s10795_s24 }
0x25e0   : > { %p10793_p9 = pnand %p10792_p0, %p11308_p4  ;;  %s10797_s10 = scalar_lea.vmem %s10796_s24, 256 }
0x25e1   : > { %p10798_p10 = scmp.lt.s32.totalorder %s8489_s7, %s10796_s24  ;;  %p10799_p11 = scmp.lt.s32.totalorder %s10797_s10, %s10791_s13 }
0x25e2   : > { %s8486_s4 = scalar_lea.hbm %s12997_s27, %s12652_s9  ;;  %p10794_p6 = pneg %p10793_p9 }
0x25e3   : > { %p10800_p13 = por %p10799_p11, %p10798_p10 }
0x25e5   : > { %p10801_p5 = pnand %p10800_p13, %p10794_p6 }
0x25e7   : > { %10804 = shalt.err (!%p10801_p5)
}
0x25e8   : > { %s10805_s11 = scalar_lea.hbm %s8486_s4, 128  ;;  %s10809_s9 = scalar_lea.hbm %s12997_s27, 256 }
0x25e9   : > { %p10806_p3 = scmp.ne.s32.totalorder %s8486_s4, %s10805_s11  ;;  %p10810_p8 = scmp.lt.s32.totalorder %s8486_s4, %s12997_s27 }
0x25ea   : > { %p10811_p12 = scmp.lt.s32.totalorder %s10809_s9, %s10805_s11 }
0x25eb   : > { %p10807_p1 = pnand %p10806_p3, %p11308_p4 }
0x25ec   : > { %p10812_p0 = por %p10811_p12, %p10810_p8 }
0x25ed   : > { %p10808_p2 = pneg %p10807_p1 }
0x25ef   : > { %p10813_p9 = pnand %p10812_p0, %p10808_p2 }
0x25f1   : > { %10816 = shalt.err (!%p10813_p9)
}
0x25f2   : > { %10158 = dma.vmem_to_hbm [thread:$0]  (%p11308_p4), %s8489_s7, 128, %s8486_s4, %s8427_s16  }
0x25f3 PF: > { %p10220_p6 = scmp.ge.s32.totalorder %s10945_s2, 2  ;;  %s8500_s5 = sand.u32 1, %s10917_s0  }
0x25f4   : > { %s8501_s30 = scalar_lea.sflag [#allocation7], %s8500_s5 }
0x25f5   : > { %p10193_p10 = pnand %p10220_p6, %p11314_p7 }
0x25f7   : > { %p12764_p11 = pneg %p10193_p10 }
0x25f9   : > { %10888 = dma.done.wait (%p12764_p11), %s8501_s30, 128  }
0x25fa   : > { %10890 = vsyncadd (%p12764_p11), %s8501_s30, 4294967168  ;;  %s12999_s19 = sadd.s32 4294967294, %s10945_s2  }
0x25fb   : > { %s8509_s22 = sand.u32 1, %s12999_s19  }
0x25fc   : > { %s8510_s20 = scalar_lea.sflag [#allocation22], %s8509_s22 }
0x25fd   : > { %10892 = dma.done.wait (%p12764_p11), %s8510_s20, 128  }
0x25fe   : > { %10894 = vsyncadd (%p12764_p11), %s8510_s20, 4294967168  ;;  %p13000_p4 = scmp.ne.s32.totalorder %s12933_s18, 0 }
0x2600   : > { %p10199_p7 = pnand %p10220_p6, %p13000_p4 }
0x2602   : > { %p10200_p13 = pneg %p10199_p7 }
0x2604   : > { %10896 = dma.done.wait (%p10200_p13), %s8510_s20, 512  }
0x2605   : > { %10898 = vsyncadd (%p10200_p13), %s8510_s20, 4294966784  ;;  %s8540_s0 = scalar_lea.sflag [#allocation25], %s8500_s5 }
0x2606   : > { %10900 = dma.done.wait (%p12764_p11), %s8540_s0, 128  }
0x2607   : > { %10902 = vsyncadd (%p12764_p11), %s8540_s0, 4294967168  ;;  %s59_s2 = sadd.s32 1, %s10945_s2   ;;  %s13001_s3 = sld [smem:[#allocation37_spill]] }
0x2608   : > { %p56_p5 = scmp.ge.s32.totalorder %s59_s2, 10   ;;  %s13002_s30 = sld [smem:[#allocation43_spill]] }
0x2609   : > { %s13003_s4 = sld [smem:[#allocation39_spill]]  ;;  %s13007_s16 = smov %s10909_s29 }
0x260a   : > { %s13004_s18 = sld [smem:[#allocation40_spill]]  ;;  %s13008_s29 = smov %s10913_s1 }
0x260b   : > { %s13005_s9 = sld [smem:[#allocation41_spill]]  ;;  %s13009_s1 = smov %s11327_s25 }
0x260c   : > { %s13006_s5 = sld [smem:[#allocation42_spill]]  ;;  %s13010_s0 = smov %s10921_s8 }
0x260d   : > { %s13011_s8 = smov %s13001_s3  ;;  %58 = sbr.rel (!%p56_p5) target bundleno = 54 (0x36), region = 357 }
0x2610   : > { %s13012_s25 = smov %s13004_s18 }
0x2612   :  { %8545 = vsyncpa [#allocation6], 1 }
0x2613   :  { %8547 = vsyncpa [#allocation6 + $0x1], 1 }
0x2614   :  { %8548 = vsyncpa [#allocation9], 1 }
0x2615   :  { %8550 = vsyncpa [#allocation9 + $0x1], 1 }
0x2616   :  { %8551 = vsyncpa [#allocation12], 1 }
0x2617   :  { %8552 = vsyncpa [#allocation15], 1 }
0x2618   :  { %8553 = vsyncpa [#allocation18], 1 }
0x2619   :  { %8554 = vsyncpa [#allocation7], 1 }
0x261a   :  { %8556 = vsyncpa [#allocation7 + $0x1], 1 }
0x261b   :  { %8557 = vsyncpa [#allocation22], 1 }
0x261c   :  { %8559 = vsyncpa [#allocation22 + $0x1], 1 }
0x261d   :  { %8560 = vsyncpa [#allocation25], 1 }
0x261e   :  { %8562 = vsyncpa [#allocation25 + $0x1], 1 }

</bundles_post_ra>
